<compile_context>
chip_gen: v7x
topology: tpu7x:2x2x1
jax: 0.10.0
libtpu: 0.0.40
codegen_flags: <defaults>
</compile_context>

<pallas_src>
import functools

import jax
import jax.numpy as jnp
import numpy as np
from jax.experimental import pallas as pl
from jax.experimental.pallas import tpu as pltpu

EPS = 1e-8
NUM_RESTYPES = 21
PSI_FRAME, CHI1_FRAME, CHI2_FRAME, CHI3_FRAME, CHI4_FRAME = 3, 4, 5, 6, 7
LANE = 128
SUB = 8  # sublanes per in-kernel strip-mine sub-tile (one f32 vreg)

# Channel counts of the packed (C, S, 128) inputs / output.
C_RBB, C_TBB, C_ALPHA, C_OUT = 9, 3, 10, 42
# Combined gathered-table channels: rot(5 frames x 9) | trn(5x3) | grp(14) | pos(14x3)
ROT_OFF, TRN_OFF, GRP_OFF, POS_OFF = 0, 45, 60, 74
C_TAB = 116


# ----------------------------- small 3x3 helpers (lists of (8, 128) arrays) --
def _compose(R1, t1, R2, t2):
    """(R1, t1) o (R2, t2) -> (R1 @ R2, R1 @ t2 + t1)."""
    R = [sum(R1[i * 3 + k] * R2[k * 3 + j] for k in range(3))
         for i in range(3) for j in range(3)]
    t = [sum(R1[i * 3 + k] * t2[k] for k in range(3)) + t1[i] for i in range(3)]
    return R, t


def _apply_torsion(R, s, c):
    """R @ Rx(theta) with Rx = [[1,0,0],[0,c,-s],[0,s,c]]: only cols 1,2 change,
    translation is unchanged (Rx acts on a zero translation)."""
    out = list(R)
    for i in range(3):
        a1, a2 = R[i * 3 + 1], R[i * 3 + 2]
        out[i * 3 + 1] = c * a1 + s * a2
        out[i * 3 + 2] = c * a2 - s * a1
    return out


# ------------------------------------------------ Pallas kernel --------------
def fullatom_kernel(rbb_ref, tbb_ref, alpha_ref, tab_ref, out_ref):
    sub_tiles = rbb_ref.shape[1] // SUB

    # Strip-mine the (C, block_rows, 128) block over 8-sublane sub-tiles so
    # every live per-residue plane is exactly one vreg; the loop (not unrolled)
    # bounds the live set per iteration.
    @pl.loop(0, sub_tiles)
    def _sub(r):
        row = pl.multiple_of(r * SUB, SUB)
        sl = pl.ds(row, SUB)

        R_bb = [rbb_ref[k, sl, :] for k in range(9)]
        t_bb = [tbb_ref[k, sl, :] for k in range(3)]

        # Normalized (sin, cos) of psi / chi1-4; rsqrt runs on the EUP slot.
        sin_cos = []
        for k in range(5):
            s = alpha_ref[2 * k + 0, sl, :]
            c = alpha_ref[2 * k + 1, sl, :]
            inv = jax.lax.rsqrt(s * s + c * c + EPS)
            sin_cos.append((s * inv, c * inv))

        def tab(ch):
            return tab_ref[ch, sl, :]

        def tab_rot(f):   # f = 0..4  <->  rigid frames PSI, CHI1..CHI4
            return [tab(ROT_OFF + f * 9 + m) for m in range(9)]

        def tab_trn(f):
            return [tab(TRN_OFF + f * 3 + m) for m in range(3)]

        # Frame chain: backbone -> psi, backbone -> chi1 -> chi2 -> chi3 -> chi4.
        R, t_psi = _compose(R_bb, t_bb, tab_rot(0), tab_trn(0))
        R_psi = _apply_torsion(R, *sin_cos[0])
        R, t_c1 = _compose(R_bb, t_bb, tab_rot(1), tab_trn(1))
        R_c1 = _apply_torsion(R, *sin_cos[1])
        R, t_c2 = _compose(R_c1, t_c1, tab_rot(2), tab_trn(2))
        R_c2 = _apply_torsion(R, *sin_cos[2])
        R, t_c3 = _compose(R_c2, t_c2, tab_rot(3), tab_trn(3))
        R_c3 = _apply_torsion(R, *sin_cos[3])
        R, t_c4 = _compose(R_c3, t_c3, tab_rot(4), tab_trn(4))
        R_c4 = _apply_torsion(R, *sin_cos[4])

        # Per-atom: select frame by rigid-group id (0..7) via a vsel chain
        # (groups 0/1/2 merged into the backbone predicate), then apply it.
        for a in range(14):
            g = tab(GRP_OFF + a)          # exact small-int group id, float32
            is_bb = g < 2.5
            lt35, lt45 = g < 3.5, g < 4.5
            lt55, lt65 = g < 5.5, g < 6.5

            def sel(v3, v4, v5, v6, v7, vbb):
                v = jnp.where(lt65, v6, v7)
                v = jnp.where(lt55, v5, v)
                v = jnp.where(lt45, v4, v)
                v = jnp.where(lt35, v3, v)
                return jnp.where(is_bb, vbb, v)

            p = [tab(POS_OFF + a * 3 + m) for m in range(3)]
            # One output row at a time keeps the peak temporaries low.
            for i in range(3):
                r0 = sel(R_psi[i * 3 + 0], R_c1[i * 3 + 0], R_c2[i * 3 + 0],
                         R_c3[i * 3 + 0], R_c4[i * 3 + 0], R_bb[i * 3 + 0])
                r1 = sel(R_psi[i * 3 + 1], R_c1[i * 3 + 1], R_c2[i * 3 + 1],
                         R_c3[i * 3 + 1], R_c4[i * 3 + 1], R_bb[i * 3 + 1])
                r2 = sel(R_psi[i * 3 + 2], R_c1[i * 3 + 2], R_c2[i * 3 + 2],
                         R_c3[i * 3 + 2], R_c4[i * 3 + 2], R_bb[i * 3 + 2])
                ti = sel(t_psi[i], t_c1[i], t_c2[i], t_c3[i], t_c4[i], t_bb[i])
                out_ref[a * 3 + i, sl, :] = r0 * p[0] + r1 * p[1] + r2 * p[2] + ti


# ------------------------------------------------ wrapper --------------------
def _round_up(x, m):
    return ((x + m - 1) // m) * m


def _choose_block_rows(tr8):
    """Pick block_rows (multiple of 8, <= 64): small padding waste, >=2 grid
    steps when there is enough work (v7x has 2 TensorCores), biggest block."""
    cands = list(range(SUB, min(64, tr8) + 1, SUB))
    s_of = lambda b: -(-tr8 // b) * b
    s_min = min(s_of(b) for b in cands)
    ok = [b for b in cands if s_of(b) <= s_min + SUB]      # <= 1 sub-tile of waste
    multi = [b for b in ok if s_of(b) // b >= 2]           # keep both v7x cores busy
    return max(multi) if multi else max(ok)


@functools.partial(jax.jit, static_argnames=("block_rows", "S"))
def _fullatom_jit(R_bb, t_bb, alpha, aa, rot_tab, trn_tab, grp_tab, pos_tab,
                  *, block_rows, S):
    N, L = aa.shape
    M = N * L
    Mp = S * LANE

    # --- restype tables -> one combined channel-major table (C_TAB, 21) ------
    rot_side = rot_tab[:, 3:8].reshape(NUM_RESTYPES, 45)   # psi, chi1..4 only
    trn_side = trn_tab[:, 3:8].reshape(NUM_RESTYPES, 15)
    grp_f = grp_tab.astype(jnp.float32)                    # (21, 14)
    pos_f = pos_tab.reshape(NUM_RESTYPES, 42)
    table_T = jnp.concatenate([rot_side, trn_side, grp_f, pos_f],
                              axis=1).T.astype(jnp.float32)   # (C_TAB, 21)

    # One-hot matmul gather: produces the per-residue tables directly in
    # channel-major layout (no XLA gather + transpose glue).  HIGHEST keeps
    # the gather exact in f32.
    aa_pad = jnp.pad(aa.reshape(-1), (0, Mp - M)).astype(jnp.int32)
    onehot = aa_pad[None, :] == jnp.arange(NUM_RESTYPES, dtype=jnp.int32)[:, None]
    gathered = jnp.dot(table_T, onehot.astype(jnp.float32),
                       precision=jax.lax.Precision.HIGHEST)   # (C_TAB, Mp)

    def to_blocks(x_cm):  # (C, M) channel-major -> (C, S, 128)
        C, m = x_cm.shape
        return jnp.pad(x_cm, ((0, 0), (0, Mp - m))).reshape(C, S, LANE)

    rbb3 = to_blocks(R_bb.reshape(M, 9).T.astype(jnp.float32))
    tbb3 = to_blocks(t_bb.reshape(M, 3).T.astype(jnp.float32))
    al3 = to_blocks(alpha.reshape(M, 10).T.astype(jnp.float32))
    tab3 = gathered.reshape(C_TAB, S, LANE)

    # Double-buffered per-step footprint + headroom (<= ~14 MB at block_rows=64).
    vmem_bytes = (2 * (C_RBB + C_TBB + C_ALPHA + C_TAB + C_OUT)
                  * block_rows * LANE * 4 + (2 << 20))
    idx = lambda i: (0, i, 0)
    out = pl.pallas_call(
        fullatom_kernel,
        out_shape=jax.ShapeDtypeStruct((C_OUT, S, LANE), jnp.float32),
        grid=(S // block_rows,),
        in_specs=[
            pl.BlockSpec((C_RBB, block_rows, LANE), idx),
            pl.BlockSpec((C_TBB, block_rows, LANE), idx),
            pl.BlockSpec((C_ALPHA, block_rows, LANE), idx),
            pl.BlockSpec((C_TAB, block_rows, LANE), idx),
        ],
        out_specs=pl.BlockSpec((C_OUT, block_rows, LANE), idx),
        compiler_params=pltpu.CompilerParams(
            dimension_semantics=("parallel",),
            vmem_limit_bytes=int(min(vmem_bytes, 48 << 20))),
    )(rbb3, tbb3, al3, tab3)

    # The module contract wants (N, L, 14, 3); the re-layout fuses under jit.
    pos14 = out.reshape(C_OUT, Mp).T[:M].reshape(N, L, 14, 3)
    return pos14


def full_atom_reconstruction(R_bb, t_bb, alpha, aa, tables):
    """Returns pos14 of shape (N, L, 14, 3), float32."""
    rot_tab, trn_tab, grp_tab, pos_tab = tables
    N, L = aa.shape
    M = N * L

    # Residues live on (sublane, lane) = (S, 128) planes.
    total_rows = _round_up(max(M, 1), LANE) // LANE
    tr8 = _round_up(total_rows, SUB)
    block_rows = _choose_block_rows(tr8)
    S = _round_up(tr8, block_rows)

    return _fullatom_jit(R_bb, t_bb, alpha, aa, rot_tab, trn_tab, grp_tab,
                         pos_tab, block_rows=block_rows, S=S)


# ------------------------------------------------ pure-JAX reference ---------
def reference(R_bb, t_bb, alpha, aa, tables):
    rot_tab, trn_tab, grp_tab, pos_tab = tables
    HI = jax.lax.Precision.HIGHEST
    norm = jnp.sqrt(jnp.sum(alpha ** 2, axis=-1, keepdims=True) + EPS)
    a_n = alpha / norm
    s, c = a_n[..., 0], a_n[..., 1]
    zero, one = jnp.zeros_like(s), jnp.ones_like(s)
    R_ang = jnp.stack([
        jnp.stack([one, zero, zero], -1),
        jnp.stack([zero, c, -s], -1),
        jnp.stack([zero, s, c], -1)], -2)  # (N, L, 5, 3, 3)

    rig_rot = rot_tab[aa]
    rig_trn = trn_tab[aa]
    grp = grp_tab[aa]
    pos = pos_tab[aa]

    def compose(R1, t1, R2, t2):
        R = jnp.einsum('...ij,...jk->...ik', R1, R2, precision=HI)
        t = jnp.einsum('...ij,...j->...i', R1, t2, precision=HI) + t1
        return R, t

    zeros = jnp.zeros_like(t_bb)
    R, t = compose(R_bb, t_bb, rig_rot[:, :, PSI_FRAME], rig_trn[:, :, PSI_FRAME])
    R_psi, t_psi = compose(R, t, R_ang[:, :, 0], zeros)
    R, t = compose(R_bb, t_bb, rig_rot[:, :, CHI1_FRAME], rig_trn[:, :, CHI1_FRAME])
    R_c1, t_c1 = compose(R, t, R_ang[:, :, 1], zeros)
    R, t = compose(R_c1, t_c1, rig_rot[:, :, CHI2_FRAME], rig_trn[:, :, CHI2_FRAME])
    R_c2, t_c2 = compose(R, t, R_ang[:, :, 2], zeros)
    R, t = compose(R_c2, t_c2, rig_rot[:, :, CHI3_FRAME], rig_trn[:, :, CHI3_FRAME])
    R_c3, t_c3 = compose(R, t, R_ang[:, :, 3], zeros)
    R, t = compose(R_c3, t_c3, rig_rot[:, :, CHI4_FRAME], rig_trn[:, :, CHI4_FRAME])
    R_c4, t_c4 = compose(R, t, R_ang[:, :, 4], zeros)

    R_all = jnp.stack([R_bb, R_bb, R_bb, R_psi, R_c1, R_c2, R_c3, R_c4], 2)
    t_all = jnp.stack([t_bb, t_bb, t_bb, t_psi, t_c1, t_c2, t_c3, t_c4], 2)

    onehot = jax.nn.one_hot(grp, 8, dtype=jnp.float32)  # (N, L, 14, 8)
    R_atom = jnp.einsum('nlag,nlgij->nlaij', onehot, R_all, precision=HI)
    t_atom = jnp.einsum('nlag,nlgi->nlai', onehot, t_all, precision=HI)
    pos14 = jnp.einsum('nlaij,nlaj->nlai', R_atom, pos, precision=HI) + t_atom
    return pos14


# ------------------------------------------------ main -----------------------
if __name__ == "__main__":
    key = jax.random.PRNGKey(0)
    k_tab_r, k_tab_t, k_tab_g, k_tab_p, k_in = jax.random.split(key, 5)

    # Deterministic synthetic restype tables (shapes per module __init__).
    rot_tab = jax.random.normal(k_tab_r, (NUM_RESTYPES, 8, 3, 3), jnp.float32)
    trn_tab = jax.random.normal(k_tab_t, (NUM_RESTYPES, 8, 3), jnp.float32)
    grp_tab = jax.random.randint(k_tab_g, (NUM_RESTYPES, 14), 0, 8, jnp.int32)
    pos_tab = jax.random.normal(k_tab_p, (NUM_RESTYPES, 14, 3), jnp.float32)
    tables = (rot_tab, trn_tab, grp_tab, pos_tab)

    def run_case(case_key, N, L):
        k_rbb, k_tbb, k_alpha, k_aa = jax.random.split(case_key, 4)
        R_bb = jax.random.normal(k_rbb, (N, L, 3, 3), jnp.float32)
        t_bb = jax.random.normal(k_tbb, (N, L, 3), jnp.float32)
        alpha = jax.random.normal(k_alpha, (N, L, 5, 2), jnp.float32)
        aa = jax.random.randint(k_aa, (N, L), 0, NUM_RESTYPES, jnp.int32)

        pos14 = jax.block_until_ready(
            full_atom_reconstruction(R_bb, t_bb, alpha, aa, tables))
        ref = reference(R_bb, t_bb, alpha, aa, tables)
        np.testing.assert_allclose(np.asarray(pos14), np.asarray(ref),
                                   rtol=1e-4, atol=1e-4)
        assert pos14.shape == (N, L, 14, 3)

    k_small, k_big = jax.random.split(k_in, 2)
    # Small case (single grid step, one sub-tile).
    run_case(k_small, N=2, L=8)
    # Moderate case exercising grid=2 and the 8-sublane strip-mine loop.
    run_case(k_big, N=2, L=1200)

    print("KERNEL_OK")
</pallas_src>

<mosaic_0001>
module attributes {stable_mosaic.version = 11 : i64} {
  func.func @fullatom_kernel(%arg0: i32, %arg1: memref<9x8x128xf32, #tpu.memory_space<vmem>>, %arg2: memref<3x8x128xf32, #tpu.memory_space<vmem>>, %arg3: memref<10x8x128xf32, #tpu.memory_space<vmem>>, %arg4: memref<116x8x128xf32, #tpu.memory_space<vmem>>, %arg5: memref<42x8x128xf32, #tpu.memory_space<vmem>>) attributes {dimension_semantics = [#tpu.dimension_semantics<parallel>], iteration_bounds = array<i64: 1>, scalar_prefetch = 0 : i64, scratch_operands = 0 : i64, tpu.core_type = #tpu.core_type<tc>, window_params = [{transform_indices = @transform_0, window_bounds = array<i64: 9, 8, 128>}, {transform_indices = @transform_1, window_bounds = array<i64: 3, 8, 128>}, {transform_indices = @transform_2, window_bounds = array<i64: 10, 8, 128>}, {transform_indices = @transform_3, window_bounds = array<i64: 116, 8, 128>}, {transform_indices = @transform_4, window_bounds = array<i64: 42, 8, 128>}]} {
    %c0_i32 = arith.constant 0 : i32
    %c1_i32 = arith.constant 1 : i32
    %0 = arith.muli %c0_i32, %c1_i32 : i32
    %c0_i32_0 = arith.constant 0 : i32
    %1 = arith.addi %c0_i32_0, %0 : i32
    %c8_i32 = arith.constant 8 : i32
    %2 = arith.muli %1, %c8_i32 : i32
    %3 = tpu.assume_multiple %2, 8 : i32
    %c0 = arith.constant 0 : index
    %4 = arith.index_cast %3 : i32 to index
    %c0_1 = arith.constant 0 : index
    %5 = vector.load %arg1[%c0, %4, %c0_1] : memref<9x8x128xf32, #tpu.memory_space<vmem>>, vector<1x8x128xf32>
    %6 = vector.shape_cast %5 : vector<1x8x128xf32> to vector<8x128xf32>
    %c1 = arith.constant 1 : index
    %7 = arith.index_cast %3 : i32 to index
    %c0_2 = arith.constant 0 : index
    %8 = vector.load %arg1[%c1, %7, %c0_2] : memref<9x8x128xf32, #tpu.memory_space<vmem>>, vector<1x8x128xf32>
    %9 = vector.shape_cast %8 : vector<1x8x128xf32> to vector<8x128xf32>
    %c2 = arith.constant 2 : index
    %10 = arith.index_cast %3 : i32 to index
    %c0_3 = arith.constant 0 : index
    %11 = vector.load %arg1[%c2, %10, %c0_3] : memref<9x8x128xf32, #tpu.memory_space<vmem>>, vector<1x8x128xf32>
    %12 = vector.shape_cast %11 : vector<1x8x128xf32> to vector<8x128xf32>
    %c3 = arith.constant 3 : index
    %13 = arith.index_cast %3 : i32 to index
    %c0_4 = arith.constant 0 : index
    %14 = vector.load %arg1[%c3, %13, %c0_4] : memref<9x8x128xf32, #tpu.memory_space<vmem>>, vector<1x8x128xf32>
    %15 = vector.shape_cast %14 : vector<1x8x128xf32> to vector<8x128xf32>
    %c4 = arith.constant 4 : index
    %16 = arith.index_cast %3 : i32 to index
    %c0_5 = arith.constant 0 : index
    %17 = vector.load %arg1[%c4, %16, %c0_5] : memref<9x8x128xf32, #tpu.memory_space<vmem>>, vector<1x8x128xf32>
    %18 = vector.shape_cast %17 : vector<1x8x128xf32> to vector<8x128xf32>
    %c5 = arith.constant 5 : index
    %19 = arith.index_cast %3 : i32 to index
    %c0_6 = arith.constant 0 : index
    %20 = vector.load %arg1[%c5, %19, %c0_6] : memref<9x8x128xf32, #tpu.memory_space<vmem>>, vector<1x8x128xf32>
    %21 = vector.shape_cast %20 : vector<1x8x128xf32> to vector<8x128xf32>
    %c6 = arith.constant 6 : index
    %22 = arith.index_cast %3 : i32 to index
    %c0_7 = arith.constant 0 : index
    %23 = vector.load %arg1[%c6, %22, %c0_7] : memref<9x8x128xf32, #tpu.memory_space<vmem>>, vector<1x8x128xf32>
    %24 = vector.shape_cast %23 : vector<1x8x128xf32> to vector<8x128xf32>
    %c7 = arith.constant 7 : index
    %25 = arith.index_cast %3 : i32 to index
    %c0_8 = arith.constant 0 : index
    %26 = vector.load %arg1[%c7, %25, %c0_8] : memref<9x8x128xf32, #tpu.memory_space<vmem>>, vector<1x8x128xf32>
    %27 = vector.shape_cast %26 : vector<1x8x128xf32> to vector<8x128xf32>
    %c8 = arith.constant 8 : index
    %28 = arith.index_cast %3 : i32 to index
    %c0_9 = arith.constant 0 : index
    %29 = vector.load %arg1[%c8, %28, %c0_9] : memref<9x8x128xf32, #tpu.memory_space<vmem>>, vector<1x8x128xf32>
    %30 = vector.shape_cast %29 : vector<1x8x128xf32> to vector<8x128xf32>
    %c0_10 = arith.constant 0 : index
    %31 = arith.index_cast %3 : i32 to index
    %c0_11 = arith.constant 0 : index
    %32 = vector.load %arg2[%c0_10, %31, %c0_11] : memref<3x8x128xf32, #tpu.memory_space<vmem>>, vector<1x8x128xf32>
    %33 = vector.shape_cast %32 : vector<1x8x128xf32> to vector<8x128xf32>
    %c1_12 = arith.constant 1 : index
    %34 = arith.index_cast %3 : i32 to index
    %c0_13 = arith.constant 0 : index
    %35 = vector.load %arg2[%c1_12, %34, %c0_13] : memref<3x8x128xf32, #tpu.memory_space<vmem>>, vector<1x8x128xf32>
    %36 = vector.shape_cast %35 : vector<1x8x128xf32> to vector<8x128xf32>
    %c2_14 = arith.constant 2 : index
    %37 = arith.index_cast %3 : i32 to index
    %c0_15 = arith.constant 0 : index
    %38 = vector.load %arg2[%c2_14, %37, %c0_15] : memref<3x8x128xf32, #tpu.memory_space<vmem>>, vector<1x8x128xf32>
    %39 = vector.shape_cast %38 : vector<1x8x128xf32> to vector<8x128xf32>
    %c0_16 = arith.constant 0 : index
    %40 = arith.index_cast %3 : i32 to index
    %c0_17 = arith.constant 0 : index
    %41 = vector.load %arg3[%c0_16, %40, %c0_17] : memref<10x8x128xf32, #tpu.memory_space<vmem>>, vector<1x8x128xf32>
    %42 = vector.shape_cast %41 : vector<1x8x128xf32> to vector<8x128xf32>
    %c1_18 = arith.constant 1 : index
    %43 = arith.index_cast %3 : i32 to index
    %c0_19 = arith.constant 0 : index
    %44 = vector.load %arg3[%c1_18, %43, %c0_19] : memref<10x8x128xf32, #tpu.memory_space<vmem>>, vector<1x8x128xf32>
    %45 = vector.shape_cast %44 : vector<1x8x128xf32> to vector<8x128xf32>
    %46 = arith.mulf %42, %42 : vector<8x128xf32>
    %47 = arith.mulf %45, %45 : vector<8x128xf32>
    %48 = arith.addf %46, %47 : vector<8x128xf32>
    %cst = arith.constant 9.99999993E-9 : f32
    %49 = vector.broadcast %cst : f32 to vector<8x128xf32>
    %50 = arith.addf %48, %49 : vector<8x128xf32>
    %51 = math.rsqrt %50 : vector<8x128xf32>
    %52 = arith.mulf %42, %51 : vector<8x128xf32>
    %53 = arith.mulf %45, %51 : vector<8x128xf32>
    %c2_20 = arith.constant 2 : index
    %54 = arith.index_cast %3 : i32 to index
    %c0_21 = arith.constant 0 : index
    %55 = vector.load %arg3[%c2_20, %54, %c0_21] : memref<10x8x128xf32, #tpu.memory_space<vmem>>, vector<1x8x128xf32>
    %56 = vector.shape_cast %55 : vector<1x8x128xf32> to vector<8x128xf32>
    %c3_22 = arith.constant 3 : index
    %57 = arith.index_cast %3 : i32 to index
    %c0_23 = arith.constant 0 : index
    %58 = vector.load %arg3[%c3_22, %57, %c0_23] : memref<10x8x128xf32, #tpu.memory_space<vmem>>, vector<1x8x128xf32>
    %59 = vector.shape_cast %58 : vector<1x8x128xf32> to vector<8x128xf32>
    %60 = arith.mulf %56, %56 : vector<8x128xf32>
    %61 = arith.mulf %59, %59 : vector<8x128xf32>
    %62 = arith.addf %60, %61 : vector<8x128xf32>
    %cst_24 = arith.constant 9.99999993E-9 : f32
    %63 = vector.broadcast %cst_24 : f32 to vector<8x128xf32>
    %64 = arith.addf %62, %63 : vector<8x128xf32>
    %65 = math.rsqrt %64 : vector<8x128xf32>
    %66 = arith.mulf %56, %65 : vector<8x128xf32>
    %67 = arith.mulf %59, %65 : vector<8x128xf32>
    %c4_25 = arith.constant 4 : index
    %68 = arith.index_cast %3 : i32 to index
    %c0_26 = arith.constant 0 : index
    %69 = vector.load %arg3[%c4_25, %68, %c0_26] : memref<10x8x128xf32, #tpu.memory_space<vmem>>, vector<1x8x128xf32>
    %70 = vector.shape_cast %69 : vector<1x8x128xf32> to vector<8x128xf32>
    %c5_27 = arith.constant 5 : index
    %71 = arith.index_cast %3 : i32 to index
    %c0_28 = arith.constant 0 : index
    %72 = vector.load %arg3[%c5_27, %71, %c0_28] : memref<10x8x128xf32, #tpu.memory_space<vmem>>, vector<1x8x128xf32>
    %73 = vector.shape_cast %72 : vector<1x8x128xf32> to vector<8x128xf32>
    %74 = arith.mulf %70, %70 : vector<8x128xf32>
    %75 = arith.mulf %73, %73 : vector<8x128xf32>
    %76 = arith.addf %74, %75 : vector<8x128xf32>
    %cst_29 = arith.constant 9.99999993E-9 : f32
    %77 = vector.broadcast %cst_29 : f32 to vector<8x128xf32>
    %78 = arith.addf %76, %77 : vector<8x128xf32>
    %79 = math.rsqrt %78 : vector<8x128xf32>
    %80 = arith.mulf %70, %79 : vector<8x128xf32>
    %81 = arith.mulf %73, %79 : vector<8x128xf32>
    %c6_30 = arith.constant 6 : index
    %82 = arith.index_cast %3 : i32 to index
    %c0_31 = arith.constant 0 : index
    %83 = vector.load %arg3[%c6_30, %82, %c0_31] : memref<10x8x128xf32, #tpu.memory_space<vmem>>, vector<1x8x128xf32>
    %84 = vector.shape_cast %83 : vector<1x8x128xf32> to vector<8x128xf32>
    %c7_32 = arith.constant 7 : index
    %85 = arith.index_cast %3 : i32 to index
    %c0_33 = arith.constant 0 : index
    %86 = vector.load %arg3[%c7_32, %85, %c0_33] : memref<10x8x128xf32, #tpu.memory_space<vmem>>, vector<1x8x128xf32>
    %87 = vector.shape_cast %86 : vector<1x8x128xf32> to vector<8x128xf32>
    %88 = arith.mulf %84, %84 : vector<8x128xf32>
    %89 = arith.mulf %87, %87 : vector<8x128xf32>
    %90 = arith.addf %88, %89 : vector<8x128xf32>
    %cst_34 = arith.constant 9.99999993E-9 : f32
    %91 = vector.broadcast %cst_34 : f32 to vector<8x128xf32>
    %92 = arith.addf %90, %91 : vector<8x128xf32>
    %93 = math.rsqrt %92 : vector<8x128xf32>
    %94 = arith.mulf %84, %93 : vector<8x128xf32>
    %95 = arith.mulf %87, %93 : vector<8x128xf32>
    %c8_35 = arith.constant 8 : index
    %96 = arith.index_cast %3 : i32 to index
    %c0_36 = arith.constant 0 : index
    %97 = vector.load %arg3[%c8_35, %96, %c0_36] : memref<10x8x128xf32, #tpu.memory_space<vmem>>, vector<1x8x128xf32>
    %98 = vector.shape_cast %97 : vector<1x8x128xf32> to vector<8x128xf32>
    %c9 = arith.constant 9 : index
    %99 = arith.index_cast %3 : i32 to index
    %c0_37 = arith.constant 0 : index
    %100 = vector.load %arg3[%c9, %99, %c0_37] : memref<10x8x128xf32, #tpu.memory_space<vmem>>, vector<1x8x128xf32>
    %101 = vector.shape_cast %100 : vector<1x8x128xf32> to vector<8x128xf32>
    %102 = arith.mulf %98, %98 : vector<8x128xf32>
    %103 = arith.mulf %101, %101 : vector<8x128xf32>
    %104 = arith.addf %102, %103 : vector<8x128xf32>
    %cst_38 = arith.constant 9.99999993E-9 : f32
    %105 = vector.broadcast %cst_38 : f32 to vector<8x128xf32>
    %106 = arith.addf %104, %105 : vector<8x128xf32>
    %107 = math.rsqrt %106 : vector<8x128xf32>
    %108 = arith.mulf %98, %107 : vector<8x128xf32>
    %109 = arith.mulf %101, %107 : vector<8x128xf32>
    %c0_39 = arith.constant 0 : index
    %110 = arith.index_cast %3 : i32 to index
    %c0_40 = arith.constant 0 : index
    %111 = vector.load %arg4[%c0_39, %110, %c0_40] : memref<116x8x128xf32, #tpu.memory_space<vmem>>, vector<1x8x128xf32>
    %112 = vector.shape_cast %111 : vector<1x8x128xf32> to vector<8x128xf32>
    %c1_41 = arith.constant 1 : index
    %113 = arith.index_cast %3 : i32 to index
    %c0_42 = arith.constant 0 : index
    %114 = vector.load %arg4[%c1_41, %113, %c0_42] : memref<116x8x128xf32, #tpu.memory_space<vmem>>, vector<1x8x128xf32>
    %115 = vector.shape_cast %114 : vector<1x8x128xf32> to vector<8x128xf32>
    %c2_43 = arith.constant 2 : index
    %116 = arith.index_cast %3 : i32 to index
    %c0_44 = arith.constant 0 : index
    %117 = vector.load %arg4[%c2_43, %116, %c0_44] : memref<116x8x128xf32, #tpu.memory_space<vmem>>, vector<1x8x128xf32>
    %118 = vector.shape_cast %117 : vector<1x8x128xf32> to vector<8x128xf32>
    %c3_45 = arith.constant 3 : index
    %119 = arith.index_cast %3 : i32 to index
    %c0_46 = arith.constant 0 : index
    %120 = vector.load %arg4[%c3_45, %119, %c0_46] : memref<116x8x128xf32, #tpu.memory_space<vmem>>, vector<1x8x128xf32>
    %121 = vector.shape_cast %120 : vector<1x8x128xf32> to vector<8x128xf32>
    %c4_47 = arith.constant 4 : index
    %122 = arith.index_cast %3 : i32 to index
    %c0_48 = arith.constant 0 : index
    %123 = vector.load %arg4[%c4_47, %122, %c0_48] : memref<116x8x128xf32, #tpu.memory_space<vmem>>, vector<1x8x128xf32>
    %124 = vector.shape_cast %123 : vector<1x8x128xf32> to vector<8x128xf32>
    %c5_49 = arith.constant 5 : index
    %125 = arith.index_cast %3 : i32 to index
    %c0_50 = arith.constant 0 : index
    %126 = vector.load %arg4[%c5_49, %125, %c0_50] : memref<116x8x128xf32, #tpu.memory_space<vmem>>, vector<1x8x128xf32>
    %127 = vector.shape_cast %126 : vector<1x8x128xf32> to vector<8x128xf32>
    %c6_51 = arith.constant 6 : index
    %128 = arith.index_cast %3 : i32 to index
    %c0_52 = arith.constant 0 : index
    %129 = vector.load %arg4[%c6_51, %128, %c0_52] : memref<116x8x128xf32, #tpu.memory_space<vmem>>, vector<1x8x128xf32>
    %130 = vector.shape_cast %129 : vector<1x8x128xf32> to vector<8x128xf32>
    %c7_53 = arith.constant 7 : index
    %131 = arith.index_cast %3 : i32 to index
    %c0_54 = arith.constant 0 : index
    %132 = vector.load %arg4[%c7_53, %131, %c0_54] : memref<116x8x128xf32, #tpu.memory_space<vmem>>, vector<1x8x128xf32>
    %133 = vector.shape_cast %132 : vector<1x8x128xf32> to vector<8x128xf32>
    %c8_55 = arith.constant 8 : index
    %134 = arith.index_cast %3 : i32 to index
    %c0_56 = arith.constant 0 : index
    %135 = vector.load %arg4[%c8_55, %134, %c0_56] : memref<116x8x128xf32, #tpu.memory_space<vmem>>, vector<1x8x128xf32>
    %136 = vector.shape_cast %135 : vector<1x8x128xf32> to vector<8x128xf32>
    %c45 = arith.constant 45 : index
    %137 = arith.index_cast %3 : i32 to index
    %c0_57 = arith.constant 0 : index
    %138 = vector.load %arg4[%c45, %137, %c0_57] : memref<116x8x128xf32, #tpu.memory_space<vmem>>, vector<1x8x128xf32>
    %139 = vector.shape_cast %138 : vector<1x8x128xf32> to vector<8x128xf32>
    %c46 = arith.constant 46 : index
    %140 = arith.index_cast %3 : i32 to index
    %c0_58 = arith.constant 0 : index
    %141 = vector.load %arg4[%c46, %140, %c0_58] : memref<116x8x128xf32, #tpu.memory_space<vmem>>, vector<1x8x128xf32>
    %142 = vector.shape_cast %141 : vector<1x8x128xf32> to vector<8x128xf32>
    %c47 = arith.constant 47 : index
    %143 = arith.index_cast %3 : i32 to index
    %c0_59 = arith.constant 0 : index
    %144 = vector.load %arg4[%c47, %143, %c0_59] : memref<116x8x128xf32, #tpu.memory_space<vmem>>, vector<1x8x128xf32>
    %145 = vector.shape_cast %144 : vector<1x8x128xf32> to vector<8x128xf32>
    %146 = arith.mulf %6, %112 : vector<8x128xf32>
    %cst_60 = arith.constant 0.000000e+00 : f32
    %147 = vector.broadcast %cst_60 : f32 to vector<8x128xf32>
    %148 = arith.addf %147, %146 : vector<8x128xf32>
    %149 = arith.mulf %9, %121 : vector<8x128xf32>
    %150 = arith.addf %148, %149 : vector<8x128xf32>
    %151 = arith.mulf %12, %130 : vector<8x128xf32>
    %152 = arith.addf %150, %151 : vector<8x128xf32>
    %153 = arith.mulf %6, %115 : vector<8x128xf32>
    %cst_61 = arith.constant 0.000000e+00 : f32
    %154 = vector.broadcast %cst_61 : f32 to vector<8x128xf32>
    %155 = arith.addf %154, %153 : vector<8x128xf32>
    %156 = arith.mulf %9, %124 : vector<8x128xf32>
    %157 = arith.addf %155, %156 : vector<8x128xf32>
    %158 = arith.mulf %12, %133 : vector<8x128xf32>
    %159 = arith.addf %157, %158 : vector<8x128xf32>
    %160 = arith.mulf %6, %118 : vector<8x128xf32>
    %cst_62 = arith.constant 0.000000e+00 : f32
    %161 = vector.broadcast %cst_62 : f32 to vector<8x128xf32>
    %162 = arith.addf %161, %160 : vector<8x128xf32>
    %163 = arith.mulf %9, %127 : vector<8x128xf32>
    %164 = arith.addf %162, %163 : vector<8x128xf32>
    %165 = arith.mulf %12, %136 : vector<8x128xf32>
    %166 = arith.addf %164, %165 : vector<8x128xf32>
    %167 = arith.mulf %15, %112 : vector<8x128xf32>
    %cst_63 = arith.constant 0.000000e+00 : f32
    %168 = vector.broadcast %cst_63 : f32 to vector<8x128xf32>
    %169 = arith.addf %168, %167 : vector<8x128xf32>
    %170 = arith.mulf %18, %121 : vector<8x128xf32>
    %171 = arith.addf %169, %170 : vector<8x128xf32>
    %172 = arith.mulf %21, %130 : vector<8x128xf32>
    %173 = arith.addf %171, %172 : vector<8x128xf32>
    %174 = arith.mulf %15, %115 : vector<8x128xf32>
    %cst_64 = arith.constant 0.000000e+00 : f32
    %175 = vector.broadcast %cst_64 : f32 to vector<8x128xf32>
    %176 = arith.addf %175, %174 : vector<8x128xf32>
    %177 = arith.mulf %18, %124 : vector<8x128xf32>
    %178 = arith.addf %176, %177 : vector<8x128xf32>
    %179 = arith.mulf %21, %133 : vector<8x128xf32>
    %180 = arith.addf %178, %179 : vector<8x128xf32>
    %181 = arith.mulf %15, %118 : vector<8x128xf32>
    %cst_65 = arith.constant 0.000000e+00 : f32
    %182 = vector.broadcast %cst_65 : f32 to vector<8x128xf32>
    %183 = arith.addf %182, %181 : vector<8x128xf32>
    %184 = arith.mulf %18, %127 : vector<8x128xf32>
    %185 = arith.addf %183, %184 : vector<8x128xf32>
    %186 = arith.mulf %21, %136 : vector<8x128xf32>
    %187 = arith.addf %185, %186 : vector<8x128xf32>
    %188 = arith.mulf %24, %112 : vector<8x128xf32>
    %cst_66 = arith.constant 0.000000e+00 : f32
    %189 = vector.broadcast %cst_66 : f32 to vector<8x128xf32>
    %190 = arith.addf %189, %188 : vector<8x128xf32>
    %191 = arith.mulf %27, %121 : vector<8x128xf32>
    %192 = arith.addf %190, %191 : vector<8x128xf32>
    %193 = arith.mulf %30, %130 : vector<8x128xf32>
    %194 = arith.addf %192, %193 : vector<8x128xf32>
    %195 = arith.mulf %24, %115 : vector<8x128xf32>
    %cst_67 = arith.constant 0.000000e+00 : f32
    %196 = vector.broadcast %cst_67 : f32 to vector<8x128xf32>
    %197 = arith.addf %196, %195 : vector<8x128xf32>
    %198 = arith.mulf %27, %124 : vector<8x128xf32>
    %199 = arith.addf %197, %198 : vector<8x128xf32>
    %200 = arith.mulf %30, %133 : vector<8x128xf32>
    %201 = arith.addf %199, %200 : vector<8x128xf32>
    %202 = arith.mulf %24, %118 : vector<8x128xf32>
    %cst_68 = arith.constant 0.000000e+00 : f32
    %203 = vector.broadcast %cst_68 : f32 to vector<8x128xf32>
    %204 = arith.addf %203, %202 : vector<8x128xf32>
    %205 = arith.mulf %27, %127 : vector<8x128xf32>
    %206 = arith.addf %204, %205 : vector<8x128xf32>
    %207 = arith.mulf %30, %136 : vector<8x128xf32>
    %208 = arith.addf %206, %207 : vector<8x128xf32>
    %209 = arith.mulf %6, %139 : vector<8x128xf32>
    %cst_69 = arith.constant 0.000000e+00 : f32
    %210 = vector.broadcast %cst_69 : f32 to vector<8x128xf32>
    %211 = arith.addf %210, %209 : vector<8x128xf32>
    %212 = arith.mulf %9, %142 : vector<8x128xf32>
    %213 = arith.addf %211, %212 : vector<8x128xf32>
    %214 = arith.mulf %12, %145 : vector<8x128xf32>
    %215 = arith.addf %213, %214 : vector<8x128xf32>
    %216 = arith.addf %215, %33 : vector<8x128xf32>
    %217 = arith.mulf %15, %139 : vector<8x128xf32>
    %cst_70 = arith.constant 0.000000e+00 : f32
    %218 = vector.broadcast %cst_70 : f32 to vector<8x128xf32>
    %219 = arith.addf %218, %217 : vector<8x128xf32>
    %220 = arith.mulf %18, %142 : vector<8x128xf32>
    %221 = arith.addf %219, %220 : vector<8x128xf32>
    %222 = arith.mulf %21, %145 : vector<8x128xf32>
    %223 = arith.addf %221, %222 : vector<8x128xf32>
    %224 = arith.addf %223, %36 : vector<8x128xf32>
    %225 = arith.mulf %24, %139 : vector<8x128xf32>
    %cst_71 = arith.constant 0.000000e+00 : f32
    %226 = vector.broadcast %cst_71 : f32 to vector<8x128xf32>
    %227 = arith.addf %226, %225 : vector<8x128xf32>
    %228 = arith.mulf %27, %142 : vector<8x128xf32>
    %229 = arith.addf %227, %228 : vector<8x128xf32>
    %230 = arith.mulf %30, %145 : vector<8x128xf32>
    %231 = arith.addf %229, %230 : vector<8x128xf32>
    %232 = arith.addf %231, %39 : vector<8x128xf32>
    %233 = arith.mulf %53, %159 : vector<8x128xf32>
    %234 = arith.mulf %52, %166 : vector<8x128xf32>
    %235 = arith.addf %233, %234 : vector<8x128xf32>
    %236 = arith.mulf %53, %166 : vector<8x128xf32>
    %237 = arith.mulf %52, %159 : vector<8x128xf32>
    %238 = arith.subf %236, %237 : vector<8x128xf32>
    %239 = arith.mulf %53, %180 : vector<8x128xf32>
    %240 = arith.mulf %52, %187 : vector<8x128xf32>
    %241 = arith.addf %239, %240 : vector<8x128xf32>
    %242 = arith.mulf %53, %187 : vector<8x128xf32>
    %243 = arith.mulf %52, %180 : vector<8x128xf32>
    %244 = arith.subf %242, %243 : vector<8x128xf32>
    %245 = arith.mulf %53, %201 : vector<8x128xf32>
    %246 = arith.mulf %52, %208 : vector<8x128xf32>
    %247 = arith.addf %245, %246 : vector<8x128xf32>
    %248 = arith.mulf %53, %208 : vector<8x128xf32>
    %249 = arith.mulf %52, %201 : vector<8x128xf32>
    %250 = arith.subf %248, %249 : vector<8x128xf32>
    %c9_72 = arith.constant 9 : index
    %251 = arith.index_cast %3 : i32 to index
    %c0_73 = arith.constant 0 : index
    %252 = vector.load %arg4[%c9_72, %251, %c0_73] : memref<116x8x128xf32, #tpu.memory_space<vmem>>, vector<1x8x128xf32>
    %253 = vector.shape_cast %252 : vector<1x8x128xf32> to vector<8x128xf32>
    %c10 = arith.constant 10 : index
    %254 = arith.index_cast %3 : i32 to index
    %c0_74 = arith.constant 0 : index
    %255 = vector.load %arg4[%c10, %254, %c0_74] : memref<116x8x128xf32, #tpu.memory_space<vmem>>, vector<1x8x128xf32>
    %256 = vector.shape_cast %255 : vector<1x8x128xf32> to vector<8x128xf32>
    %c11 = arith.constant 11 : index
    %257 = arith.index_cast %3 : i32 to index
    %c0_75 = arith.constant 0 : index
    %258 = vector.load %arg4[%c11, %257, %c0_75] : memref<116x8x128xf32, #tpu.memory_space<vmem>>, vector<1x8x128xf32>
    %259 = vector.shape_cast %258 : vector<1x8x128xf32> to vector<8x128xf32>
    %c12 = arith.constant 12 : index
    %260 = arith.index_cast %3 : i32 to index
    %c0_76 = arith.constant 0 : index
    %261 = vector.load %arg4[%c12, %260, %c0_76] : memref<116x8x128xf32, #tpu.memory_space<vmem>>, vector<1x8x128xf32>
    %262 = vector.shape_cast %261 : vector<1x8x128xf32> to vector<8x128xf32>
    %c13 = arith.constant 13 : index
    %263 = arith.index_cast %3 : i32 to index
    %c0_77 = arith.constant 0 : index
    %264 = vector.load %arg4[%c13, %263, %c0_77] : memref<116x8x128xf32, #tpu.memory_space<vmem>>, vector<1x8x128xf32>
    %265 = vector.shape_cast %264 : vector<1x8x128xf32> to vector<8x128xf32>
    %c14 = arith.constant 14 : index
    %266 = arith.index_cast %3 : i32 to index
    %c0_78 = arith.constant 0 : index
    %267 = vector.load %arg4[%c14, %266, %c0_78] : memref<116x8x128xf32, #tpu.memory_space<vmem>>, vector<1x8x128xf32>
    %268 = vector.shape_cast %267 : vector<1x8x128xf32> to vector<8x128xf32>
    %c15 = arith.constant 15 : index
    %269 = arith.index_cast %3 : i32 to index
    %c0_79 = arith.constant 0 : index
    %270 = vector.load %arg4[%c15, %269, %c0_79] : memref<116x8x128xf32, #tpu.memory_space<vmem>>, vector<1x8x128xf32>
    %271 = vector.shape_cast %270 : vector<1x8x128xf32> to vector<8x128xf32>
    %c16 = arith.constant 16 : index
    %272 = arith.index_cast %3 : i32 to index
    %c0_80 = arith.constant 0 : index
    %273 = vector.load %arg4[%c16, %272, %c0_80] : memref<116x8x128xf32, #tpu.memory_space<vmem>>, vector<1x8x128xf32>
    %274 = vector.shape_cast %273 : vector<1x8x128xf32> to vector<8x128xf32>
    %c17 = arith.constant 17 : index
    %275 = arith.index_cast %3 : i32 to index
    %c0_81 = arith.constant 0 : index
    %276 = vector.load %arg4[%c17, %275, %c0_81] : memref<116x8x128xf32, #tpu.memory_space<vmem>>, vector<1x8x128xf32>
    %277 = vector.shape_cast %276 : vector<1x8x128xf32> to vector<8x128xf32>
    %c48 = arith.constant 48 : index
    %278 = arith.index_cast %3 : i32 to index
    %c0_82 = arith.constant 0 : index
    %279 = vector.load %arg4[%c48, %278, %c0_82] : memref<116x8x128xf32, #tpu.memory_space<vmem>>, vector<1x8x128xf32>
    %280 = vector.shape_cast %279 : vector<1x8x128xf32> to vector<8x128xf32>
    %c49 = arith.constant 49 : index
    %281 = arith.index_cast %3 : i32 to index
    %c0_83 = arith.constant 0 : index
    %282 = vector.load %arg4[%c49, %281, %c0_83] : memref<116x8x128xf32, #tpu.memory_space<vmem>>, vector<1x8x128xf32>
    %283 = vector.shape_cast %282 : vector<1x8x128xf32> to vector<8x128xf32>
    %c50 = arith.constant 50 : index
    %284 = arith.index_cast %3 : i32 to index
    %c0_84 = arith.constant 0 : index
    %285 = vector.load %arg4[%c50, %284, %c0_84] : memref<116x8x128xf32, #tpu.memory_space<vmem>>, vector<1x8x128xf32>
    %286 = vector.shape_cast %285 : vector<1x8x128xf32> to vector<8x128xf32>
    %287 = arith.mulf %6, %253 : vector<8x128xf32>
    %cst_85 = arith.constant 0.000000e+00 : f32
    %288 = vector.broadcast %cst_85 : f32 to vector<8x128xf32>
    %289 = arith.addf %288, %287 : vector<8x128xf32>
    %290 = arith.mulf %9, %262 : vector<8x128xf32>
    %291 = arith.addf %289, %290 : vector<8x128xf32>
    %292 = arith.mulf %12, %271 : vector<8x128xf32>
    %293 = arith.addf %291, %292 : vector<8x128xf32>
    %294 = arith.mulf %6, %256 : vector<8x128xf32>
    %cst_86 = arith.constant 0.000000e+00 : f32
    %295 = vector.broadcast %cst_86 : f32 to vector<8x128xf32>
    %296 = arith.addf %295, %294 : vector<8x128xf32>
    %297 = arith.mulf %9, %265 : vector<8x128xf32>
    %298 = arith.addf %296, %297 : vector<8x128xf32>
    %299 = arith.mulf %12, %274 : vector<8x128xf32>
    %300 = arith.addf %298, %299 : vector<8x128xf32>
    %301 = arith.mulf %6, %259 : vector<8x128xf32>
    %cst_87 = arith.constant 0.000000e+00 : f32
    %302 = vector.broadcast %cst_87 : f32 to vector<8x128xf32>
    %303 = arith.addf %302, %301 : vector<8x128xf32>
    %304 = arith.mulf %9, %268 : vector<8x128xf32>
    %305 = arith.addf %303, %304 : vector<8x128xf32>
    %306 = arith.mulf %12, %277 : vector<8x128xf32>
    %307 = arith.addf %305, %306 : vector<8x128xf32>
    %308 = arith.mulf %15, %253 : vector<8x128xf32>
    %cst_88 = arith.constant 0.000000e+00 : f32
    %309 = vector.broadcast %cst_88 : f32 to vector<8x128xf32>
    %310 = arith.addf %309, %308 : vector<8x128xf32>
    %311 = arith.mulf %18, %262 : vector<8x128xf32>
    %312 = arith.addf %310, %311 : vector<8x128xf32>
    %313 = arith.mulf %21, %271 : vector<8x128xf32>
    %314 = arith.addf %312, %313 : vector<8x128xf32>
    %315 = arith.mulf %15, %256 : vector<8x128xf32>
    %cst_89 = arith.constant 0.000000e+00 : f32
    %316 = vector.broadcast %cst_89 : f32 to vector<8x128xf32>
    %317 = arith.addf %316, %315 : vector<8x128xf32>
    %318 = arith.mulf %18, %265 : vector<8x128xf32>
    %319 = arith.addf %317, %318 : vector<8x128xf32>
    %320 = arith.mulf %21, %274 : vector<8x128xf32>
    %321 = arith.addf %319, %320 : vector<8x128xf32>
    %322 = arith.mulf %15, %259 : vector<8x128xf32>
    %cst_90 = arith.constant 0.000000e+00 : f32
    %323 = vector.broadcast %cst_90 : f32 to vector<8x128xf32>
    %324 = arith.addf %323, %322 : vector<8x128xf32>
    %325 = arith.mulf %18, %268 : vector<8x128xf32>
    %326 = arith.addf %324, %325 : vector<8x128xf32>
    %327 = arith.mulf %21, %277 : vector<8x128xf32>
    %328 = arith.addf %326, %327 : vector<8x128xf32>
    %329 = arith.mulf %24, %253 : vector<8x128xf32>
    %cst_91 = arith.constant 0.000000e+00 : f32
    %330 = vector.broadcast %cst_91 : f32 to vector<8x128xf32>
    %331 = arith.addf %330, %329 : vector<8x128xf32>
    %332 = arith.mulf %27, %262 : vector<8x128xf32>
    %333 = arith.addf %331, %332 : vector<8x128xf32>
    %334 = arith.mulf %30, %271 : vector<8x128xf32>
    %335 = arith.addf %333, %334 : vector<8x128xf32>
    %336 = arith.mulf %24, %256 : vector<8x128xf32>
    %cst_92 = arith.constant 0.000000e+00 : f32
    %337 = vector.broadcast %cst_92 : f32 to vector<8x128xf32>
    %338 = arith.addf %337, %336 : vector<8x128xf32>
    %339 = arith.mulf %27, %265 : vector<8x128xf32>
    %340 = arith.addf %338, %339 : vector<8x128xf32>
    %341 = arith.mulf %30, %274 : vector<8x128xf32>
    %342 = arith.addf %340, %341 : vector<8x128xf32>
    %343 = arith.mulf %24, %259 : vector<8x128xf32>
    %cst_93 = arith.constant 0.000000e+00 : f32
    %344 = vector.broadcast %cst_93 : f32 to vector<8x128xf32>
    %345 = arith.addf %344, %343 : vector<8x128xf32>
    %346 = arith.mulf %27, %268 : vector<8x128xf32>
    %347 = arith.addf %345, %346 : vector<8x128xf32>
    %348 = arith.mulf %30, %277 : vector<8x128xf32>
    %349 = arith.addf %347, %348 : vector<8x128xf32>
    %350 = arith.mulf %6, %280 : vector<8x128xf32>
    %cst_94 = arith.constant 0.000000e+00 : f32
    %351 = vector.broadcast %cst_94 : f32 to vector<8x128xf32>
    %352 = arith.addf %351, %350 : vector<8x128xf32>
    %353 = arith.mulf %9, %283 : vector<8x128xf32>
    %354 = arith.addf %352, %353 : vector<8x128xf32>
    %355 = arith.mulf %12, %286 : vector<8x128xf32>
    %356 = arith.addf %354, %355 : vector<8x128xf32>
    %357 = arith.addf %356, %33 : vector<8x128xf32>
    %358 = arith.mulf %15, %280 : vector<8x128xf32>
    %cst_95 = arith.constant 0.000000e+00 : f32
    %359 = vector.broadcast %cst_95 : f32 to vector<8x128xf32>
    %360 = arith.addf %359, %358 : vector<8x128xf32>
    %361 = arith.mulf %18, %283 : vector<8x128xf32>
    %362 = arith.addf %360, %361 : vector<8x128xf32>
    %363 = arith.mulf %21, %286 : vector<8x128xf32>
    %364 = arith.addf %362, %363 : vector<8x128xf32>
    %365 = arith.addf %364, %36 : vector<8x128xf32>
    %366 = arith.mulf %24, %280 : vector<8x128xf32>
    %cst_96 = arith.constant 0.000000e+00 : f32
    %367 = vector.broadcast %cst_96 : f32 to vector<8x128xf32>
    %368 = arith.addf %367, %366 : vector<8x128xf32>
    %369 = arith.mulf %27, %283 : vector<8x128xf32>
    %370 = arith.addf %368, %369 : vector<8x128xf32>
    %371 = arith.mulf %30, %286 : vector<8x128xf32>
    %372 = arith.addf %370, %371 : vector<8x128xf32>
    %373 = arith.addf %372, %39 : vector<8x128xf32>
    %374 = arith.mulf %67, %300 : vector<8x128xf32>
    %375 = arith.mulf %66, %307 : vector<8x128xf32>
    %376 = arith.addf %374, %375 : vector<8x128xf32>
    %377 = arith.mulf %67, %307 : vector<8x128xf32>
    %378 = arith.mulf %66, %300 : vector<8x128xf32>
    %379 = arith.subf %377, %378 : vector<8x128xf32>
    %380 = arith.mulf %67, %321 : vector<8x128xf32>
    %381 = arith.mulf %66, %328 : vector<8x128xf32>
    %382 = arith.addf %380, %381 : vector<8x128xf32>
    %383 = arith.mulf %67, %328 : vector<8x128xf32>
    %384 = arith.mulf %66, %321 : vector<8x128xf32>
    %385 = arith.subf %383, %384 : vector<8x128xf32>
    %386 = arith.mulf %67, %342 : vector<8x128xf32>
    %387 = arith.mulf %66, %349 : vector<8x128xf32>
    %388 = arith.addf %386, %387 : vector<8x128xf32>
    %389 = arith.mulf %67, %349 : vector<8x128xf32>
    %390 = arith.mulf %66, %342 : vector<8x128xf32>
    %391 = arith.subf %389, %390 : vector<8x128xf32>
    %c18 = arith.constant 18 : index
    %392 = arith.index_cast %3 : i32 to index
    %c0_97 = arith.constant 0 : index
    %393 = vector.load %arg4[%c18, %392, %c0_97] : memref<116x8x128xf32, #tpu.memory_space<vmem>>, vector<1x8x128xf32>
    %394 = vector.shape_cast %393 : vector<1x8x128xf32> to vector<8x128xf32>
    %c19 = arith.constant 19 : index
    %395 = arith.index_cast %3 : i32 to index
    %c0_98 = arith.constant 0 : index
    %396 = vector.load %arg4[%c19, %395, %c0_98] : memref<116x8x128xf32, #tpu.memory_space<vmem>>, vector<1x8x128xf32>
    %397 = vector.shape_cast %396 : vector<1x8x128xf32> to vector<8x128xf32>
    %c20 = arith.constant 20 : index
    %398 = arith.index_cast %3 : i32 to index
    %c0_99 = arith.constant 0 : index
    %399 = vector.load %arg4[%c20, %398, %c0_99] : memref<116x8x128xf32, #tpu.memory_space<vmem>>, vector<1x8x128xf32>
    %400 = vector.shape_cast %399 : vector<1x8x128xf32> to vector<8x128xf32>
    %c21 = arith.constant 21 : index
    %401 = arith.index_cast %3 : i32 to index
    %c0_100 = arith.constant 0 : index
    %402 = vector.load %arg4[%c21, %401, %c0_100] : memref<116x8x128xf32, #tpu.memory_space<vmem>>, vector<1x8x128xf32>
    %403 = vector.shape_cast %402 : vector<1x8x128xf32> to vector<8x128xf32>
    %c22 = arith.constant 22 : index
    %404 = arith.index_cast %3 : i32 to index
    %c0_101 = arith.constant 0 : index
    %405 = vector.load %arg4[%c22, %404, %c0_101] : memref<116x8x128xf32, #tpu.memory_space<vmem>>, vector<1x8x128xf32>
    %406 = vector.shape_cast %405 : vector<1x8x128xf32> to vector<8x128xf32>
    %c23 = arith.constant 23 : index
    %407 = arith.index_cast %3 : i32 to index
    %c0_102 = arith.constant 0 : index
    %408 = vector.load %arg4[%c23, %407, %c0_102] : memref<116x8x128xf32, #tpu.memory_space<vmem>>, vector<1x8x128xf32>
    %409 = vector.shape_cast %408 : vector<1x8x128xf32> to vector<8x128xf32>
    %c24 = arith.constant 24 : index
    %410 = arith.index_cast %3 : i32 to index
    %c0_103 = arith.constant 0 : index
    %411 = vector.load %arg4[%c24, %410, %c0_103] : memref<116x8x128xf32, #tpu.memory_space<vmem>>, vector<1x8x128xf32>
    %412 = vector.shape_cast %411 : vector<1x8x128xf32> to vector<8x128xf32>
    %c25 = arith.constant 25 : index
    %413 = arith.index_cast %3 : i32 to index
    %c0_104 = arith.constant 0 : index
    %414 = vector.load %arg4[%c25, %413, %c0_104] : memref<116x8x128xf32, #tpu.memory_space<vmem>>, vector<1x8x128xf32>
    %415 = vector.shape_cast %414 : vector<1x8x128xf32> to vector<8x128xf32>
    %c26 = arith.constant 26 : index
    %416 = arith.index_cast %3 : i32 to index
    %c0_105 = arith.constant 0 : index
    %417 = vector.load %arg4[%c26, %416, %c0_105] : memref<116x8x128xf32, #tpu.memory_space<vmem>>, vector<1x8x128xf32>
    %418 = vector.shape_cast %417 : vector<1x8x128xf32> to vector<8x128xf32>
    %c51 = arith.constant 51 : index
    %419 = arith.index_cast %3 : i32 to index
    %c0_106 = arith.constant 0 : index
    %420 = vector.load %arg4[%c51, %419, %c0_106] : memref<116x8x128xf32, #tpu.memory_space<vmem>>, vector<1x8x128xf32>
    %421 = vector.shape_cast %420 : vector<1x8x128xf32> to vector<8x128xf32>
    %c52 = arith.constant 52 : index
    %422 = arith.index_cast %3 : i32 to index
    %c0_107 = arith.constant 0 : index
    %423 = vector.load %arg4[%c52, %422, %c0_107] : memref<116x8x128xf32, #tpu.memory_space<vmem>>, vector<1x8x128xf32>
    %424 = vector.shape_cast %423 : vector<1x8x128xf32> to vector<8x128xf32>
    %c53 = arith.constant 53 : index
    %425 = arith.index_cast %3 : i32 to index
    %c0_108 = arith.constant 0 : index
    %426 = vector.load %arg4[%c53, %425, %c0_108] : memref<116x8x128xf32, #tpu.memory_space<vmem>>, vector<1x8x128xf32>
    %427 = vector.shape_cast %426 : vector<1x8x128xf32> to vector<8x128xf32>
    %428 = arith.mulf %293, %394 : vector<8x128xf32>
    %cst_109 = arith.constant 0.000000e+00 : f32
    %429 = vector.broadcast %cst_109 : f32 to vector<8x128xf32>
    %430 = arith.addf %429, %428 : vector<8x128xf32>
    %431 = arith.mulf %376, %403 : vector<8x128xf32>
    %432 = arith.addf %430, %431 : vector<8x128xf32>
    %433 = arith.mulf %379, %412 : vector<8x128xf32>
    %434 = arith.addf %432, %433 : vector<8x128xf32>
    %435 = arith.mulf %293, %397 : vector<8x128xf32>
    %cst_110 = arith.constant 0.000000e+00 : f32
    %436 = vector.broadcast %cst_110 : f32 to vector<8x128xf32>
    %437 = arith.addf %436, %435 : vector<8x128xf32>
    %438 = arith.mulf %376, %406 : vector<8x128xf32>
    %439 = arith.addf %437, %438 : vector<8x128xf32>
    %440 = arith.mulf %379, %415 : vector<8x128xf32>
    %441 = arith.addf %439, %440 : vector<8x128xf32>
    %442 = arith.mulf %293, %400 : vector<8x128xf32>
    %cst_111 = arith.constant 0.000000e+00 : f32
    %443 = vector.broadcast %cst_111 : f32 to vector<8x128xf32>
    %444 = arith.addf %443, %442 : vector<8x128xf32>
    %445 = arith.mulf %376, %409 : vector<8x128xf32>
    %446 = arith.addf %444, %445 : vector<8x128xf32>
    %447 = arith.mulf %379, %418 : vector<8x128xf32>
    %448 = arith.addf %446, %447 : vector<8x128xf32>
    %449 = arith.mulf %314, %394 : vector<8x128xf32>
    %cst_112 = arith.constant 0.000000e+00 : f32
    %450 = vector.broadcast %cst_112 : f32 to vector<8x128xf32>
    %451 = arith.addf %450, %449 : vector<8x128xf32>
    %452 = arith.mulf %382, %403 : vector<8x128xf32>
    %453 = arith.addf %451, %452 : vector<8x128xf32>
    %454 = arith.mulf %385, %412 : vector<8x128xf32>
    %455 = arith.addf %453, %454 : vector<8x128xf32>
    %456 = arith.mulf %314, %397 : vector<8x128xf32>
    %cst_113 = arith.constant 0.000000e+00 : f32
    %457 = vector.broadcast %cst_113 : f32 to vector<8x128xf32>
    %458 = arith.addf %457, %456 : vector<8x128xf32>
    %459 = arith.mulf %382, %406 : vector<8x128xf32>
    %460 = arith.addf %458, %459 : vector<8x128xf32>
    %461 = arith.mulf %385, %415 : vector<8x128xf32>
    %462 = arith.addf %460, %461 : vector<8x128xf32>
    %463 = arith.mulf %314, %400 : vector<8x128xf32>
    %cst_114 = arith.constant 0.000000e+00 : f32
    %464 = vector.broadcast %cst_114 : f32 to vector<8x128xf32>
    %465 = arith.addf %464, %463 : vector<8x128xf32>
    %466 = arith.mulf %382, %409 : vector<8x128xf32>
    %467 = arith.addf %465, %466 : vector<8x128xf32>
    %468 = arith.mulf %385, %418 : vector<8x128xf32>
    %469 = arith.addf %467, %468 : vector<8x128xf32>
    %470 = arith.mulf %335, %394 : vector<8x128xf32>
    %cst_115 = arith.constant 0.000000e+00 : f32
    %471 = vector.broadcast %cst_115 : f32 to vector<8x128xf32>
    %472 = arith.addf %471, %470 : vector<8x128xf32>
    %473 = arith.mulf %388, %403 : vector<8x128xf32>
    %474 = arith.addf %472, %473 : vector<8x128xf32>
    %475 = arith.mulf %391, %412 : vector<8x128xf32>
    %476 = arith.addf %474, %475 : vector<8x128xf32>
    %477 = arith.mulf %335, %397 : vector<8x128xf32>
    %cst_116 = arith.constant 0.000000e+00 : f32
    %478 = vector.broadcast %cst_116 : f32 to vector<8x128xf32>
    %479 = arith.addf %478, %477 : vector<8x128xf32>
    %480 = arith.mulf %388, %406 : vector<8x128xf32>
    %481 = arith.addf %479, %480 : vector<8x128xf32>
    %482 = arith.mulf %391, %415 : vector<8x128xf32>
    %483 = arith.addf %481, %482 : vector<8x128xf32>
    %484 = arith.mulf %335, %400 : vector<8x128xf32>
    %cst_117 = arith.constant 0.000000e+00 : f32
    %485 = vector.broadcast %cst_117 : f32 to vector<8x128xf32>
    %486 = arith.addf %485, %484 : vector<8x128xf32>
    %487 = arith.mulf %388, %409 : vector<8x128xf32>
    %488 = arith.addf %486, %487 : vector<8x128xf32>
    %489 = arith.mulf %391, %418 : vector<8x128xf32>
    %490 = arith.addf %488, %489 : vector<8x128xf32>
    %491 = arith.mulf %293, %421 : vector<8x128xf32>
    %cst_118 = arith.constant 0.000000e+00 : f32
    %492 = vector.broadcast %cst_118 : f32 to vector<8x128xf32>
    %493 = arith.addf %492, %491 : vector<8x128xf32>
    %494 = arith.mulf %376, %424 : vector<8x128xf32>
    %495 = arith.addf %493, %494 : vector<8x128xf32>
    %496 = arith.mulf %379, %427 : vector<8x128xf32>
    %497 = arith.addf %495, %496 : vector<8x128xf32>
    %498 = arith.addf %497, %357 : vector<8x128xf32>
    %499 = arith.mulf %314, %421 : vector<8x128xf32>
    %cst_119 = arith.constant 0.000000e+00 : f32
    %500 = vector.broadcast %cst_119 : f32 to vector<8x128xf32>
    %501 = arith.addf %500, %499 : vector<8x128xf32>
    %502 = arith.mulf %382, %424 : vector<8x128xf32>
    %503 = arith.addf %501, %502 : vector<8x128xf32>
    %504 = arith.mulf %385, %427 : vector<8x128xf32>
    %505 = arith.addf %503, %504 : vector<8x128xf32>
    %506 = arith.addf %505, %365 : vector<8x128xf32>
    %507 = arith.mulf %335, %421 : vector<8x128xf32>
    %cst_120 = arith.constant 0.000000e+00 : f32
    %508 = vector.broadcast %cst_120 : f32 to vector<8x128xf32>
    %509 = arith.addf %508, %507 : vector<8x128xf32>
    %510 = arith.mulf %388, %424 : vector<8x128xf32>
    %511 = arith.addf %509, %510 : vector<8x128xf32>
    %512 = arith.mulf %391, %427 : vector<8x128xf32>
    %513 = arith.addf %511, %512 : vector<8x128xf32>
    %514 = arith.addf %513, %373 : vector<8x128xf32>
    %515 = arith.mulf %81, %441 : vector<8x128xf32>
    %516 = arith.mulf %80, %448 : vector<8x128xf32>
    %517 = arith.addf %515, %516 : vector<8x128xf32>
    %518 = arith.mulf %81, %448 : vector<8x128xf32>
    %519 = arith.mulf %80, %441 : vector<8x128xf32>
    %520 = arith.subf %518, %519 : vector<8x128xf32>
    %521 = arith.mulf %81, %462 : vector<8x128xf32>
    %522 = arith.mulf %80, %469 : vector<8x128xf32>
    %523 = arith.addf %521, %522 : vector<8x128xf32>
    %524 = arith.mulf %81, %469 : vector<8x128xf32>
    %525 = arith.mulf %80, %462 : vector<8x128xf32>
    %526 = arith.subf %524, %525 : vector<8x128xf32>
    %527 = arith.mulf %81, %483 : vector<8x128xf32>
    %528 = arith.mulf %80, %490 : vector<8x128xf32>
    %529 = arith.addf %527, %528 : vector<8x128xf32>
    %530 = arith.mulf %81, %490 : vector<8x128xf32>
    %531 = arith.mulf %80, %483 : vector<8x128xf32>
    %532 = arith.subf %530, %531 : vector<8x128xf32>
    %c27 = arith.constant 27 : index
    %533 = arith.index_cast %3 : i32 to index
    %c0_121 = arith.constant 0 : index
    %534 = vector.load %arg4[%c27, %533, %c0_121] : memref<116x8x128xf32, #tpu.memory_space<vmem>>, vector<1x8x128xf32>
    %535 = vector.shape_cast %534 : vector<1x8x128xf32> to vector<8x128xf32>
    %c28 = arith.constant 28 : index
    %536 = arith.index_cast %3 : i32 to index
    %c0_122 = arith.constant 0 : index
    %537 = vector.load %arg4[%c28, %536, %c0_122] : memref<116x8x128xf32, #tpu.memory_space<vmem>>, vector<1x8x128xf32>
    %538 = vector.shape_cast %537 : vector<1x8x128xf32> to vector<8x128xf32>
    %c29 = arith.constant 29 : index
    %539 = arith.index_cast %3 : i32 to index
    %c0_123 = arith.constant 0 : index
    %540 = vector.load %arg4[%c29, %539, %c0_123] : memref<116x8x128xf32, #tpu.memory_space<vmem>>, vector<1x8x128xf32>
    %541 = vector.shape_cast %540 : vector<1x8x128xf32> to vector<8x128xf32>
    %c30 = arith.constant 30 : index
    %542 = arith.index_cast %3 : i32 to index
    %c0_124 = arith.constant 0 : index
    %543 = vector.load %arg4[%c30, %542, %c0_124] : memref<116x8x128xf32, #tpu.memory_space<vmem>>, vector<1x8x128xf32>
    %544 = vector.shape_cast %543 : vector<1x8x128xf32> to vector<8x128xf32>
    %c31 = arith.constant 31 : index
    %545 = arith.index_cast %3 : i32 to index
    %c0_125 = arith.constant 0 : index
    %546 = vector.load %arg4[%c31, %545, %c0_125] : memref<116x8x128xf32, #tpu.memory_space<vmem>>, vector<1x8x128xf32>
    %547 = vector.shape_cast %546 : vector<1x8x128xf32> to vector<8x128xf32>
    %c32 = arith.constant 32 : index
    %548 = arith.index_cast %3 : i32 to index
    %c0_126 = arith.constant 0 : index
    %549 = vector.load %arg4[%c32, %548, %c0_126] : memref<116x8x128xf32, #tpu.memory_space<vmem>>, vector<1x8x128xf32>
    %550 = vector.shape_cast %549 : vector<1x8x128xf32> to vector<8x128xf32>
    %c33 = arith.constant 33 : index
    %551 = arith.index_cast %3 : i32 to index
    %c0_127 = arith.constant 0 : index
    %552 = vector.load %arg4[%c33, %551, %c0_127] : memref<116x8x128xf32, #tpu.memory_space<vmem>>, vector<1x8x128xf32>
    %553 = vector.shape_cast %552 : vector<1x8x128xf32> to vector<8x128xf32>
    %c34 = arith.constant 34 : index
    %554 = arith.index_cast %3 : i32 to index
    %c0_128 = arith.constant 0 : index
    %555 = vector.load %arg4[%c34, %554, %c0_128] : memref<116x8x128xf32, #tpu.memory_space<vmem>>, vector<1x8x128xf32>
    %556 = vector.shape_cast %555 : vector<1x8x128xf32> to vector<8x128xf32>
    %c35 = arith.constant 35 : index
    %557 = arith.index_cast %3 : i32 to index
    %c0_129 = arith.constant 0 : index
    %558 = vector.load %arg4[%c35, %557, %c0_129] : memref<116x8x128xf32, #tpu.memory_space<vmem>>, vector<1x8x128xf32>
    %559 = vector.shape_cast %558 : vector<1x8x128xf32> to vector<8x128xf32>
    %c54 = arith.constant 54 : index
    %560 = arith.index_cast %3 : i32 to index
    %c0_130 = arith.constant 0 : index
    %561 = vector.load %arg4[%c54, %560, %c0_130] : memref<116x8x128xf32, #tpu.memory_space<vmem>>, vector<1x8x128xf32>
    %562 = vector.shape_cast %561 : vector<1x8x128xf32> to vector<8x128xf32>
    %c55 = arith.constant 55 : index
    %563 = arith.index_cast %3 : i32 to index
    %c0_131 = arith.constant 0 : index
    %564 = vector.load %arg4[%c55, %563, %c0_131] : memref<116x8x128xf32, #tpu.memory_space<vmem>>, vector<1x8x128xf32>
    %565 = vector.shape_cast %564 : vector<1x8x128xf32> to vector<8x128xf32>
    %c56 = arith.constant 56 : index
    %566 = arith.index_cast %3 : i32 to index
    %c0_132 = arith.constant 0 : index
    %567 = vector.load %arg4[%c56, %566, %c0_132] : memref<116x8x128xf32, #tpu.memory_space<vmem>>, vector<1x8x128xf32>
    %568 = vector.shape_cast %567 : vector<1x8x128xf32> to vector<8x128xf32>
    %569 = arith.mulf %434, %535 : vector<8x128xf32>
    %cst_133 = arith.constant 0.000000e+00 : f32
    %570 = vector.broadcast %cst_133 : f32 to vector<8x128xf32>
    %571 = arith.addf %570, %569 : vector<8x128xf32>
    %572 = arith.mulf %517, %544 : vector<8x128xf32>
    %573 = arith.addf %571, %572 : vector<8x128xf32>
    %574 = arith.mulf %520, %553 : vector<8x128xf32>
    %575 = arith.addf %573, %574 : vector<8x128xf32>
    %576 = arith.mulf %434, %538 : vector<8x128xf32>
    %cst_134 = arith.constant 0.000000e+00 : f32
    %577 = vector.broadcast %cst_134 : f32 to vector<8x128xf32>
    %578 = arith.addf %577, %576 : vector<8x128xf32>
    %579 = arith.mulf %517, %547 : vector<8x128xf32>
    %580 = arith.addf %578, %579 : vector<8x128xf32>
    %581 = arith.mulf %520, %556 : vector<8x128xf32>
    %582 = arith.addf %580, %581 : vector<8x128xf32>
    %583 = arith.mulf %434, %541 : vector<8x128xf32>
    %cst_135 = arith.constant 0.000000e+00 : f32
    %584 = vector.broadcast %cst_135 : f32 to vector<8x128xf32>
    %585 = arith.addf %584, %583 : vector<8x128xf32>
    %586 = arith.mulf %517, %550 : vector<8x128xf32>
    %587 = arith.addf %585, %586 : vector<8x128xf32>
    %588 = arith.mulf %520, %559 : vector<8x128xf32>
    %589 = arith.addf %587, %588 : vector<8x128xf32>
    %590 = arith.mulf %455, %535 : vector<8x128xf32>
    %cst_136 = arith.constant 0.000000e+00 : f32
    %591 = vector.broadcast %cst_136 : f32 to vector<8x128xf32>
    %592 = arith.addf %591, %590 : vector<8x128xf32>
    %593 = arith.mulf %523, %544 : vector<8x128xf32>
    %594 = arith.addf %592, %593 : vector<8x128xf32>
    %595 = arith.mulf %526, %553 : vector<8x128xf32>
    %596 = arith.addf %594, %595 : vector<8x128xf32>
    %597 = arith.mulf %455, %538 : vector<8x128xf32>
    %cst_137 = arith.constant 0.000000e+00 : f32
    %598 = vector.broadcast %cst_137 : f32 to vector<8x128xf32>
    %599 = arith.addf %598, %597 : vector<8x128xf32>
    %600 = arith.mulf %523, %547 : vector<8x128xf32>
    %601 = arith.addf %599, %600 : vector<8x128xf32>
    %602 = arith.mulf %526, %556 : vector<8x128xf32>
    %603 = arith.addf %601, %602 : vector<8x128xf32>
    %604 = arith.mulf %455, %541 : vector<8x128xf32>
    %cst_138 = arith.constant 0.000000e+00 : f32
    %605 = vector.broadcast %cst_138 : f32 to vector<8x128xf32>
    %606 = arith.addf %605, %604 : vector<8x128xf32>
    %607 = arith.mulf %523, %550 : vector<8x128xf32>
    %608 = arith.addf %606, %607 : vector<8x128xf32>
    %609 = arith.mulf %526, %559 : vector<8x128xf32>
    %610 = arith.addf %608, %609 : vector<8x128xf32>
    %611 = arith.mulf %476, %535 : vector<8x128xf32>
    %cst_139 = arith.constant 0.000000e+00 : f32
    %612 = vector.broadcast %cst_139 : f32 to vector<8x128xf32>
    %613 = arith.addf %612, %611 : vector<8x128xf32>
    %614 = arith.mulf %529, %544 : vector<8x128xf32>
    %615 = arith.addf %613, %614 : vector<8x128xf32>
    %616 = arith.mulf %532, %553 : vector<8x128xf32>
    %617 = arith.addf %615, %616 : vector<8x128xf32>
    %618 = arith.mulf %476, %538 : vector<8x128xf32>
    %cst_140 = arith.constant 0.000000e+00 : f32
    %619 = vector.broadcast %cst_140 : f32 to vector<8x128xf32>
    %620 = arith.addf %619, %618 : vector<8x128xf32>
    %621 = arith.mulf %529, %547 : vector<8x128xf32>
    %622 = arith.addf %620, %621 : vector<8x128xf32>
    %623 = arith.mulf %532, %556 : vector<8x128xf32>
    %624 = arith.addf %622, %623 : vector<8x128xf32>
    %625 = arith.mulf %476, %541 : vector<8x128xf32>
    %cst_141 = arith.constant 0.000000e+00 : f32
    %626 = vector.broadcast %cst_141 : f32 to vector<8x128xf32>
    %627 = arith.addf %626, %625 : vector<8x128xf32>
    %628 = arith.mulf %529, %550 : vector<8x128xf32>
    %629 = arith.addf %627, %628 : vector<8x128xf32>
    %630 = arith.mulf %532, %559 : vector<8x128xf32>
    %631 = arith.addf %629, %630 : vector<8x128xf32>
    %632 = arith.mulf %434, %562 : vector<8x128xf32>
    %cst_142 = arith.constant 0.000000e+00 : f32
    %633 = vector.broadcast %cst_142 : f32 to vector<8x128xf32>
    %634 = arith.addf %633, %632 : vector<8x128xf32>
    %635 = arith.mulf %517, %565 : vector<8x128xf32>
    %636 = arith.addf %634, %635 : vector<8x128xf32>
    %637 = arith.mulf %520, %568 : vector<8x128xf32>
    %638 = arith.addf %636, %637 : vector<8x128xf32>
    %639 = arith.addf %638, %498 : vector<8x128xf32>
    %640 = arith.mulf %455, %562 : vector<8x128xf32>
    %cst_143 = arith.constant 0.000000e+00 : f32
    %641 = vector.broadcast %cst_143 : f32 to vector<8x128xf32>
    %642 = arith.addf %641, %640 : vector<8x128xf32>
    %643 = arith.mulf %523, %565 : vector<8x128xf32>
    %644 = arith.addf %642, %643 : vector<8x128xf32>
    %645 = arith.mulf %526, %568 : vector<8x128xf32>
    %646 = arith.addf %644, %645 : vector<8x128xf32>
    %647 = arith.addf %646, %506 : vector<8x128xf32>
    %648 = arith.mulf %476, %562 : vector<8x128xf32>
    %cst_144 = arith.constant 0.000000e+00 : f32
    %649 = vector.broadcast %cst_144 : f32 to vector<8x128xf32>
    %650 = arith.addf %649, %648 : vector<8x128xf32>
    %651 = arith.mulf %529, %565 : vector<8x128xf32>
    %652 = arith.addf %650, %651 : vector<8x128xf32>
    %653 = arith.mulf %532, %568 : vector<8x128xf32>
    %654 = arith.addf %652, %653 : vector<8x128xf32>
    %655 = arith.addf %654, %514 : vector<8x128xf32>
    %656 = arith.mulf %95, %582 : vector<8x128xf32>
    %657 = arith.mulf %94, %589 : vector<8x128xf32>
    %658 = arith.addf %656, %657 : vector<8x128xf32>
    %659 = arith.mulf %95, %589 : vector<8x128xf32>
    %660 = arith.mulf %94, %582 : vector<8x128xf32>
    %661 = arith.subf %659, %660 : vector<8x128xf32>
    %662 = arith.mulf %95, %603 : vector<8x128xf32>
    %663 = arith.mulf %94, %610 : vector<8x128xf32>
    %664 = arith.addf %662, %663 : vector<8x128xf32>
    %665 = arith.mulf %95, %610 : vector<8x128xf32>
    %666 = arith.mulf %94, %603 : vector<8x128xf32>
    %667 = arith.subf %665, %666 : vector<8x128xf32>
    %668 = arith.mulf %95, %624 : vector<8x128xf32>
    %669 = arith.mulf %94, %631 : vector<8x128xf32>
    %670 = arith.addf %668, %669 : vector<8x128xf32>
    %671 = arith.mulf %95, %631 : vector<8x128xf32>
    %672 = arith.mulf %94, %624 : vector<8x128xf32>
    %673 = arith.subf %671, %672 : vector<8x128xf32>
    %c36 = arith.constant 36 : index
    %674 = arith.index_cast %3 : i32 to index
    %c0_145 = arith.constant 0 : index
    %675 = vector.load %arg4[%c36, %674, %c0_145] : memref<116x8x128xf32, #tpu.memory_space<vmem>>, vector<1x8x128xf32>
    %676 = vector.shape_cast %675 : vector<1x8x128xf32> to vector<8x128xf32>
    %c37 = arith.constant 37 : index
    %677 = arith.index_cast %3 : i32 to index
    %c0_146 = arith.constant 0 : index
    %678 = vector.load %arg4[%c37, %677, %c0_146] : memref<116x8x128xf32, #tpu.memory_space<vmem>>, vector<1x8x128xf32>
    %679 = vector.shape_cast %678 : vector<1x8x128xf32> to vector<8x128xf32>
    %c38 = arith.constant 38 : index
    %680 = arith.index_cast %3 : i32 to index
    %c0_147 = arith.constant 0 : index
    %681 = vector.load %arg4[%c38, %680, %c0_147] : memref<116x8x128xf32, #tpu.memory_space<vmem>>, vector<1x8x128xf32>
    %682 = vector.shape_cast %681 : vector<1x8x128xf32> to vector<8x128xf32>
    %c39 = arith.constant 39 : index
    %683 = arith.index_cast %3 : i32 to index
    %c0_148 = arith.constant 0 : index
    %684 = vector.load %arg4[%c39, %683, %c0_148] : memref<116x8x128xf32, #tpu.memory_space<vmem>>, vector<1x8x128xf32>
    %685 = vector.shape_cast %684 : vector<1x8x128xf32> to vector<8x128xf32>
    %c40 = arith.constant 40 : index
    %686 = arith.index_cast %3 : i32 to index
    %c0_149 = arith.constant 0 : index
    %687 = vector.load %arg4[%c40, %686, %c0_149] : memref<116x8x128xf32, #tpu.memory_space<vmem>>, vector<1x8x128xf32>
    %688 = vector.shape_cast %687 : vector<1x8x128xf32> to vector<8x128xf32>
    %c41 = arith.constant 41 : index
    %689 = arith.index_cast %3 : i32 to index
    %c0_150 = arith.constant 0 : index
    %690 = vector.load %arg4[%c41, %689, %c0_150] : memref<116x8x128xf32, #tpu.memory_space<vmem>>, vector<1x8x128xf32>
    %691 = vector.shape_cast %690 : vector<1x8x128xf32> to vector<8x128xf32>
    %c42 = arith.constant 42 : index
    %692 = arith.index_cast %3 : i32 to index
    %c0_151 = arith.constant 0 : index
    %693 = vector.load %arg4[%c42, %692, %c0_151] : memref<116x8x128xf32, #tpu.memory_space<vmem>>, vector<1x8x128xf32>
    %694 = vector.shape_cast %693 : vector<1x8x128xf32> to vector<8x128xf32>
    %c43 = arith.constant 43 : index
    %695 = arith.index_cast %3 : i32 to index
    %c0_152 = arith.constant 0 : index
    %696 = vector.load %arg4[%c43, %695, %c0_152] : memref<116x8x128xf32, #tpu.memory_space<vmem>>, vector<1x8x128xf32>
    %697 = vector.shape_cast %696 : vector<1x8x128xf32> to vector<8x128xf32>
    %c44 = arith.constant 44 : index
    %698 = arith.index_cast %3 : i32 to index
    %c0_153 = arith.constant 0 : index
    %699 = vector.load %arg4[%c44, %698, %c0_153] : memref<116x8x128xf32, #tpu.memory_space<vmem>>, vector<1x8x128xf32>
    %700 = vector.shape_cast %699 : vector<1x8x128xf32> to vector<8x128xf32>
    %c57 = arith.constant 57 : index
    %701 = arith.index_cast %3 : i32 to index
    %c0_154 = arith.constant 0 : index
    %702 = vector.load %arg4[%c57, %701, %c0_154] : memref<116x8x128xf32, #tpu.memory_space<vmem>>, vector<1x8x128xf32>
    %703 = vector.shape_cast %702 : vector<1x8x128xf32> to vector<8x128xf32>
    %c58 = arith.constant 58 : index
    %704 = arith.index_cast %3 : i32 to index
    %c0_155 = arith.constant 0 : index
    %705 = vector.load %arg4[%c58, %704, %c0_155] : memref<116x8x128xf32, #tpu.memory_space<vmem>>, vector<1x8x128xf32>
    %706 = vector.shape_cast %705 : vector<1x8x128xf32> to vector<8x128xf32>
    %c59 = arith.constant 59 : index
    %707 = arith.index_cast %3 : i32 to index
    %c0_156 = arith.constant 0 : index
    %708 = vector.load %arg4[%c59, %707, %c0_156] : memref<116x8x128xf32, #tpu.memory_space<vmem>>, vector<1x8x128xf32>
    %709 = vector.shape_cast %708 : vector<1x8x128xf32> to vector<8x128xf32>
    %710 = arith.mulf %575, %676 : vector<8x128xf32>
    %cst_157 = arith.constant 0.000000e+00 : f32
    %711 = vector.broadcast %cst_157 : f32 to vector<8x128xf32>
    %712 = arith.addf %711, %710 : vector<8x128xf32>
    %713 = arith.mulf %658, %685 : vector<8x128xf32>
    %714 = arith.addf %712, %713 : vector<8x128xf32>
    %715 = arith.mulf %661, %694 : vector<8x128xf32>
    %716 = arith.addf %714, %715 : vector<8x128xf32>
    %717 = arith.mulf %575, %679 : vector<8x128xf32>
    %cst_158 = arith.constant 0.000000e+00 : f32
    %718 = vector.broadcast %cst_158 : f32 to vector<8x128xf32>
    %719 = arith.addf %718, %717 : vector<8x128xf32>
    %720 = arith.mulf %658, %688 : vector<8x128xf32>
    %721 = arith.addf %719, %720 : vector<8x128xf32>
    %722 = arith.mulf %661, %697 : vector<8x128xf32>
    %723 = arith.addf %721, %722 : vector<8x128xf32>
    %724 = arith.mulf %575, %682 : vector<8x128xf32>
    %cst_159 = arith.constant 0.000000e+00 : f32
    %725 = vector.broadcast %cst_159 : f32 to vector<8x128xf32>
    %726 = arith.addf %725, %724 : vector<8x128xf32>
    %727 = arith.mulf %658, %691 : vector<8x128xf32>
    %728 = arith.addf %726, %727 : vector<8x128xf32>
    %729 = arith.mulf %661, %700 : vector<8x128xf32>
    %730 = arith.addf %728, %729 : vector<8x128xf32>
    %731 = arith.mulf %596, %676 : vector<8x128xf32>
    %cst_160 = arith.constant 0.000000e+00 : f32
    %732 = vector.broadcast %cst_160 : f32 to vector<8x128xf32>
    %733 = arith.addf %732, %731 : vector<8x128xf32>
    %734 = arith.mulf %664, %685 : vector<8x128xf32>
    %735 = arith.addf %733, %734 : vector<8x128xf32>
    %736 = arith.mulf %667, %694 : vector<8x128xf32>
    %737 = arith.addf %735, %736 : vector<8x128xf32>
    %738 = arith.mulf %596, %679 : vector<8x128xf32>
    %cst_161 = arith.constant 0.000000e+00 : f32
    %739 = vector.broadcast %cst_161 : f32 to vector<8x128xf32>
    %740 = arith.addf %739, %738 : vector<8x128xf32>
    %741 = arith.mulf %664, %688 : vector<8x128xf32>
    %742 = arith.addf %740, %741 : vector<8x128xf32>
    %743 = arith.mulf %667, %697 : vector<8x128xf32>
    %744 = arith.addf %742, %743 : vector<8x128xf32>
    %745 = arith.mulf %596, %682 : vector<8x128xf32>
    %cst_162 = arith.constant 0.000000e+00 : f32
    %746 = vector.broadcast %cst_162 : f32 to vector<8x128xf32>
    %747 = arith.addf %746, %745 : vector<8x128xf32>
    %748 = arith.mulf %664, %691 : vector<8x128xf32>
    %749 = arith.addf %747, %748 : vector<8x128xf32>
    %750 = arith.mulf %667, %700 : vector<8x128xf32>
    %751 = arith.addf %749, %750 : vector<8x128xf32>
    %752 = arith.mulf %617, %676 : vector<8x128xf32>
    %cst_163 = arith.constant 0.000000e+00 : f32
    %753 = vector.broadcast %cst_163 : f32 to vector<8x128xf32>
    %754 = arith.addf %753, %752 : vector<8x128xf32>
    %755 = arith.mulf %670, %685 : vector<8x128xf32>
    %756 = arith.addf %754, %755 : vector<8x128xf32>
    %757 = arith.mulf %673, %694 : vector<8x128xf32>
    %758 = arith.addf %756, %757 : vector<8x128xf32>
    %759 = arith.mulf %617, %679 : vector<8x128xf32>
    %cst_164 = arith.constant 0.000000e+00 : f32
    %760 = vector.broadcast %cst_164 : f32 to vector<8x128xf32>
    %761 = arith.addf %760, %759 : vector<8x128xf32>
    %762 = arith.mulf %670, %688 : vector<8x128xf32>
    %763 = arith.addf %761, %762 : vector<8x128xf32>
    %764 = arith.mulf %673, %697 : vector<8x128xf32>
    %765 = arith.addf %763, %764 : vector<8x128xf32>
    %766 = arith.mulf %617, %682 : vector<8x128xf32>
    %cst_165 = arith.constant 0.000000e+00 : f32
    %767 = vector.broadcast %cst_165 : f32 to vector<8x128xf32>
    %768 = arith.addf %767, %766 : vector<8x128xf32>
    %769 = arith.mulf %670, %691 : vector<8x128xf32>
    %770 = arith.addf %768, %769 : vector<8x128xf32>
    %771 = arith.mulf %673, %700 : vector<8x128xf32>
    %772 = arith.addf %770, %771 : vector<8x128xf32>
    %773 = arith.mulf %575, %703 : vector<8x128xf32>
    %cst_166 = arith.constant 0.000000e+00 : f32
    %774 = vector.broadcast %cst_166 : f32 to vector<8x128xf32>
    %775 = arith.addf %774, %773 : vector<8x128xf32>
    %776 = arith.mulf %658, %706 : vector<8x128xf32>
    %777 = arith.addf %775, %776 : vector<8x128xf32>
    %778 = arith.mulf %661, %709 : vector<8x128xf32>
    %779 = arith.addf %777, %778 : vector<8x128xf32>
    %780 = arith.addf %779, %639 : vector<8x128xf32>
    %781 = arith.mulf %596, %703 : vector<8x128xf32>
    %cst_167 = arith.constant 0.000000e+00 : f32
    %782 = vector.broadcast %cst_167 : f32 to vector<8x128xf32>
    %783 = arith.addf %782, %781 : vector<8x128xf32>
    %784 = arith.mulf %664, %706 : vector<8x128xf32>
    %785 = arith.addf %783, %784 : vector<8x128xf32>
    %786 = arith.mulf %667, %709 : vector<8x128xf32>
    %787 = arith.addf %785, %786 : vector<8x128xf32>
    %788 = arith.addf %787, %647 : vector<8x128xf32>
    %789 = arith.mulf %617, %703 : vector<8x128xf32>
    %cst_168 = arith.constant 0.000000e+00 : f32
    %790 = vector.broadcast %cst_168 : f32 to vector<8x128xf32>
    %791 = arith.addf %790, %789 : vector<8x128xf32>
    %792 = arith.mulf %670, %706 : vector<8x128xf32>
    %793 = arith.addf %791, %792 : vector<8x128xf32>
    %794 = arith.mulf %673, %709 : vector<8x128xf32>
    %795 = arith.addf %793, %794 : vector<8x128xf32>
    %796 = arith.addf %795, %655 : vector<8x128xf32>
    %797 = arith.mulf %109, %723 : vector<8x128xf32>
    %798 = arith.mulf %108, %730 : vector<8x128xf32>
    %799 = arith.addf %797, %798 : vector<8x128xf32>
    %800 = arith.mulf %109, %730 : vector<8x128xf32>
    %801 = arith.mulf %108, %723 : vector<8x128xf32>
    %802 = arith.subf %800, %801 : vector<8x128xf32>
    %803 = arith.mulf %109, %744 : vector<8x128xf32>
    %804 = arith.mulf %108, %751 : vector<8x128xf32>
    %805 = arith.addf %803, %804 : vector<8x128xf32>
    %806 = arith.mulf %109, %751 : vector<8x128xf32>
    %807 = arith.mulf %108, %744 : vector<8x128xf32>
    %808 = arith.subf %806, %807 : vector<8x128xf32>
    %809 = arith.mulf %109, %765 : vector<8x128xf32>
    %810 = arith.mulf %108, %772 : vector<8x128xf32>
    %811 = arith.addf %809, %810 : vector<8x128xf32>
    %812 = arith.mulf %109, %772 : vector<8x128xf32>
    %813 = arith.mulf %108, %765 : vector<8x128xf32>
    %814 = arith.subf %812, %813 : vector<8x128xf32>
    %c60 = arith.constant 60 : index
    %815 = arith.index_cast %3 : i32 to index
    %c0_169 = arith.constant 0 : index
    %816 = vector.load %arg4[%c60, %815, %c0_169] : memref<116x8x128xf32, #tpu.memory_space<vmem>>, vector<1x8x128xf32>
    %817 = vector.shape_cast %816 : vector<1x8x128xf32> to vector<8x128xf32>
    %cst_170 = arith.constant 2.500000e+00 : f32
    %818 = vector.broadcast %cst_170 : f32 to vector<8x128xf32>
    %819 = arith.cmpf olt, %817, %818 : vector<8x128xf32>
    %cst_171 = arith.constant 3.500000e+00 : f32
    %820 = vector.broadcast %cst_171 : f32 to vector<8x128xf32>
    %821 = arith.cmpf olt, %817, %820 : vector<8x128xf32>
    %cst_172 = arith.constant 4.500000e+00 : f32
    %822 = vector.broadcast %cst_172 : f32 to vector<8x128xf32>
    %823 = arith.cmpf olt, %817, %822 : vector<8x128xf32>
    %cst_173 = arith.constant 5.500000e+00 : f32
    %824 = vector.broadcast %cst_173 : f32 to vector<8x128xf32>
    %825 = arith.cmpf olt, %817, %824 : vector<8x128xf32>
    %cst_174 = arith.constant 6.500000e+00 : f32
    %826 = vector.broadcast %cst_174 : f32 to vector<8x128xf32>
    %827 = arith.cmpf olt, %817, %826 : vector<8x128xf32>
    %c74 = arith.constant 74 : index
    %828 = arith.index_cast %3 : i32 to index
    %c0_175 = arith.constant 0 : index
    %829 = vector.load %arg4[%c74, %828, %c0_175] : memref<116x8x128xf32, #tpu.memory_space<vmem>>, vector<1x8x128xf32>
    %830 = vector.shape_cast %829 : vector<1x8x128xf32> to vector<8x128xf32>
    %c75 = arith.constant 75 : index
    %831 = arith.index_cast %3 : i32 to index
    %c0_176 = arith.constant 0 : index
    %832 = vector.load %arg4[%c75, %831, %c0_176] : memref<116x8x128xf32, #tpu.memory_space<vmem>>, vector<1x8x128xf32>
    %833 = vector.shape_cast %832 : vector<1x8x128xf32> to vector<8x128xf32>
    %c76 = arith.constant 76 : index
    %834 = arith.index_cast %3 : i32 to index
    %c0_177 = arith.constant 0 : index
    %835 = vector.load %arg4[%c76, %834, %c0_177] : memref<116x8x128xf32, #tpu.memory_space<vmem>>, vector<1x8x128xf32>
    %836 = vector.shape_cast %835 : vector<1x8x128xf32> to vector<8x128xf32>
    %837 = arith.select %827, %575, %716 : vector<8x128xi1>, vector<8x128xf32>
    %838 = arith.select %825, %434, %837 : vector<8x128xi1>, vector<8x128xf32>
    %839 = arith.select %823, %293, %838 : vector<8x128xi1>, vector<8x128xf32>
    %840 = arith.select %821, %152, %839 : vector<8x128xi1>, vector<8x128xf32>
    %841 = arith.select %819, %6, %840 : vector<8x128xi1>, vector<8x128xf32>
    %842 = arith.select %827, %658, %799 : vector<8x128xi1>, vector<8x128xf32>
    %843 = arith.select %825, %517, %842 : vector<8x128xi1>, vector<8x128xf32>
    %844 = arith.select %823, %376, %843 : vector<8x128xi1>, vector<8x128xf32>
    %845 = arith.select %821, %235, %844 : vector<8x128xi1>, vector<8x128xf32>
    %846 = arith.select %819, %9, %845 : vector<8x128xi1>, vector<8x128xf32>
    %847 = arith.select %827, %661, %802 : vector<8x128xi1>, vector<8x128xf32>
    %848 = arith.select %825, %520, %847 : vector<8x128xi1>, vector<8x128xf32>
    %849 = arith.select %823, %379, %848 : vector<8x128xi1>, vector<8x128xf32>
    %850 = arith.select %821, %238, %849 : vector<8x128xi1>, vector<8x128xf32>
    %851 = arith.select %819, %12, %850 : vector<8x128xi1>, vector<8x128xf32>
    %852 = arith.select %827, %639, %780 : vector<8x128xi1>, vector<8x128xf32>
    %853 = arith.select %825, %498, %852 : vector<8x128xi1>, vector<8x128xf32>
    %854 = arith.select %823, %357, %853 : vector<8x128xi1>, vector<8x128xf32>
    %855 = arith.select %821, %216, %854 : vector<8x128xi1>, vector<8x128xf32>
    %856 = arith.select %819, %33, %855 : vector<8x128xi1>, vector<8x128xf32>
    %857 = arith.mulf %841, %830 : vector<8x128xf32>
    %858 = arith.mulf %846, %833 : vector<8x128xf32>
    %859 = arith.addf %857, %858 : vector<8x128xf32>
    %860 = arith.mulf %851, %836 : vector<8x128xf32>
    %861 = arith.addf %859, %860 : vector<8x128xf32>
    %862 = arith.addf %861, %856 : vector<8x128xf32>
    %c0_178 = arith.constant 0 : index
    %863 = arith.index_cast %3 : i32 to index
    %c0_179 = arith.constant 0 : index
    %864 = vector.load %arg5[%c0_178, %863, %c0_179] : memref<42x8x128xf32, #tpu.memory_space<vmem>>, vector<1x8x128xf32>
    %865 = vector.shape_cast %864 : vector<1x8x128xf32> to vector<8x128xf32>
    %866 = vector.shape_cast %862 : vector<8x128xf32> to vector<1x8x128xf32>
    tpu.vector_store %arg5[%c0_178, %863, %c0_179], %866 {strides = array<i32>} : memref<42x8x128xf32, #tpu.memory_space<vmem>>, vector<1x8x128xf32>,
    %867 = arith.select %827, %596, %737 : vector<8x128xi1>, vector<8x128xf32>
    %868 = arith.select %825, %455, %867 : vector<8x128xi1>, vector<8x128xf32>
    %869 = arith.select %823, %314, %868 : vector<8x128xi1>, vector<8x128xf32>
    %870 = arith.select %821, %173, %869 : vector<8x128xi1>, vector<8x128xf32>
    %871 = arith.select %819, %15, %870 : vector<8x128xi1>, vector<8x128xf32>
    %872 = arith.select %827, %664, %805 : vector<8x128xi1>, vector<8x128xf32>
    %873 = arith.select %825, %523, %872 : vector<8x128xi1>, vector<8x128xf32>
    %874 = arith.select %823, %382, %873 : vector<8x128xi1>, vector<8x128xf32>
    %875 = arith.select %821, %241, %874 : vector<8x128xi1>, vector<8x128xf32>
    %876 = arith.select %819, %18, %875 : vector<8x128xi1>, vector<8x128xf32>
    %877 = arith.select %827, %667, %808 : vector<8x128xi1>, vector<8x128xf32>
    %878 = arith.select %825, %526, %877 : vector<8x128xi1>, vector<8x128xf32>
    %879 = arith.select %823, %385, %878 : vector<8x128xi1>, vector<8x128xf32>
    %880 = arith.select %821, %244, %879 : vector<8x128xi1>, vector<8x128xf32>
    %881 = arith.select %819, %21, %880 : vector<8x128xi1>, vector<8x128xf32>
    %882 = arith.select %827, %647, %788 : vector<8x128xi1>, vector<8x128xf32>
    %883 = arith.select %825, %506, %882 : vector<8x128xi1>, vector<8x128xf32>
    %884 = arith.select %823, %365, %883 : vector<8x128xi1>, vector<8x128xf32>
    %885 = arith.select %821, %224, %884 : vector<8x128xi1>, vector<8x128xf32>
    %886 = arith.select %819, %36, %885 : vector<8x128xi1>, vector<8x128xf32>
    %887 = arith.mulf %871, %830 : vector<8x128xf32>
    %888 = arith.mulf %876, %833 : vector<8x128xf32>
    %889 = arith.addf %887, %888 : vector<8x128xf32>
    %890 = arith.mulf %881, %836 : vector<8x128xf32>
    %891 = arith.addf %889, %890 : vector<8x128xf32>
    %892 = arith.addf %891, %886 : vector<8x128xf32>
    %c1_180 = arith.constant 1 : index
    %893 = arith.index_cast %3 : i32 to index
    %c0_181 = arith.constant 0 : index
    %894 = vector.load %arg5[%c1_180, %893, %c0_181] : memref<42x8x128xf32, #tpu.memory_space<vmem>>, vector<1x8x128xf32>
    %895 = vector.shape_cast %894 : vector<1x8x128xf32> to vector<8x128xf32>
    %896 = vector.shape_cast %892 : vector<8x128xf32> to vector<1x8x128xf32>
    tpu.vector_store %arg5[%c1_180, %893, %c0_181], %896 {strides = array<i32>} : memref<42x8x128xf32, #tpu.memory_space<vmem>>, vector<1x8x128xf32>,
    %897 = arith.select %827, %617, %758 : vector<8x128xi1>, vector<8x128xf32>
    %898 = arith.select %825, %476, %897 : vector<8x128xi1>, vector<8x128xf32>
    %899 = arith.select %823, %335, %898 : vector<8x128xi1>, vector<8x128xf32>
    %900 = arith.select %821, %194, %899 : vector<8x128xi1>, vector<8x128xf32>
    %901 = arith.select %819, %24, %900 : vector<8x128xi1>, vector<8x128xf32>
    %902 = arith.select %827, %670, %811 : vector<8x128xi1>, vector<8x128xf32>
    %903 = arith.select %825, %529, %902 : vector<8x128xi1>, vector<8x128xf32>
    %904 = arith.select %823, %388, %903 : vector<8x128xi1>, vector<8x128xf32>
    %905 = arith.select %821, %247, %904 : vector<8x128xi1>, vector<8x128xf32>
    %906 = arith.select %819, %27, %905 : vector<8x128xi1>, vector<8x128xf32>
    %907 = arith.select %827, %673, %814 : vector<8x128xi1>, vector<8x128xf32>
    %908 = arith.select %825, %532, %907 : vector<8x128xi1>, vector<8x128xf32>
    %909 = arith.select %823, %391, %908 : vector<8x128xi1>, vector<8x128xf32>
    %910 = arith.select %821, %250, %909 : vector<8x128xi1>, vector<8x128xf32>
    %911 = arith.select %819, %30, %910 : vector<8x128xi1>, vector<8x128xf32>
    %912 = arith.select %827, %655, %796 : vector<8x128xi1>, vector<8x128xf32>
    %913 = arith.select %825, %514, %912 : vector<8x128xi1>, vector<8x128xf32>
    %914 = arith.select %823, %373, %913 : vector<8x128xi1>, vector<8x128xf32>
    %915 = arith.select %821, %232, %914 : vector<8x128xi1>, vector<8x128xf32>
    %916 = arith.select %819, %39, %915 : vector<8x128xi1>, vector<8x128xf32>
    %917 = arith.mulf %901, %830 : vector<8x128xf32>
    %918 = arith.mulf %906, %833 : vector<8x128xf32>
    %919 = arith.addf %917, %918 : vector<8x128xf32>
    %920 = arith.mulf %911, %836 : vector<8x128xf32>
    %921 = arith.addf %919, %920 : vector<8x128xf32>
    %922 = arith.addf %921, %916 : vector<8x128xf32>
    %c2_182 = arith.constant 2 : index
    %923 = arith.index_cast %3 : i32 to index
    %c0_183 = arith.constant 0 : index
    %924 = vector.load %arg5[%c2_182, %923, %c0_183] : memref<42x8x128xf32, #tpu.memory_space<vmem>>, vector<1x8x128xf32>
    %925 = vector.shape_cast %924 : vector<1x8x128xf32> to vector<8x128xf32>
    %926 = vector.shape_cast %922 : vector<8x128xf32> to vector<1x8x128xf32>
    tpu.vector_store %arg5[%c2_182, %923, %c0_183], %926 {strides = array<i32>} : memref<42x8x128xf32, #tpu.memory_space<vmem>>, vector<1x8x128xf32>,
    %c61 = arith.constant 61 : index
    %927 = arith.index_cast %3 : i32 to index
    %c0_184 = arith.constant 0 : index
    %928 = vector.load %arg4[%c61, %927, %c0_184] : memref<116x8x128xf32, #tpu.memory_space<vmem>>, vector<1x8x128xf32>
    %929 = vector.shape_cast %928 : vector<1x8x128xf32> to vector<8x128xf32>
    %cst_185 = arith.constant 2.500000e+00 : f32
    %930 = vector.broadcast %cst_185 : f32 to vector<8x128xf32>
    %931 = arith.cmpf olt, %929, %930 : vector<8x128xf32>
    %cst_186 = arith.constant 3.500000e+00 : f32
    %932 = vector.broadcast %cst_186 : f32 to vector<8x128xf32>
    %933 = arith.cmpf olt, %929, %932 : vector<8x128xf32>
    %cst_187 = arith.constant 4.500000e+00 : f32
    %934 = vector.broadcast %cst_187 : f32 to vector<8x128xf32>
    %935 = arith.cmpf olt, %929, %934 : vector<8x128xf32>
    %cst_188 = arith.constant 5.500000e+00 : f32
    %936 = vector.broadcast %cst_188 : f32 to vector<8x128xf32>
    %937 = arith.cmpf olt, %929, %936 : vector<8x128xf32>
    %cst_189 = arith.constant 6.500000e+00 : f32
    %938 = vector.broadcast %cst_189 : f32 to vector<8x128xf32>
    %939 = arith.cmpf olt, %929, %938 : vector<8x128xf32>
    %c77 = arith.constant 77 : index
    %940 = arith.index_cast %3 : i32 to index
    %c0_190 = arith.constant 0 : index
    %941 = vector.load %arg4[%c77, %940, %c0_190] : memref<116x8x128xf32, #tpu.memory_space<vmem>>, vector<1x8x128xf32>
    %942 = vector.shape_cast %941 : vector<1x8x128xf32> to vector<8x128xf32>
    %c78 = arith.constant 78 : index
    %943 = arith.index_cast %3 : i32 to index
    %c0_191 = arith.constant 0 : index
    %944 = vector.load %arg4[%c78, %943, %c0_191] : memref<116x8x128xf32, #tpu.memory_space<vmem>>, vector<1x8x128xf32>
    %945 = vector.shape_cast %944 : vector<1x8x128xf32> to vector<8x128xf32>
    %c79 = arith.constant 79 : index
    %946 = arith.index_cast %3 : i32 to index
    %c0_192 = arith.constant 0 : index
    %947 = vector.load %arg4[%c79, %946, %c0_192] : memref<116x8x128xf32, #tpu.memory_space<vmem>>, vector<1x8x128xf32>
    %948 = vector.shape_cast %947 : vector<1x8x128xf32> to vector<8x128xf32>
    %949 = arith.select %939, %575, %716 : vector<8x128xi1>, vector<8x128xf32>
    %950 = arith.select %937, %434, %949 : vector<8x128xi1>, vector<8x128xf32>
    %951 = arith.select %935, %293, %950 : vector<8x128xi1>, vector<8x128xf32>
    %952 = arith.select %933, %152, %951 : vector<8x128xi1>, vector<8x128xf32>
    %953 = arith.select %931, %6, %952 : vector<8x128xi1>, vector<8x128xf32>
    %954 = arith.select %939, %658, %799 : vector<8x128xi1>, vector<8x128xf32>
    %955 = arith.select %937, %517, %954 : vector<8x128xi1>, vector<8x128xf32>
    %956 = arith.select %935, %376, %955 : vector<8x128xi1>, vector<8x128xf32>
    %957 = arith.select %933, %235, %956 : vector<8x128xi1>, vector<8x128xf32>
    %958 = arith.select %931, %9, %957 : vector<8x128xi1>, vector<8x128xf32>
    %959 = arith.select %939, %661, %802 : vector<8x128xi1>, vector<8x128xf32>
    %960 = arith.select %937, %520, %959 : vector<8x128xi1>, vector<8x128xf32>
    %961 = arith.select %935, %379, %960 : vector<8x128xi1>, vector<8x128xf32>
    %962 = arith.select %933, %238, %961 : vector<8x128xi1>, vector<8x128xf32>
    %963 = arith.select %931, %12, %962 : vector<8x128xi1>, vector<8x128xf32>
    %964 = arith.select %939, %639, %780 : vector<8x128xi1>, vector<8x128xf32>
    %965 = arith.select %937, %498, %964 : vector<8x128xi1>, vector<8x128xf32>
    %966 = arith.select %935, %357, %965 : vector<8x128xi1>, vector<8x128xf32>
    %967 = arith.select %933, %216, %966 : vector<8x128xi1>, vector<8x128xf32>
    %968 = arith.select %931, %33, %967 : vector<8x128xi1>, vector<8x128xf32>
    %969 = arith.mulf %953, %942 : vector<8x128xf32>
    %970 = arith.mulf %958, %945 : vector<8x128xf32>
    %971 = arith.addf %969, %970 : vector<8x128xf32>
    %972 = arith.mulf %963, %948 : vector<8x128xf32>
    %973 = arith.addf %971, %972 : vector<8x128xf32>
    %974 = arith.addf %973, %968 : vector<8x128xf32>
    %c3_193 = arith.constant 3 : index
    %975 = arith.index_cast %3 : i32 to index
    %c0_194 = arith.constant 0 : index
    %976 = vector.load %arg5[%c3_193, %975, %c0_194] : memref<42x8x128xf32, #tpu.memory_space<vmem>>, vector<1x8x128xf32>
    %977 = vector.shape_cast %976 : vector<1x8x128xf32> to vector<8x128xf32>
    %978 = vector.shape_cast %974 : vector<8x128xf32> to vector<1x8x128xf32>
    tpu.vector_store %arg5[%c3_193, %975, %c0_194], %978 {strides = array<i32>} : memref<42x8x128xf32, #tpu.memory_space<vmem>>, vector<1x8x128xf32>,
    %979 = arith.select %939, %596, %737 : vector<8x128xi1>, vector<8x128xf32>
    %980 = arith.select %937, %455, %979 : vector<8x128xi1>, vector<8x128xf32>
    %981 = arith.select %935, %314, %980 : vector<8x128xi1>, vector<8x128xf32>
    %982 = arith.select %933, %173, %981 : vector<8x128xi1>, vector<8x128xf32>
    %983 = arith.select %931, %15, %982 : vector<8x128xi1>, vector<8x128xf32>
    %984 = arith.select %939, %664, %805 : vector<8x128xi1>, vector<8x128xf32>
    %985 = arith.select %937, %523, %984 : vector<8x128xi1>, vector<8x128xf32>
    %986 = arith.select %935, %382, %985 : vector<8x128xi1>, vector<8x128xf32>
    %987 = arith.select %933, %241, %986 : vector<8x128xi1>, vector<8x128xf32>
    %988 = arith.select %931, %18, %987 : vector<8x128xi1>, vector<8x128xf32>
    %989 = arith.select %939, %667, %808 : vector<8x128xi1>, vector<8x128xf32>
    %990 = arith.select %937, %526, %989 : vector<8x128xi1>, vector<8x128xf32>
    %991 = arith.select %935, %385, %990 : vector<8x128xi1>, vector<8x128xf32>
    %992 = arith.select %933, %244, %991 : vector<8x128xi1>, vector<8x128xf32>
    %993 = arith.select %931, %21, %992 : vector<8x128xi1>, vector<8x128xf32>
    %994 = arith.select %939, %647, %788 : vector<8x128xi1>, vector<8x128xf32>
    %995 = arith.select %937, %506, %994 : vector<8x128xi1>, vector<8x128xf32>
    %996 = arith.select %935, %365, %995 : vector<8x128xi1>, vector<8x128xf32>
    %997 = arith.select %933, %224, %996 : vector<8x128xi1>, vector<8x128xf32>
    %998 = arith.select %931, %36, %997 : vector<8x128xi1>, vector<8x128xf32>
    %999 = arith.mulf %983, %942 : vector<8x128xf32>
    %1000 = arith.mulf %988, %945 : vector<8x128xf32>
    %1001 = arith.addf %999, %1000 : vector<8x128xf32>
    %1002 = arith.mulf %993, %948 : vector<8x128xf32>
    %1003 = arith.addf %1001, %1002 : vector<8x128xf32>
    %1004 = arith.addf %1003, %998 : vector<8x128xf32>
    %c4_195 = arith.constant 4 : index
    %1005 = arith.index_cast %3 : i32 to index
    %c0_196 = arith.constant 0 : index
    %1006 = vector.load %arg5[%c4_195, %1005, %c0_196] : memref<42x8x128xf32, #tpu.memory_space<vmem>>, vector<1x8x128xf32>
    %1007 = vector.shape_cast %1006 : vector<1x8x128xf32> to vector<8x128xf32>
    %1008 = vector.shape_cast %1004 : vector<8x128xf32> to vector<1x8x128xf32>
    tpu.vector_store %arg5[%c4_195, %1005, %c0_196], %1008 {strides = array<i32>} : memref<42x8x128xf32, #tpu.memory_space<vmem>>, vector<1x8x128xf32>,
    %1009 = arith.select %939, %617, %758 : vector<8x128xi1>, vector<8x128xf32>
    %1010 = arith.select %937, %476, %1009 : vector<8x128xi1>, vector<8x128xf32>
    %1011 = arith.select %935, %335, %1010 : vector<8x128xi1>, vector<8x128xf32>
    %1012 = arith.select %933, %194, %1011 : vector<8x128xi1>, vector<8x128xf32>
    %1013 = arith.select %931, %24, %1012 : vector<8x128xi1>, vector<8x128xf32>
    %1014 = arith.select %939, %670, %811 : vector<8x128xi1>, vector<8x128xf32>
    %1015 = arith.select %937, %529, %1014 : vector<8x128xi1>, vector<8x128xf32>
    %1016 = arith.select %935, %388, %1015 : vector<8x128xi1>, vector<8x128xf32>
    %1017 = arith.select %933, %247, %1016 : vector<8x128xi1>, vector<8x128xf32>
    %1018 = arith.select %931, %27, %1017 : vector<8x128xi1>, vector<8x128xf32>
    %1019 = arith.select %939, %673, %814 : vector<8x128xi1>, vector<8x128xf32>
    %1020 = arith.select %937, %532, %1019 : vector<8x128xi1>, vector<8x128xf32>
    %1021 = arith.select %935, %391, %1020 : vector<8x128xi1>, vector<8x128xf32>
    %1022 = arith.select %933, %250, %1021 : vector<8x128xi1>, vector<8x128xf32>
    %1023 = arith.select %931, %30, %1022 : vector<8x128xi1>, vector<8x128xf32>
    %1024 = arith.select %939, %655, %796 : vector<8x128xi1>, vector<8x128xf32>
    %1025 = arith.select %937, %514, %1024 : vector<8x128xi1>, vector<8x128xf32>
    %1026 = arith.select %935, %373, %1025 : vector<8x128xi1>, vector<8x128xf32>
    %1027 = arith.select %933, %232, %1026 : vector<8x128xi1>, vector<8x128xf32>
    %1028 = arith.select %931, %39, %1027 : vector<8x128xi1>, vector<8x128xf32>
    %1029 = arith.mulf %1013, %942 : vector<8x128xf32>
    %1030 = arith.mulf %1018, %945 : vector<8x128xf32>
    %1031 = arith.addf %1029, %1030 : vector<8x128xf32>
    %1032 = arith.mulf %1023, %948 : vector<8x128xf32>
    %1033 = arith.addf %1031, %1032 : vector<8x128xf32>
    %1034 = arith.addf %1033, %1028 : vector<8x128xf32>
    %c5_197 = arith.constant 5 : index
    %1035 = arith.index_cast %3 : i32 to index
    %c0_198 = arith.constant 0 : index
    %1036 = vector.load %arg5[%c5_197, %1035, %c0_198] : memref<42x8x128xf32, #tpu.memory_space<vmem>>, vector<1x8x128xf32>
    %1037 = vector.shape_cast %1036 : vector<1x8x128xf32> to vector<8x128xf32>
    %1038 = vector.shape_cast %1034 : vector<8x128xf32> to vector<1x8x128xf32>
    tpu.vector_store %arg5[%c5_197, %1035, %c0_198], %1038 {strides = array<i32>} : memref<42x8x128xf32, #tpu.memory_space<vmem>>, vector<1x8x128xf32>,
    %c62 = arith.constant 62 : index
    %1039 = arith.index_cast %3 : i32 to index
    %c0_199 = arith.constant 0 : index
    %1040 = vector.load %arg4[%c62, %1039, %c0_199] : memref<116x8x128xf32, #tpu.memory_space<vmem>>, vector<1x8x128xf32>
    %1041 = vector.shape_cast %1040 : vector<1x8x128xf32> to vector<8x128xf32>
    %cst_200 = arith.constant 2.500000e+00 : f32
    %1042 = vector.broadcast %cst_200 : f32 to vector<8x128xf32>
    %1043 = arith.cmpf olt, %1041, %1042 : vector<8x128xf32>
    %cst_201 = arith.constant 3.500000e+00 : f32
    %1044 = vector.broadcast %cst_201 : f32 to vector<8x128xf32>
    %1045 = arith.cmpf olt, %1041, %1044 : vector<8x128xf32>
    %cst_202 = arith.constant 4.500000e+00 : f32
    %1046 = vector.broadcast %cst_202 : f32 to vector<8x128xf32>
    %1047 = arith.cmpf olt, %1041, %1046 : vector<8x128xf32>
    %cst_203 = arith.constant 5.500000e+00 : f32
    %1048 = vector.broadcast %cst_203 : f32 to vector<8x128xf32>
    %1049 = arith.cmpf olt, %1041, %1048 : vector<8x128xf32>
    %cst_204 = arith.constant 6.500000e+00 : f32
    %1050 = vector.broadcast %cst_204 : f32 to vector<8x128xf32>
    %1051 = arith.cmpf olt, %1041, %1050 : vector<8x128xf32>
    %c80 = arith.constant 80 : index
    %1052 = arith.index_cast %3 : i32 to index
    %c0_205 = arith.constant 0 : index
    %1053 = vector.load %arg4[%c80, %1052, %c0_205] : memref<116x8x128xf32, #tpu.memory_space<vmem>>, vector<1x8x128xf32>
    %1054 = vector.shape_cast %1053 : vector<1x8x128xf32> to vector<8x128xf32>
    %c81 = arith.constant 81 : index
    %1055 = arith.index_cast %3 : i32 to index
    %c0_206 = arith.constant 0 : index
    %1056 = vector.load %arg4[%c81, %1055, %c0_206] : memref<116x8x128xf32, #tpu.memory_space<vmem>>, vector<1x8x128xf32>
    %1057 = vector.shape_cast %1056 : vector<1x8x128xf32> to vector<8x128xf32>
    %c82 = arith.constant 82 : index
    %1058 = arith.index_cast %3 : i32 to index
    %c0_207 = arith.constant 0 : index
    %1059 = vector.load %arg4[%c82, %1058, %c0_207] : memref<116x8x128xf32, #tpu.memory_space<vmem>>, vector<1x8x128xf32>
    %1060 = vector.shape_cast %1059 : vector<1x8x128xf32> to vector<8x128xf32>
    %1061 = arith.select %1051, %575, %716 : vector<8x128xi1>, vector<8x128xf32>
    %1062 = arith.select %1049, %434, %1061 : vector<8x128xi1>, vector<8x128xf32>
    %1063 = arith.select %1047, %293, %1062 : vector<8x128xi1>, vector<8x128xf32>
    %1064 = arith.select %1045, %152, %1063 : vector<8x128xi1>, vector<8x128xf32>
    %1065 = arith.select %1043, %6, %1064 : vector<8x128xi1>, vector<8x128xf32>
    %1066 = arith.select %1051, %658, %799 : vector<8x128xi1>, vector<8x128xf32>
    %1067 = arith.select %1049, %517, %1066 : vector<8x128xi1>, vector<8x128xf32>
    %1068 = arith.select %1047, %376, %1067 : vector<8x128xi1>, vector<8x128xf32>
    %1069 = arith.select %1045, %235, %1068 : vector<8x128xi1>, vector<8x128xf32>
    %1070 = arith.select %1043, %9, %1069 : vector<8x128xi1>, vector<8x128xf32>
    %1071 = arith.select %1051, %661, %802 : vector<8x128xi1>, vector<8x128xf32>
    %1072 = arith.select %1049, %520, %1071 : vector<8x128xi1>, vector<8x128xf32>
    %1073 = arith.select %1047, %379, %1072 : vector<8x128xi1>, vector<8x128xf32>
    %1074 = arith.select %1045, %238, %1073 : vector<8x128xi1>, vector<8x128xf32>
    %1075 = arith.select %1043, %12, %1074 : vector<8x128xi1>, vector<8x128xf32>
    %1076 = arith.select %1051, %639, %780 : vector<8x128xi1>, vector<8x128xf32>
    %1077 = arith.select %1049, %498, %1076 : vector<8x128xi1>, vector<8x128xf32>
    %1078 = arith.select %1047, %357, %1077 : vector<8x128xi1>, vector<8x128xf32>
    %1079 = arith.select %1045, %216, %1078 : vector<8x128xi1>, vector<8x128xf32>
    %1080 = arith.select %1043, %33, %1079 : vector<8x128xi1>, vector<8x128xf32>
    %1081 = arith.mulf %1065, %1054 : vector<8x128xf32>
    %1082 = arith.mulf %1070, %1057 : vector<8x128xf32>
    %1083 = arith.addf %1081, %1082 : vector<8x128xf32>
    %1084 = arith.mulf %1075, %1060 : vector<8x128xf32>
    %1085 = arith.addf %1083, %1084 : vector<8x128xf32>
    %1086 = arith.addf %1085, %1080 : vector<8x128xf32>
    %c6_208 = arith.constant 6 : index
    %1087 = arith.index_cast %3 : i32 to index
    %c0_209 = arith.constant 0 : index
    %1088 = vector.load %arg5[%c6_208, %1087, %c0_209] : memref<42x8x128xf32, #tpu.memory_space<vmem>>, vector<1x8x128xf32>
    %1089 = vector.shape_cast %1088 : vector<1x8x128xf32> to vector<8x128xf32>
    %1090 = vector.shape_cast %1086 : vector<8x128xf32> to vector<1x8x128xf32>
    tpu.vector_store %arg5[%c6_208, %1087, %c0_209], %1090 {strides = array<i32>} : memref<42x8x128xf32, #tpu.memory_space<vmem>>, vector<1x8x128xf32>,
    %1091 = arith.select %1051, %596, %737 : vector<8x128xi1>, vector<8x128xf32>
    %1092 = arith.select %1049, %455, %1091 : vector<8x128xi1>, vector<8x128xf32>
    %1093 = arith.select %1047, %314, %1092 : vector<8x128xi1>, vector<8x128xf32>
    %1094 = arith.select %1045, %173, %1093 : vector<8x128xi1>, vector<8x128xf32>
    %1095 = arith.select %1043, %15, %1094 : vector<8x128xi1>, vector<8x128xf32>
    %1096 = arith.select %1051, %664, %805 : vector<8x128xi1>, vector<8x128xf32>
    %1097 = arith.select %1049, %523, %1096 : vector<8x128xi1>, vector<8x128xf32>
    %1098 = arith.select %1047, %382, %1097 : vector<8x128xi1>, vector<8x128xf32>
    %1099 = arith.select %1045, %241, %1098 : vector<8x128xi1>, vector<8x128xf32>
    %1100 = arith.select %1043, %18, %1099 : vector<8x128xi1>, vector<8x128xf32>
    %1101 = arith.select %1051, %667, %808 : vector<8x128xi1>, vector<8x128xf32>
    %1102 = arith.select %1049, %526, %1101 : vector<8x128xi1>, vector<8x128xf32>
    %1103 = arith.select %1047, %385, %1102 : vector<8x128xi1>, vector<8x128xf32>
    %1104 = arith.select %1045, %244, %1103 : vector<8x128xi1>, vector<8x128xf32>
    %1105 = arith.select %1043, %21, %1104 : vector<8x128xi1>, vector<8x128xf32>
    %1106 = arith.select %1051, %647, %788 : vector<8x128xi1>, vector<8x128xf32>
    %1107 = arith.select %1049, %506, %1106 : vector<8x128xi1>, vector<8x128xf32>
    %1108 = arith.select %1047, %365, %1107 : vector<8x128xi1>, vector<8x128xf32>
    %1109 = arith.select %1045, %224, %1108 : vector<8x128xi1>, vector<8x128xf32>
    %1110 = arith.select %1043, %36, %1109 : vector<8x128xi1>, vector<8x128xf32>
    %1111 = arith.mulf %1095, %1054 : vector<8x128xf32>
    %1112 = arith.mulf %1100, %1057 : vector<8x128xf32>
    %1113 = arith.addf %1111, %1112 : vector<8x128xf32>
    %1114 = arith.mulf %1105, %1060 : vector<8x128xf32>
    %1115 = arith.addf %1113, %1114 : vector<8x128xf32>
    %1116 = arith.addf %1115, %1110 : vector<8x128xf32>
    %c7_210 = arith.constant 7 : index
    %1117 = arith.index_cast %3 : i32 to index
    %c0_211 = arith.constant 0 : index
    %1118 = vector.load %arg5[%c7_210, %1117, %c0_211] : memref<42x8x128xf32, #tpu.memory_space<vmem>>, vector<1x8x128xf32>
    %1119 = vector.shape_cast %1118 : vector<1x8x128xf32> to vector<8x128xf32>
    %1120 = vector.shape_cast %1116 : vector<8x128xf32> to vector<1x8x128xf32>
    tpu.vector_store %arg5[%c7_210, %1117, %c0_211], %1120 {strides = array<i32>} : memref<42x8x128xf32, #tpu.memory_space<vmem>>, vector<1x8x128xf32>,
    %1121 = arith.select %1051, %617, %758 : vector<8x128xi1>, vector<8x128xf32>
    %1122 = arith.select %1049, %476, %1121 : vector<8x128xi1>, vector<8x128xf32>
    %1123 = arith.select %1047, %335, %1122 : vector<8x128xi1>, vector<8x128xf32>
    %1124 = arith.select %1045, %194, %1123 : vector<8x128xi1>, vector<8x128xf32>
    %1125 = arith.select %1043, %24, %1124 : vector<8x128xi1>, vector<8x128xf32>
    %1126 = arith.select %1051, %670, %811 : vector<8x128xi1>, vector<8x128xf32>
    %1127 = arith.select %1049, %529, %1126 : vector<8x128xi1>, vector<8x128xf32>
    %1128 = arith.select %1047, %388, %1127 : vector<8x128xi1>, vector<8x128xf32>
    %1129 = arith.select %1045, %247, %1128 : vector<8x128xi1>, vector<8x128xf32>
    %1130 = arith.select %1043, %27, %1129 : vector<8x128xi1>, vector<8x128xf32>
    %1131 = arith.select %1051, %673, %814 : vector<8x128xi1>, vector<8x128xf32>
    %1132 = arith.select %1049, %532, %1131 : vector<8x128xi1>, vector<8x128xf32>
    %1133 = arith.select %1047, %391, %1132 : vector<8x128xi1>, vector<8x128xf32>
    %1134 = arith.select %1045, %250, %1133 : vector<8x128xi1>, vector<8x128xf32>
    %1135 = arith.select %1043, %30, %1134 : vector<8x128xi1>, vector<8x128xf32>
    %1136 = arith.select %1051, %655, %796 : vector<8x128xi1>, vector<8x128xf32>
    %1137 = arith.select %1049, %514, %1136 : vector<8x128xi1>, vector<8x128xf32>
    %1138 = arith.select %1047, %373, %1137 : vector<8x128xi1>, vector<8x128xf32>
    %1139 = arith.select %1045, %232, %1138 : vector<8x128xi1>, vector<8x128xf32>
    %1140 = arith.select %1043, %39, %1139 : vector<8x128xi1>, vector<8x128xf32>
    %1141 = arith.mulf %1125, %1054 : vector<8x128xf32>
    %1142 = arith.mulf %1130, %1057 : vector<8x128xf32>
    %1143 = arith.addf %1141, %1142 : vector<8x128xf32>
    %1144 = arith.mulf %1135, %1060 : vector<8x128xf32>
    %1145 = arith.addf %1143, %1144 : vector<8x128xf32>
    %1146 = arith.addf %1145, %1140 : vector<8x128xf32>
    %c8_212 = arith.constant 8 : index
    %1147 = arith.index_cast %3 : i32 to index
    %c0_213 = arith.constant 0 : index
    %1148 = vector.load %arg5[%c8_212, %1147, %c0_213] : memref<42x8x128xf32, #tpu.memory_space<vmem>>, vector<1x8x128xf32>
    %1149 = vector.shape_cast %1148 : vector<1x8x128xf32> to vector<8x128xf32>
    %1150 = vector.shape_cast %1146 : vector<8x128xf32> to vector<1x8x128xf32>
    tpu.vector_store %arg5[%c8_212, %1147, %c0_213], %1150 {strides = array<i32>} : memref<42x8x128xf32, #tpu.memory_space<vmem>>, vector<1x8x128xf32>,
    %c63 = arith.constant 63 : index
    %1151 = arith.index_cast %3 : i32 to index
    %c0_214 = arith.constant 0 : index
    %1152 = vector.load %arg4[%c63, %1151, %c0_214] : memref<116x8x128xf32, #tpu.memory_space<vmem>>, vector<1x8x128xf32>
    %1153 = vector.shape_cast %1152 : vector<1x8x128xf32> to vector<8x128xf32>
    %cst_215 = arith.constant 2.500000e+00 : f32
    %1154 = vector.broadcast %cst_215 : f32 to vector<8x128xf32>
    %1155 = arith.cmpf olt, %1153, %1154 : vector<8x128xf32>
    %cst_216 = arith.constant 3.500000e+00 : f32
    %1156 = vector.broadcast %cst_216 : f32 to vector<8x128xf32>
    %1157 = arith.cmpf olt, %1153, %1156 : vector<8x128xf32>
    %cst_217 = arith.constant 4.500000e+00 : f32
    %1158 = vector.broadcast %cst_217 : f32 to vector<8x128xf32>
    %1159 = arith.cmpf olt, %1153, %1158 : vector<8x128xf32>
    %cst_218 = arith.constant 5.500000e+00 : f32
    %1160 = vector.broadcast %cst_218 : f32 to vector<8x128xf32>
    %1161 = arith.cmpf olt, %1153, %1160 : vector<8x128xf32>
    %cst_219 = arith.constant 6.500000e+00 : f32
    %1162 = vector.broadcast %cst_219 : f32 to vector<8x128xf32>
    %1163 = arith.cmpf olt, %1153, %1162 : vector<8x128xf32>
    %c83 = arith.constant 83 : index
    %1164 = arith.index_cast %3 : i32 to index
    %c0_220 = arith.constant 0 : index
    %1165 = vector.load %arg4[%c83, %1164, %c0_220] : memref<116x8x128xf32, #tpu.memory_space<vmem>>, vector<1x8x128xf32>
    %1166 = vector.shape_cast %1165 : vector<1x8x128xf32> to vector<8x128xf32>
    %c84 = arith.constant 84 : index
    %1167 = arith.index_cast %3 : i32 to index
    %c0_221 = arith.constant 0 : index
    %1168 = vector.load %arg4[%c84, %1167, %c0_221] : memref<116x8x128xf32, #tpu.memory_space<vmem>>, vector<1x8x128xf32>
    %1169 = vector.shape_cast %1168 : vector<1x8x128xf32> to vector<8x128xf32>
    %c85 = arith.constant 85 : index
    %1170 = arith.index_cast %3 : i32 to index
    %c0_222 = arith.constant 0 : index
    %1171 = vector.load %arg4[%c85, %1170, %c0_222] : memref<116x8x128xf32, #tpu.memory_space<vmem>>, vector<1x8x128xf32>
    %1172 = vector.shape_cast %1171 : vector<1x8x128xf32> to vector<8x128xf32>
    %1173 = arith.select %1163, %575, %716 : vector<8x128xi1>, vector<8x128xf32>
    %1174 = arith.select %1161, %434, %1173 : vector<8x128xi1>, vector<8x128xf32>
    %1175 = arith.select %1159, %293, %1174 : vector<8x128xi1>, vector<8x128xf32>
    %1176 = arith.select %1157, %152, %1175 : vector<8x128xi1>, vector<8x128xf32>
    %1177 = arith.select %1155, %6, %1176 : vector<8x128xi1>, vector<8x128xf32>
    %1178 = arith.select %1163, %658, %799 : vector<8x128xi1>, vector<8x128xf32>
    %1179 = arith.select %1161, %517, %1178 : vector<8x128xi1>, vector<8x128xf32>
    %1180 = arith.select %1159, %376, %1179 : vector<8x128xi1>, vector<8x128xf32>
    %1181 = arith.select %1157, %235, %1180 : vector<8x128xi1>, vector<8x128xf32>
    %1182 = arith.select %1155, %9, %1181 : vector<8x128xi1>, vector<8x128xf32>
    %1183 = arith.select %1163, %661, %802 : vector<8x128xi1>, vector<8x128xf32>
    %1184 = arith.select %1161, %520, %1183 : vector<8x128xi1>, vector<8x128xf32>
    %1185 = arith.select %1159, %379, %1184 : vector<8x128xi1>, vector<8x128xf32>
    %1186 = arith.select %1157, %238, %1185 : vector<8x128xi1>, vector<8x128xf32>
    %1187 = arith.select %1155, %12, %1186 : vector<8x128xi1>, vector<8x128xf32>
    %1188 = arith.select %1163, %639, %780 : vector<8x128xi1>, vector<8x128xf32>
    %1189 = arith.select %1161, %498, %1188 : vector<8x128xi1>, vector<8x128xf32>
    %1190 = arith.select %1159, %357, %1189 : vector<8x128xi1>, vector<8x128xf32>
    %1191 = arith.select %1157, %216, %1190 : vector<8x128xi1>, vector<8x128xf32>
    %1192 = arith.select %1155, %33, %1191 : vector<8x128xi1>, vector<8x128xf32>
    %1193 = arith.mulf %1177, %1166 : vector<8x128xf32>
    %1194 = arith.mulf %1182, %1169 : vector<8x128xf32>
    %1195 = arith.addf %1193, %1194 : vector<8x128xf32>
    %1196 = arith.mulf %1187, %1172 : vector<8x128xf32>
    %1197 = arith.addf %1195, %1196 : vector<8x128xf32>
    %1198 = arith.addf %1197, %1192 : vector<8x128xf32>
    %c9_223 = arith.constant 9 : index
    %1199 = arith.index_cast %3 : i32 to index
    %c0_224 = arith.constant 0 : index
    %1200 = vector.load %arg5[%c9_223, %1199, %c0_224] : memref<42x8x128xf32, #tpu.memory_space<vmem>>, vector<1x8x128xf32>
    %1201 = vector.shape_cast %1200 : vector<1x8x128xf32> to vector<8x128xf32>
    %1202 = vector.shape_cast %1198 : vector<8x128xf32> to vector<1x8x128xf32>
    tpu.vector_store %arg5[%c9_223, %1199, %c0_224], %1202 {strides = array<i32>} : memref<42x8x128xf32, #tpu.memory_space<vmem>>, vector<1x8x128xf32>,
    %1203 = arith.select %1163, %596, %737 : vector<8x128xi1>, vector<8x128xf32>
    %1204 = arith.select %1161, %455, %1203 : vector<8x128xi1>, vector<8x128xf32>
    %1205 = arith.select %1159, %314, %1204 : vector<8x128xi1>, vector<8x128xf32>
    %1206 = arith.select %1157, %173, %1205 : vector<8x128xi1>, vector<8x128xf32>
    %1207 = arith.select %1155, %15, %1206 : vector<8x128xi1>, vector<8x128xf32>
    %1208 = arith.select %1163, %664, %805 : vector<8x128xi1>, vector<8x128xf32>
    %1209 = arith.select %1161, %523, %1208 : vector<8x128xi1>, vector<8x128xf32>
    %1210 = arith.select %1159, %382, %1209 : vector<8x128xi1>, vector<8x128xf32>
    %1211 = arith.select %1157, %241, %1210 : vector<8x128xi1>, vector<8x128xf32>
    %1212 = arith.select %1155, %18, %1211 : vector<8x128xi1>, vector<8x128xf32>
    %1213 = arith.select %1163, %667, %808 : vector<8x128xi1>, vector<8x128xf32>
    %1214 = arith.select %1161, %526, %1213 : vector<8x128xi1>, vector<8x128xf32>
    %1215 = arith.select %1159, %385, %1214 : vector<8x128xi1>, vector<8x128xf32>
    %1216 = arith.select %1157, %244, %1215 : vector<8x128xi1>, vector<8x128xf32>
    %1217 = arith.select %1155, %21, %1216 : vector<8x128xi1>, vector<8x128xf32>
    %1218 = arith.select %1163, %647, %788 : vector<8x128xi1>, vector<8x128xf32>
    %1219 = arith.select %1161, %506, %1218 : vector<8x128xi1>, vector<8x128xf32>
    %1220 = arith.select %1159, %365, %1219 : vector<8x128xi1>, vector<8x128xf32>
    %1221 = arith.select %1157, %224, %1220 : vector<8x128xi1>, vector<8x128xf32>
    %1222 = arith.select %1155, %36, %1221 : vector<8x128xi1>, vector<8x128xf32>
    %1223 = arith.mulf %1207, %1166 : vector<8x128xf32>
    %1224 = arith.mulf %1212, %1169 : vector<8x128xf32>
    %1225 = arith.addf %1223, %1224 : vector<8x128xf32>
    %1226 = arith.mulf %1217, %1172 : vector<8x128xf32>
    %1227 = arith.addf %1225, %1226 : vector<8x128xf32>
    %1228 = arith.addf %1227, %1222 : vector<8x128xf32>
    %c10_225 = arith.constant 10 : index
    %1229 = arith.index_cast %3 : i32 to index
    %c0_226 = arith.constant 0 : index
    %1230 = vector.load %arg5[%c10_225, %1229, %c0_226] : memref<42x8x128xf32, #tpu.memory_space<vmem>>, vector<1x8x128xf32>
    %1231 = vector.shape_cast %1230 : vector<1x8x128xf32> to vector<8x128xf32>
    %1232 = vector.shape_cast %1228 : vector<8x128xf32> to vector<1x8x128xf32>
    tpu.vector_store %arg5[%c10_225, %1229, %c0_226], %1232 {strides = array<i32>} : memref<42x8x128xf32, #tpu.memory_space<vmem>>, vector<1x8x128xf32>,
    %1233 = arith.select %1163, %617, %758 : vector<8x128xi1>, vector<8x128xf32>
    %1234 = arith.select %1161, %476, %1233 : vector<8x128xi1>, vector<8x128xf32>
    %1235 = arith.select %1159, %335, %1234 : vector<8x128xi1>, vector<8x128xf32>
    %1236 = arith.select %1157, %194, %1235 : vector<8x128xi1>, vector<8x128xf32>
    %1237 = arith.select %1155, %24, %1236 : vector<8x128xi1>, vector<8x128xf32>
    %1238 = arith.select %1163, %670, %811 : vector<8x128xi1>, vector<8x128xf32>
    %1239 = arith.select %1161, %529, %1238 : vector<8x128xi1>, vector<8x128xf32>
    %1240 = arith.select %1159, %388, %1239 : vector<8x128xi1>, vector<8x128xf32>
    %1241 = arith.select %1157, %247, %1240 : vector<8x128xi1>, vector<8x128xf32>
    %1242 = arith.select %1155, %27, %1241 : vector<8x128xi1>, vector<8x128xf32>
    %1243 = arith.select %1163, %673, %814 : vector<8x128xi1>, vector<8x128xf32>
    %1244 = arith.select %1161, %532, %1243 : vector<8x128xi1>, vector<8x128xf32>
    %1245 = arith.select %1159, %391, %1244 : vector<8x128xi1>, vector<8x128xf32>
    %1246 = arith.select %1157, %250, %1245 : vector<8x128xi1>, vector<8x128xf32>
    %1247 = arith.select %1155, %30, %1246 : vector<8x128xi1>, vector<8x128xf32>
    %1248 = arith.select %1163, %655, %796 : vector<8x128xi1>, vector<8x128xf32>
    %1249 = arith.select %1161, %514, %1248 : vector<8x128xi1>, vector<8x128xf32>
    %1250 = arith.select %1159, %373, %1249 : vector<8x128xi1>, vector<8x128xf32>
    %1251 = arith.select %1157, %232, %1250 : vector<8x128xi1>, vector<8x128xf32>
    %1252 = arith.select %1155, %39, %1251 : vector<8x128xi1>, vector<8x128xf32>
    %1253 = arith.mulf %1237, %1166 : vector<8x128xf32>
    %1254 = arith.mulf %1242, %1169 : vector<8x128xf32>
    %1255 = arith.addf %1253, %1254 : vector<8x128xf32>
    %1256 = arith.mulf %1247, %1172 : vector<8x128xf32>
    %1257 = arith.addf %1255, %1256 : vector<8x128xf32>
    %1258 = arith.addf %1257, %1252 : vector<8x128xf32>
    %c11_227 = arith.constant 11 : index
    %1259 = arith.index_cast %3 : i32 to index
    %c0_228 = arith.constant 0 : index
    %1260 = vector.load %arg5[%c11_227, %1259, %c0_228] : memref<42x8x128xf32, #tpu.memory_space<vmem>>, vector<1x8x128xf32>
    %1261 = vector.shape_cast %1260 : vector<1x8x128xf32> to vector<8x128xf32>
    %1262 = vector.shape_cast %1258 : vector<8x128xf32> to vector<1x8x128xf32>
    tpu.vector_store %arg5[%c11_227, %1259, %c0_228], %1262 {strides = array<i32>} : memref<42x8x128xf32, #tpu.memory_space<vmem>>, vector<1x8x128xf32>,
    %c64 = arith.constant 64 : index
    %1263 = arith.index_cast %3 : i32 to index
    %c0_229 = arith.constant 0 : index
    %1264 = vector.load %arg4[%c64, %1263, %c0_229] : memref<116x8x128xf32, #tpu.memory_space<vmem>>, vector<1x8x128xf32>
    %1265 = vector.shape_cast %1264 : vector<1x8x128xf32> to vector<8x128xf32>
    %cst_230 = arith.constant 2.500000e+00 : f32
    %1266 = vector.broadcast %cst_230 : f32 to vector<8x128xf32>
    %1267 = arith.cmpf olt, %1265, %1266 : vector<8x128xf32>
    %cst_231 = arith.constant 3.500000e+00 : f32
    %1268 = vector.broadcast %cst_231 : f32 to vector<8x128xf32>
    %1269 = arith.cmpf olt, %1265, %1268 : vector<8x128xf32>
    %cst_232 = arith.constant 4.500000e+00 : f32
    %1270 = vector.broadcast %cst_232 : f32 to vector<8x128xf32>
    %1271 = arith.cmpf olt, %1265, %1270 : vector<8x128xf32>
    %cst_233 = arith.constant 5.500000e+00 : f32
    %1272 = vector.broadcast %cst_233 : f32 to vector<8x128xf32>
    %1273 = arith.cmpf olt, %1265, %1272 : vector<8x128xf32>
    %cst_234 = arith.constant 6.500000e+00 : f32
    %1274 = vector.broadcast %cst_234 : f32 to vector<8x128xf32>
    %1275 = arith.cmpf olt, %1265, %1274 : vector<8x128xf32>
    %c86 = arith.constant 86 : index
    %1276 = arith.index_cast %3 : i32 to index
    %c0_235 = arith.constant 0 : index
    %1277 = vector.load %arg4[%c86, %1276, %c0_235] : memref<116x8x128xf32, #tpu.memory_space<vmem>>, vector<1x8x128xf32>
    %1278 = vector.shape_cast %1277 : vector<1x8x128xf32> to vector<8x128xf32>
    %c87 = arith.constant 87 : index
    %1279 = arith.index_cast %3 : i32 to index
    %c0_236 = arith.constant 0 : index
    %1280 = vector.load %arg4[%c87, %1279, %c0_236] : memref<116x8x128xf32, #tpu.memory_space<vmem>>, vector<1x8x128xf32>
    %1281 = vector.shape_cast %1280 : vector<1x8x128xf32> to vector<8x128xf32>
    %c88 = arith.constant 88 : index
    %1282 = arith.index_cast %3 : i32 to index
    %c0_237 = arith.constant 0 : index
    %1283 = vector.load %arg4[%c88, %1282, %c0_237] : memref<116x8x128xf32, #tpu.memory_space<vmem>>, vector<1x8x128xf32>
    %1284 = vector.shape_cast %1283 : vector<1x8x128xf32> to vector<8x128xf32>
    %1285 = arith.select %1275, %575, %716 : vector<8x128xi1>, vector<8x128xf32>
    %1286 = arith.select %1273, %434, %1285 : vector<8x128xi1>, vector<8x128xf32>
    %1287 = arith.select %1271, %293, %1286 : vector<8x128xi1>, vector<8x128xf32>
    %1288 = arith.select %1269, %152, %1287 : vector<8x128xi1>, vector<8x128xf32>
    %1289 = arith.select %1267, %6, %1288 : vector<8x128xi1>, vector<8x128xf32>
    %1290 = arith.select %1275, %658, %799 : vector<8x128xi1>, vector<8x128xf32>
    %1291 = arith.select %1273, %517, %1290 : vector<8x128xi1>, vector<8x128xf32>
    %1292 = arith.select %1271, %376, %1291 : vector<8x128xi1>, vector<8x128xf32>
    %1293 = arith.select %1269, %235, %1292 : vector<8x128xi1>, vector<8x128xf32>
    %1294 = arith.select %1267, %9, %1293 : vector<8x128xi1>, vector<8x128xf32>
    %1295 = arith.select %1275, %661, %802 : vector<8x128xi1>, vector<8x128xf32>
    %1296 = arith.select %1273, %520, %1295 : vector<8x128xi1>, vector<8x128xf32>
    %1297 = arith.select %1271, %379, %1296 : vector<8x128xi1>, vector<8x128xf32>
    %1298 = arith.select %1269, %238, %1297 : vector<8x128xi1>, vector<8x128xf32>
    %1299 = arith.select %1267, %12, %1298 : vector<8x128xi1>, vector<8x128xf32>
    %1300 = arith.select %1275, %639, %780 : vector<8x128xi1>, vector<8x128xf32>
    %1301 = arith.select %1273, %498, %1300 : vector<8x128xi1>, vector<8x128xf32>
    %1302 = arith.select %1271, %357, %1301 : vector<8x128xi1>, vector<8x128xf32>
    %1303 = arith.select %1269, %216, %1302 : vector<8x128xi1>, vector<8x128xf32>
    %1304 = arith.select %1267, %33, %1303 : vector<8x128xi1>, vector<8x128xf32>
    %1305 = arith.mulf %1289, %1278 : vector<8x128xf32>
    %1306 = arith.mulf %1294, %1281 : vector<8x128xf32>
    %1307 = arith.addf %1305, %1306 : vector<8x128xf32>
    %1308 = arith.mulf %1299, %1284 : vector<8x128xf32>
    %1309 = arith.addf %1307, %1308 : vector<8x128xf32>
    %1310 = arith.addf %1309, %1304 : vector<8x128xf32>
    %c12_238 = arith.constant 12 : index
    %1311 = arith.index_cast %3 : i32 to index
    %c0_239 = arith.constant 0 : index
    %1312 = vector.load %arg5[%c12_238, %1311, %c0_239] : memref<42x8x128xf32, #tpu.memory_space<vmem>>, vector<1x8x128xf32>
    %1313 = vector.shape_cast %1312 : vector<1x8x128xf32> to vector<8x128xf32>
    %1314 = vector.shape_cast %1310 : vector<8x128xf32> to vector<1x8x128xf32>
    tpu.vector_store %arg5[%c12_238, %1311, %c0_239], %1314 {strides = array<i32>} : memref<42x8x128xf32, #tpu.memory_space<vmem>>, vector<1x8x128xf32>,
    %1315 = arith.select %1275, %596, %737 : vector<8x128xi1>, vector<8x128xf32>
    %1316 = arith.select %1273, %455, %1315 : vector<8x128xi1>, vector<8x128xf32>
    %1317 = arith.select %1271, %314, %1316 : vector<8x128xi1>, vector<8x128xf32>
    %1318 = arith.select %1269, %173, %1317 : vector<8x128xi1>, vector<8x128xf32>
    %1319 = arith.select %1267, %15, %1318 : vector<8x128xi1>, vector<8x128xf32>
    %1320 = arith.select %1275, %664, %805 : vector<8x128xi1>, vector<8x128xf32>
    %1321 = arith.select %1273, %523, %1320 : vector<8x128xi1>, vector<8x128xf32>
    %1322 = arith.select %1271, %382, %1321 : vector<8x128xi1>, vector<8x128xf32>
    %1323 = arith.select %1269, %241, %1322 : vector<8x128xi1>, vector<8x128xf32>
    %1324 = arith.select %1267, %18, %1323 : vector<8x128xi1>, vector<8x128xf32>
    %1325 = arith.select %1275, %667, %808 : vector<8x128xi1>, vector<8x128xf32>
    %1326 = arith.select %1273, %526, %1325 : vector<8x128xi1>, vector<8x128xf32>
    %1327 = arith.select %1271, %385, %1326 : vector<8x128xi1>, vector<8x128xf32>
    %1328 = arith.select %1269, %244, %1327 : vector<8x128xi1>, vector<8x128xf32>
    %1329 = arith.select %1267, %21, %1328 : vector<8x128xi1>, vector<8x128xf32>
    %1330 = arith.select %1275, %647, %788 : vector<8x128xi1>, vector<8x128xf32>
    %1331 = arith.select %1273, %506, %1330 : vector<8x128xi1>, vector<8x128xf32>
    %1332 = arith.select %1271, %365, %1331 : vector<8x128xi1>, vector<8x128xf32>
    %1333 = arith.select %1269, %224, %1332 : vector<8x128xi1>, vector<8x128xf32>
    %1334 = arith.select %1267, %36, %1333 : vector<8x128xi1>, vector<8x128xf32>
    %1335 = arith.mulf %1319, %1278 : vector<8x128xf32>
    %1336 = arith.mulf %1324, %1281 : vector<8x128xf32>
    %1337 = arith.addf %1335, %1336 : vector<8x128xf32>
    %1338 = arith.mulf %1329, %1284 : vector<8x128xf32>
    %1339 = arith.addf %1337, %1338 : vector<8x128xf32>
    %1340 = arith.addf %1339, %1334 : vector<8x128xf32>
    %c13_240 = arith.constant 13 : index
    %1341 = arith.index_cast %3 : i32 to index
    %c0_241 = arith.constant 0 : index
    %1342 = vector.load %arg5[%c13_240, %1341, %c0_241] : memref<42x8x128xf32, #tpu.memory_space<vmem>>, vector<1x8x128xf32>
    %1343 = vector.shape_cast %1342 : vector<1x8x128xf32> to vector<8x128xf32>
    %1344 = vector.shape_cast %1340 : vector<8x128xf32> to vector<1x8x128xf32>
    tpu.vector_store %arg5[%c13_240, %1341, %c0_241], %1344 {strides = array<i32>} : memref<42x8x128xf32, #tpu.memory_space<vmem>>, vector<1x8x128xf32>,
    %1345 = arith.select %1275, %617, %758 : vector<8x128xi1>, vector<8x128xf32>
    %1346 = arith.select %1273, %476, %1345 : vector<8x128xi1>, vector<8x128xf32>
    %1347 = arith.select %1271, %335, %1346 : vector<8x128xi1>, vector<8x128xf32>
    %1348 = arith.select %1269, %194, %1347 : vector<8x128xi1>, vector<8x128xf32>
    %1349 = arith.select %1267, %24, %1348 : vector<8x128xi1>, vector<8x128xf32>
    %1350 = arith.select %1275, %670, %811 : vector<8x128xi1>, vector<8x128xf32>
    %1351 = arith.select %1273, %529, %1350 : vector<8x128xi1>, vector<8x128xf32>
    %1352 = arith.select %1271, %388, %1351 : vector<8x128xi1>, vector<8x128xf32>
    %1353 = arith.select %1269, %247, %1352 : vector<8x128xi1>, vector<8x128xf32>
    %1354 = arith.select %1267, %27, %1353 : vector<8x128xi1>, vector<8x128xf32>
    %1355 = arith.select %1275, %673, %814 : vector<8x128xi1>, vector<8x128xf32>
    %1356 = arith.select %1273, %532, %1355 : vector<8x128xi1>, vector<8x128xf32>
    %1357 = arith.select %1271, %391, %1356 : vector<8x128xi1>, vector<8x128xf32>
    %1358 = arith.select %1269, %250, %1357 : vector<8x128xi1>, vector<8x128xf32>
    %1359 = arith.select %1267, %30, %1358 : vector<8x128xi1>, vector<8x128xf32>
    %1360 = arith.select %1275, %655, %796 : vector<8x128xi1>, vector<8x128xf32>
    %1361 = arith.select %1273, %514, %1360 : vector<8x128xi1>, vector<8x128xf32>
    %1362 = arith.select %1271, %373, %1361 : vector<8x128xi1>, vector<8x128xf32>
    %1363 = arith.select %1269, %232, %1362 : vector<8x128xi1>, vector<8x128xf32>
    %1364 = arith.select %1267, %39, %1363 : vector<8x128xi1>, vector<8x128xf32>
    %1365 = arith.mulf %1349, %1278 : vector<8x128xf32>
    %1366 = arith.mulf %1354, %1281 : vector<8x128xf32>
    %1367 = arith.addf %1365, %1366 : vector<8x128xf32>
    %1368 = arith.mulf %1359, %1284 : vector<8x128xf32>
    %1369 = arith.addf %1367, %1368 : vector<8x128xf32>
    %1370 = arith.addf %1369, %1364 : vector<8x128xf32>
    %c14_242 = arith.constant 14 : index
    %1371 = arith.index_cast %3 : i32 to index
    %c0_243 = arith.constant 0 : index
    %1372 = vector.load %arg5[%c14_242, %1371, %c0_243] : memref<42x8x128xf32, #tpu.memory_space<vmem>>, vector<1x8x128xf32>
    %1373 = vector.shape_cast %1372 : vector<1x8x128xf32> to vector<8x128xf32>
    %1374 = vector.shape_cast %1370 : vector<8x128xf32> to vector<1x8x128xf32>
    tpu.vector_store %arg5[%c14_242, %1371, %c0_243], %1374 {strides = array<i32>} : memref<42x8x128xf32, #tpu.memory_space<vmem>>, vector<1x8x128xf32>,
    %c65 = arith.constant 65 : index
    %1375 = arith.index_cast %3 : i32 to index
    %c0_244 = arith.constant 0 : index
    %1376 = vector.load %arg4[%c65, %1375, %c0_244] : memref<116x8x128xf32, #tpu.memory_space<vmem>>, vector<1x8x128xf32>
    %1377 = vector.shape_cast %1376 : vector<1x8x128xf32> to vector<8x128xf32>
    %cst_245 = arith.constant 2.500000e+00 : f32
    %1378 = vector.broadcast %cst_245 : f32 to vector<8x128xf32>
    %1379 = arith.cmpf olt, %1377, %1378 : vector<8x128xf32>
    %cst_246 = arith.constant 3.500000e+00 : f32
    %1380 = vector.broadcast %cst_246 : f32 to vector<8x128xf32>
    %1381 = arith.cmpf olt, %1377, %1380 : vector<8x128xf32>
    %cst_247 = arith.constant 4.500000e+00 : f32
    %1382 = vector.broadcast %cst_247 : f32 to vector<8x128xf32>
    %1383 = arith.cmpf olt, %1377, %1382 : vector<8x128xf32>
    %cst_248 = arith.constant 5.500000e+00 : f32
    %1384 = vector.broadcast %cst_248 : f32 to vector<8x128xf32>
    %1385 = arith.cmpf olt, %1377, %1384 : vector<8x128xf32>
    %cst_249 = arith.constant 6.500000e+00 : f32
    %1386 = vector.broadcast %cst_249 : f32 to vector<8x128xf32>
    %1387 = arith.cmpf olt, %1377, %1386 : vector<8x128xf32>
    %c89 = arith.constant 89 : index
    %1388 = arith.index_cast %3 : i32 to index
    %c0_250 = arith.constant 0 : index
    %1389 = vector.load %arg4[%c89, %1388, %c0_250] : memref<116x8x128xf32, #tpu.memory_space<vmem>>, vector<1x8x128xf32>
    %1390 = vector.shape_cast %1389 : vector<1x8x128xf32> to vector<8x128xf32>
    %c90 = arith.constant 90 : index
    %1391 = arith.index_cast %3 : i32 to index
    %c0_251 = arith.constant 0 : index
    %1392 = vector.load %arg4[%c90, %1391, %c0_251] : memref<116x8x128xf32, #tpu.memory_space<vmem>>, vector<1x8x128xf32>
    %1393 = vector.shape_cast %1392 : vector<1x8x128xf32> to vector<8x128xf32>
    %c91 = arith.constant 91 : index
    %1394 = arith.index_cast %3 : i32 to index
    %c0_252 = arith.constant 0 : index
    %1395 = vector.load %arg4[%c91, %1394, %c0_252] : memref<116x8x128xf32, #tpu.memory_space<vmem>>, vector<1x8x128xf32>
    %1396 = vector.shape_cast %1395 : vector<1x8x128xf32> to vector<8x128xf32>
    %1397 = arith.select %1387, %575, %716 : vector<8x128xi1>, vector<8x128xf32>
    %1398 = arith.select %1385, %434, %1397 : vector<8x128xi1>, vector<8x128xf32>
    %1399 = arith.select %1383, %293, %1398 : vector<8x128xi1>, vector<8x128xf32>
    %1400 = arith.select %1381, %152, %1399 : vector<8x128xi1>, vector<8x128xf32>
    %1401 = arith.select %1379, %6, %1400 : vector<8x128xi1>, vector<8x128xf32>
    %1402 = arith.select %1387, %658, %799 : vector<8x128xi1>, vector<8x128xf32>
    %1403 = arith.select %1385, %517, %1402 : vector<8x128xi1>, vector<8x128xf32>
    %1404 = arith.select %1383, %376, %1403 : vector<8x128xi1>, vector<8x128xf32>
    %1405 = arith.select %1381, %235, %1404 : vector<8x128xi1>, vector<8x128xf32>
    %1406 = arith.select %1379, %9, %1405 : vector<8x128xi1>, vector<8x128xf32>
    %1407 = arith.select %1387, %661, %802 : vector<8x128xi1>, vector<8x128xf32>
    %1408 = arith.select %1385, %520, %1407 : vector<8x128xi1>, vector<8x128xf32>
    %1409 = arith.select %1383, %379, %1408 : vector<8x128xi1>, vector<8x128xf32>
    %1410 = arith.select %1381, %238, %1409 : vector<8x128xi1>, vector<8x128xf32>
    %1411 = arith.select %1379, %12, %1410 : vector<8x128xi1>, vector<8x128xf32>
    %1412 = arith.select %1387, %639, %780 : vector<8x128xi1>, vector<8x128xf32>
    %1413 = arith.select %1385, %498, %1412 : vector<8x128xi1>, vector<8x128xf32>
    %1414 = arith.select %1383, %357, %1413 : vector<8x128xi1>, vector<8x128xf32>
    %1415 = arith.select %1381, %216, %1414 : vector<8x128xi1>, vector<8x128xf32>
    %1416 = arith.select %1379, %33, %1415 : vector<8x128xi1>, vector<8x128xf32>
    %1417 = arith.mulf %1401, %1390 : vector<8x128xf32>
    %1418 = arith.mulf %1406, %1393 : vector<8x128xf32>
    %1419 = arith.addf %1417, %1418 : vector<8x128xf32>
    %1420 = arith.mulf %1411, %1396 : vector<8x128xf32>
    %1421 = arith.addf %1419, %1420 : vector<8x128xf32>
    %1422 = arith.addf %1421, %1416 : vector<8x128xf32>
    %c15_253 = arith.constant 15 : index
    %1423 = arith.index_cast %3 : i32 to index
    %c0_254 = arith.constant 0 : index
    %1424 = vector.load %arg5[%c15_253, %1423, %c0_254] : memref<42x8x128xf32, #tpu.memory_space<vmem>>, vector<1x8x128xf32>
    %1425 = vector.shape_cast %1424 : vector<1x8x128xf32> to vector<8x128xf32>
    %1426 = vector.shape_cast %1422 : vector<8x128xf32> to vector<1x8x128xf32>
    tpu.vector_store %arg5[%c15_253, %1423, %c0_254], %1426 {strides = array<i32>} : memref<42x8x128xf32, #tpu.memory_space<vmem>>, vector<1x8x128xf32>,
    %1427 = arith.select %1387, %596, %737 : vector<8x128xi1>, vector<8x128xf32>
    %1428 = arith.select %1385, %455, %1427 : vector<8x128xi1>, vector<8x128xf32>
    %1429 = arith.select %1383, %314, %1428 : vector<8x128xi1>, vector<8x128xf32>
    %1430 = arith.select %1381, %173, %1429 : vector<8x128xi1>, vector<8x128xf32>
    %1431 = arith.select %1379, %15, %1430 : vector<8x128xi1>, vector<8x128xf32>
    %1432 = arith.select %1387, %664, %805 : vector<8x128xi1>, vector<8x128xf32>
    %1433 = arith.select %1385, %523, %1432 : vector<8x128xi1>, vector<8x128xf32>
    %1434 = arith.select %1383, %382, %1433 : vector<8x128xi1>, vector<8x128xf32>
    %1435 = arith.select %1381, %241, %1434 : vector<8x128xi1>, vector<8x128xf32>
    %1436 = arith.select %1379, %18, %1435 : vector<8x128xi1>, vector<8x128xf32>
    %1437 = arith.select %1387, %667, %808 : vector<8x128xi1>, vector<8x128xf32>
    %1438 = arith.select %1385, %526, %1437 : vector<8x128xi1>, vector<8x128xf32>
    %1439 = arith.select %1383, %385, %1438 : vector<8x128xi1>, vector<8x128xf32>
    %1440 = arith.select %1381, %244, %1439 : vector<8x128xi1>, vector<8x128xf32>
    %1441 = arith.select %1379, %21, %1440 : vector<8x128xi1>, vector<8x128xf32>
    %1442 = arith.select %1387, %647, %788 : vector<8x128xi1>, vector<8x128xf32>
    %1443 = arith.select %1385, %506, %1442 : vector<8x128xi1>, vector<8x128xf32>
    %1444 = arith.select %1383, %365, %1443 : vector<8x128xi1>, vector<8x128xf32>
    %1445 = arith.select %1381, %224, %1444 : vector<8x128xi1>, vector<8x128xf32>
    %1446 = arith.select %1379, %36, %1445 : vector<8x128xi1>, vector<8x128xf32>
    %1447 = arith.mulf %1431, %1390 : vector<8x128xf32>
    %1448 = arith.mulf %1436, %1393 : vector<8x128xf32>
    %1449 = arith.addf %1447, %1448 : vector<8x128xf32>
    %1450 = arith.mulf %1441, %1396 : vector<8x128xf32>
    %1451 = arith.addf %1449, %1450 : vector<8x128xf32>
    %1452 = arith.addf %1451, %1446 : vector<8x128xf32>
    %c16_255 = arith.constant 16 : index
    %1453 = arith.index_cast %3 : i32 to index
    %c0_256 = arith.constant 0 : index
    %1454 = vector.load %arg5[%c16_255, %1453, %c0_256] : memref<42x8x128xf32, #tpu.memory_space<vmem>>, vector<1x8x128xf32>
    %1455 = vector.shape_cast %1454 : vector<1x8x128xf32> to vector<8x128xf32>
    %1456 = vector.shape_cast %1452 : vector<8x128xf32> to vector<1x8x128xf32>
    tpu.vector_store %arg5[%c16_255, %1453, %c0_256], %1456 {strides = array<i32>} : memref<42x8x128xf32, #tpu.memory_space<vmem>>, vector<1x8x128xf32>,
    %1457 = arith.select %1387, %617, %758 : vector<8x128xi1>, vector<8x128xf32>
    %1458 = arith.select %1385, %476, %1457 : vector<8x128xi1>, vector<8x128xf32>
    %1459 = arith.select %1383, %335, %1458 : vector<8x128xi1>, vector<8x128xf32>
    %1460 = arith.select %1381, %194, %1459 : vector<8x128xi1>, vector<8x128xf32>
    %1461 = arith.select %1379, %24, %1460 : vector<8x128xi1>, vector<8x128xf32>
    %1462 = arith.select %1387, %670, %811 : vector<8x128xi1>, vector<8x128xf32>
    %1463 = arith.select %1385, %529, %1462 : vector<8x128xi1>, vector<8x128xf32>
    %1464 = arith.select %1383, %388, %1463 : vector<8x128xi1>, vector<8x128xf32>
    %1465 = arith.select %1381, %247, %1464 : vector<8x128xi1>, vector<8x128xf32>
    %1466 = arith.select %1379, %27, %1465 : vector<8x128xi1>, vector<8x128xf32>
    %1467 = arith.select %1387, %673, %814 : vector<8x128xi1>, vector<8x128xf32>
    %1468 = arith.select %1385, %532, %1467 : vector<8x128xi1>, vector<8x128xf32>
    %1469 = arith.select %1383, %391, %1468 : vector<8x128xi1>, vector<8x128xf32>
    %1470 = arith.select %1381, %250, %1469 : vector<8x128xi1>, vector<8x128xf32>
    %1471 = arith.select %1379, %30, %1470 : vector<8x128xi1>, vector<8x128xf32>
    %1472 = arith.select %1387, %655, %796 : vector<8x128xi1>, vector<8x128xf32>
    %1473 = arith.select %1385, %514, %1472 : vector<8x128xi1>, vector<8x128xf32>
    %1474 = arith.select %1383, %373, %1473 : vector<8x128xi1>, vector<8x128xf32>
    %1475 = arith.select %1381, %232, %1474 : vector<8x128xi1>, vector<8x128xf32>
    %1476 = arith.select %1379, %39, %1475 : vector<8x128xi1>, vector<8x128xf32>
    %1477 = arith.mulf %1461, %1390 : vector<8x128xf32>
    %1478 = arith.mulf %1466, %1393 : vector<8x128xf32>
    %1479 = arith.addf %1477, %1478 : vector<8x128xf32>
    %1480 = arith.mulf %1471, %1396 : vector<8x128xf32>
    %1481 = arith.addf %1479, %1480 : vector<8x128xf32>
    %1482 = arith.addf %1481, %1476 : vector<8x128xf32>
    %c17_257 = arith.constant 17 : index
    %1483 = arith.index_cast %3 : i32 to index
    %c0_258 = arith.constant 0 : index
    %1484 = vector.load %arg5[%c17_257, %1483, %c0_258] : memref<42x8x128xf32, #tpu.memory_space<vmem>>, vector<1x8x128xf32>
    %1485 = vector.shape_cast %1484 : vector<1x8x128xf32> to vector<8x128xf32>
    %1486 = vector.shape_cast %1482 : vector<8x128xf32> to vector<1x8x128xf32>
    tpu.vector_store %arg5[%c17_257, %1483, %c0_258], %1486 {strides = array<i32>} : memref<42x8x128xf32, #tpu.memory_space<vmem>>, vector<1x8x128xf32>,
    %c66 = arith.constant 66 : index
    %1487 = arith.index_cast %3 : i32 to index
    %c0_259 = arith.constant 0 : index
    %1488 = vector.load %arg4[%c66, %1487, %c0_259] : memref<116x8x128xf32, #tpu.memory_space<vmem>>, vector<1x8x128xf32>
    %1489 = vector.shape_cast %1488 : vector<1x8x128xf32> to vector<8x128xf32>
    %cst_260 = arith.constant 2.500000e+00 : f32
    %1490 = vector.broadcast %cst_260 : f32 to vector<8x128xf32>
    %1491 = arith.cmpf olt, %1489, %1490 : vector<8x128xf32>
    %cst_261 = arith.constant 3.500000e+00 : f32
    %1492 = vector.broadcast %cst_261 : f32 to vector<8x128xf32>
    %1493 = arith.cmpf olt, %1489, %1492 : vector<8x128xf32>
    %cst_262 = arith.constant 4.500000e+00 : f32
    %1494 = vector.broadcast %cst_262 : f32 to vector<8x128xf32>
    %1495 = arith.cmpf olt, %1489, %1494 : vector<8x128xf32>
    %cst_263 = arith.constant 5.500000e+00 : f32
    %1496 = vector.broadcast %cst_263 : f32 to vector<8x128xf32>
    %1497 = arith.cmpf olt, %1489, %1496 : vector<8x128xf32>
    %cst_264 = arith.constant 6.500000e+00 : f32
    %1498 = vector.broadcast %cst_264 : f32 to vector<8x128xf32>
    %1499 = arith.cmpf olt, %1489, %1498 : vector<8x128xf32>
    %c92 = arith.constant 92 : index
    %1500 = arith.index_cast %3 : i32 to index
    %c0_265 = arith.constant 0 : index
    %1501 = vector.load %arg4[%c92, %1500, %c0_265] : memref<116x8x128xf32, #tpu.memory_space<vmem>>, vector<1x8x128xf32>
    %1502 = vector.shape_cast %1501 : vector<1x8x128xf32> to vector<8x128xf32>
    %c93 = arith.constant 93 : index
    %1503 = arith.index_cast %3 : i32 to index
    %c0_266 = arith.constant 0 : index
    %1504 = vector.load %arg4[%c93, %1503, %c0_266] : memref<116x8x128xf32, #tpu.memory_space<vmem>>, vector<1x8x128xf32>
    %1505 = vector.shape_cast %1504 : vector<1x8x128xf32> to vector<8x128xf32>
    %c94 = arith.constant 94 : index
    %1506 = arith.index_cast %3 : i32 to index
    %c0_267 = arith.constant 0 : index
    %1507 = vector.load %arg4[%c94, %1506, %c0_267] : memref<116x8x128xf32, #tpu.memory_space<vmem>>, vector<1x8x128xf32>
    %1508 = vector.shape_cast %1507 : vector<1x8x128xf32> to vector<8x128xf32>
    %1509 = arith.select %1499, %575, %716 : vector<8x128xi1>, vector<8x128xf32>
    %1510 = arith.select %1497, %434, %1509 : vector<8x128xi1>, vector<8x128xf32>
    %1511 = arith.select %1495, %293, %1510 : vector<8x128xi1>, vector<8x128xf32>
    %1512 = arith.select %1493, %152, %1511 : vector<8x128xi1>, vector<8x128xf32>
    %1513 = arith.select %1491, %6, %1512 : vector<8x128xi1>, vector<8x128xf32>
    %1514 = arith.select %1499, %658, %799 : vector<8x128xi1>, vector<8x128xf32>
    %1515 = arith.select %1497, %517, %1514 : vector<8x128xi1>, vector<8x128xf32>
    %1516 = arith.select %1495, %376, %1515 : vector<8x128xi1>, vector<8x128xf32>
    %1517 = arith.select %1493, %235, %1516 : vector<8x128xi1>, vector<8x128xf32>
    %1518 = arith.select %1491, %9, %1517 : vector<8x128xi1>, vector<8x128xf32>
    %1519 = arith.select %1499, %661, %802 : vector<8x128xi1>, vector<8x128xf32>
    %1520 = arith.select %1497, %520, %1519 : vector<8x128xi1>, vector<8x128xf32>
    %1521 = arith.select %1495, %379, %1520 : vector<8x128xi1>, vector<8x128xf32>
    %1522 = arith.select %1493, %238, %1521 : vector<8x128xi1>, vector<8x128xf32>
    %1523 = arith.select %1491, %12, %1522 : vector<8x128xi1>, vector<8x128xf32>
    %1524 = arith.select %1499, %639, %780 : vector<8x128xi1>, vector<8x128xf32>
    %1525 = arith.select %1497, %498, %1524 : vector<8x128xi1>, vector<8x128xf32>
    %1526 = arith.select %1495, %357, %1525 : vector<8x128xi1>, vector<8x128xf32>
    %1527 = arith.select %1493, %216, %1526 : vector<8x128xi1>, vector<8x128xf32>
    %1528 = arith.select %1491, %33, %1527 : vector<8x128xi1>, vector<8x128xf32>
    %1529 = arith.mulf %1513, %1502 : vector<8x128xf32>
    %1530 = arith.mulf %1518, %1505 : vector<8x128xf32>
    %1531 = arith.addf %1529, %1530 : vector<8x128xf32>
    %1532 = arith.mulf %1523, %1508 : vector<8x128xf32>
    %1533 = arith.addf %1531, %1532 : vector<8x128xf32>
    %1534 = arith.addf %1533, %1528 : vector<8x128xf32>
    %c18_268 = arith.constant 18 : index
    %1535 = arith.index_cast %3 : i32 to index
    %c0_269 = arith.constant 0 : index
    %1536 = vector.load %arg5[%c18_268, %1535, %c0_269] : memref<42x8x128xf32, #tpu.memory_space<vmem>>, vector<1x8x128xf32>
    %1537 = vector.shape_cast %1536 : vector<1x8x128xf32> to vector<8x128xf32>
    %1538 = vector.shape_cast %1534 : vector<8x128xf32> to vector<1x8x128xf32>
    tpu.vector_store %arg5[%c18_268, %1535, %c0_269], %1538 {strides = array<i32>} : memref<42x8x128xf32, #tpu.memory_space<vmem>>, vector<1x8x128xf32>,
    %1539 = arith.select %1499, %596, %737 : vector<8x128xi1>, vector<8x128xf32>
    %1540 = arith.select %1497, %455, %1539 : vector<8x128xi1>, vector<8x128xf32>
    %1541 = arith.select %1495, %314, %1540 : vector<8x128xi1>, vector<8x128xf32>
    %1542 = arith.select %1493, %173, %1541 : vector<8x128xi1>, vector<8x128xf32>
    %1543 = arith.select %1491, %15, %1542 : vector<8x128xi1>, vector<8x128xf32>
    %1544 = arith.select %1499, %664, %805 : vector<8x128xi1>, vector<8x128xf32>
    %1545 = arith.select %1497, %523, %1544 : vector<8x128xi1>, vector<8x128xf32>
    %1546 = arith.select %1495, %382, %1545 : vector<8x128xi1>, vector<8x128xf32>
    %1547 = arith.select %1493, %241, %1546 : vector<8x128xi1>, vector<8x128xf32>
    %1548 = arith.select %1491, %18, %1547 : vector<8x128xi1>, vector<8x128xf32>
    %1549 = arith.select %1499, %667, %808 : vector<8x128xi1>, vector<8x128xf32>
    %1550 = arith.select %1497, %526, %1549 : vector<8x128xi1>, vector<8x128xf32>
    %1551 = arith.select %1495, %385, %1550 : vector<8x128xi1>, vector<8x128xf32>
    %1552 = arith.select %1493, %244, %1551 : vector<8x128xi1>, vector<8x128xf32>
    %1553 = arith.select %1491, %21, %1552 : vector<8x128xi1>, vector<8x128xf32>
    %1554 = arith.select %1499, %647, %788 : vector<8x128xi1>, vector<8x128xf32>
    %1555 = arith.select %1497, %506, %1554 : vector<8x128xi1>, vector<8x128xf32>
    %1556 = arith.select %1495, %365, %1555 : vector<8x128xi1>, vector<8x128xf32>
    %1557 = arith.select %1493, %224, %1556 : vector<8x128xi1>, vector<8x128xf32>
    %1558 = arith.select %1491, %36, %1557 : vector<8x128xi1>, vector<8x128xf32>
    %1559 = arith.mulf %1543, %1502 : vector<8x128xf32>
    %1560 = arith.mulf %1548, %1505 : vector<8x128xf32>
    %1561 = arith.addf %1559, %1560 : vector<8x128xf32>
    %1562 = arith.mulf %1553, %1508 : vector<8x128xf32>
    %1563 = arith.addf %1561, %1562 : vector<8x128xf32>
    %1564 = arith.addf %1563, %1558 : vector<8x128xf32>
    %c19_270 = arith.constant 19 : index
    %1565 = arith.index_cast %3 : i32 to index
    %c0_271 = arith.constant 0 : index
    %1566 = vector.load %arg5[%c19_270, %1565, %c0_271] : memref<42x8x128xf32, #tpu.memory_space<vmem>>, vector<1x8x128xf32>
    %1567 = vector.shape_cast %1566 : vector<1x8x128xf32> to vector<8x128xf32>
    %1568 = vector.shape_cast %1564 : vector<8x128xf32> to vector<1x8x128xf32>
    tpu.vector_store %arg5[%c19_270, %1565, %c0_271], %1568 {strides = array<i32>} : memref<42x8x128xf32, #tpu.memory_space<vmem>>, vector<1x8x128xf32>,
    %1569 = arith.select %1499, %617, %758 : vector<8x128xi1>, vector<8x128xf32>
    %1570 = arith.select %1497, %476, %1569 : vector<8x128xi1>, vector<8x128xf32>
    %1571 = arith.select %1495, %335, %1570 : vector<8x128xi1>, vector<8x128xf32>
    %1572 = arith.select %1493, %194, %1571 : vector<8x128xi1>, vector<8x128xf32>
    %1573 = arith.select %1491, %24, %1572 : vector<8x128xi1>, vector<8x128xf32>
    %1574 = arith.select %1499, %670, %811 : vector<8x128xi1>, vector<8x128xf32>
    %1575 = arith.select %1497, %529, %1574 : vector<8x128xi1>, vector<8x128xf32>
    %1576 = arith.select %1495, %388, %1575 : vector<8x128xi1>, vector<8x128xf32>
    %1577 = arith.select %1493, %247, %1576 : vector<8x128xi1>, vector<8x128xf32>
    %1578 = arith.select %1491, %27, %1577 : vector<8x128xi1>, vector<8x128xf32>
    %1579 = arith.select %1499, %673, %814 : vector<8x128xi1>, vector<8x128xf32>
    %1580 = arith.select %1497, %532, %1579 : vector<8x128xi1>, vector<8x128xf32>
    %1581 = arith.select %1495, %391, %1580 : vector<8x128xi1>, vector<8x128xf32>
    %1582 = arith.select %1493, %250, %1581 : vector<8x128xi1>, vector<8x128xf32>
    %1583 = arith.select %1491, %30, %1582 : vector<8x128xi1>, vector<8x128xf32>
    %1584 = arith.select %1499, %655, %796 : vector<8x128xi1>, vector<8x128xf32>
    %1585 = arith.select %1497, %514, %1584 : vector<8x128xi1>, vector<8x128xf32>
    %1586 = arith.select %1495, %373, %1585 : vector<8x128xi1>, vector<8x128xf32>
    %1587 = arith.select %1493, %232, %1586 : vector<8x128xi1>, vector<8x128xf32>
    %1588 = arith.select %1491, %39, %1587 : vector<8x128xi1>, vector<8x128xf32>
    %1589 = arith.mulf %1573, %1502 : vector<8x128xf32>
    %1590 = arith.mulf %1578, %1505 : vector<8x128xf32>
    %1591 = arith.addf %1589, %1590 : vector<8x128xf32>
    %1592 = arith.mulf %1583, %1508 : vector<8x128xf32>
    %1593 = arith.addf %1591, %1592 : vector<8x128xf32>
    %1594 = arith.addf %1593, %1588 : vector<8x128xf32>
    %c20_272 = arith.constant 20 : index
    %1595 = arith.index_cast %3 : i32 to index
    %c0_273 = arith.constant 0 : index
    %1596 = vector.load %arg5[%c20_272, %1595, %c0_273] : memref<42x8x128xf32, #tpu.memory_space<vmem>>, vector<1x8x128xf32>
    %1597 = vector.shape_cast %1596 : vector<1x8x128xf32> to vector<8x128xf32>
    %1598 = vector.shape_cast %1594 : vector<8x128xf32> to vector<1x8x128xf32>
    tpu.vector_store %arg5[%c20_272, %1595, %c0_273], %1598 {strides = array<i32>} : memref<42x8x128xf32, #tpu.memory_space<vmem>>, vector<1x8x128xf32>,
    %c67 = arith.constant 67 : index
    %1599 = arith.index_cast %3 : i32 to index
    %c0_274 = arith.constant 0 : index
    %1600 = vector.load %arg4[%c67, %1599, %c0_274] : memref<116x8x128xf32, #tpu.memory_space<vmem>>, vector<1x8x128xf32>
    %1601 = vector.shape_cast %1600 : vector<1x8x128xf32> to vector<8x128xf32>
    %cst_275 = arith.constant 2.500000e+00 : f32
    %1602 = vector.broadcast %cst_275 : f32 to vector<8x128xf32>
    %1603 = arith.cmpf olt, %1601, %1602 : vector<8x128xf32>
    %cst_276 = arith.constant 3.500000e+00 : f32
    %1604 = vector.broadcast %cst_276 : f32 to vector<8x128xf32>
    %1605 = arith.cmpf olt, %1601, %1604 : vector<8x128xf32>
    %cst_277 = arith.constant 4.500000e+00 : f32
    %1606 = vector.broadcast %cst_277 : f32 to vector<8x128xf32>
    %1607 = arith.cmpf olt, %1601, %1606 : vector<8x128xf32>
    %cst_278 = arith.constant 5.500000e+00 : f32
    %1608 = vector.broadcast %cst_278 : f32 to vector<8x128xf32>
    %1609 = arith.cmpf olt, %1601, %1608 : vector<8x128xf32>
    %cst_279 = arith.constant 6.500000e+00 : f32
    %1610 = vector.broadcast %cst_279 : f32 to vector<8x128xf32>
    %1611 = arith.cmpf olt, %1601, %1610 : vector<8x128xf32>
    %c95 = arith.constant 95 : index
    %1612 = arith.index_cast %3 : i32 to index
    %c0_280 = arith.constant 0 : index
    %1613 = vector.load %arg4[%c95, %1612, %c0_280] : memref<116x8x128xf32, #tpu.memory_space<vmem>>, vector<1x8x128xf32>
    %1614 = vector.shape_cast %1613 : vector<1x8x128xf32> to vector<8x128xf32>
    %c96 = arith.constant 96 : index
    %1615 = arith.index_cast %3 : i32 to index
    %c0_281 = arith.constant 0 : index
    %1616 = vector.load %arg4[%c96, %1615, %c0_281] : memref<116x8x128xf32, #tpu.memory_space<vmem>>, vector<1x8x128xf32>
    %1617 = vector.shape_cast %1616 : vector<1x8x128xf32> to vector<8x128xf32>
    %c97 = arith.constant 97 : index
    %1618 = arith.index_cast %3 : i32 to index
    %c0_282 = arith.constant 0 : index
    %1619 = vector.load %arg4[%c97, %1618, %c0_282] : memref<116x8x128xf32, #tpu.memory_space<vmem>>, vector<1x8x128xf32>
    %1620 = vector.shape_cast %1619 : vector<1x8x128xf32> to vector<8x128xf32>
    %1621 = arith.select %1611, %575, %716 : vector<8x128xi1>, vector<8x128xf32>
    %1622 = arith.select %1609, %434, %1621 : vector<8x128xi1>, vector<8x128xf32>
    %1623 = arith.select %1607, %293, %1622 : vector<8x128xi1>, vector<8x128xf32>
    %1624 = arith.select %1605, %152, %1623 : vector<8x128xi1>, vector<8x128xf32>
    %1625 = arith.select %1603, %6, %1624 : vector<8x128xi1>, vector<8x128xf32>
    %1626 = arith.select %1611, %658, %799 : vector<8x128xi1>, vector<8x128xf32>
    %1627 = arith.select %1609, %517, %1626 : vector<8x128xi1>, vector<8x128xf32>
    %1628 = arith.select %1607, %376, %1627 : vector<8x128xi1>, vector<8x128xf32>
    %1629 = arith.select %1605, %235, %1628 : vector<8x128xi1>, vector<8x128xf32>
    %1630 = arith.select %1603, %9, %1629 : vector<8x128xi1>, vector<8x128xf32>
    %1631 = arith.select %1611, %661, %802 : vector<8x128xi1>, vector<8x128xf32>
    %1632 = arith.select %1609, %520, %1631 : vector<8x128xi1>, vector<8x128xf32>
    %1633 = arith.select %1607, %379, %1632 : vector<8x128xi1>, vector<8x128xf32>
    %1634 = arith.select %1605, %238, %1633 : vector<8x128xi1>, vector<8x128xf32>
    %1635 = arith.select %1603, %12, %1634 : vector<8x128xi1>, vector<8x128xf32>
    %1636 = arith.select %1611, %639, %780 : vector<8x128xi1>, vector<8x128xf32>
    %1637 = arith.select %1609, %498, %1636 : vector<8x128xi1>, vector<8x128xf32>
    %1638 = arith.select %1607, %357, %1637 : vector<8x128xi1>, vector<8x128xf32>
    %1639 = arith.select %1605, %216, %1638 : vector<8x128xi1>, vector<8x128xf32>
    %1640 = arith.select %1603, %33, %1639 : vector<8x128xi1>, vector<8x128xf32>
    %1641 = arith.mulf %1625, %1614 : vector<8x128xf32>
    %1642 = arith.mulf %1630, %1617 : vector<8x128xf32>
    %1643 = arith.addf %1641, %1642 : vector<8x128xf32>
    %1644 = arith.mulf %1635, %1620 : vector<8x128xf32>
    %1645 = arith.addf %1643, %1644 : vector<8x128xf32>
    %1646 = arith.addf %1645, %1640 : vector<8x128xf32>
    %c21_283 = arith.constant 21 : index
    %1647 = arith.index_cast %3 : i32 to index
    %c0_284 = arith.constant 0 : index
    %1648 = vector.load %arg5[%c21_283, %1647, %c0_284] : memref<42x8x128xf32, #tpu.memory_space<vmem>>, vector<1x8x128xf32>
    %1649 = vector.shape_cast %1648 : vector<1x8x128xf32> to vector<8x128xf32>
    %1650 = vector.shape_cast %1646 : vector<8x128xf32> to vector<1x8x128xf32>
    tpu.vector_store %arg5[%c21_283, %1647, %c0_284], %1650 {strides = array<i32>} : memref<42x8x128xf32, #tpu.memory_space<vmem>>, vector<1x8x128xf32>,
    %1651 = arith.select %1611, %596, %737 : vector<8x128xi1>, vector<8x128xf32>
    %1652 = arith.select %1609, %455, %1651 : vector<8x128xi1>, vector<8x128xf32>
    %1653 = arith.select %1607, %314, %1652 : vector<8x128xi1>, vector<8x128xf32>
    %1654 = arith.select %1605, %173, %1653 : vector<8x128xi1>, vector<8x128xf32>
    %1655 = arith.select %1603, %15, %1654 : vector<8x128xi1>, vector<8x128xf32>
    %1656 = arith.select %1611, %664, %805 : vector<8x128xi1>, vector<8x128xf32>
    %1657 = arith.select %1609, %523, %1656 : vector<8x128xi1>, vector<8x128xf32>
    %1658 = arith.select %1607, %382, %1657 : vector<8x128xi1>, vector<8x128xf32>
    %1659 = arith.select %1605, %241, %1658 : vector<8x128xi1>, vector<8x128xf32>
    %1660 = arith.select %1603, %18, %1659 : vector<8x128xi1>, vector<8x128xf32>
    %1661 = arith.select %1611, %667, %808 : vector<8x128xi1>, vector<8x128xf32>
    %1662 = arith.select %1609, %526, %1661 : vector<8x128xi1>, vector<8x128xf32>
    %1663 = arith.select %1607, %385, %1662 : vector<8x128xi1>, vector<8x128xf32>
    %1664 = arith.select %1605, %244, %1663 : vector<8x128xi1>, vector<8x128xf32>
    %1665 = arith.select %1603, %21, %1664 : vector<8x128xi1>, vector<8x128xf32>
    %1666 = arith.select %1611, %647, %788 : vector<8x128xi1>, vector<8x128xf32>
    %1667 = arith.select %1609, %506, %1666 : vector<8x128xi1>, vector<8x128xf32>
    %1668 = arith.select %1607, %365, %1667 : vector<8x128xi1>, vector<8x128xf32>
    %1669 = arith.select %1605, %224, %1668 : vector<8x128xi1>, vector<8x128xf32>
    %1670 = arith.select %1603, %36, %1669 : vector<8x128xi1>, vector<8x128xf32>
    %1671 = arith.mulf %1655, %1614 : vector<8x128xf32>
    %1672 = arith.mulf %1660, %1617 : vector<8x128xf32>
    %1673 = arith.addf %1671, %1672 : vector<8x128xf32>
    %1674 = arith.mulf %1665, %1620 : vector<8x128xf32>
    %1675 = arith.addf %1673, %1674 : vector<8x128xf32>
    %1676 = arith.addf %1675, %1670 : vector<8x128xf32>
    %c22_285 = arith.constant 22 : index
    %1677 = arith.index_cast %3 : i32 to index
    %c0_286 = arith.constant 0 : index
    %1678 = vector.load %arg5[%c22_285, %1677, %c0_286] : memref<42x8x128xf32, #tpu.memory_space<vmem>>, vector<1x8x128xf32>
    %1679 = vector.shape_cast %1678 : vector<1x8x128xf32> to vector<8x128xf32>
    %1680 = vector.shape_cast %1676 : vector<8x128xf32> to vector<1x8x128xf32>
    tpu.vector_store %arg5[%c22_285, %1677, %c0_286], %1680 {strides = array<i32>} : memref<42x8x128xf32, #tpu.memory_space<vmem>>, vector<1x8x128xf32>,
    %1681 = arith.select %1611, %617, %758 : vector<8x128xi1>, vector<8x128xf32>
    %1682 = arith.select %1609, %476, %1681 : vector<8x128xi1>, vector<8x128xf32>
    %1683 = arith.select %1607, %335, %1682 : vector<8x128xi1>, vector<8x128xf32>
    %1684 = arith.select %1605, %194, %1683 : vector<8x128xi1>, vector<8x128xf32>
    %1685 = arith.select %1603, %24, %1684 : vector<8x128xi1>, vector<8x128xf32>
    %1686 = arith.select %1611, %670, %811 : vector<8x128xi1>, vector<8x128xf32>
    %1687 = arith.select %1609, %529, %1686 : vector<8x128xi1>, vector<8x128xf32>
    %1688 = arith.select %1607, %388, %1687 : vector<8x128xi1>, vector<8x128xf32>
    %1689 = arith.select %1605, %247, %1688 : vector<8x128xi1>, vector<8x128xf32>
    %1690 = arith.select %1603, %27, %1689 : vector<8x128xi1>, vector<8x128xf32>
    %1691 = arith.select %1611, %673, %814 : vector<8x128xi1>, vector<8x128xf32>
    %1692 = arith.select %1609, %532, %1691 : vector<8x128xi1>, vector<8x128xf32>
    %1693 = arith.select %1607, %391, %1692 : vector<8x128xi1>, vector<8x128xf32>
    %1694 = arith.select %1605, %250, %1693 : vector<8x128xi1>, vector<8x128xf32>
    %1695 = arith.select %1603, %30, %1694 : vector<8x128xi1>, vector<8x128xf32>
    %1696 = arith.select %1611, %655, %796 : vector<8x128xi1>, vector<8x128xf32>
    %1697 = arith.select %1609, %514, %1696 : vector<8x128xi1>, vector<8x128xf32>
    %1698 = arith.select %1607, %373, %1697 : vector<8x128xi1>, vector<8x128xf32>
    %1699 = arith.select %1605, %232, %1698 : vector<8x128xi1>, vector<8x128xf32>
    %1700 = arith.select %1603, %39, %1699 : vector<8x128xi1>, vector<8x128xf32>
    %1701 = arith.mulf %1685, %1614 : vector<8x128xf32>
    %1702 = arith.mulf %1690, %1617 : vector<8x128xf32>
    %1703 = arith.addf %1701, %1702 : vector<8x128xf32>
    %1704 = arith.mulf %1695, %1620 : vector<8x128xf32>
    %1705 = arith.addf %1703, %1704 : vector<8x128xf32>
    %1706 = arith.addf %1705, %1700 : vector<8x128xf32>
    %c23_287 = arith.constant 23 : index
    %1707 = arith.index_cast %3 : i32 to index
    %c0_288 = arith.constant 0 : index
    %1708 = vector.load %arg5[%c23_287, %1707, %c0_288] : memref<42x8x128xf32, #tpu.memory_space<vmem>>, vector<1x8x128xf32>
    %1709 = vector.shape_cast %1708 : vector<1x8x128xf32> to vector<8x128xf32>
    %1710 = vector.shape_cast %1706 : vector<8x128xf32> to vector<1x8x128xf32>
    tpu.vector_store %arg5[%c23_287, %1707, %c0_288], %1710 {strides = array<i32>} : memref<42x8x128xf32, #tpu.memory_space<vmem>>, vector<1x8x128xf32>,
    %c68 = arith.constant 68 : index
    %1711 = arith.index_cast %3 : i32 to index
    %c0_289 = arith.constant 0 : index
    %1712 = vector.load %arg4[%c68, %1711, %c0_289] : memref<116x8x128xf32, #tpu.memory_space<vmem>>, vector<1x8x128xf32>
    %1713 = vector.shape_cast %1712 : vector<1x8x128xf32> to vector<8x128xf32>
    %cst_290 = arith.constant 2.500000e+00 : f32
    %1714 = vector.broadcast %cst_290 : f32 to vector<8x128xf32>
    %1715 = arith.cmpf olt, %1713, %1714 : vector<8x128xf32>
    %cst_291 = arith.constant 3.500000e+00 : f32
    %1716 = vector.broadcast %cst_291 : f32 to vector<8x128xf32>
    %1717 = arith.cmpf olt, %1713, %1716 : vector<8x128xf32>
    %cst_292 = arith.constant 4.500000e+00 : f32
    %1718 = vector.broadcast %cst_292 : f32 to vector<8x128xf32>
    %1719 = arith.cmpf olt, %1713, %1718 : vector<8x128xf32>
    %cst_293 = arith.constant 5.500000e+00 : f32
    %1720 = vector.broadcast %cst_293 : f32 to vector<8x128xf32>
    %1721 = arith.cmpf olt, %1713, %1720 : vector<8x128xf32>
    %cst_294 = arith.constant 6.500000e+00 : f32
    %1722 = vector.broadcast %cst_294 : f32 to vector<8x128xf32>
    %1723 = arith.cmpf olt, %1713, %1722 : vector<8x128xf32>
    %c98 = arith.constant 98 : index
    %1724 = arith.index_cast %3 : i32 to index
    %c0_295 = arith.constant 0 : index
    %1725 = vector.load %arg4[%c98, %1724, %c0_295] : memref<116x8x128xf32, #tpu.memory_space<vmem>>, vector<1x8x128xf32>
    %1726 = vector.shape_cast %1725 : vector<1x8x128xf32> to vector<8x128xf32>
    %c99 = arith.constant 99 : index
    %1727 = arith.index_cast %3 : i32 to index
    %c0_296 = arith.constant 0 : index
    %1728 = vector.load %arg4[%c99, %1727, %c0_296] : memref<116x8x128xf32, #tpu.memory_space<vmem>>, vector<1x8x128xf32>
    %1729 = vector.shape_cast %1728 : vector<1x8x128xf32> to vector<8x128xf32>
    %c100 = arith.constant 100 : index
    %1730 = arith.index_cast %3 : i32 to index
    %c0_297 = arith.constant 0 : index
    %1731 = vector.load %arg4[%c100, %1730, %c0_297] : memref<116x8x128xf32, #tpu.memory_space<vmem>>, vector<1x8x128xf32>
    %1732 = vector.shape_cast %1731 : vector<1x8x128xf32> to vector<8x128xf32>
    %1733 = arith.select %1723, %575, %716 : vector<8x128xi1>, vector<8x128xf32>
    %1734 = arith.select %1721, %434, %1733 : vector<8x128xi1>, vector<8x128xf32>
    %1735 = arith.select %1719, %293, %1734 : vector<8x128xi1>, vector<8x128xf32>
    %1736 = arith.select %1717, %152, %1735 : vector<8x128xi1>, vector<8x128xf32>
    %1737 = arith.select %1715, %6, %1736 : vector<8x128xi1>, vector<8x128xf32>
    %1738 = arith.select %1723, %658, %799 : vector<8x128xi1>, vector<8x128xf32>
    %1739 = arith.select %1721, %517, %1738 : vector<8x128xi1>, vector<8x128xf32>
    %1740 = arith.select %1719, %376, %1739 : vector<8x128xi1>, vector<8x128xf32>
    %1741 = arith.select %1717, %235, %1740 : vector<8x128xi1>, vector<8x128xf32>
    %1742 = arith.select %1715, %9, %1741 : vector<8x128xi1>, vector<8x128xf32>
    %1743 = arith.select %1723, %661, %802 : vector<8x128xi1>, vector<8x128xf32>
    %1744 = arith.select %1721, %520, %1743 : vector<8x128xi1>, vector<8x128xf32>
    %1745 = arith.select %1719, %379, %1744 : vector<8x128xi1>, vector<8x128xf32>
    %1746 = arith.select %1717, %238, %1745 : vector<8x128xi1>, vector<8x128xf32>
    %1747 = arith.select %1715, %12, %1746 : vector<8x128xi1>, vector<8x128xf32>
    %1748 = arith.select %1723, %639, %780 : vector<8x128xi1>, vector<8x128xf32>
    %1749 = arith.select %1721, %498, %1748 : vector<8x128xi1>, vector<8x128xf32>
    %1750 = arith.select %1719, %357, %1749 : vector<8x128xi1>, vector<8x128xf32>
    %1751 = arith.select %1717, %216, %1750 : vector<8x128xi1>, vector<8x128xf32>
    %1752 = arith.select %1715, %33, %1751 : vector<8x128xi1>, vector<8x128xf32>
    %1753 = arith.mulf %1737, %1726 : vector<8x128xf32>
    %1754 = arith.mulf %1742, %1729 : vector<8x128xf32>
    %1755 = arith.addf %1753, %1754 : vector<8x128xf32>
    %1756 = arith.mulf %1747, %1732 : vector<8x128xf32>
    %1757 = arith.addf %1755, %1756 : vector<8x128xf32>
    %1758 = arith.addf %1757, %1752 : vector<8x128xf32>
    %c24_298 = arith.constant 24 : index
    %1759 = arith.index_cast %3 : i32 to index
    %c0_299 = arith.constant 0 : index
    %1760 = vector.load %arg5[%c24_298, %1759, %c0_299] : memref<42x8x128xf32, #tpu.memory_space<vmem>>, vector<1x8x128xf32>
    %1761 = vector.shape_cast %1760 : vector<1x8x128xf32> to vector<8x128xf32>
    %1762 = vector.shape_cast %1758 : vector<8x128xf32> to vector<1x8x128xf32>
    tpu.vector_store %arg5[%c24_298, %1759, %c0_299], %1762 {strides = array<i32>} : memref<42x8x128xf32, #tpu.memory_space<vmem>>, vector<1x8x128xf32>,
    %1763 = arith.select %1723, %596, %737 : vector<8x128xi1>, vector<8x128xf32>
    %1764 = arith.select %1721, %455, %1763 : vector<8x128xi1>, vector<8x128xf32>
    %1765 = arith.select %1719, %314, %1764 : vector<8x128xi1>, vector<8x128xf32>
    %1766 = arith.select %1717, %173, %1765 : vector<8x128xi1>, vector<8x128xf32>
    %1767 = arith.select %1715, %15, %1766 : vector<8x128xi1>, vector<8x128xf32>
    %1768 = arith.select %1723, %664, %805 : vector<8x128xi1>, vector<8x128xf32>
    %1769 = arith.select %1721, %523, %1768 : vector<8x128xi1>, vector<8x128xf32>
    %1770 = arith.select %1719, %382, %1769 : vector<8x128xi1>, vector<8x128xf32>
    %1771 = arith.select %1717, %241, %1770 : vector<8x128xi1>, vector<8x128xf32>
    %1772 = arith.select %1715, %18, %1771 : vector<8x128xi1>, vector<8x128xf32>
    %1773 = arith.select %1723, %667, %808 : vector<8x128xi1>, vector<8x128xf32>
    %1774 = arith.select %1721, %526, %1773 : vector<8x128xi1>, vector<8x128xf32>
    %1775 = arith.select %1719, %385, %1774 : vector<8x128xi1>, vector<8x128xf32>
    %1776 = arith.select %1717, %244, %1775 : vector<8x128xi1>, vector<8x128xf32>
    %1777 = arith.select %1715, %21, %1776 : vector<8x128xi1>, vector<8x128xf32>
    %1778 = arith.select %1723, %647, %788 : vector<8x128xi1>, vector<8x128xf32>
    %1779 = arith.select %1721, %506, %1778 : vector<8x128xi1>, vector<8x128xf32>
    %1780 = arith.select %1719, %365, %1779 : vector<8x128xi1>, vector<8x128xf32>
    %1781 = arith.select %1717, %224, %1780 : vector<8x128xi1>, vector<8x128xf32>
    %1782 = arith.select %1715, %36, %1781 : vector<8x128xi1>, vector<8x128xf32>
    %1783 = arith.mulf %1767, %1726 : vector<8x128xf32>
    %1784 = arith.mulf %1772, %1729 : vector<8x128xf32>
    %1785 = arith.addf %1783, %1784 : vector<8x128xf32>
    %1786 = arith.mulf %1777, %1732 : vector<8x128xf32>
    %1787 = arith.addf %1785, %1786 : vector<8x128xf32>
    %1788 = arith.addf %1787, %1782 : vector<8x128xf32>
    %c25_300 = arith.constant 25 : index
    %1789 = arith.index_cast %3 : i32 to index
    %c0_301 = arith.constant 0 : index
    %1790 = vector.load %arg5[%c25_300, %1789, %c0_301] : memref<42x8x128xf32, #tpu.memory_space<vmem>>, vector<1x8x128xf32>
    %1791 = vector.shape_cast %1790 : vector<1x8x128xf32> to vector<8x128xf32>
    %1792 = vector.shape_cast %1788 : vector<8x128xf32> to vector<1x8x128xf32>
    tpu.vector_store %arg5[%c25_300, %1789, %c0_301], %1792 {strides = array<i32>} : memref<42x8x128xf32, #tpu.memory_space<vmem>>, vector<1x8x128xf32>,
    %1793 = arith.select %1723, %617, %758 : vector<8x128xi1>, vector<8x128xf32>
    %1794 = arith.select %1721, %476, %1793 : vector<8x128xi1>, vector<8x128xf32>
    %1795 = arith.select %1719, %335, %1794 : vector<8x128xi1>, vector<8x128xf32>
    %1796 = arith.select %1717, %194, %1795 : vector<8x128xi1>, vector<8x128xf32>
    %1797 = arith.select %1715, %24, %1796 : vector<8x128xi1>, vector<8x128xf32>
    %1798 = arith.select %1723, %670, %811 : vector<8x128xi1>, vector<8x128xf32>
    %1799 = arith.select %1721, %529, %1798 : vector<8x128xi1>, vector<8x128xf32>
    %1800 = arith.select %1719, %388, %1799 : vector<8x128xi1>, vector<8x128xf32>
    %1801 = arith.select %1717, %247, %1800 : vector<8x128xi1>, vector<8x128xf32>
    %1802 = arith.select %1715, %27, %1801 : vector<8x128xi1>, vector<8x128xf32>
    %1803 = arith.select %1723, %673, %814 : vector<8x128xi1>, vector<8x128xf32>
    %1804 = arith.select %1721, %532, %1803 : vector<8x128xi1>, vector<8x128xf32>
    %1805 = arith.select %1719, %391, %1804 : vector<8x128xi1>, vector<8x128xf32>
    %1806 = arith.select %1717, %250, %1805 : vector<8x128xi1>, vector<8x128xf32>
    %1807 = arith.select %1715, %30, %1806 : vector<8x128xi1>, vector<8x128xf32>
    %1808 = arith.select %1723, %655, %796 : vector<8x128xi1>, vector<8x128xf32>
    %1809 = arith.select %1721, %514, %1808 : vector<8x128xi1>, vector<8x128xf32>
    %1810 = arith.select %1719, %373, %1809 : vector<8x128xi1>, vector<8x128xf32>
    %1811 = arith.select %1717, %232, %1810 : vector<8x128xi1>, vector<8x128xf32>
    %1812 = arith.select %1715, %39, %1811 : vector<8x128xi1>, vector<8x128xf32>
    %1813 = arith.mulf %1797, %1726 : vector<8x128xf32>
    %1814 = arith.mulf %1802, %1729 : vector<8x128xf32>
    %1815 = arith.addf %1813, %1814 : vector<8x128xf32>
    %1816 = arith.mulf %1807, %1732 : vector<8x128xf32>
    %1817 = arith.addf %1815, %1816 : vector<8x128xf32>
    %1818 = arith.addf %1817, %1812 : vector<8x128xf32>
    %c26_302 = arith.constant 26 : index
    %1819 = arith.index_cast %3 : i32 to index
    %c0_303 = arith.constant 0 : index
    %1820 = vector.load %arg5[%c26_302, %1819, %c0_303] : memref<42x8x128xf32, #tpu.memory_space<vmem>>, vector<1x8x128xf32>
    %1821 = vector.shape_cast %1820 : vector<1x8x128xf32> to vector<8x128xf32>
    %1822 = vector.shape_cast %1818 : vector<8x128xf32> to vector<1x8x128xf32>
    tpu.vector_store %arg5[%c26_302, %1819, %c0_303], %1822 {strides = array<i32>} : memref<42x8x128xf32, #tpu.memory_space<vmem>>, vector<1x8x128xf32>,
    %c69 = arith.constant 69 : index
    %1823 = arith.index_cast %3 : i32 to index
    %c0_304 = arith.constant 0 : index
    %1824 = vector.load %arg4[%c69, %1823, %c0_304] : memref<116x8x128xf32, #tpu.memory_space<vmem>>, vector<1x8x128xf32>
    %1825 = vector.shape_cast %1824 : vector<1x8x128xf32> to vector<8x128xf32>
    %cst_305 = arith.constant 2.500000e+00 : f32
    %1826 = vector.broadcast %cst_305 : f32 to vector<8x128xf32>
    %1827 = arith.cmpf olt, %1825, %1826 : vector<8x128xf32>
    %cst_306 = arith.constant 3.500000e+00 : f32
    %1828 = vector.broadcast %cst_306 : f32 to vector<8x128xf32>
    %1829 = arith.cmpf olt, %1825, %1828 : vector<8x128xf32>
    %cst_307 = arith.constant 4.500000e+00 : f32
    %1830 = vector.broadcast %cst_307 : f32 to vector<8x128xf32>
    %1831 = arith.cmpf olt, %1825, %1830 : vector<8x128xf32>
    %cst_308 = arith.constant 5.500000e+00 : f32
    %1832 = vector.broadcast %cst_308 : f32 to vector<8x128xf32>
    %1833 = arith.cmpf olt, %1825, %1832 : vector<8x128xf32>
    %cst_309 = arith.constant 6.500000e+00 : f32
    %1834 = vector.broadcast %cst_309 : f32 to vector<8x128xf32>
    %1835 = arith.cmpf olt, %1825, %1834 : vector<8x128xf32>
    %c101 = arith.constant 101 : index
    %1836 = arith.index_cast %3 : i32 to index
    %c0_310 = arith.constant 0 : index
    %1837 = vector.load %arg4[%c101, %1836, %c0_310] : memref<116x8x128xf32, #tpu.memory_space<vmem>>, vector<1x8x128xf32>
    %1838 = vector.shape_cast %1837 : vector<1x8x128xf32> to vector<8x128xf32>
    %c102 = arith.constant 102 : index
    %1839 = arith.index_cast %3 : i32 to index
    %c0_311 = arith.constant 0 : index
    %1840 = vector.load %arg4[%c102, %1839, %c0_311] : memref<116x8x128xf32, #tpu.memory_space<vmem>>, vector<1x8x128xf32>
    %1841 = vector.shape_cast %1840 : vector<1x8x128xf32> to vector<8x128xf32>
    %c103 = arith.constant 103 : index
    %1842 = arith.index_cast %3 : i32 to index
    %c0_312 = arith.constant 0 : index
    %1843 = vector.load %arg4[%c103, %1842, %c0_312] : memref<116x8x128xf32, #tpu.memory_space<vmem>>, vector<1x8x128xf32>
    %1844 = vector.shape_cast %1843 : vector<1x8x128xf32> to vector<8x128xf32>
    %1845 = arith.select %1835, %575, %716 : vector<8x128xi1>, vector<8x128xf32>
    %1846 = arith.select %1833, %434, %1845 : vector<8x128xi1>, vector<8x128xf32>
    %1847 = arith.select %1831, %293, %1846 : vector<8x128xi1>, vector<8x128xf32>
    %1848 = arith.select %1829, %152, %1847 : vector<8x128xi1>, vector<8x128xf32>
    %1849 = arith.select %1827, %6, %1848 : vector<8x128xi1>, vector<8x128xf32>
    %1850 = arith.select %1835, %658, %799 : vector<8x128xi1>, vector<8x128xf32>
    %1851 = arith.select %1833, %517, %1850 : vector<8x128xi1>, vector<8x128xf32>
    %1852 = arith.select %1831, %376, %1851 : vector<8x128xi1>, vector<8x128xf32>
    %1853 = arith.select %1829, %235, %1852 : vector<8x128xi1>, vector<8x128xf32>
    %1854 = arith.select %1827, %9, %1853 : vector<8x128xi1>, vector<8x128xf32>
    %1855 = arith.select %1835, %661, %802 : vector<8x128xi1>, vector<8x128xf32>
    %1856 = arith.select %1833, %520, %1855 : vector<8x128xi1>, vector<8x128xf32>
    %1857 = arith.select %1831, %379, %1856 : vector<8x128xi1>, vector<8x128xf32>
    %1858 = arith.select %1829, %238, %1857 : vector<8x128xi1>, vector<8x128xf32>
    %1859 = arith.select %1827, %12, %1858 : vector<8x128xi1>, vector<8x128xf32>
    %1860 = arith.select %1835, %639, %780 : vector<8x128xi1>, vector<8x128xf32>
    %1861 = arith.select %1833, %498, %1860 : vector<8x128xi1>, vector<8x128xf32>
    %1862 = arith.select %1831, %357, %1861 : vector<8x128xi1>, vector<8x128xf32>
    %1863 = arith.select %1829, %216, %1862 : vector<8x128xi1>, vector<8x128xf32>
    %1864 = arith.select %1827, %33, %1863 : vector<8x128xi1>, vector<8x128xf32>
    %1865 = arith.mulf %1849, %1838 : vector<8x128xf32>
    %1866 = arith.mulf %1854, %1841 : vector<8x128xf32>
    %1867 = arith.addf %1865, %1866 : vector<8x128xf32>
    %1868 = arith.mulf %1859, %1844 : vector<8x128xf32>
    %1869 = arith.addf %1867, %1868 : vector<8x128xf32>
    %1870 = arith.addf %1869, %1864 : vector<8x128xf32>
    %c27_313 = arith.constant 27 : index
    %1871 = arith.index_cast %3 : i32 to index
    %c0_314 = arith.constant 0 : index
    %1872 = vector.load %arg5[%c27_313, %1871, %c0_314] : memref<42x8x128xf32, #tpu.memory_space<vmem>>, vector<1x8x128xf32>
    %1873 = vector.shape_cast %1872 : vector<1x8x128xf32> to vector<8x128xf32>
    %1874 = vector.shape_cast %1870 : vector<8x128xf32> to vector<1x8x128xf32>
    tpu.vector_store %arg5[%c27_313, %1871, %c0_314], %1874 {strides = array<i32>} : memref<42x8x128xf32, #tpu.memory_space<vmem>>, vector<1x8x128xf32>,
    %1875 = arith.select %1835, %596, %737 : vector<8x128xi1>, vector<8x128xf32>
    %1876 = arith.select %1833, %455, %1875 : vector<8x128xi1>, vector<8x128xf32>
    %1877 = arith.select %1831, %314, %1876 : vector<8x128xi1>, vector<8x128xf32>
    %1878 = arith.select %1829, %173, %1877 : vector<8x128xi1>, vector<8x128xf32>
    %1879 = arith.select %1827, %15, %1878 : vector<8x128xi1>, vector<8x128xf32>
    %1880 = arith.select %1835, %664, %805 : vector<8x128xi1>, vector<8x128xf32>
    %1881 = arith.select %1833, %523, %1880 : vector<8x128xi1>, vector<8x128xf32>
    %1882 = arith.select %1831, %382, %1881 : vector<8x128xi1>, vector<8x128xf32>
    %1883 = arith.select %1829, %241, %1882 : vector<8x128xi1>, vector<8x128xf32>
    %1884 = arith.select %1827, %18, %1883 : vector<8x128xi1>, vector<8x128xf32>
    %1885 = arith.select %1835, %667, %808 : vector<8x128xi1>, vector<8x128xf32>
    %1886 = arith.select %1833, %526, %1885 : vector<8x128xi1>, vector<8x128xf32>
    %1887 = arith.select %1831, %385, %1886 : vector<8x128xi1>, vector<8x128xf32>
    %1888 = arith.select %1829, %244, %1887 : vector<8x128xi1>, vector<8x128xf32>
    %1889 = arith.select %1827, %21, %1888 : vector<8x128xi1>, vector<8x128xf32>
    %1890 = arith.select %1835, %647, %788 : vector<8x128xi1>, vector<8x128xf32>
    %1891 = arith.select %1833, %506, %1890 : vector<8x128xi1>, vector<8x128xf32>
    %1892 = arith.select %1831, %365, %1891 : vector<8x128xi1>, vector<8x128xf32>
    %1893 = arith.select %1829, %224, %1892 : vector<8x128xi1>, vector<8x128xf32>
    %1894 = arith.select %1827, %36, %1893 : vector<8x128xi1>, vector<8x128xf32>
    %1895 = arith.mulf %1879, %1838 : vector<8x128xf32>
    %1896 = arith.mulf %1884, %1841 : vector<8x128xf32>
    %1897 = arith.addf %1895, %1896 : vector<8x128xf32>
    %1898 = arith.mulf %1889, %1844 : vector<8x128xf32>
    %1899 = arith.addf %1897, %1898 : vector<8x128xf32>
    %1900 = arith.addf %1899, %1894 : vector<8x128xf32>
    %c28_315 = arith.constant 28 : index
    %1901 = arith.index_cast %3 : i32 to index
    %c0_316 = arith.constant 0 : index
    %1902 = vector.load %arg5[%c28_315, %1901, %c0_316] : memref<42x8x128xf32, #tpu.memory_space<vmem>>, vector<1x8x128xf32>
    %1903 = vector.shape_cast %1902 : vector<1x8x128xf32> to vector<8x128xf32>
    %1904 = vector.shape_cast %1900 : vector<8x128xf32> to vector<1x8x128xf32>
    tpu.vector_store %arg5[%c28_315, %1901, %c0_316], %1904 {strides = array<i32>} : memref<42x8x128xf32, #tpu.memory_space<vmem>>, vector<1x8x128xf32>,
    %1905 = arith.select %1835, %617, %758 : vector<8x128xi1>, vector<8x128xf32>
    %1906 = arith.select %1833, %476, %1905 : vector<8x128xi1>, vector<8x128xf32>
    %1907 = arith.select %1831, %335, %1906 : vector<8x128xi1>, vector<8x128xf32>
    %1908 = arith.select %1829, %194, %1907 : vector<8x128xi1>, vector<8x128xf32>
    %1909 = arith.select %1827, %24, %1908 : vector<8x128xi1>, vector<8x128xf32>
    %1910 = arith.select %1835, %670, %811 : vector<8x128xi1>, vector<8x128xf32>
    %1911 = arith.select %1833, %529, %1910 : vector<8x128xi1>, vector<8x128xf32>
    %1912 = arith.select %1831, %388, %1911 : vector<8x128xi1>, vector<8x128xf32>
    %1913 = arith.select %1829, %247, %1912 : vector<8x128xi1>, vector<8x128xf32>
    %1914 = arith.select %1827, %27, %1913 : vector<8x128xi1>, vector<8x128xf32>
    %1915 = arith.select %1835, %673, %814 : vector<8x128xi1>, vector<8x128xf32>
    %1916 = arith.select %1833, %532, %1915 : vector<8x128xi1>, vector<8x128xf32>
    %1917 = arith.select %1831, %391, %1916 : vector<8x128xi1>, vector<8x128xf32>
    %1918 = arith.select %1829, %250, %1917 : vector<8x128xi1>, vector<8x128xf32>
    %1919 = arith.select %1827, %30, %1918 : vector<8x128xi1>, vector<8x128xf32>
    %1920 = arith.select %1835, %655, %796 : vector<8x128xi1>, vector<8x128xf32>
    %1921 = arith.select %1833, %514, %1920 : vector<8x128xi1>, vector<8x128xf32>
    %1922 = arith.select %1831, %373, %1921 : vector<8x128xi1>, vector<8x128xf32>
    %1923 = arith.select %1829, %232, %1922 : vector<8x128xi1>, vector<8x128xf32>
    %1924 = arith.select %1827, %39, %1923 : vector<8x128xi1>, vector<8x128xf32>
    %1925 = arith.mulf %1909, %1838 : vector<8x128xf32>
    %1926 = arith.mulf %1914, %1841 : vector<8x128xf32>
    %1927 = arith.addf %1925, %1926 : vector<8x128xf32>
    %1928 = arith.mulf %1919, %1844 : vector<8x128xf32>
    %1929 = arith.addf %1927, %1928 : vector<8x128xf32>
    %1930 = arith.addf %1929, %1924 : vector<8x128xf32>
    %c29_317 = arith.constant 29 : index
    %1931 = arith.index_cast %3 : i32 to index
    %c0_318 = arith.constant 0 : index
    %1932 = vector.load %arg5[%c29_317, %1931, %c0_318] : memref<42x8x128xf32, #tpu.memory_space<vmem>>, vector<1x8x128xf32>
    %1933 = vector.shape_cast %1932 : vector<1x8x128xf32> to vector<8x128xf32>
    %1934 = vector.shape_cast %1930 : vector<8x128xf32> to vector<1x8x128xf32>
    tpu.vector_store %arg5[%c29_317, %1931, %c0_318], %1934 {strides = array<i32>} : memref<42x8x128xf32, #tpu.memory_space<vmem>>, vector<1x8x128xf32>,
    %c70 = arith.constant 70 : index
    %1935 = arith.index_cast %3 : i32 to index
    %c0_319 = arith.constant 0 : index
    %1936 = vector.load %arg4[%c70, %1935, %c0_319] : memref<116x8x128xf32, #tpu.memory_space<vmem>>, vector<1x8x128xf32>
    %1937 = vector.shape_cast %1936 : vector<1x8x128xf32> to vector<8x128xf32>
    %cst_320 = arith.constant 2.500000e+00 : f32
    %1938 = vector.broadcast %cst_320 : f32 to vector<8x128xf32>
    %1939 = arith.cmpf olt, %1937, %1938 : vector<8x128xf32>
    %cst_321 = arith.constant 3.500000e+00 : f32
    %1940 = vector.broadcast %cst_321 : f32 to vector<8x128xf32>
    %1941 = arith.cmpf olt, %1937, %1940 : vector<8x128xf32>
    %cst_322 = arith.constant 4.500000e+00 : f32
    %1942 = vector.broadcast %cst_322 : f32 to vector<8x128xf32>
    %1943 = arith.cmpf olt, %1937, %1942 : vector<8x128xf32>
    %cst_323 = arith.constant 5.500000e+00 : f32
    %1944 = vector.broadcast %cst_323 : f32 to vector<8x128xf32>
    %1945 = arith.cmpf olt, %1937, %1944 : vector<8x128xf32>
    %cst_324 = arith.constant 6.500000e+00 : f32
    %1946 = vector.broadcast %cst_324 : f32 to vector<8x128xf32>
    %1947 = arith.cmpf olt, %1937, %1946 : vector<8x128xf32>
    %c104 = arith.constant 104 : index
    %1948 = arith.index_cast %3 : i32 to index
    %c0_325 = arith.constant 0 : index
    %1949 = vector.load %arg4[%c104, %1948, %c0_325] : memref<116x8x128xf32, #tpu.memory_space<vmem>>, vector<1x8x128xf32>
    %1950 = vector.shape_cast %1949 : vector<1x8x128xf32> to vector<8x128xf32>
    %c105 = arith.constant 105 : index
    %1951 = arith.index_cast %3 : i32 to index
    %c0_326 = arith.constant 0 : index
    %1952 = vector.load %arg4[%c105, %1951, %c0_326] : memref<116x8x128xf32, #tpu.memory_space<vmem>>, vector<1x8x128xf32>
    %1953 = vector.shape_cast %1952 : vector<1x8x128xf32> to vector<8x128xf32>
    %c106 = arith.constant 106 : index
    %1954 = arith.index_cast %3 : i32 to index
    %c0_327 = arith.constant 0 : index
    %1955 = vector.load %arg4[%c106, %1954, %c0_327] : memref<116x8x128xf32, #tpu.memory_space<vmem>>, vector<1x8x128xf32>
    %1956 = vector.shape_cast %1955 : vector<1x8x128xf32> to vector<8x128xf32>
    %1957 = arith.select %1947, %575, %716 : vector<8x128xi1>, vector<8x128xf32>
    %1958 = arith.select %1945, %434, %1957 : vector<8x128xi1>, vector<8x128xf32>
    %1959 = arith.select %1943, %293, %1958 : vector<8x128xi1>, vector<8x128xf32>
    %1960 = arith.select %1941, %152, %1959 : vector<8x128xi1>, vector<8x128xf32>
    %1961 = arith.select %1939, %6, %1960 : vector<8x128xi1>, vector<8x128xf32>
    %1962 = arith.select %1947, %658, %799 : vector<8x128xi1>, vector<8x128xf32>
    %1963 = arith.select %1945, %517, %1962 : vector<8x128xi1>, vector<8x128xf32>
    %1964 = arith.select %1943, %376, %1963 : vector<8x128xi1>, vector<8x128xf32>
    %1965 = arith.select %1941, %235, %1964 : vector<8x128xi1>, vector<8x128xf32>
    %1966 = arith.select %1939, %9, %1965 : vector<8x128xi1>, vector<8x128xf32>
    %1967 = arith.select %1947, %661, %802 : vector<8x128xi1>, vector<8x128xf32>
    %1968 = arith.select %1945, %520, %1967 : vector<8x128xi1>, vector<8x128xf32>
    %1969 = arith.select %1943, %379, %1968 : vector<8x128xi1>, vector<8x128xf32>
    %1970 = arith.select %1941, %238, %1969 : vector<8x128xi1>, vector<8x128xf32>
    %1971 = arith.select %1939, %12, %1970 : vector<8x128xi1>, vector<8x128xf32>
    %1972 = arith.select %1947, %639, %780 : vector<8x128xi1>, vector<8x128xf32>
    %1973 = arith.select %1945, %498, %1972 : vector<8x128xi1>, vector<8x128xf32>
    %1974 = arith.select %1943, %357, %1973 : vector<8x128xi1>, vector<8x128xf32>
    %1975 = arith.select %1941, %216, %1974 : vector<8x128xi1>, vector<8x128xf32>
    %1976 = arith.select %1939, %33, %1975 : vector<8x128xi1>, vector<8x128xf32>
    %1977 = arith.mulf %1961, %1950 : vector<8x128xf32>
    %1978 = arith.mulf %1966, %1953 : vector<8x128xf32>
    %1979 = arith.addf %1977, %1978 : vector<8x128xf32>
    %1980 = arith.mulf %1971, %1956 : vector<8x128xf32>
    %1981 = arith.addf %1979, %1980 : vector<8x128xf32>
    %1982 = arith.addf %1981, %1976 : vector<8x128xf32>
    %c30_328 = arith.constant 30 : index
    %1983 = arith.index_cast %3 : i32 to index
    %c0_329 = arith.constant 0 : index
    %1984 = vector.load %arg5[%c30_328, %1983, %c0_329] : memref<42x8x128xf32, #tpu.memory_space<vmem>>, vector<1x8x128xf32>
    %1985 = vector.shape_cast %1984 : vector<1x8x128xf32> to vector<8x128xf32>
    %1986 = vector.shape_cast %1982 : vector<8x128xf32> to vector<1x8x128xf32>
    tpu.vector_store %arg5[%c30_328, %1983, %c0_329], %1986 {strides = array<i32>} : memref<42x8x128xf32, #tpu.memory_space<vmem>>, vector<1x8x128xf32>,
    %1987 = arith.select %1947, %596, %737 : vector<8x128xi1>, vector<8x128xf32>
    %1988 = arith.select %1945, %455, %1987 : vector<8x128xi1>, vector<8x128xf32>
    %1989 = arith.select %1943, %314, %1988 : vector<8x128xi1>, vector<8x128xf32>
    %1990 = arith.select %1941, %173, %1989 : vector<8x128xi1>, vector<8x128xf32>
    %1991 = arith.select %1939, %15, %1990 : vector<8x128xi1>, vector<8x128xf32>
    %1992 = arith.select %1947, %664, %805 : vector<8x128xi1>, vector<8x128xf32>
    %1993 = arith.select %1945, %523, %1992 : vector<8x128xi1>, vector<8x128xf32>
    %1994 = arith.select %1943, %382, %1993 : vector<8x128xi1>, vector<8x128xf32>
    %1995 = arith.select %1941, %241, %1994 : vector<8x128xi1>, vector<8x128xf32>
    %1996 = arith.select %1939, %18, %1995 : vector<8x128xi1>, vector<8x128xf32>
    %1997 = arith.select %1947, %667, %808 : vector<8x128xi1>, vector<8x128xf32>
    %1998 = arith.select %1945, %526, %1997 : vector<8x128xi1>, vector<8x128xf32>
    %1999 = arith.select %1943, %385, %1998 : vector<8x128xi1>, vector<8x128xf32>
    %2000 = arith.select %1941, %244, %1999 : vector<8x128xi1>, vector<8x128xf32>
    %2001 = arith.select %1939, %21, %2000 : vector<8x128xi1>, vector<8x128xf32>
    %2002 = arith.select %1947, %647, %788 : vector<8x128xi1>, vector<8x128xf32>
    %2003 = arith.select %1945, %506, %2002 : vector<8x128xi1>, vector<8x128xf32>
    %2004 = arith.select %1943, %365, %2003 : vector<8x128xi1>, vector<8x128xf32>
    %2005 = arith.select %1941, %224, %2004 : vector<8x128xi1>, vector<8x128xf32>
    %2006 = arith.select %1939, %36, %2005 : vector<8x128xi1>, vector<8x128xf32>
    %2007 = arith.mulf %1991, %1950 : vector<8x128xf32>
    %2008 = arith.mulf %1996, %1953 : vector<8x128xf32>
    %2009 = arith.addf %2007, %2008 : vector<8x128xf32>
    %2010 = arith.mulf %2001, %1956 : vector<8x128xf32>
    %2011 = arith.addf %2009, %2010 : vector<8x128xf32>
    %2012 = arith.addf %2011, %2006 : vector<8x128xf32>
    %c31_330 = arith.constant 31 : index
    %2013 = arith.index_cast %3 : i32 to index
    %c0_331 = arith.constant 0 : index
    %2014 = vector.load %arg5[%c31_330, %2013, %c0_331] : memref<42x8x128xf32, #tpu.memory_space<vmem>>, vector<1x8x128xf32>
    %2015 = vector.shape_cast %2014 : vector<1x8x128xf32> to vector<8x128xf32>
    %2016 = vector.shape_cast %2012 : vector<8x128xf32> to vector<1x8x128xf32>
    tpu.vector_store %arg5[%c31_330, %2013, %c0_331], %2016 {strides = array<i32>} : memref<42x8x128xf32, #tpu.memory_space<vmem>>, vector<1x8x128xf32>,
    %2017 = arith.select %1947, %617, %758 : vector<8x128xi1>, vector<8x128xf32>
    %2018 = arith.select %1945, %476, %2017 : vector<8x128xi1>, vector<8x128xf32>
    %2019 = arith.select %1943, %335, %2018 : vector<8x128xi1>, vector<8x128xf32>
    %2020 = arith.select %1941, %194, %2019 : vector<8x128xi1>, vector<8x128xf32>
    %2021 = arith.select %1939, %24, %2020 : vector<8x128xi1>, vector<8x128xf32>
    %2022 = arith.select %1947, %670, %811 : vector<8x128xi1>, vector<8x128xf32>
    %2023 = arith.select %1945, %529, %2022 : vector<8x128xi1>, vector<8x128xf32>
    %2024 = arith.select %1943, %388, %2023 : vector<8x128xi1>, vector<8x128xf32>
    %2025 = arith.select %1941, %247, %2024 : vector<8x128xi1>, vector<8x128xf32>
    %2026 = arith.select %1939, %27, %2025 : vector<8x128xi1>, vector<8x128xf32>
    %2027 = arith.select %1947, %673, %814 : vector<8x128xi1>, vector<8x128xf32>
    %2028 = arith.select %1945, %532, %2027 : vector<8x128xi1>, vector<8x128xf32>
    %2029 = arith.select %1943, %391, %2028 : vector<8x128xi1>, vector<8x128xf32>
    %2030 = arith.select %1941, %250, %2029 : vector<8x128xi1>, vector<8x128xf32>
    %2031 = arith.select %1939, %30, %2030 : vector<8x128xi1>, vector<8x128xf32>
    %2032 = arith.select %1947, %655, %796 : vector<8x128xi1>, vector<8x128xf32>
    %2033 = arith.select %1945, %514, %2032 : vector<8x128xi1>, vector<8x128xf32>
    %2034 = arith.select %1943, %373, %2033 : vector<8x128xi1>, vector<8x128xf32>
    %2035 = arith.select %1941, %232, %2034 : vector<8x128xi1>, vector<8x128xf32>
    %2036 = arith.select %1939, %39, %2035 : vector<8x128xi1>, vector<8x128xf32>
    %2037 = arith.mulf %2021, %1950 : vector<8x128xf32>
    %2038 = arith.mulf %2026, %1953 : vector<8x128xf32>
    %2039 = arith.addf %2037, %2038 : vector<8x128xf32>
    %2040 = arith.mulf %2031, %1956 : vector<8x128xf32>
    %2041 = arith.addf %2039, %2040 : vector<8x128xf32>
    %2042 = arith.addf %2041, %2036 : vector<8x128xf32>
    %c32_332 = arith.constant 32 : index
    %2043 = arith.index_cast %3 : i32 to index
    %c0_333 = arith.constant 0 : index
    %2044 = vector.load %arg5[%c32_332, %2043, %c0_333] : memref<42x8x128xf32, #tpu.memory_space<vmem>>, vector<1x8x128xf32>
    %2045 = vector.shape_cast %2044 : vector<1x8x128xf32> to vector<8x128xf32>
    %2046 = vector.shape_cast %2042 : vector<8x128xf32> to vector<1x8x128xf32>
    tpu.vector_store %arg5[%c32_332, %2043, %c0_333], %2046 {strides = array<i32>} : memref<42x8x128xf32, #tpu.memory_space<vmem>>, vector<1x8x128xf32>,
    %c71 = arith.constant 71 : index
    %2047 = arith.index_cast %3 : i32 to index
    %c0_334 = arith.constant 0 : index
    %2048 = vector.load %arg4[%c71, %2047, %c0_334] : memref<116x8x128xf32, #tpu.memory_space<vmem>>, vector<1x8x128xf32>
    %2049 = vector.shape_cast %2048 : vector<1x8x128xf32> to vector<8x128xf32>
    %cst_335 = arith.constant 2.500000e+00 : f32
    %2050 = vector.broadcast %cst_335 : f32 to vector<8x128xf32>
    %2051 = arith.cmpf olt, %2049, %2050 : vector<8x128xf32>
    %cst_336 = arith.constant 3.500000e+00 : f32
    %2052 = vector.broadcast %cst_336 : f32 to vector<8x128xf32>
    %2053 = arith.cmpf olt, %2049, %2052 : vector<8x128xf32>
    %cst_337 = arith.constant 4.500000e+00 : f32
    %2054 = vector.broadcast %cst_337 : f32 to vector<8x128xf32>
    %2055 = arith.cmpf olt, %2049, %2054 : vector<8x128xf32>
    %cst_338 = arith.constant 5.500000e+00 : f32
    %2056 = vector.broadcast %cst_338 : f32 to vector<8x128xf32>
    %2057 = arith.cmpf olt, %2049, %2056 : vector<8x128xf32>
    %cst_339 = arith.constant 6.500000e+00 : f32
    %2058 = vector.broadcast %cst_339 : f32 to vector<8x128xf32>
    %2059 = arith.cmpf olt, %2049, %2058 : vector<8x128xf32>
    %c107 = arith.constant 107 : index
    %2060 = arith.index_cast %3 : i32 to index
    %c0_340 = arith.constant 0 : index
    %2061 = vector.load %arg4[%c107, %2060, %c0_340] : memref<116x8x128xf32, #tpu.memory_space<vmem>>, vector<1x8x128xf32>
    %2062 = vector.shape_cast %2061 : vector<1x8x128xf32> to vector<8x128xf32>
    %c108 = arith.constant 108 : index
    %2063 = arith.index_cast %3 : i32 to index
    %c0_341 = arith.constant 0 : index
    %2064 = vector.load %arg4[%c108, %2063, %c0_341] : memref<116x8x128xf32, #tpu.memory_space<vmem>>, vector<1x8x128xf32>
    %2065 = vector.shape_cast %2064 : vector<1x8x128xf32> to vector<8x128xf32>
    %c109 = arith.constant 109 : index
    %2066 = arith.index_cast %3 : i32 to index
    %c0_342 = arith.constant 0 : index
    %2067 = vector.load %arg4[%c109, %2066, %c0_342] : memref<116x8x128xf32, #tpu.memory_space<vmem>>, vector<1x8x128xf32>
    %2068 = vector.shape_cast %2067 : vector<1x8x128xf32> to vector<8x128xf32>
    %2069 = arith.select %2059, %575, %716 : vector<8x128xi1>, vector<8x128xf32>
    %2070 = arith.select %2057, %434, %2069 : vector<8x128xi1>, vector<8x128xf32>
    %2071 = arith.select %2055, %293, %2070 : vector<8x128xi1>, vector<8x128xf32>
    %2072 = arith.select %2053, %152, %2071 : vector<8x128xi1>, vector<8x128xf32>
    %2073 = arith.select %2051, %6, %2072 : vector<8x128xi1>, vector<8x128xf32>
    %2074 = arith.select %2059, %658, %799 : vector<8x128xi1>, vector<8x128xf32>
    %2075 = arith.select %2057, %517, %2074 : vector<8x128xi1>, vector<8x128xf32>
    %2076 = arith.select %2055, %376, %2075 : vector<8x128xi1>, vector<8x128xf32>
    %2077 = arith.select %2053, %235, %2076 : vector<8x128xi1>, vector<8x128xf32>
    %2078 = arith.select %2051, %9, %2077 : vector<8x128xi1>, vector<8x128xf32>
    %2079 = arith.select %2059, %661, %802 : vector<8x128xi1>, vector<8x128xf32>
    %2080 = arith.select %2057, %520, %2079 : vector<8x128xi1>, vector<8x128xf32>
    %2081 = arith.select %2055, %379, %2080 : vector<8x128xi1>, vector<8x128xf32>
    %2082 = arith.select %2053, %238, %2081 : vector<8x128xi1>, vector<8x128xf32>
    %2083 = arith.select %2051, %12, %2082 : vector<8x128xi1>, vector<8x128xf32>
    %2084 = arith.select %2059, %639, %780 : vector<8x128xi1>, vector<8x128xf32>
    %2085 = arith.select %2057, %498, %2084 : vector<8x128xi1>, vector<8x128xf32>
    %2086 = arith.select %2055, %357, %2085 : vector<8x128xi1>, vector<8x128xf32>
    %2087 = arith.select %2053, %216, %2086 : vector<8x128xi1>, vector<8x128xf32>
    %2088 = arith.select %2051, %33, %2087 : vector<8x128xi1>, vector<8x128xf32>
    %2089 = arith.mulf %2073, %2062 : vector<8x128xf32>
    %2090 = arith.mulf %2078, %2065 : vector<8x128xf32>
    %2091 = arith.addf %2089, %2090 : vector<8x128xf32>
    %2092 = arith.mulf %2083, %2068 : vector<8x128xf32>
    %2093 = arith.addf %2091, %2092 : vector<8x128xf32>
    %2094 = arith.addf %2093, %2088 : vector<8x128xf32>
    %c33_343 = arith.constant 33 : index
    %2095 = arith.index_cast %3 : i32 to index
    %c0_344 = arith.constant 0 : index
    %2096 = vector.load %arg5[%c33_343, %2095, %c0_344] : memref<42x8x128xf32, #tpu.memory_space<vmem>>, vector<1x8x128xf32>
    %2097 = vector.shape_cast %2096 : vector<1x8x128xf32> to vector<8x128xf32>
    %2098 = vector.shape_cast %2094 : vector<8x128xf32> to vector<1x8x128xf32>
    tpu.vector_store %arg5[%c33_343, %2095, %c0_344], %2098 {strides = array<i32>} : memref<42x8x128xf32, #tpu.memory_space<vmem>>, vector<1x8x128xf32>,
    %2099 = arith.select %2059, %596, %737 : vector<8x128xi1>, vector<8x128xf32>
    %2100 = arith.select %2057, %455, %2099 : vector<8x128xi1>, vector<8x128xf32>
    %2101 = arith.select %2055, %314, %2100 : vector<8x128xi1>, vector<8x128xf32>
    %2102 = arith.select %2053, %173, %2101 : vector<8x128xi1>, vector<8x128xf32>
    %2103 = arith.select %2051, %15, %2102 : vector<8x128xi1>, vector<8x128xf32>
    %2104 = arith.select %2059, %664, %805 : vector<8x128xi1>, vector<8x128xf32>
    %2105 = arith.select %2057, %523, %2104 : vector<8x128xi1>, vector<8x128xf32>
    %2106 = arith.select %2055, %382, %2105 : vector<8x128xi1>, vector<8x128xf32>
    %2107 = arith.select %2053, %241, %2106 : vector<8x128xi1>, vector<8x128xf32>
    %2108 = arith.select %2051, %18, %2107 : vector<8x128xi1>, vector<8x128xf32>
    %2109 = arith.select %2059, %667, %808 : vector<8x128xi1>, vector<8x128xf32>
    %2110 = arith.select %2057, %526, %2109 : vector<8x128xi1>, vector<8x128xf32>
    %2111 = arith.select %2055, %385, %2110 : vector<8x128xi1>, vector<8x128xf32>
    %2112 = arith.select %2053, %244, %2111 : vector<8x128xi1>, vector<8x128xf32>
    %2113 = arith.select %2051, %21, %2112 : vector<8x128xi1>, vector<8x128xf32>
    %2114 = arith.select %2059, %647, %788 : vector<8x128xi1>, vector<8x128xf32>
    %2115 = arith.select %2057, %506, %2114 : vector<8x128xi1>, vector<8x128xf32>
    %2116 = arith.select %2055, %365, %2115 : vector<8x128xi1>, vector<8x128xf32>
    %2117 = arith.select %2053, %224, %2116 : vector<8x128xi1>, vector<8x128xf32>
    %2118 = arith.select %2051, %36, %2117 : vector<8x128xi1>, vector<8x128xf32>
    %2119 = arith.mulf %2103, %2062 : vector<8x128xf32>
    %2120 = arith.mulf %2108, %2065 : vector<8x128xf32>
    %2121 = arith.addf %2119, %2120 : vector<8x128xf32>
    %2122 = arith.mulf %2113, %2068 : vector<8x128xf32>
    %2123 = arith.addf %2121, %2122 : vector<8x128xf32>
    %2124 = arith.addf %2123, %2118 : vector<8x128xf32>
    %c34_345 = arith.constant 34 : index
    %2125 = arith.index_cast %3 : i32 to index
    %c0_346 = arith.constant 0 : index
    %2126 = vector.load %arg5[%c34_345, %2125, %c0_346] : memref<42x8x128xf32, #tpu.memory_space<vmem>>, vector<1x8x128xf32>
    %2127 = vector.shape_cast %2126 : vector<1x8x128xf32> to vector<8x128xf32>
    %2128 = vector.shape_cast %2124 : vector<8x128xf32> to vector<1x8x128xf32>
    tpu.vector_store %arg5[%c34_345, %2125, %c0_346], %2128 {strides = array<i32>} : memref<42x8x128xf32, #tpu.memory_space<vmem>>, vector<1x8x128xf32>,
    %2129 = arith.select %2059, %617, %758 : vector<8x128xi1>, vector<8x128xf32>
    %2130 = arith.select %2057, %476, %2129 : vector<8x128xi1>, vector<8x128xf32>
    %2131 = arith.select %2055, %335, %2130 : vector<8x128xi1>, vector<8x128xf32>
    %2132 = arith.select %2053, %194, %2131 : vector<8x128xi1>, vector<8x128xf32>
    %2133 = arith.select %2051, %24, %2132 : vector<8x128xi1>, vector<8x128xf32>
    %2134 = arith.select %2059, %670, %811 : vector<8x128xi1>, vector<8x128xf32>
    %2135 = arith.select %2057, %529, %2134 : vector<8x128xi1>, vector<8x128xf32>
    %2136 = arith.select %2055, %388, %2135 : vector<8x128xi1>, vector<8x128xf32>
    %2137 = arith.select %2053, %247, %2136 : vector<8x128xi1>, vector<8x128xf32>
    %2138 = arith.select %2051, %27, %2137 : vector<8x128xi1>, vector<8x128xf32>
    %2139 = arith.select %2059, %673, %814 : vector<8x128xi1>, vector<8x128xf32>
    %2140 = arith.select %2057, %532, %2139 : vector<8x128xi1>, vector<8x128xf32>
    %2141 = arith.select %2055, %391, %2140 : vector<8x128xi1>, vector<8x128xf32>
    %2142 = arith.select %2053, %250, %2141 : vector<8x128xi1>, vector<8x128xf32>
    %2143 = arith.select %2051, %30, %2142 : vector<8x128xi1>, vector<8x128xf32>
    %2144 = arith.select %2059, %655, %796 : vector<8x128xi1>, vector<8x128xf32>
    %2145 = arith.select %2057, %514, %2144 : vector<8x128xi1>, vector<8x128xf32>
    %2146 = arith.select %2055, %373, %2145 : vector<8x128xi1>, vector<8x128xf32>
    %2147 = arith.select %2053, %232, %2146 : vector<8x128xi1>, vector<8x128xf32>
    %2148 = arith.select %2051, %39, %2147 : vector<8x128xi1>, vector<8x128xf32>
    %2149 = arith.mulf %2133, %2062 : vector<8x128xf32>
    %2150 = arith.mulf %2138, %2065 : vector<8x128xf32>
    %2151 = arith.addf %2149, %2150 : vector<8x128xf32>
    %2152 = arith.mulf %2143, %2068 : vector<8x128xf32>
    %2153 = arith.addf %2151, %2152 : vector<8x128xf32>
    %2154 = arith.addf %2153, %2148 : vector<8x128xf32>
    %c35_347 = arith.constant 35 : index
    %2155 = arith.index_cast %3 : i32 to index
    %c0_348 = arith.constant 0 : index
    %2156 = vector.load %arg5[%c35_347, %2155, %c0_348] : memref<42x8x128xf32, #tpu.memory_space<vmem>>, vector<1x8x128xf32>
    %2157 = vector.shape_cast %2156 : vector<1x8x128xf32> to vector<8x128xf32>
    %2158 = vector.shape_cast %2154 : vector<8x128xf32> to vector<1x8x128xf32>
    tpu.vector_store %arg5[%c35_347, %2155, %c0_348], %2158 {strides = array<i32>} : memref<42x8x128xf32, #tpu.memory_space<vmem>>, vector<1x8x128xf32>,
    %c72 = arith.constant 72 : index
    %2159 = arith.index_cast %3 : i32 to index
    %c0_349 = arith.constant 0 : index
    %2160 = vector.load %arg4[%c72, %2159, %c0_349] : memref<116x8x128xf32, #tpu.memory_space<vmem>>, vector<1x8x128xf32>
    %2161 = vector.shape_cast %2160 : vector<1x8x128xf32> to vector<8x128xf32>
    %cst_350 = arith.constant 2.500000e+00 : f32
    %2162 = vector.broadcast %cst_350 : f32 to vector<8x128xf32>
    %2163 = arith.cmpf olt, %2161, %2162 : vector<8x128xf32>
    %cst_351 = arith.constant 3.500000e+00 : f32
    %2164 = vector.broadcast %cst_351 : f32 to vector<8x128xf32>
    %2165 = arith.cmpf olt, %2161, %2164 : vector<8x128xf32>
    %cst_352 = arith.constant 4.500000e+00 : f32
    %2166 = vector.broadcast %cst_352 : f32 to vector<8x128xf32>
    %2167 = arith.cmpf olt, %2161, %2166 : vector<8x128xf32>
    %cst_353 = arith.constant 5.500000e+00 : f32
    %2168 = vector.broadcast %cst_353 : f32 to vector<8x128xf32>
    %2169 = arith.cmpf olt, %2161, %2168 : vector<8x128xf32>
    %cst_354 = arith.constant 6.500000e+00 : f32
    %2170 = vector.broadcast %cst_354 : f32 to vector<8x128xf32>
    %2171 = arith.cmpf olt, %2161, %2170 : vector<8x128xf32>
    %c110 = arith.constant 110 : index
    %2172 = arith.index_cast %3 : i32 to index
    %c0_355 = arith.constant 0 : index
    %2173 = vector.load %arg4[%c110, %2172, %c0_355] : memref<116x8x128xf32, #tpu.memory_space<vmem>>, vector<1x8x128xf32>
    %2174 = vector.shape_cast %2173 : vector<1x8x128xf32> to vector<8x128xf32>
    %c111 = arith.constant 111 : index
    %2175 = arith.index_cast %3 : i32 to index
    %c0_356 = arith.constant 0 : index
    %2176 = vector.load %arg4[%c111, %2175, %c0_356] : memref<116x8x128xf32, #tpu.memory_space<vmem>>, vector<1x8x128xf32>
    %2177 = vector.shape_cast %2176 : vector<1x8x128xf32> to vector<8x128xf32>
    %c112 = arith.constant 112 : index
    %2178 = arith.index_cast %3 : i32 to index
    %c0_357 = arith.constant 0 : index
    %2179 = vector.load %arg4[%c112, %2178, %c0_357] : memref<116x8x128xf32, #tpu.memory_space<vmem>>, vector<1x8x128xf32>
    %2180 = vector.shape_cast %2179 : vector<1x8x128xf32> to vector<8x128xf32>
    %2181 = arith.select %2171, %575, %716 : vector<8x128xi1>, vector<8x128xf32>
    %2182 = arith.select %2169, %434, %2181 : vector<8x128xi1>, vector<8x128xf32>
    %2183 = arith.select %2167, %293, %2182 : vector<8x128xi1>, vector<8x128xf32>
    %2184 = arith.select %2165, %152, %2183 : vector<8x128xi1>, vector<8x128xf32>
    %2185 = arith.select %2163, %6, %2184 : vector<8x128xi1>, vector<8x128xf32>
    %2186 = arith.select %2171, %658, %799 : vector<8x128xi1>, vector<8x128xf32>
    %2187 = arith.select %2169, %517, %2186 : vector<8x128xi1>, vector<8x128xf32>
    %2188 = arith.select %2167, %376, %2187 : vector<8x128xi1>, vector<8x128xf32>
    %2189 = arith.select %2165, %235, %2188 : vector<8x128xi1>, vector<8x128xf32>
    %2190 = arith.select %2163, %9, %2189 : vector<8x128xi1>, vector<8x128xf32>
    %2191 = arith.select %2171, %661, %802 : vector<8x128xi1>, vector<8x128xf32>
    %2192 = arith.select %2169, %520, %2191 : vector<8x128xi1>, vector<8x128xf32>
    %2193 = arith.select %2167, %379, %2192 : vector<8x128xi1>, vector<8x128xf32>
    %2194 = arith.select %2165, %238, %2193 : vector<8x128xi1>, vector<8x128xf32>
    %2195 = arith.select %2163, %12, %2194 : vector<8x128xi1>, vector<8x128xf32>
    %2196 = arith.select %2171, %639, %780 : vector<8x128xi1>, vector<8x128xf32>
    %2197 = arith.select %2169, %498, %2196 : vector<8x128xi1>, vector<8x128xf32>
    %2198 = arith.select %2167, %357, %2197 : vector<8x128xi1>, vector<8x128xf32>
    %2199 = arith.select %2165, %216, %2198 : vector<8x128xi1>, vector<8x128xf32>
    %2200 = arith.select %2163, %33, %2199 : vector<8x128xi1>, vector<8x128xf32>
    %2201 = arith.mulf %2185, %2174 : vector<8x128xf32>
    %2202 = arith.mulf %2190, %2177 : vector<8x128xf32>
    %2203 = arith.addf %2201, %2202 : vector<8x128xf32>
    %2204 = arith.mulf %2195, %2180 : vector<8x128xf32>
    %2205 = arith.addf %2203, %2204 : vector<8x128xf32>
    %2206 = arith.addf %2205, %2200 : vector<8x128xf32>
    %c36_358 = arith.constant 36 : index
    %2207 = arith.index_cast %3 : i32 to index
    %c0_359 = arith.constant 0 : index
    %2208 = vector.load %arg5[%c36_358, %2207, %c0_359] : memref<42x8x128xf32, #tpu.memory_space<vmem>>, vector<1x8x128xf32>
    %2209 = vector.shape_cast %2208 : vector<1x8x128xf32> to vector<8x128xf32>
    %2210 = vector.shape_cast %2206 : vector<8x128xf32> to vector<1x8x128xf32>
    tpu.vector_store %arg5[%c36_358, %2207, %c0_359], %2210 {strides = array<i32>} : memref<42x8x128xf32, #tpu.memory_space<vmem>>, vector<1x8x128xf32>,
    %2211 = arith.select %2171, %596, %737 : vector<8x128xi1>, vector<8x128xf32>
    %2212 = arith.select %2169, %455, %2211 : vector<8x128xi1>, vector<8x128xf32>
    %2213 = arith.select %2167, %314, %2212 : vector<8x128xi1>, vector<8x128xf32>
    %2214 = arith.select %2165, %173, %2213 : vector<8x128xi1>, vector<8x128xf32>
    %2215 = arith.select %2163, %15, %2214 : vector<8x128xi1>, vector<8x128xf32>
    %2216 = arith.select %2171, %664, %805 : vector<8x128xi1>, vector<8x128xf32>
    %2217 = arith.select %2169, %523, %2216 : vector<8x128xi1>, vector<8x128xf32>
    %2218 = arith.select %2167, %382, %2217 : vector<8x128xi1>, vector<8x128xf32>
    %2219 = arith.select %2165, %241, %2218 : vector<8x128xi1>, vector<8x128xf32>
    %2220 = arith.select %2163, %18, %2219 : vector<8x128xi1>, vector<8x128xf32>
    %2221 = arith.select %2171, %667, %808 : vector<8x128xi1>, vector<8x128xf32>
    %2222 = arith.select %2169, %526, %2221 : vector<8x128xi1>, vector<8x128xf32>
    %2223 = arith.select %2167, %385, %2222 : vector<8x128xi1>, vector<8x128xf32>
    %2224 = arith.select %2165, %244, %2223 : vector<8x128xi1>, vector<8x128xf32>
    %2225 = arith.select %2163, %21, %2224 : vector<8x128xi1>, vector<8x128xf32>
    %2226 = arith.select %2171, %647, %788 : vector<8x128xi1>, vector<8x128xf32>
    %2227 = arith.select %2169, %506, %2226 : vector<8x128xi1>, vector<8x128xf32>
    %2228 = arith.select %2167, %365, %2227 : vector<8x128xi1>, vector<8x128xf32>
    %2229 = arith.select %2165, %224, %2228 : vector<8x128xi1>, vector<8x128xf32>
    %2230 = arith.select %2163, %36, %2229 : vector<8x128xi1>, vector<8x128xf32>
    %2231 = arith.mulf %2215, %2174 : vector<8x128xf32>
    %2232 = arith.mulf %2220, %2177 : vector<8x128xf32>
    %2233 = arith.addf %2231, %2232 : vector<8x128xf32>
    %2234 = arith.mulf %2225, %2180 : vector<8x128xf32>
    %2235 = arith.addf %2233, %2234 : vector<8x128xf32>
    %2236 = arith.addf %2235, %2230 : vector<8x128xf32>
    %c37_360 = arith.constant 37 : index
    %2237 = arith.index_cast %3 : i32 to index
    %c0_361 = arith.constant 0 : index
    %2238 = vector.load %arg5[%c37_360, %2237, %c0_361] : memref<42x8x128xf32, #tpu.memory_space<vmem>>, vector<1x8x128xf32>
    %2239 = vector.shape_cast %2238 : vector<1x8x128xf32> to vector<8x128xf32>
    %2240 = vector.shape_cast %2236 : vector<8x128xf32> to vector<1x8x128xf32>
    tpu.vector_store %arg5[%c37_360, %2237, %c0_361], %2240 {strides = array<i32>} : memref<42x8x128xf32, #tpu.memory_space<vmem>>, vector<1x8x128xf32>,
    %2241 = arith.select %2171, %617, %758 : vector<8x128xi1>, vector<8x128xf32>
    %2242 = arith.select %2169, %476, %2241 : vector<8x128xi1>, vector<8x128xf32>
    %2243 = arith.select %2167, %335, %2242 : vector<8x128xi1>, vector<8x128xf32>
    %2244 = arith.select %2165, %194, %2243 : vector<8x128xi1>, vector<8x128xf32>
    %2245 = arith.select %2163, %24, %2244 : vector<8x128xi1>, vector<8x128xf32>
    %2246 = arith.select %2171, %670, %811 : vector<8x128xi1>, vector<8x128xf32>
    %2247 = arith.select %2169, %529, %2246 : vector<8x128xi1>, vector<8x128xf32>
    %2248 = arith.select %2167, %388, %2247 : vector<8x128xi1>, vector<8x128xf32>
    %2249 = arith.select %2165, %247, %2248 : vector<8x128xi1>, vector<8x128xf32>
    %2250 = arith.select %2163, %27, %2249 : vector<8x128xi1>, vector<8x128xf32>
    %2251 = arith.select %2171, %673, %814 : vector<8x128xi1>, vector<8x128xf32>
    %2252 = arith.select %2169, %532, %2251 : vector<8x128xi1>, vector<8x128xf32>
    %2253 = arith.select %2167, %391, %2252 : vector<8x128xi1>, vector<8x128xf32>
    %2254 = arith.select %2165, %250, %2253 : vector<8x128xi1>, vector<8x128xf32>
    %2255 = arith.select %2163, %30, %2254 : vector<8x128xi1>, vector<8x128xf32>
    %2256 = arith.select %2171, %655, %796 : vector<8x128xi1>, vector<8x128xf32>
    %2257 = arith.select %2169, %514, %2256 : vector<8x128xi1>, vector<8x128xf32>
    %2258 = arith.select %2167, %373, %2257 : vector<8x128xi1>, vector<8x128xf32>
    %2259 = arith.select %2165, %232, %2258 : vector<8x128xi1>, vector<8x128xf32>
    %2260 = arith.select %2163, %39, %2259 : vector<8x128xi1>, vector<8x128xf32>
    %2261 = arith.mulf %2245, %2174 : vector<8x128xf32>
    %2262 = arith.mulf %2250, %2177 : vector<8x128xf32>
    %2263 = arith.addf %2261, %2262 : vector<8x128xf32>
    %2264 = arith.mulf %2255, %2180 : vector<8x128xf32>
    %2265 = arith.addf %2263, %2264 : vector<8x128xf32>
    %2266 = arith.addf %2265, %2260 : vector<8x128xf32>
    %c38_362 = arith.constant 38 : index
    %2267 = arith.index_cast %3 : i32 to index
    %c0_363 = arith.constant 0 : index
    %2268 = vector.load %arg5[%c38_362, %2267, %c0_363] : memref<42x8x128xf32, #tpu.memory_space<vmem>>, vector<1x8x128xf32>
    %2269 = vector.shape_cast %2268 : vector<1x8x128xf32> to vector<8x128xf32>
    %2270 = vector.shape_cast %2266 : vector<8x128xf32> to vector<1x8x128xf32>
    tpu.vector_store %arg5[%c38_362, %2267, %c0_363], %2270 {strides = array<i32>} : memref<42x8x128xf32, #tpu.memory_space<vmem>>, vector<1x8x128xf32>,
    %c73 = arith.constant 73 : index
    %2271 = arith.index_cast %3 : i32 to index
    %c0_364 = arith.constant 0 : index
    %2272 = vector.load %arg4[%c73, %2271, %c0_364] : memref<116x8x128xf32, #tpu.memory_space<vmem>>, vector<1x8x128xf32>
    %2273 = vector.shape_cast %2272 : vector<1x8x128xf32> to vector<8x128xf32>
    %cst_365 = arith.constant 2.500000e+00 : f32
    %2274 = vector.broadcast %cst_365 : f32 to vector<8x128xf32>
    %2275 = arith.cmpf olt, %2273, %2274 : vector<8x128xf32>
    %cst_366 = arith.constant 3.500000e+00 : f32
    %2276 = vector.broadcast %cst_366 : f32 to vector<8x128xf32>
    %2277 = arith.cmpf olt, %2273, %2276 : vector<8x128xf32>
    %cst_367 = arith.constant 4.500000e+00 : f32
    %2278 = vector.broadcast %cst_367 : f32 to vector<8x128xf32>
    %2279 = arith.cmpf olt, %2273, %2278 : vector<8x128xf32>
    %cst_368 = arith.constant 5.500000e+00 : f32
    %2280 = vector.broadcast %cst_368 : f32 to vector<8x128xf32>
    %2281 = arith.cmpf olt, %2273, %2280 : vector<8x128xf32>
    %cst_369 = arith.constant 6.500000e+00 : f32
    %2282 = vector.broadcast %cst_369 : f32 to vector<8x128xf32>
    %2283 = arith.cmpf olt, %2273, %2282 : vector<8x128xf32>
    %c113 = arith.constant 113 : index
    %2284 = arith.index_cast %3 : i32 to index
    %c0_370 = arith.constant 0 : index
    %2285 = vector.load %arg4[%c113, %2284, %c0_370] : memref<116x8x128xf32, #tpu.memory_space<vmem>>, vector<1x8x128xf32>
    %2286 = vector.shape_cast %2285 : vector<1x8x128xf32> to vector<8x128xf32>
    %c114 = arith.constant 114 : index
    %2287 = arith.index_cast %3 : i32 to index
    %c0_371 = arith.constant 0 : index
    %2288 = vector.load %arg4[%c114, %2287, %c0_371] : memref<116x8x128xf32, #tpu.memory_space<vmem>>, vector<1x8x128xf32>
    %2289 = vector.shape_cast %2288 : vector<1x8x128xf32> to vector<8x128xf32>
    %c115 = arith.constant 115 : index
    %2290 = arith.index_cast %3 : i32 to index
    %c0_372 = arith.constant 0 : index
    %2291 = vector.load %arg4[%c115, %2290, %c0_372] : memref<116x8x128xf32, #tpu.memory_space<vmem>>, vector<1x8x128xf32>
    %2292 = vector.shape_cast %2291 : vector<1x8x128xf32> to vector<8x128xf32>
    %2293 = arith.select %2283, %575, %716 : vector<8x128xi1>, vector<8x128xf32>
    %2294 = arith.select %2281, %434, %2293 : vector<8x128xi1>, vector<8x128xf32>
    %2295 = arith.select %2279, %293, %2294 : vector<8x128xi1>, vector<8x128xf32>
    %2296 = arith.select %2277, %152, %2295 : vector<8x128xi1>, vector<8x128xf32>
    %2297 = arith.select %2275, %6, %2296 : vector<8x128xi1>, vector<8x128xf32>
    %2298 = arith.select %2283, %658, %799 : vector<8x128xi1>, vector<8x128xf32>
    %2299 = arith.select %2281, %517, %2298 : vector<8x128xi1>, vector<8x128xf32>
    %2300 = arith.select %2279, %376, %2299 : vector<8x128xi1>, vector<8x128xf32>
    %2301 = arith.select %2277, %235, %2300 : vector<8x128xi1>, vector<8x128xf32>
    %2302 = arith.select %2275, %9, %2301 : vector<8x128xi1>, vector<8x128xf32>
    %2303 = arith.select %2283, %661, %802 : vector<8x128xi1>, vector<8x128xf32>
    %2304 = arith.select %2281, %520, %2303 : vector<8x128xi1>, vector<8x128xf32>
    %2305 = arith.select %2279, %379, %2304 : vector<8x128xi1>, vector<8x128xf32>
    %2306 = arith.select %2277, %238, %2305 : vector<8x128xi1>, vector<8x128xf32>
    %2307 = arith.select %2275, %12, %2306 : vector<8x128xi1>, vector<8x128xf32>
    %2308 = arith.select %2283, %639, %780 : vector<8x128xi1>, vector<8x128xf32>
    %2309 = arith.select %2281, %498, %2308 : vector<8x128xi1>, vector<8x128xf32>
    %2310 = arith.select %2279, %357, %2309 : vector<8x128xi1>, vector<8x128xf32>
    %2311 = arith.select %2277, %216, %2310 : vector<8x128xi1>, vector<8x128xf32>
    %2312 = arith.select %2275, %33, %2311 : vector<8x128xi1>, vector<8x128xf32>
    %2313 = arith.mulf %2297, %2286 : vector<8x128xf32>
    %2314 = arith.mulf %2302, %2289 : vector<8x128xf32>
    %2315 = arith.addf %2313, %2314 : vector<8x128xf32>
    %2316 = arith.mulf %2307, %2292 : vector<8x128xf32>
    %2317 = arith.addf %2315, %2316 : vector<8x128xf32>
    %2318 = arith.addf %2317, %2312 : vector<8x128xf32>
    %c39_373 = arith.constant 39 : index
    %2319 = arith.index_cast %3 : i32 to index
    %c0_374 = arith.constant 0 : index
    %2320 = vector.load %arg5[%c39_373, %2319, %c0_374] : memref<42x8x128xf32, #tpu.memory_space<vmem>>, vector<1x8x128xf32>
    %2321 = vector.shape_cast %2320 : vector<1x8x128xf32> to vector<8x128xf32>
    %2322 = vector.shape_cast %2318 : vector<8x128xf32> to vector<1x8x128xf32>
    tpu.vector_store %arg5[%c39_373, %2319, %c0_374], %2322 {strides = array<i32>} : memref<42x8x128xf32, #tpu.memory_space<vmem>>, vector<1x8x128xf32>,
    %2323 = arith.select %2283, %596, %737 : vector<8x128xi1>, vector<8x128xf32>
    %2324 = arith.select %2281, %455, %2323 : vector<8x128xi1>, vector<8x128xf32>
    %2325 = arith.select %2279, %314, %2324 : vector<8x128xi1>, vector<8x128xf32>
    %2326 = arith.select %2277, %173, %2325 : vector<8x128xi1>, vector<8x128xf32>
    %2327 = arith.select %2275, %15, %2326 : vector<8x128xi1>, vector<8x128xf32>
    %2328 = arith.select %2283, %664, %805 : vector<8x128xi1>, vector<8x128xf32>
    %2329 = arith.select %2281, %523, %2328 : vector<8x128xi1>, vector<8x128xf32>
    %2330 = arith.select %2279, %382, %2329 : vector<8x128xi1>, vector<8x128xf32>
    %2331 = arith.select %2277, %241, %2330 : vector<8x128xi1>, vector<8x128xf32>
    %2332 = arith.select %2275, %18, %2331 : vector<8x128xi1>, vector<8x128xf32>
    %2333 = arith.select %2283, %667, %808 : vector<8x128xi1>, vector<8x128xf32>
    %2334 = arith.select %2281, %526, %2333 : vector<8x128xi1>, vector<8x128xf32>
    %2335 = arith.select %2279, %385, %2334 : vector<8x128xi1>, vector<8x128xf32>
    %2336 = arith.select %2277, %244, %2335 : vector<8x128xi1>, vector<8x128xf32>
    %2337 = arith.select %2275, %21, %2336 : vector<8x128xi1>, vector<8x128xf32>
    %2338 = arith.select %2283, %647, %788 : vector<8x128xi1>, vector<8x128xf32>
    %2339 = arith.select %2281, %506, %2338 : vector<8x128xi1>, vector<8x128xf32>
    %2340 = arith.select %2279, %365, %2339 : vector<8x128xi1>, vector<8x128xf32>
    %2341 = arith.select %2277, %224, %2340 : vector<8x128xi1>, vector<8x128xf32>
    %2342 = arith.select %2275, %36, %2341 : vector<8x128xi1>, vector<8x128xf32>
    %2343 = arith.mulf %2327, %2286 : vector<8x128xf32>
    %2344 = arith.mulf %2332, %2289 : vector<8x128xf32>
    %2345 = arith.addf %2343, %2344 : vector<8x128xf32>
    %2346 = arith.mulf %2337, %2292 : vector<8x128xf32>
    %2347 = arith.addf %2345, %2346 : vector<8x128xf32>
    %2348 = arith.addf %2347, %2342 : vector<8x128xf32>
    %c40_375 = arith.constant 40 : index
    %2349 = arith.index_cast %3 : i32 to index
    %c0_376 = arith.constant 0 : index
    %2350 = vector.load %arg5[%c40_375, %2349, %c0_376] : memref<42x8x128xf32, #tpu.memory_space<vmem>>, vector<1x8x128xf32>
    %2351 = vector.shape_cast %2350 : vector<1x8x128xf32> to vector<8x128xf32>
    %2352 = vector.shape_cast %2348 : vector<8x128xf32> to vector<1x8x128xf32>
    tpu.vector_store %arg5[%c40_375, %2349, %c0_376], %2352 {strides = array<i32>} : memref<42x8x128xf32, #tpu.memory_space<vmem>>, vector<1x8x128xf32>,
    %2353 = arith.select %2283, %617, %758 : vector<8x128xi1>, vector<8x128xf32>
    %2354 = arith.select %2281, %476, %2353 : vector<8x128xi1>, vector<8x128xf32>
    %2355 = arith.select %2279, %335, %2354 : vector<8x128xi1>, vector<8x128xf32>
    %2356 = arith.select %2277, %194, %2355 : vector<8x128xi1>, vector<8x128xf32>
    %2357 = arith.select %2275, %24, %2356 : vector<8x128xi1>, vector<8x128xf32>
    %2358 = arith.select %2283, %670, %811 : vector<8x128xi1>, vector<8x128xf32>
    %2359 = arith.select %2281, %529, %2358 : vector<8x128xi1>, vector<8x128xf32>
    %2360 = arith.select %2279, %388, %2359 : vector<8x128xi1>, vector<8x128xf32>
    %2361 = arith.select %2277, %247, %2360 : vector<8x128xi1>, vector<8x128xf32>
    %2362 = arith.select %2275, %27, %2361 : vector<8x128xi1>, vector<8x128xf32>
    %2363 = arith.select %2283, %673, %814 : vector<8x128xi1>, vector<8x128xf32>
    %2364 = arith.select %2281, %532, %2363 : vector<8x128xi1>, vector<8x128xf32>
    %2365 = arith.select %2279, %391, %2364 : vector<8x128xi1>, vector<8x128xf32>
    %2366 = arith.select %2277, %250, %2365 : vector<8x128xi1>, vector<8x128xf32>
    %2367 = arith.select %2275, %30, %2366 : vector<8x128xi1>, vector<8x128xf32>
    %2368 = arith.select %2283, %655, %796 : vector<8x128xi1>, vector<8x128xf32>
    %2369 = arith.select %2281, %514, %2368 : vector<8x128xi1>, vector<8x128xf32>
    %2370 = arith.select %2279, %373, %2369 : vector<8x128xi1>, vector<8x128xf32>
    %2371 = arith.select %2277, %232, %2370 : vector<8x128xi1>, vector<8x128xf32>
    %2372 = arith.select %2275, %39, %2371 : vector<8x128xi1>, vector<8x128xf32>
    %2373 = arith.mulf %2357, %2286 : vector<8x128xf32>
    %2374 = arith.mulf %2362, %2289 : vector<8x128xf32>
    %2375 = arith.addf %2373, %2374 : vector<8x128xf32>
    %2376 = arith.mulf %2367, %2292 : vector<8x128xf32>
    %2377 = arith.addf %2375, %2376 : vector<8x128xf32>
    %2378 = arith.addf %2377, %2372 : vector<8x128xf32>
    %c41_377 = arith.constant 41 : index
    %2379 = arith.index_cast %3 : i32 to index
    %c0_378 = arith.constant 0 : index
    %2380 = vector.load %arg5[%c41_377, %2379, %c0_378] : memref<42x8x128xf32, #tpu.memory_space<vmem>>, vector<1x8x128xf32>
    %2381 = vector.shape_cast %2380 : vector<1x8x128xf32> to vector<8x128xf32>
    %2382 = vector.shape_cast %2378 : vector<8x128xf32> to vector<1x8x128xf32>
    tpu.vector_store %arg5[%c41_377, %2379, %c0_378], %2382 {strides = array<i32>} : memref<42x8x128xf32, #tpu.memory_space<vmem>>, vector<1x8x128xf32>,
    %c1_i32_379 = arith.constant 1 : i32
    return
  }
  func.func @transform_0(%arg0: i32) -> (i32, i32, i32) {
    %c0_i32 = arith.constant 0 : i32
    %c0_i32_0 = arith.constant 0 : i32
    %c0_i32_1 = arith.constant 0 : i32
    return %c0_i32, %arg0, %c0_i32_0 : i32, i32, i32
  }
  func.func @transform_1(%arg0: i32) -> (i32, i32, i32) {
    %c0_i32 = arith.constant 0 : i32
    %c0_i32_0 = arith.constant 0 : i32
    %c0_i32_1 = arith.constant 0 : i32
    return %c0_i32, %arg0, %c0_i32_0 : i32, i32, i32
  }
  func.func @transform_2(%arg0: i32) -> (i32, i32, i32) {
    %c0_i32 = arith.constant 0 : i32
    %c0_i32_0 = arith.constant 0 : i32
    %c0_i32_1 = arith.constant 0 : i32
    return %c0_i32, %arg0, %c0_i32_0 : i32, i32, i32
  }
  func.func @transform_3(%arg0: i32) -> (i32, i32, i32) {
    %c0_i32 = arith.constant 0 : i32
    %c0_i32_0 = arith.constant 0 : i32
    %c0_i32_1 = arith.constant 0 : i32
    return %c0_i32, %arg0, %c0_i32_0 : i32, i32, i32
  }
  func.func @transform_4(%arg0: i32) -> (i32, i32, i32) {
    %c0_i32 = arith.constant 0 : i32
    %c0_i32_0 = arith.constant 0 : i32
    %c0_i32_1 = arith.constant 0 : i32
    return %c0_i32, %arg0, %c0_i32_0 : i32, i32, i32
  }
}

</mosaic_0001>

<bundles_post_ra>
// kernel: _fullatom_jit.1
= control target key start
LH: loop header
LB: loop body
LE: loop exit
PB: predicated region body
PF: predicated region fallthrough
CT: control target
= control target key end

     0   :  { %s7011_s2 = inlined_call_operand.vmem [shape: f32[10,8,128], index: 2, kind: input, shape index: {}]   ;;  %s7012_s0 = inlined_call_operand.vmem [shape: f32[9,8,128], index: 0, kind: input, shape index: {}]   ;;  %s7013_s3 = inlined_call_operand.vmem [shape: f32[116,8,128], index: 3, kind: input, shape index: {}]   ;;  %s7014_s1 = inlined_call_operand.vmem [shape: f32[3,8,128], index: 1, kind: input, shape index: {}]   ;;  %s7015_s4 = inlined_call_operand.vmem [shape: f32[42,8,128], index: 4, kind: output, shape index: {}]  }
   0x1   :  { %v2568_v0 = vld [vmem:[%s7011_s2] sm:$0xff]  ;;  %v2573_v1 = vld [vmem:[%s7011_s2 + $0x8] sm:$0xff]  ;;  %v2582_v4 = vld [vmem:[%s7011_s2 + $0x10] sm:$0xff] }
   0x2   :  { %v50_v2 = vmul.f32 %v2568_v0, %v2568_v0  ;;  %v51_v3 = vmul.f32 %v2573_v1, %v2573_v1  ;;  %v2587_v5 = vld [vmem:[%s7011_s2 + $0x18] sm:$0xff]  ;;  %v2592_v6 = vld [vmem:[%s7011_s2 + $0x20] sm:$0xff]  ;;  %v61_v7 = vmul.f32 %v2582_v4, %v2582_v4  ;;  %v2601_v9 = vld [vmem:[%s7011_s2 + $0x28] sm:$0xff] }
   0x3   :  { %v62_v8 = vmul.f32 %v2587_v5, %v2587_v5  ;;  %v72_v10 = vmul.f32 %v2592_v6, %v2592_v6  ;;  %v2608_v11 = vld [vmem:[%s7011_s2 + $0x30] sm:$0xff]  ;;  %v2613_v12 = vld [vmem:[%s7011_s2 + $0x38] sm:$0xff]  ;;  %v73_v14 = vmul.f32 %v2601_v9, %v2601_v9  ;;  %v2624_v17 = vld [vmem:[%s7011_s2 + $0x40] sm:$0xff] }
   0x4   :  { %v52_v13 = vadd.f32 %v51_v3, %v50_v2  ;;  %v83_v15 = vmul.f32 %v2608_v11, %v2608_v11  ;;  %v84_v16 = vmul.f32 %v2613_v12, %v2613_v12  ;;  %v2629_v18 = vld [vmem:[%s7011_s2 + $0x48] sm:$0xff]  ;;  %v95_v20 = vmul.f32 %v2624_v17, %v2624_v17  ;;  %v2643_v23 = vld [vmem:[%s7012_s0] sm:$0xff]  ;;  %v2663_v32 = vld [vmem:[%s7013_s3 + $0x10] sm:$0xff] }
   0x5   :  { %v63_v19 = vadd.f32 %v62_v8, %v61_v7  ;;  %v96_v21 = vmul.f32 %v2629_v18, %v2629_v18  ;;  %v2638_v22 = vld [vmem:[%s7013_s3 + $0x8] sm:$0xff]  ;;  %v74_v26 = vadd.f32 %v73_v14, %v72_v10  ;;  %v2653_v28 = vld [vmem:[%s7013_s3 + $0x20] sm:$0xff]  ;;  %7370 = vst [vmem:[#allocation6_spill] sm:$0xff] %v2663_v32  ;;  %v2668_v33 = vld [vmem:[%s7013_s3 + $0x18] sm:$0xff]  ;;  %v140_v50 = vmul.f32 %v2663_v32, %v2643_v23 }
   0x6   :  { %7366 = vst [vmem:[#allocation2_spill] sm:$0xff] %v2638_v22  ;;  %v2648_v24 = vld [vmem:[%s7012_s0 + $0x8] sm:$0xff]  ;;  %v53_v25 = vadd.f32 1e-08, %v52_v13  ;;  %v85_v27 = vadd.f32 %v84_v16, %v83_v15  ;;  %7368 = vst [vmem:[#allocation4_spill] sm:$0xff] %v2653_v28  ;;  %v2658_v31 = vld [vmem:[%s7013_s3] sm:$0xff]  ;;  %v134_v38 = vmul.f32 %v2638_v22, %v2643_v23 }
   0x7   :  { %7367 = vst [vmem:[#allocation3_spill] sm:$0xff] %v2648_v24  ;;  %v64_v29 = vadd.f32 1e-08, %v63_v19  ;;  %v97_v30 = vadd.f32 %v96_v21, %v95_v20  ;;  %7369 = vst [vmem:[#allocation5_spill] sm:$0xff] %v2658_v31  ;;  %v75_v34 = vadd.f32 1e-08, %v74_v26  ;;  %v136_v44 = vmul.f32 %v2653_v28, %v2648_v24 }
   0x8   :  { %7371 = vst [vmem:[#allocation7_spill] sm:$0xff] %v2668_v33  ;;  %2503 = vrsqrt.f32 %v53_v25  ;;  %v86_v35 = vadd.f32 1e-08, %v85_v27  ;;  %v2673_v36 = vld [vmem:[%s7013_s3 + $0x28] sm:$0xff]  ;;  %v2685_v39 = vld [vmem:[%s7012_s0 + $0x10] sm:$0xff]  ;;  %v2690_v41 = vld [vmem:[%s7013_s3 + $0x38] sm:$0xff]  ;;  %v128_v46 = vmul.f32 %v2658_v31, %v2643_v23  ;;  %v130_v47 = vmul.f32 %v2668_v33, %v2648_v24 }
   0x9   :  { %7372 = vst [vmem:[#allocation8_spill] sm:$0xff] %v2673_v36  ;;  %v2678_v37 = vld [vmem:[%s7013_s3 + $0x168] sm:$0xff]  ;;  %7374 = vst [vmem:[#allocation10_spill] sm:$0xff] %v2685_v39  ;;  %2505 = vrsqrt.f32 %v64_v29  ;;  %v98_v40 = vadd.f32 1e-08, %v97_v30  ;;  %v2695_v42 = vld [vmem:[%s7013_s3 + $0x40] sm:$0xff]  ;;  %v142_v51 = vmul.f32 %v2673_v36, %v2648_v24  ;;  %v137_v56 = vadd.f32 %v136_v44, %v134_v38 }
   0xa   :  { %7373 = vst [vmem:[#allocation9_spill] sm:$0xff] %v2678_v37  ;;  %7375 = vst [vmem:[#allocation11_spill] sm:$0xff] %v2690_v41  ;;  %v2700_v43 = vld [vmem:[%s7013_s3 + $0x170] sm:$0xff]  ;;  %2507 = vrsqrt.f32 %v75_v34  ;;  %v2707_v45 = vld [vmem:[%s7013_s3 + $0x178] sm:$0xff]  ;;  %v182_v52 = vmul.f32 %v2678_v37, %v2643_v23  ;;  %v138_v57 = vmul.f32 %v2690_v41, %v2685_v39  ;;  %v144_v61 = vmul.f32 %v2695_v42, %v2685_v39 }
   0xb   :  { %7376 = vst [vmem:[#allocation12_spill] sm:$0xff] %v2695_v42  ;;  %v2716_v48 = vld [vmem:[%s7013_s3 + $0x48] sm:$0xff]  ;;  %v2721_v49 = vld [vmem:[%s7013_s3 + $0x60] sm:$0xff]  ;;  %2509 = vrsqrt.f32 %v86_v35  ;;  %v2732_v53 = vld [vmem:[%s7013_s3 + $0x50] sm:$0xff]  ;;  %v184_v58 = vmul.f32 %v2700_v43, %v2648_v24  ;;  %v186_v62 = vmul.f32 %v2707_v45, %v2685_v39  ;;  %v143_v16 = vadd.f32 %v142_v51, %v140_v50 }
   0xc   :  { %7377 = vst [vmem:[#allocation13_spill] sm:$0xff] %v2721_v49  ;;  %v2737_v54 = vld [vmem:[%s7013_s3 + $0x68] sm:$0xff]  ;;  %v2742_v55 = vld [vmem:[%s7013_s3 + $0x78] sm:$0xff]  ;;  %2511 = vrsqrt.f32 %v98_v40  ;;  %v2756_v60 = vld [vmem:[%s7013_s3 + $0x70] sm:$0xff]  ;;  %v256_v3 = vmul.f32 %v2716_v48, %v2643_v23  ;;  %v258_v7 = vmul.f32 %v2721_v49, %v2648_v24  ;;  %v262_v14 = vmul.f32 %v2732_v53, %v2643_v23 }
   0xd   :  { %v2751_v59 = vld [vmem:[%s7013_s3 + $0x58] sm:$0xff]  ;;  %v2765_v63 = vld [vmem:[%s7013_s3 + $0x80] sm:$0xff]  ;;  %v2770_v2 = vld [vmem:[%s7013_s3 + $0x88] sm:$0xff]  ;;  %v185_v10 = vadd.f32 %v184_v58, %v182_v52  ;;  %v260_v13 = vmul.f32 %v2742_v55, %v2685_v39  ;;  %v264_v15 = vmul.f32 %v2737_v54, %v2648_v24  ;;  %v270_v26 = vmul.f32 %v2756_v60, %v2648_v24 }
   0xe   :  { %v2779_v8 = vld [vmem:[%s7013_s3 + $0x30] sm:$0xff]  ;;  %v2790_v19 = vld [vmem:[%s7013_s3 + $0x180] sm:$0xff]  ;;  %v2795_v20 = vld [vmem:[%s7013_s3 + $0x188] sm:$0xff]  ;;  %v259_v21 = vadd.f32 %v258_v7, %v256_v3  ;;  %v268_v25 = vmul.f32 %v2751_v59, %v2643_v23  ;;  %v266_v29 = vmul.f32 %v2765_v63, %v2685_v39  ;;  %v272_v30 = vmul.f32 %v2770_v2, %v2685_v39 }
   0xf   :  { %7378 = vst [vmem:[#allocation14_spill] sm:$0xff] %v2779_v8  ;;  %7379 = vst [vmem:[#allocation15_spill] sm:$0xff] %v2790_v19  ;;  %v265_v27 = vadd.f32 %v264_v15, %v262_v14  ;;  %v131_v34 = vadd.f32 %v130_v47, %v128_v46  ;;  %v132_v35 = vmul.f32 %v2779_v8, %v2685_v39  ;;  %v2810_v50 = vld [vmem:[%s7013_s3 + $0x190] sm:$0xff] }
  0x10   :  { %7380 = vst [vmem:[#allocation16_spill] sm:$0xff] %v2795_v20  ;;  %v187_v38 = vadd.f32 %v186_v62, %v185_v10  ;;  %v271_v40 = vadd.f32 %v270_v26, %v268_v25  ;;  %7381 = vst [vmem:[#allocation17_spill] sm:$0xff] %v2810_v50  ;;  %v2812_v51 = vadd.f32 %v260_v13, %v259_v21  ;;  %v2827_v10 = vld [vmem:[%s7013_s3 + $0x90] sm:$0xff]  ;;  %v2832_v13 = vld [vmem:[%s7013_s3 + $0x98] sm:$0xff] }
  0x11   :  { %v310_v52 = vmul.f32 %v2790_v19, %v2643_v23  ;;  %v312_v58 = vmul.f32 %v2795_v20, %v2648_v24  ;;  %v139_v3 = vadd.f32 %v138_v57, %v137_v56  ;;  %v145_v7 = vadd.f32 %v144_v61, %v143_v16  ;;  %7383 = vst [vmem:[#allocation19_spill] sm:$0xff] %v2827_v10 }
  0x12   :  { %v2504_v44 = vpop.eup %2503  ;;  %7382 = vst [vmem:[#allocation18_spill] sm:$0xff] %v2812_v51  ;;  %7384 = vst [vmem:[#allocation20_spill] sm:$0xff] %v2832_v13  ;;  %v267_v57 = vadd.f32 %v266_v29, %v265_v27  ;;  %v273_v61 = vadd.f32 %v272_v30, %v271_v40  ;;  %v2845_v16 = vadd.f32 %v132_v35, %v131_v34 }
  0x13   :  { %v2506_v46 = vpop.eup %2505  ;;  %v2819_v47 = vmul.f32 %v2504_v44, %v2568_v0  ;;  %v2822_v62 = vmul.f32 %v2504_v44, %v2573_v1  ;;  %v2837_v0 = vld [vmem:[%s7014_s1] sm:$0xff]  ;;  %v314_v25 = vmul.f32 %v2810_v50, %v2685_v39  ;;  %v391_v27 = vmul.f32 %v2832_v13, %v2812_v51 }
  0x14   :  { %v2508_v14 = vpop.eup %2507  ;;  %7385 = vst [vmem:[#allocation21_spill] sm:$0xff] %v2837_v0  ;;  %v2840_v1 = vmul.f32 %v2506_v46, %v2582_v4  ;;  %v2843_v56 = vmul.f32 %v2506_v46, %v2587_v5  ;;  %7388 = vst [vmem:[#allocation24_spill] sm:$0xff] %v2845_v16  ;;  %v2848_v21 = vadd.f32 %v187_v38, %v2837_v0  ;;  %v2875_v38 = vld [vmem:[%s7013_s3 + $0x198] sm:$0xff]  ;;  %v2891_v46 = vld [vmem:[%s7013_s3 + $0xb0] sm:$0xff] }
  0x15   :  { %v2510_v15 = vpop.eup %2509  ;;  %v2853_v44 = vmul.f32 %v2508_v14, %v2592_v6  ;;  %v313_v4 = vadd.f32 %v312_v58, %v310_v52  ;;  %v385_v5 = vmul.f32 %v2827_v10, %v2812_v51  ;;  %v2860_v29 = vmul.f32 %v2508_v14, %v2601_v9  ;;  %v2870_v6 = vld [vmem:[%s7013_s3 + $0xa0] sm:$0xff]  ;;  %7394 = vst [vmem:[#allocation30_spill] sm:$0xff] %v2875_v38  ;;  %v2886_v58 = vld [vmem:[%s7013_s3 + $0xa8] sm:$0xff] }
  0x16   :  { %7386 = vst [vmem:[#allocation22_spill] sm:$0xff] %v2840_v1  ;;  %7387 = vst [vmem:[#allocation23_spill] sm:$0xff] %v2843_v56  ;;  %v2512_v26 = vpop.eup %2511  ;;  %v2863_v30 = vmul.f32 %v2510_v15, %v2608_v11  ;;  %v203_v34 = vmul.f32 %v139_v3, %v2822_v62  ;;  %v204_v35 = vmul.f32 %v145_v7, %v2819_v47  ;;  %v2907_v10 = vld [vmem:[%s7013_s3 + $0xc0] sm:$0xff] }
  0x17   :  { %7389 = vst [vmem:[#allocation25_spill] sm:$0xff] %v2848_v21  ;;  %7390 = vst [vmem:[#allocation26_spill] sm:$0xff] %v2853_v44  ;;  %v2878_v9 = vmul.f32 %v2510_v15, %v2613_v12  ;;  %v331_v11 = vmul.f32 %v267_v57, %v2843_v56  ;;  %v332_v40 = vmul.f32 %v273_v61, %v2840_v1  ;;  %v2896_v12 = vld [vmem:[%s7013_s3 + $0xb8] sm:$0xff] }
  0x18   :  { %7391 = vst [vmem:[#allocation27_spill] sm:$0xff] %v2860_v29  ;;  %7392 = vst [vmem:[#allocation28_spill] sm:$0xff] %v2863_v30  ;;  %v334_v52 = vmul.f32 %v273_v61, %v2843_v56  ;;  %v2899_v14 = vmul.f32 %v2512_v26, %v2624_v17  ;;  %v206_v61 = vmul.f32 %v145_v7, %v2822_v62  ;;  %v2912_v56 = vld [vmem:[%s7013_s3 + $0xc8] sm:$0xff]  ;;  %v2917_v17 = vld [vmem:[%s7013_s3 + $0x1a0] sm:$0xff] }
  0x19   :  { %7393 = vst [vmem:[#allocation29_spill] sm:$0xff] %v2870_v6  ;;  %7395 = vst [vmem:[#allocation31_spill] sm:$0xff] %v2878_v9  ;;  %v207_v15 = vmul.f32 %v139_v3, %v2819_v47  ;;  %v335_v13 = vmul.f32 %v267_v57, %v2840_v1  ;;  %v2920_v7 = vmul.f32 %v2512_v26, %v2629_v18  ;;  %v2927_v57 = vld [vmem:[%s7013_s3 + $0xd0] sm:$0xff]  ;;  %v2932_v1 = vld [vmem:[%s7013_s3 + $0x1a8] sm:$0xff] }
  0x1a   :  { %7396 = vst [vmem:[#allocation32_spill] sm:$0xff] %v2886_v58  ;;  %7397 = vst [vmem:[#allocation33_spill] sm:$0xff] %v2891_v46  ;;  %v2922_v3 = vadd.f32 %v332_v40, %v331_v11  ;;  %v397_v39 = vmul.f32 %v2870_v6, %v2812_v51  ;;  %v439_v50 = vmul.f32 %v2875_v38, %v2812_v51  ;;  %v2941_v18 = vld [vmem:[%s7012_s0 + $0x18] sm:$0xff] }
  0x1b   :  { %7398 = vst [vmem:[#allocation34_spill] sm:$0xff] %v2896_v12  ;;  %7399 = vst [vmem:[#allocation35_spill] sm:$0xff] %v2907_v10  ;;  %v2943_v26 = vadd.f32 %v204_v35, %v203_v34  ;;  %v315_v11 = vadd.f32 %v314_v25, %v313_v4  ;;  %v2945_v40 = vsub.f32 %v334_v52, %v335_v13 }
  0x1c   :  { %7400 = vst [vmem:[#allocation36_spill] sm:$0xff] %v2912_v56  ;;  %7401 = vst [vmem:[#allocation37_spill] sm:$0xff] %v2917_v17  ;;  %v146_v20 = vmul.f32 %v2941_v18, %v2658_v31  ;;  %v387_v24 = vmul.f32 %v2886_v58, %v2922_v3  ;;  %v393_v6 = vmul.f32 %v2891_v46, %v2922_v3 }
  0x1d   :  { %7402 = vst [vmem:[#allocation38_spill] sm:$0xff] %v2922_v3  ;;  %7403 = vst [vmem:[#allocation39_spill] sm:$0xff] %v2927_v57  ;;  %v399_v38 = vmul.f32 %v2896_v12, %v2922_v3  ;;  %v441_v19 = vmul.f32 %v2917_v17, %v2922_v3  ;;  %v389_v25 = vmul.f32 %v2907_v10, %v2945_v40  ;;  %v2968_v17 = vld [vmem:[%s7012_s0 + $0x20] sm:$0xff]  ;;  %v3057_v10 = vld [vmem:[%s7013_s3 + $0x118] sm:$0xff] }
  0x1e   :  { %7404 = vst [vmem:[#allocation40_spill] sm:$0xff] %v2932_v1  ;;  %7405 = vst [vmem:[#allocation41_spill] sm:$0xff] %v2943_v26  ;;  %v395_v13 = vmul.f32 %v2912_v56, %v2945_v40  ;;  %v401_v4 = vmul.f32 %v2927_v57, %v2945_v40  ;;  %v443_v34 = vmul.f32 %v2932_v1, %v2945_v40 }
  0x1f   :  { %7406 = vst [vmem:[#allocation42_spill] sm:$0xff] %v2945_v40  ;;  %v388_v35 = vadd.f32 %v387_v24, %v385_v5  ;;  %v394_v52 = vadd.f32 %v393_v6, %v391_v27  ;;  %v400_v46 = vadd.f32 %v399_v38, %v397_v39  ;;  %v442_v58 = vadd.f32 %v441_v19, %v439_v50  ;;  %v2986_v5 = vld [vmem:[%s7013_s3 + $0xd8] sm:$0xff]  ;;  %v2991_v27 = vld [vmem:[%s7013_s3 + $0xe0] sm:$0xff]  ;;  %v2996_v6 = vld [vmem:[%s7012_s0 + $0x28] sm:$0xff] }
  0x20   :  { %7407 = vst [vmem:[#allocation43_spill] sm:$0xff] %v2968_v17  ;;  %v2970_v12 = vsub.f32 %v206_v61, %v207_v15  ;;  %v148_v56 = vmul.f32 %v2668_v33, %v2968_v17  ;;  %v152_v57 = vmul.f32 %v2638_v22, %v2941_v18  ;;  %v154_v1 = vmul.f32 %v2653_v28, %v2968_v17  ;;  %v3006_v61 = vld [vmem:[%s7013_s3 + $0x1b0] sm:$0xff] }
  0x21   :  { %v2979_v24 = vadd.f32 %v315_v11, %v2837_v0  ;;  %v2981_v39 = vadd.f32 %v389_v25, %v388_v35  ;;  %v396_v19 = vadd.f32 %v395_v13, %v394_v52  ;;  %v402_v50 = vadd.f32 %v401_v4, %v400_v46  ;;  %7411 = vst [vmem:[#allocation47_spill] sm:$0xff] %v2986_v5  ;;  %v3001_v46 = vld [vmem:[%s7013_s3 + $0xe8] sm:$0xff]  ;;  %v3023_v35 = vld [vmem:[%s7013_s3 + $0xf8] sm:$0xff]  ;;  %v3029_v52 = vld [vmem:[%s7013_s3 + $0x100] sm:$0xff] }
  0x22   :  { %7408 = vst [vmem:[#allocation44_spill] sm:$0xff] %v2970_v12  ;;  %7412 = vst [vmem:[#allocation48_spill] sm:$0xff] %v2991_v27  ;;  %v444_v38 = vadd.f32 %v443_v34, %v442_v58  ;;  %v150_v15 = vmul.f32 %v2779_v8, %v2996_v6  ;;  %v155_v11 = vadd.f32 %v154_v1, %v152_v57  ;;  %v3018_v34 = vld [vmem:[%s7013_s3 + $0xf0] sm:$0xff] }
  0x23   :  { %7409 = vst [vmem:[#allocation45_spill] sm:$0xff] %v2979_v24  ;;  %7410 = vst [vmem:[#allocation46_spill] sm:$0xff] %v2981_v39  ;;  %v156_v25 = vmul.f32 %v2690_v41, %v2996_v6  ;;  %v460_v13 = vmul.f32 %v396_v19, %v2860_v29  ;;  %v461_v58 = vmul.f32 %v402_v50, %v2853_v44  ;;  %v3052_v41 = vld [vmem:[%s7013_s3 + $0x110] sm:$0xff] }
  0x24   :  { %7413 = vst [vmem:[#allocation49_spill] sm:$0xff] %v2996_v6  ;;  %7414 = vst [vmem:[#allocation50_spill] sm:$0xff] %v3001_v46  ;;  %v463_v4 = vmul.f32 %v402_v50, %v2860_v29  ;;  %v149_v1 = vadd.f32 %v148_v56, %v146_v20  ;;  %v464_v57 = vmul.f32 %v396_v19, %v2853_v44  ;;  %v3034_v50 = vld [vmem:[%s7013_s3 + $0x108] sm:$0xff]  ;;  %v3039_v29 = vld [vmem:[%s7013_s3 + $0x1b8] sm:$0xff] }
  0x25   :  { %7415 = vst [vmem:[#allocation51_spill] sm:$0xff] %v3006_v61  ;;  %7416 = vst [vmem:[#allocation52_spill] sm:$0xff] %v3018_v34  ;;  %v514_v20 = vmul.f32 %v2986_v5, %v2981_v39  ;;  %v520_v56 = vmul.f32 %v2991_v27, %v2981_v39  ;;  %v158_v19 = vmul.f32 %v2663_v32, %v2941_v18  ;;  %v3062_v5 = vld [vmem:[%s7013_s3 + $0x1c0] sm:$0xff] }
  0x26   :  { %7417 = vst [vmem:[#allocation53_spill] sm:$0xff] %v3023_v35  ;;  %7418 = vst [vmem:[#allocation54_spill] sm:$0xff] %v3029_v52  ;;  %v3047_v44 = vadd.f32 %v461_v58, %v460_v13  ;;  %v526_v27 = vmul.f32 %v3001_v46, %v2981_v39  ;;  %v568_v13 = vmul.f32 %v3006_v61, %v2981_v39 }
  0x27   :  { %7419 = vst [vmem:[#allocation55_spill] sm:$0xff] %v3034_v50  ;;  %7420 = vst [vmem:[#allocation56_spill] sm:$0xff] %v3039_v29  ;;  %v157_v58 = vadd.f32 %v156_v25, %v155_v11  ;;  %v3068_v32 = vsub.f32 %v463_v4, %v464_v57  ;;  %v160_v28 = vmul.f32 %v2673_v36, %v2968_v17 }
  0x28   :  { %7421 = vst [vmem:[#allocation57_spill] sm:$0xff] %v3047_v44  ;;  %7422 = vst [vmem:[#allocation58_spill] sm:$0xff] %v3052_v41  ;;  %v162_v22 = vmul.f32 %v2695_v42, %v2996_v6  ;;  %v189_v8 = vmul.f32 %v2678_v37, %v2941_v18  ;;  %v516_v33 = vmul.f32 %v3018_v34, %v3047_v44 }
  0x29   :  { %7423 = vst [vmem:[#allocation59_spill] sm:$0xff] %v3057_v10  ;;  %7424 = vst [vmem:[#allocation60_spill] sm:$0xff] %v3062_v5  ;;  %v522_v46 = vmul.f32 %v3023_v35, %v3047_v44  ;;  %v528_v11 = vmul.f32 %v3029_v52, %v3047_v44  ;;  %v570_v25 = vmul.f32 %v3039_v29, %v3047_v44  ;;  %v3098_v29 = vld [vmem:[%s7013_s3 + $0x1e0] sm:$0xff] }
  0x2a   :  { %7425 = vst [vmem:[#allocation61_spill] sm:$0xff] %v3068_v32  ;;  %v518_v4 = vmul.f32 %v3034_v50, %v3068_v32  ;;  %v524_v57 = vmul.f32 %v3052_v41, %v3068_v32  ;;  %v530_v37 = vmul.f32 %v3057_v10, %v3068_v32  ;;  %v572_v34 = vmul.f32 %v3062_v5, %v3068_v32 }
  0x2b   :  { %v517_v42 = vadd.f32 %v516_v33, %v514_v20  ;;  %v523_v35 = vadd.f32 %v522_v46, %v520_v56  ;;  %v529_v61 = vadd.f32 %v528_v11, %v526_v27  ;;  %v571_v36 = vadd.f32 %v570_v25, %v568_v13  ;;  %v3114_v20 = vld [vmem:[%s7013_s3 + $0x128] sm:$0xff]  ;;  %v3135_v56 = vld [vmem:[%s7013_s3 + $0x138] sm:$0xff]  ;;  %v3158_v13 = vld [vmem:[%s7013_s3 + $0x150] sm:$0xff] }
  0x2c   :  { %v3093_v52 = vadd.f32 %v444_v38, %v2979_v24  ;;  %v3100_v50 = vadd.f32 %v150_v15, %v149_v1  ;;  %v161_v41 = vadd.f32 %v160_v28, %v158_v19  ;;  %v191_v10 = vmul.f32 %v2700_v43, %v2968_v17  ;;  %v3109_v38 = vld [vmem:[%s7013_s3 + $0x120] sm:$0xff]  ;;  %7430 = vst [vmem:[#allocation66_spill] sm:$0xff] %v3114_v20  ;;  %v3119_v28 = vld [vmem:[%s7013_s3 + $0x130] sm:$0xff]  ;;  %v3153_v19 = vld [vmem:[%s7013_s3 + $0x148] sm:$0xff] }
  0x2d   :  { %v3104_v31 = vadd.f32 %v518_v4, %v517_v42  ;;  %v525_v33 = vadd.f32 %v524_v57, %v523_v35  ;;  %v531_v46 = vadd.f32 %v530_v37, %v529_v61  ;;  %v573_v27 = vadd.f32 %v572_v34, %v571_v36  ;;  %7429 = vst [vmem:[#allocation65_spill] sm:$0xff] %v3109_v38  ;;  %v3124_v37 = vld [vmem:[%s7013_s3 + $0x1c8] sm:$0xff]  ;;  %v3175_v57 = vld [vmem:[%s7013_s3 + $0x158] sm:$0xff] }
  0x2e   :  { %7426 = vst [vmem:[#allocation62_spill] sm:$0xff] %v3093_v52  ;;  %7427 = vst [vmem:[#allocation63_spill] sm:$0xff] %v3100_v50  ;;  %v163_v36 = vadd.f32 %v162_v22, %v161_v41  ;;  %v192_v42 = vadd.f32 %v191_v10, %v189_v8  ;;  %v193_v61 = vmul.f32 %v2707_v45, %v2996_v6  ;;  %v3140_v22 = vld [vmem:[%s7013_s3 + $0x140] sm:$0xff]  ;;  %vm743_vm0 = vcmp.lt.f32.partialorder %v3098_v29, 6.5 }
  0x2f   :  { %7428 = vst [vmem:[#allocation64_spill] sm:$0xff] %v3104_v31  ;;  %7431 = vst [vmem:[#allocation67_spill] sm:$0xff] %v3119_v28  ;;  %v209_v15 = vmul.f32 %v157_v58, %v2822_v62  ;;  %v589_v34 = vmul.f32 %v525_v33, %v2878_v9  ;;  %v590_v35 = vmul.f32 %v531_v46, %v2863_v30  ;;  %vm742_vm1 = vcmp.lt.f32.partialorder %v3098_v29, 5.5 }
  0x30   :  { %7432 = vst [vmem:[#allocation68_spill] sm:$0xff] %v3124_v37  ;;  %v592_v1 = vmul.f32 %v531_v46, %v2878_v9  ;;  %7433 = vst [vmem:[#allocation69_spill] sm:$0xff] %v3135_v56  ;;  %v3144_v41 = vmul.f32 %v157_v58, %v2819_v47  ;;  %v3147_v8 = vadd.f32 %v573_v27, %v3093_v52  ;;  %v3163_v58 = vld [vmem:[%s7013_s3 + $0x1d0] sm:$0xff]  ;;  %v3185_v46 = vld [vmem:[%s7013_s3 + $0x1d8] sm:$0xff]  ;;  %vm741_vm2 = vcmp.lt.f32.partialorder %v3098_v29, 4.5 }
  0x31   :  { %7434 = vst [vmem:[#allocation70_spill] sm:$0xff] %v3140_v22  ;;  %v593_v10 = vmul.f32 %v525_v33, %v2863_v30  ;;  %7437 = vst [vmem:[#allocation73_spill] sm:$0xff] %v3153_v19  ;;  %v643_v11 = vmul.f32 %v3109_v38, %v3104_v31  ;;  %v274_v25 = vmul.f32 %v2716_v48, %v2941_v18  ;;  %v3180_v33 = vld [vmem:[%s7013_s3 + $0x160] sm:$0xff]  ;;  %vm740_vm3 = vcmp.lt.f32.partialorder %v3098_v29, 3.5 }
  0x32   :  { %7435 = vst [vmem:[#allocation71_spill] sm:$0xff] %v3144_v41  ;;  %7436 = vst [vmem:[#allocation72_spill] sm:$0xff] %v3147_v8  ;;  %v3170_v4 = vadd.f32 %v590_v35, %v589_v34  ;;  %v649_v27 = vmul.f32 %v3114_v20, %v3104_v31  ;;  %v655_v34 = vmul.f32 %v3119_v28, %v3104_v31  ;;  %vm739_vm4 = vcmp.lt.f32.partialorder %v3098_v29, 2.5 }
  0x33   :  { %7438 = vst [vmem:[#allocation74_spill] sm:$0xff] %v3158_v13  ;;  %7439 = vst [vmem:[#allocation75_spill] sm:$0xff] %v3163_v58  ;;  %v697_v35 = vmul.f32 %v3124_v37, %v3104_v31  ;;  %v3194_v50 = vsub.f32 %v592_v1, %v593_v10  ;;  %v194_v38 = vadd.f32 %v193_v61, %v192_v42 }
  0x34   :  { %7440 = vst [vmem:[#allocation76_spill] sm:$0xff] %v3170_v4  ;;  %7441 = vst [vmem:[#allocation77_spill] sm:$0xff] %v3175_v57  ;;  %v210_v30 = vmul.f32 %v163_v36, %v2819_v47  ;;  %v276_v9 = vmul.f32 %v2721_v49, %v2968_v17  ;;  %v645_v20 = vmul.f32 %v3135_v56, %v3170_v4 }
  0x35   :  { %7442 = vst [vmem:[#allocation78_spill] sm:$0xff] %v3180_v33  ;;  %7443 = vst [vmem:[#allocation79_spill] sm:$0xff] %v3185_v46  ;;  %v651_v28 = vmul.f32 %v3140_v22, %v3170_v4  ;;  %v657_v37 = vmul.f32 %v3153_v19, %v3170_v4  ;;  %v699_v1 = vmul.f32 %v3163_v58, %v3170_v4  ;;  %v3220_v58 = vld [vmem:[%s7014_s1 + $0x8] sm:$0xff] }
  0x36   :  { %7444 = vst [vmem:[#allocation80_spill] sm:$0xff] %v3194_v50  ;;  %v647_v42 = vmul.f32 %v3158_v13, %v3194_v50  ;;  %v653_v61 = vmul.f32 %v3175_v57, %v3194_v50  ;;  %v659_v10 = vmul.f32 %v3180_v33, %v3194_v50  ;;  %v701_v22 = vmul.f32 %v3185_v46, %v3194_v50 }
  0x37   :  { %v646_v56 = vadd.f32 %v645_v20, %v643_v11  ;;  %v652_v41 = vadd.f32 %v651_v28, %v649_v27  ;;  %v658_v19 = vadd.f32 %v657_v37, %v655_v34  ;;  %v700_v49 = vadd.f32 %v699_v1, %v697_v35  ;;  %7445 = vst [vmem:[#allocation81_spill] sm:$0xff] %v3220_v58 }
  0x38   :  { %v3223_v13 = vadd.f32 %v3220_v58, %v194_v38  ;;  %v3225_v5 = vadd.f32 %v210_v30, %v209_v15  ;;  %v3228_v57 = vmul.f32 %v163_v36, %v2822_v62  ;;  %v278_v46 = vmul.f32 %v2742_v55, %v2996_v6 }
  0x39   :  { %v3232_v20 = vadd.f32 %v647_v42, %v646_v56  ;;  %v654_v28 = vadd.f32 %v653_v61, %v652_v41  ;;  %v660_v37 = vadd.f32 %v659_v10, %v658_v19  ;;  %v702_v11 = vadd.f32 %v701_v22, %v700_v49  ;;  %v3269_v10 = vld [vmem:[%s7013_s3 + $0x250] sm:$0xff] }
  0x3a   :  { %7446 = vst [vmem:[#allocation82_spill] sm:$0xff] %v3223_v13  ;;  %7447 = vst [vmem:[#allocation83_spill] sm:$0xff] %v3225_v5  ;;  %v277_v27 = vadd.f32 %v276_v9, %v274_v25  ;;  %v280_v34 = vmul.f32 %v2732_v53, %v2941_v18  ;;  %v282_v38 = vmul.f32 %v2737_v54, %v2968_v17 }
  0x3b   :  { %7448 = vst [vmem:[#allocation84_spill] sm:$0xff] %v3232_v20  ;;  %v284_v30 = vmul.f32 %v2765_v63, %v2996_v6  ;;  %v3241_v36 = vadd.f32 %v702_v11, %v3147_v8  ;;  %v718_v15 = vmul.f32 %v654_v28, %v2920_v7  ;;  %v719_v56 = vmul.f32 %v660_v37, %v2899_v14 }
  0x3c   :  { %v721_v41 = vmul.f32 %v660_v37, %v2920_v7  ;;  %v722_v49 = vmul.f32 %v654_v28, %v2899_v14  ;;  %v753_v9 = vsel %vm743_vm0, %v3104_v31, %v3232_v20  ;;  %v283_v22 = vadd.f32 %v282_v38, %v280_v34  ;;  %v7478_v20 = vld [vmem:[#allocation36_spill] sm:$0xff] }
  0x3d   :  { %7449 = vst [vmem:[#allocation85_spill] sm:$0xff] %v3241_v36  ;;  %v286_v19 = vmul.f32 %v2751_v59, %v2941_v18  ;;  %v3253_v25 = vadd.f32 %v719_v56, %v718_v15  ;;  %v754_v35 = vsel %vm742_vm1, %v2981_v39, %v753_v9  ;;  %v768_v1 = vsel %vm743_vm0, %v3147_v8, %v3241_v36  ;;  %v3302_v9 = vld [vmem:[%s7013_s3 + $0x258] sm:$0xff]  ;;  %v7471_v36 = vld [vmem:[#allocation30_spill] sm:$0xff] }
  0x3e   :  { %v288_v42 = vmul.f32 %v2756_v60, %v2968_v17  ;;  %v3264_v61 = vsub.f32 %v721_v41, %v722_v49  ;;  %v755_v28 = vsel %vm741_vm2, %v2812_v51, %v754_v35  ;;  %v769_v37 = vsel %vm742_vm1, %v3093_v52, %v768_v1  ;;  %7453 = vst [vmem:[#allocation89_spill] sm:$0xff] %v3302_v9 }
  0x3f   :  { %7450 = vst [vmem:[#allocation86_spill] sm:$0xff] %v3253_v25  ;;  %v3277_v11 = vadd.f32 %v278_v46, %v277_v27  ;;  %v756_v34 = vsel %vm740_vm3, %v2845_v16, %v755_v28  ;;  %v758_v38 = vsel %vm743_vm0, %v3170_v4, %v3253_v25  ;;  %v770_v15 = vsel %vm741_vm2, %v2979_v24, %v769_v37  ;;  %v7455_v37 = vld [vmem:[#allocation15_spill] sm:$0xff] }
  0x40   :  { %7451 = vst [vmem:[#allocation87_spill] sm:$0xff] %v3264_v61  ;;  %v285_v56 = vadd.f32 %v284_v30, %v283_v22  ;;  %v757_v41 = vsel %vm739_vm4, %v2643_v23, %v756_v34  ;;  %v759_v46 = vsel %vm742_vm1, %v3047_v44, %v758_v38  ;;  %v763_v27 = vsel %vm743_vm0, %v3194_v50, %v3264_v61  ;;  %v7456_v38 = vld [vmem:[#allocation3_spill] sm:$0xff]  ;;  %v7472_v61 = vld [vmem:[#allocation14_spill] sm:$0xff] }
  0x41   :  { %7452 = vst [vmem:[#allocation88_spill] sm:$0xff] %v3277_v11  ;;  %v289_v49 = vadd.f32 %v288_v42, %v286_v19  ;;  %v760_v30 = vsel %vm741_vm2, %v2922_v3, %v759_v46  ;;  %v764_v23 = vsel %vm742_vm1, %v3068_v32, %v763_v27  ;;  %v771_v22 = vsel %vm740_vm3, %v2848_v21, %v770_v15  ;;  %v3317_v19 = vld [vmem:[%s7013_s3 + $0x260] sm:$0xff]  ;;  %v7457_v46 = vld [vmem:[#allocation16_spill] sm:$0xff]  ;;  %v7460_v32 = vld [vmem:[#allocation23_spill] sm:$0xff] }
  0x42   :  { %v773_v35 = vmul.f32 %v3269_v10, %v757_v41  ;;  %7454 = vst [vmem:[#allocation90_spill] sm:$0xff] %v3317_v19  ;;  %v761_v1 = vsel %vm740_vm3, %v2943_v26, %v760_v30  ;;  %v765_v42 = vsel %vm741_vm2, %v2945_v40, %v764_v23  ;;  %v290_v28 = vmul.f32 %v2770_v2, %v2996_v6  ;;  %v7458_v30 = vld [vmem:[#allocation17_spill] sm:$0xff]  ;;  %v7459_v21 = vld [vmem:[#allocation10_spill] sm:$0xff]  ;;  %v7476_v25 = vld [vmem:[#allocation35_spill] sm:$0xff] }
  0x43   :  { %v317_v34 = vmul.f32 %v7455_v37, %v2941_v18  ;;  %v762_v15 = vsel %vm739_vm4, %v7456_v38, %v761_v1  ;;  %v766_v41 = vsel %vm740_vm3, %v2970_v12, %v765_v42  ;;  %v319_v27 = vmul.f32 %v7457_v46, %v2968_v17  ;;  %v7461_v12 = vld [vmem:[#allocation22_spill] sm:$0xff] }
  0x44   :  { %v321_v23 = vmul.f32 %v7458_v30, %v2996_v6  ;;  %v767_v24 = vsel %vm739_vm4, %v7459_v21, %v766_v41  ;;  %v774_v52 = vmul.f32 %v3302_v9, %v762_v15  ;;  %v291_v40 = vadd.f32 %v290_v28, %v289_v49  ;;  %v7462_v21 = vld [vmem:[#allocation19_spill] sm:$0xff]  ;;  %v3356_v49 = vld [vmem:[%s7012_s0 + $0x30] sm:$0xff] }
  0x45   :  { %v337_v26 = vmul.f32 %v285_v56, %v7460_v32  ;;  %v772_v1 = vsel %vm739_vm4, %v2837_v0, %v771_v22  ;;  %v776_v42 = vmul.f32 %v3317_v19, %v767_v24  ;;  %v320_v38 = vadd.f32 %v319_v27, %v317_v34  ;;  %v7463_v22 = vld [vmem:[#allocation20_spill] sm:$0xff]  ;;  %v7464_v34 = vld [vmem:[#allocation29_spill] sm:$0xff] }
  0x46   :  { %v341_v3 = vmul.f32 %v285_v56, %v7461_v12  ;;  %v775_v16 = vadd.f32 %v774_v52, %v773_v35  ;;  %v338_v44 = vmul.f32 %v291_v40, %v7461_v12  ;;  %v340_v51 = vmul.f32 %v291_v40, %v7460_v32  ;;  %v3365_v52 = vld [vmem:[%s7012_s0 + $0x38] sm:$0xff]  ;;  %v7482_v9 = vld [vmem:[#allocation40_spill] sm:$0xff] }
  0x47   :  { %v403_v15 = vmul.f32 %v7462_v21, %v3277_v11  ;;  %v322_v28 = vadd.f32 %v321_v23, %v320_v38  ;;  %v409_v24 = vmul.f32 %v7463_v22, %v3277_v11  ;;  %v415_v56 = vmul.f32 %v7464_v34, %v3277_v11  ;;  %7465 = vst [vmem:[#allocation15_spill] sm:$0xff] %v3365_v52  ;;  %v7466_v40 = vld [vmem:[#allocation5_spill] sm:$0xff]  ;;  %v3376_v23 = vld [vmem:[%s7012_s0 + $0x40] sm:$0xff]  ;;  %v7470_v38 = vld [vmem:[#allocation7_spill] sm:$0xff] }
  0x48   :  { %v164_v35 = vmul.f32 %v3356_v49, %v7466_v40  ;;  %v777_v41 = vadd.f32 %v776_v42, %v775_v16  ;;  %v3369_v27 = vadd.f32 %v338_v44, %v337_v26  ;;  %v3371_v0 = vsub.f32 %v340_v51, %v341_v3  ;;  %7469 = vst [vmem:[#allocation17_spill] sm:$0xff] %v3376_v23  ;;  %v7473_v16 = vld [vmem:[#allocation2_spill] sm:$0xff]  ;;  %v7474_v51 = vld [vmem:[#allocation4_spill] sm:$0xff] }
  0x49   :  { %v166_v8 = vmul.f32 %v7470_v38, %v3365_v52  ;;  %v446_v50 = vmul.f32 %v7471_v36, %v3277_v11  ;;  %v168_v4 = vmul.f32 %v7472_v61, %v3376_v23  ;;  %v170_v44 = vmul.f32 %v7473_v16, %v3356_v49  ;;  %v7475_v42 = vld [vmem:[#allocation32_spill] sm:$0xff]  ;;  %v7477_v38 = vld [vmem:[#allocation33_spill] sm:$0xff]  ;;  %v7479_v61 = vld [vmem:[#allocation34_spill] sm:$0xff] }
  0x4a   :  { %7467 = vst [vmem:[#allocation3_spill] sm:$0xff] %v3369_v27  ;;  %7468 = vst [vmem:[#allocation16_spill] sm:$0xff] %v3371_v0  ;;  %v172_v3 = vmul.f32 %v7474_v51, %v3365_v52  ;;  %v778_v26 = vadd.f32 %v777_v41, %v772_v1  ;;  %v405_v40 = vmul.f32 %v7475_v42, %v3369_v27  ;;  %v7480_v16 = vld [vmem:[#allocation39_spill] sm:$0xff]  ;;  %v7481_v1 = vld [vmem:[#allocation37_spill] sm:$0xff] }
  0x4b   :  { %v407_v39 = vmul.f32 %v7476_v25, %v3371_v0  ;;  %v411_v31 = vmul.f32 %v7477_v38, %v3369_v27  ;;  %v413_v36 = vmul.f32 %v7478_v20, %v3371_v0  ;;  %v417_v34 = vmul.f32 %v7479_v61, %v3369_v27  ;;  %v7483_v61 = vld [vmem:[#allocation11_spill] sm:$0xff]  ;;  %v7485_v21 = vld [vmem:[#allocation6_spill] sm:$0xff] }
  0x4c   :  { %v419_v19 = vmul.f32 %v7480_v16, %v3371_v0  ;;  %v448_v41 = vmul.f32 %v7481_v1, %v3369_v27  ;;  %779 = vst [vmem:[%s7015_s4] sm:$0xff] %v778_v26  ;;  %v406_v51 = vadd.f32 %v405_v40, %v403_v15  ;;  %v450_v38 = vmul.f32 %v7482_v9, %v3371_v0  ;;  %v7495_v40 = vld [vmem:[#allocation9_spill] sm:$0xff] }
  0x4d   :  { %v412_v25 = vadd.f32 %v411_v31, %v409_v24  ;;  %v167_v22 = vadd.f32 %v166_v8, %v164_v35  ;;  %v418_v20 = vadd.f32 %v417_v34, %v415_v56  ;;  %v173_v17 = vadd.f32 %v172_v3, %v170_v44  ;;  %v7487_v8 = vld [vmem:[#allocation8_spill] sm:$0xff]  ;;  %v7488_v56 = vld [vmem:[#allocation27_spill] sm:$0xff]  ;;  %v7489_v44 = vld [vmem:[#allocation26_spill] sm:$0xff] }
  0x4e   :  { %v449_v6 = vadd.f32 %v448_v41, %v446_v50  ;;  %v174_v42 = vmul.f32 %v7483_v61, %v3376_v23  ;;  %v3409_v16 = vadd.f32 %v407_v39, %v406_v51  ;;  %v176_v26 = vmul.f32 %v7485_v21, %v3356_v49 }
  0x4f   :  { %v414_v5 = vadd.f32 %v413_v36, %v412_v25  ;;  %v3411_v1 = vadd.f32 %v168_v4, %v167_v22  ;;  %v3416_v31 = vadd.f32 %v3220_v58, %v322_v28  ;;  %v420_v15 = vadd.f32 %v419_v19, %v418_v20  ;;  %v7490_v36 = vld [vmem:[#allocation47_spill] sm:$0xff]  ;;  %v7491_v28 = vld [vmem:[#allocation48_spill] sm:$0xff] }
  0x50   :  { %v175_v24 = vadd.f32 %v174_v42, %v173_v17  ;;  %v178_v50 = vmul.f32 %v7487_v8, %v3365_v52  ;;  %v451_v34 = vadd.f32 %v450_v38, %v449_v6  ;;  %v532_v4 = vmul.f32 %v7490_v36, %v3409_v16  ;;  %v7492_v17 = vld [vmem:[#allocation50_spill] sm:$0xff]  ;;  %v7493_v19 = vld [vmem:[#allocation51_spill] sm:$0xff]  ;;  %v7494_v42 = vld [vmem:[#allocation12_spill] sm:$0xff] }
  0x51   :  { %7484 = vst [vmem:[#allocation10_spill] sm:$0xff] %v3411_v1  ;;  %7486 = vst [vmem:[#allocation23_spill] sm:$0xff] %v3416_v31  ;;  %v466_v35 = vmul.f32 %v414_v5, %v7488_v56  ;;  %v470_v39 = vmul.f32 %v414_v5, %v7489_v44  ;;  %v467_v25 = vmul.f32 %v420_v15, %v7489_v44 }
  0x52   :  { %v469_v21 = vmul.f32 %v420_v15, %v7488_v56  ;;  %v538_v22 = vmul.f32 %v7491_v28, %v3409_v16  ;;  %v544_v20 = vmul.f32 %v7492_v17, %v3409_v16  ;;  %v575_v6 = vmul.f32 %v7493_v19, %v3409_v16 }
  0x53   :  { %v179_v3 = vadd.f32 %v178_v50, %v176_v26  ;;  %v180_v5 = vmul.f32 %v7494_v42, %v3376_v23  ;;  %v196_v38 = vmul.f32 %v7495_v40, %v3356_v49  ;;  %v3436_v61 = vadd.f32 %v467_v25, %v466_v35  ;;  %v7498_v42 = vld [vmem:[#allocation52_spill] sm:$0xff]  ;;  %v7501_v40 = vld [vmem:[#allocation58_spill] sm:$0xff] }
  0x54   :  { %v3438_v41 = vsub.f32 %v469_v21, %v470_v39  ;;  %v198_v51 = vmul.f32 %v2700_v43, %v3365_v52  ;;  %v200_v15 = vmul.f32 %v2707_v45, %v3376_v23  ;;  %v215_v1 = vmul.f32 %v175_v24, %v2822_v62  ;;  %v7499_v39 = vld [vmem:[#allocation55_spill] sm:$0xff]  ;;  %v7500_v21 = vld [vmem:[#allocation53_spill] sm:$0xff] }
  0x55   :  { %7496 = vst [vmem:[#allocation22_spill] sm:$0xff] %v3436_v61  ;;  %v181_v8 = vadd.f32 %v180_v5, %v179_v3  ;;  %v219_v26 = vmul.f32 %v175_v24, %v2819_v47  ;;  %v292_v50 = vmul.f32 %v2716_v48, %v3356_v49  ;;  %v534_v35 = vmul.f32 %v7498_v42, %v3436_v61  ;;  %v7502_v3 = vld [vmem:[#allocation54_spill] sm:$0xff]  ;;  %v7503_v24 = vld [vmem:[#allocation59_spill] sm:$0xff]  ;;  %v7504_v48 = vld [vmem:[#allocation56_spill] sm:$0xff] }
  0x56   :  { %7497 = vst [vmem:[#allocation5_spill] sm:$0xff] %v3438_v41  ;;  %v536_v25 = vmul.f32 %v7499_v39, %v3438_v41  ;;  %v540_v43 = vmul.f32 %v7500_v21, %v3436_v61  ;;  %v542_v45 = vmul.f32 %v7501_v40, %v3438_v41  ;;  %v546_v5 = vmul.f32 %v7502_v3, %v3436_v61  ;;  %v7505_v42 = vld [vmem:[#allocation60_spill] sm:$0xff]  ;;  %v7506_v3 = vld [vmem:[#allocation13_spill] sm:$0xff] }
  0x57   :  { %v548_v19 = vmul.f32 %v7503_v24, %v3438_v41  ;;  %v577_v17 = vmul.f32 %v7504_v48, %v3436_v61  ;;  %v579_v28 = vmul.f32 %v7505_v42, %v3438_v41  ;;  %v535_v44 = vadd.f32 %v534_v35, %v532_v4  ;;  %v7510_v4 = vld [vmem:[#allocation71_spill] sm:$0xff]  ;;  %v7515_v35 = vld [vmem:[#allocation65_spill] sm:$0xff] }
  0x58   :  { %v541_v39 = vadd.f32 %v540_v43, %v538_v22  ;;  %v199_v56 = vadd.f32 %v198_v51, %v196_v38  ;;  %v216_v21 = vmul.f32 %v181_v8, %v2819_v47  ;;  %v547_v36 = vadd.f32 %v546_v5, %v544_v20  ;;  %v7514_v38 = vld [vmem:[#allocation28_spill] sm:$0xff] }
  0x59   :  { %v578_v9 = vadd.f32 %v577_v17, %v575_v6  ;;  %v218_v40 = vmul.f32 %v181_v8, %v2822_v62  ;;  %v294_v58 = vmul.f32 %v7506_v3, %v3365_v52  ;;  %v3469_v24 = vadd.f32 %v451_v34, %v3416_v31  ;;  %v7513_v62 = vld [vmem:[#allocation31_spill] sm:$0xff]  ;;  %v7522_v3 = vld [vmem:[#allocation69_spill] sm:$0xff] }
  0x5a   :  { %v3471_v0 = vadd.f32 %v536_v25, %v535_v44  ;;  %v543_v48 = vadd.f32 %v542_v45, %v541_v39  ;;  %v3473_v27 = vadd.f32 %v216_v21, %v215_v1  ;;  %v3477_v22 = vsub.f32 %v3228_v57, %v7510_v4  ;;  %v7516_v57 = vld [vmem:[#allocation66_spill] sm:$0xff] }
  0x5b   :  { %7507 = vst [vmem:[#allocation7_spill] sm:$0xff] %v3469_v24  ;;  %v549_v47 = vadd.f32 %v548_v19, %v547_v36  ;;  %v580_v20 = vadd.f32 %v579_v28, %v578_v9  ;;  %v3479_v17 = vsub.f32 %v218_v40, %v219_v26  ;;  %v3483_v8 = vadd.f32 %v200_v15, %v199_v56  ;;  %v7518_v28 = vld [vmem:[#allocation67_spill] sm:$0xff]  ;;  %v7519_v56 = vld [vmem:[#allocation68_spill] sm:$0xff] }
  0x5c   :  { %7508 = vst [vmem:[#allocation14_spill] sm:$0xff] %v3471_v0  ;;  %7509 = vst [vmem:[#allocation2_spill] sm:$0xff] %v3473_v27  ;;  %v595_v6 = vmul.f32 %v543_v48, %v7513_v62  ;;  %v599_v51 = vmul.f32 %v543_v48, %v7514_v38  ;;  %v295_v34 = vadd.f32 %v294_v58, %v292_v50 }
  0x5d   :  { %7511 = vst [vmem:[#allocation4_spill] sm:$0xff] %v3477_v22  ;;  %7512 = vst [vmem:[#allocation11_spill] sm:$0xff] %v3479_v17  ;;  %v596_v44 = vmul.f32 %v549_v47, %v7514_v38  ;;  %v598_v1 = vmul.f32 %v549_v47, %v7513_v62  ;;  %v661_v39 = vmul.f32 %v7515_v35, %v3471_v0 }
  0x5e   :  { %v667_v36 = vmul.f32 %v7516_v57, %v3471_v0  ;;  %v3492_v9 = vadd.f32 %v580_v20, %v3469_v24  ;;  %v673_v19 = vmul.f32 %v7518_v28, %v3471_v0  ;;  %v704_v15 = vmul.f32 %v7519_v56, %v3471_v0 }
  0x5f   :  { %v296_v58 = vmul.f32 %v2742_v55, %v3376_v23  ;;  %v3500_v26 = vadd.f32 %v596_v44, %v595_v6  ;;  %v3502_v50 = vsub.f32 %v598_v1, %v599_v51  ;;  %v298_v25 = vmul.f32 %v2732_v53, %v3356_v49  ;;  %v7523_v53 = vld [vmem:[#allocation74_spill] sm:$0xff]  ;;  %v7528_v51 = vld [vmem:[#allocation79_spill] sm:$0xff] }
  0x60   :  { %7517 = vst [vmem:[#allocation6_spill] sm:$0xff] %v3492_v9  ;;  %v300_v21 = vmul.f32 %v2737_v54, %v3365_v52  ;;  %v302_v43 = vmul.f32 %v2765_v63, %v3376_v23  ;;  %v304_v40 = vmul.f32 %v2751_v59, %v3356_v49  ;;  %v306_v45 = vmul.f32 %v2756_v60, %v3365_v52  ;;  %v7524_v54 = vld [vmem:[#allocation70_spill] sm:$0xff]  ;;  %v7525_v63 = vld [vmem:[#allocation77_spill] sm:$0xff] }
  0x61   :  { %7520 = vst [vmem:[#allocation8_spill] sm:$0xff] %v3500_v26  ;;  %7521 = vst [vmem:[#allocation12_spill] sm:$0xff] %v3502_v50  ;;  %v308_v55 = vmul.f32 %v2770_v2, %v3376_v23  ;;  %v663_v5 = vmul.f32 %v7522_v3, %v3500_v26  ;;  %v665_v48 = vmul.f32 %v7523_v53, %v3502_v50  ;;  %v7526_v59 = vld [vmem:[#allocation73_spill] sm:$0xff]  ;;  %v7527_v2 = vld [vmem:[#allocation75_spill] sm:$0xff] }
  0x62   :  { %v669_v4 = vmul.f32 %v7524_v54, %v3500_v26  ;;  %v671_v47 = vmul.f32 %v7525_v63, %v3502_v50  ;;  %v675_v20 = vmul.f32 %v7526_v59, %v3500_v26  ;;  %v677_v60 = vmul.f32 %v3180_v33, %v3502_v50 }
  0x63   :  { %v706_v6 = vmul.f32 %v7527_v2, %v3500_v26  ;;  %v708_v44 = vmul.f32 %v7528_v51, %v3502_v50  ;;  %v664_v1 = vadd.f32 %v663_v5, %v661_v39  ;;  %v301_v27 = vadd.f32 %v300_v21, %v298_v25 }
  0x64   :  { %v670_v17 = vadd.f32 %v669_v4, %v667_v36  ;;  %v307_v53 = vadd.f32 %v306_v45, %v304_v40  ;;  %v676_v54 = vadd.f32 %v675_v20, %v673_v19  ;;  %v324_v63 = vmul.f32 %v7455_v37, %v3356_v49  ;;  %v7534_v45 = vld [vmem:[#allocation63_spill] sm:$0xff] }
  0x65   :  { %v707_v3 = vadd.f32 %v706_v6, %v704_v15  ;;  %v326_v59 = vmul.f32 %v7457_v46, %v3365_v52  ;;  %v3536_v56 = vadd.f32 %v665_v48, %v664_v1  ;;  %v303_v28 = vadd.f32 %v302_v43, %v301_v27  ;;  %v7536_v20 = vld [vmem:[#allocation3_spill] sm:$0xff]  ;;  %v7586_v52 = vld [vmem:[#allocation24_spill] sm:$0xff] }
  0x66   :  { %v672_v33 = vadd.f32 %v671_v47, %v670_v17  ;;  %v309_v2 = vadd.f32 %v308_v55, %v307_v53  ;;  %v678_v57 = vadd.f32 %v677_v60, %v676_v54  ;;  %v328_v39 = vmul.f32 %v7458_v30, %v3376_v23  ;;  %v7539_v1 = vld [vmem:[#allocation19_spill] sm:$0xff] }
  0x67   :  { %7529 = vst [vmem:[#allocation9_spill] sm:$0xff] %v3536_v56  ;;  %v709_v35 = vadd.f32 %v708_v44, %v707_v3  ;;  %v327_v51 = vadd.f32 %v326_v59, %v324_v63  ;;  %v780_v37 = vsel %vm743_vm0, %v3471_v0, %v3536_v56  ;;  %v343_v46 = vmul.f32 %v303_v28, %v7460_v32 }
  0x68   :  { %v724_v36 = vmul.f32 %v672_v33, %v2920_v7  ;;  %v728_v19 = vmul.f32 %v672_v33, %v2899_v14  ;;  %v725_v17 = vmul.f32 %v678_v57, %v2899_v14  ;;  %v727_v15 = vmul.f32 %v678_v57, %v2920_v7 }
  0x69   :  { %v3548_v27 = vadd.f32 %v709_v35, %v3492_v9  ;;  %v781_v30 = vsel %vm742_vm1, %v3409_v16, %v780_v37  ;;  %v3558_v25 = vadd.f32 %v296_v58, %v295_v34  ;;  %v329_v21 = vadd.f32 %v328_v39, %v327_v51  ;;  %v7538_v51 = vld [vmem:[#allocation81_spill] sm:$0xff]  ;;  %v7542_v37 = vld [vmem:[#allocation32_spill] sm:$0xff] }
  0x6a   :  { %v782_v33 = vsel %vm741_vm2, %v3277_v11, %v781_v30  ;;  %v344_v43 = vmul.f32 %v309_v2, %v7461_v12  ;;  %v3561_v40 = vadd.f32 %v725_v17, %v724_v36  ;;  %v3563_v35 = vsub.f32 %v727_v15, %v728_v19  ;;  %v7540_v36 = vld [vmem:[#allocation83_spill] sm:$0xff]  ;;  %v7544_v30 = vld [vmem:[#allocation49_spill] sm:$0xff] }
  0x6b   :  { %7530 = vst [vmem:[#allocation60_spill] sm:$0xff] %v3548_v27  ;;  %7531 = vst [vmem:[#allocation13_spill] sm:$0xff] %v3558_v25  ;;  %v783_v57 = vsel %vm740_vm3, %v7534_v45, %v782_v33  ;;  %v795_v55 = vsel %vm743_vm0, %v3492_v9, %v3548_v27  ;;  %v346_v5 = vmul.f32 %v309_v2, %v7460_v32  ;;  %v7537_v2 = vld [vmem:[#allocation16_spill] sm:$0xff]  ;;  %v7543_v17 = vld [vmem:[#allocation43_spill] sm:$0xff] }
  0x6c   :  { %7532 = vst [vmem:[#allocation71_spill] sm:$0xff] %v3561_v40  ;;  %7533 = vst [vmem:[#allocation31_spill] sm:$0xff] %v3563_v35  ;;  %v784_v34 = vsel %vm739_vm4, %v2941_v18, %v783_v57  ;;  %v796_v58 = vsel %vm742_vm1, %v3469_v24, %v795_v55  ;;  %v3578_v3 = vadd.f32 %v344_v43, %v343_v46  ;;  %v7545_v43 = vld [vmem:[#allocation20_spill] sm:$0xff]  ;;  %v7546_v55 = vld [vmem:[#allocation33_spill] sm:$0xff] }
  0x6d   :  { %v785_v53 = vsel %vm743_vm0, %v3500_v26, %v3561_v40  ;;  %v790_v48 = vsel %vm743_vm0, %v3502_v50, %v3563_v35  ;;  %v797_v54 = vsel %vm741_vm2, %v3416_v31, %v796_v58  ;;  %v800_v4 = vmul.f32 %v3269_v10, %v784_v34  ;;  %v7547_v58 = vld [vmem:[#allocation89_spill] sm:$0xff]  ;;  %v7584_v24 = vld [vmem:[#allocation18_spill] sm:$0xff] }
  0x6e   :  { %7535 = vst [vmem:[#allocation28_spill] sm:$0xff] %v3578_v3  ;;  %v786_v32 = vsel %vm742_vm1, %v3436_v61, %v785_v53  ;;  %v791_v63 = vsel %vm742_vm1, %v3438_v41, %v790_v48  ;;  %v798_v47 = vsel %vm740_vm3, %v3223_v13, %v797_v54  ;;  %v347_v59 = vmul.f32 %v303_v28, %v7461_v12  ;;  %v7548_v53 = vld [vmem:[#allocation90_spill] sm:$0xff] }
  0x6f   :  { %v787_v60 = vsel %vm741_vm2, %v7536_v20, %v786_v32  ;;  %v792_v6 = vsel %vm741_vm2, %v7537_v2, %v791_v63  ;;  %v799_v44 = vsel %vm739_vm4, %v7538_v51, %v798_v47  ;;  %v421_v39 = vmul.f32 %v7539_v1, %v3558_v25  ;;  %v7549_v32 = vld [vmem:[#allocation35_spill] sm:$0xff]  ;;  %v3641_v47 = vld [vmem:[%s7014_s1 + $0x10] sm:$0xff]  ;;  %v7552_v1 = vld [vmem:[#allocation29_spill] sm:$0xff] }
  0x70   :  { %v788_v19 = vsel %vm740_vm3, %v7540_v36, %v787_v60  ;;  %v793_v12 = vsel %vm740_vm3, %v3477_v22, %v792_v6  ;;  %v3620_v28 = vsub.f32 %v346_v5, %v347_v59  ;;  %v423_v46 = vmul.f32 %v7542_v37, %v3578_v3  ;;  %7550 = vst [vmem:[#allocation32_spill] sm:$0xff] %v3641_v47  ;;  %v7551_v60 = vld [vmem:[#allocation36_spill] sm:$0xff]  ;;  %v7585_v22 = vld [vmem:[#allocation57_spill] sm:$0xff] }
  0x71   :  { %v789_v15 = vsel %vm739_vm4, %v7543_v17, %v788_v19  ;;  %v794_v33 = vsel %vm739_vm4, %v7544_v30, %v793_v12  ;;  %v427_v57 = vmul.f32 %v7545_v43, %v3558_v25  ;;  %v429_v34 = vmul.f32 %v7546_v55, %v3578_v3  ;;  %v7553_v12 = vld [vmem:[#allocation34_spill] sm:$0xff]  ;;  %v7558_v51 = vld [vmem:[#allocation40_spill] sm:$0xff] }
  0x72   :  { %7541 = vst [vmem:[#allocation19_spill] sm:$0xff] %v3620_v28  ;;  %v801_v5 = vmul.f32 %v7547_v58, %v789_v15  ;;  %v803_v48 = vmul.f32 %v7548_v53, %v794_v33  ;;  %v424_v54 = vadd.f32 %v423_v46, %v421_v39  ;;  %v425_v63 = vmul.f32 %v7549_v32, %v3620_v28  ;;  %v7555_v46 = vld [vmem:[#allocation39_spill] sm:$0xff]  ;;  %v7556_v43 = vld [vmem:[#allocation30_spill] sm:$0xff] }
  0x73   :  { %v430_v59 = vadd.f32 %v429_v34, %v427_v57  ;;  %v431_v6 = vmul.f32 %v7551_v60, %v3620_v28  ;;  %v433_v19 = vmul.f32 %v7552_v1, %v3558_v25  ;;  %v435_v37 = vmul.f32 %v7553_v12, %v3578_v3  ;;  %v7557_v34 = vld [vmem:[#allocation37_spill] sm:$0xff]  ;;  %v7581_v30 = vld [vmem:[#allocation54_spill] sm:$0xff] }
  0x74   :  { %v802_v15 = vadd.f32 %v801_v5, %v800_v4  ;;  %v3649_v39 = vadd.f32 %v425_v63, %v424_v54  ;;  %v437_v33 = vmul.f32 %v7555_v46, %v3620_v28  ;;  %v453_v55 = vmul.f32 %v7556_v43, %v3558_v25  ;;  %v7559_v54 = vld [vmem:[#allocation47_spill] sm:$0xff] }
  0x75   :  { %v432_v32 = vadd.f32 %v431_v6, %v430_v59  ;;  %v436_v57 = vadd.f32 %v435_v37, %v433_v19  ;;  %v455_v60 = vmul.f32 %v7557_v34, %v3578_v3  ;;  %v457_v1 = vmul.f32 %v7558_v51, %v3620_v28  ;;  %v7560_v6 = vld [vmem:[#allocation27_spill] sm:$0xff]  ;;  %v7561_v37 = vld [vmem:[#allocation26_spill] sm:$0xff] }
  0x76   :  { %7554 = vst [vmem:[#allocation43_spill] sm:$0xff] %v3649_v39  ;;  %v804_v13 = vadd.f32 %v803_v48, %v802_v15  ;;  %v3661_v4 = vadd.f32 %v3641_v47, %v3483_v8  ;;  %v3664_v5 = vadd.f32 %v3641_v47, %v329_v21  ;;  %v550_v63 = vmul.f32 %v7559_v54, %v3649_v39  ;;  %v3673_v51 = vld [vmem:[%s7013_s3 + $0x1e8] sm:$0xff]  ;;  %v7562_v8 = vld [vmem:[#allocation48_spill] sm:$0xff]  ;;  %v7563_v21 = vld [vmem:[#allocation50_spill] sm:$0xff] }
  0x77   :  { %v438_v12 = vadd.f32 %v437_v33, %v436_v57  ;;  %v456_v59 = vadd.f32 %v455_v60, %v453_v55  ;;  %v472_v19 = vmul.f32 %v432_v32, %v7560_v6  ;;  %v476_v46 = vmul.f32 %v432_v32, %v7561_v37  ;;  %v7564_v34 = vld [vmem:[#allocation51_spill] sm:$0xff]  ;;  %v7569_v54 = vld [vmem:[#allocation64_spill] sm:$0xff] }
  0x78   :  { %v805_v48 = vadd.f32 %v804_v13, %v799_v44  ;;  %v556_v15 = vmul.f32 %v7562_v8, %v3649_v39  ;;  %v562_v43 = vmul.f32 %v7563_v21, %v3649_v39  ;;  %v582_v33 = vmul.f32 %v7564_v34, %v3649_v39  ;;  %v7573_v21 = vld [vmem:[#allocation87_spill] sm:$0xff]  ;;  %v7574_v34 = vld [vmem:[#allocation80_spill] sm:$0xff] }
  0x79   :  { %v458_v55 = vadd.f32 %v457_v1, %v456_v59  ;;  %v473_v57 = vmul.f32 %v438_v12, %v7561_v37  ;;  %v475_v32 = vmul.f32 %v438_v12, %v7560_v6  ;;  %vm839_vm5 = vcmp.lt.f32.partialorder %v3673_v51, 2.5  ;;  %v7568_v1 = vld [vmem:[#allocation84_spill] sm:$0xff]  ;;  %v7570_v59 = vld [vmem:[#allocation46_spill] sm:$0xff] }
  0x7a   :  { %2410 = vst [vmem:[%s7015_s4 + $0x8] sm:$0xff] %v805_v48  ;;  %vm840_vm6 = vcmp.lt.f32.partialorder %v3673_v51, 3.5  ;;  %vm841_vm7 = vcmp.lt.f32.partialorder %v3673_v51, 4.5  ;;  %vm842_vm8 = vcmp.lt.f32.partialorder %v3673_v51, 5.5  ;;  %vm843_vm9 = vcmp.lt.f32.partialorder %v3673_v51, 6.5  ;;  %v7571_v37 = vld [vmem:[#allocation86_spill] sm:$0xff] }
  0x7b   :  { %v3692_v13 = vadd.f32 %v458_v55, %v3664_v5  ;;  %v3694_v44 = vadd.f32 %v473_v57, %v472_v19  ;;  %v3696_v60 = vsub.f32 %v475_v32, %v476_v46  ;;  %v853_v12 = vsel %vm843_vm9, %v7569_v54, %v7568_v1  ;;  %v7572_v48 = vld [vmem:[#allocation76_spill] sm:$0xff]  ;;  %v7575_v46 = vld [vmem:[#allocation85_spill] sm:$0xff]  ;;  %v4107_v51 = vld [vmem:[%s7013_s3 + $0x288] sm:$0xff] }
  0x7c   :  { %v854_v6 = vsel %vm842_vm8, %v7570_v59, %v853_v12  ;;  %v858_v8 = vsel %vm843_vm9, %v7572_v48, %v7571_v37  ;;  %v863_v19 = vsel %vm843_vm9, %v7574_v34, %v7573_v21  ;;  %v7576_v55 = vld [vmem:[#allocation72_spill] sm:$0xff]  ;;  %v7578_v12 = vld [vmem:[#allocation55_spill] sm:$0xff]  ;;  %v7579_v1 = vld [vmem:[#allocation53_spill] sm:$0xff] }
  0x7d   :  { %7565 = vst [vmem:[#allocation20_spill] sm:$0xff] %v3692_v13  ;;  %7566 = vst [vmem:[#allocation33_spill] sm:$0xff] %v3694_v44  ;;  %v868_v57 = vsel %vm843_vm9, %v7576_v55, %v7575_v46  ;;  %v7577_v32 = vld [vmem:[#allocation52_spill] sm:$0xff]  ;;  %v554_v59 = vmul.f32 %v7578_v12, %v3696_v60  ;;  %v558_v31 = vmul.f32 %v7579_v1, %v3694_v44  ;;  %v7580_v48 = vld [vmem:[#allocation58_spill] sm:$0xff] }
  0x7e   :  { %7567 = vst [vmem:[#allocation35_spill] sm:$0xff] %v3696_v60  ;;  %v552_v54 = vmul.f32 %v7577_v32, %v3694_v44  ;;  %v560_v37 = vmul.f32 %v7580_v48, %v3696_v60  ;;  %v564_v34 = vmul.f32 %v7581_v30, %v3694_v44  ;;  %v7582_v21 = vld [vmem:[#allocation59_spill] sm:$0xff]  ;;  %v7583_v55 = vld [vmem:[#allocation56_spill] sm:$0xff]  ;;  %v586_v32 = vmul.f32 %v7505_v42, %v3696_v60 }
  0x7f   :  { %v566_v53 = vmul.f32 %v7582_v21, %v3696_v60  ;;  %v584_v46 = vmul.f32 %v7583_v55, %v3694_v44  ;;  %v559_v12 = vadd.f32 %v558_v31, %v556_v15  ;;  %v855_v1 = vsel %vm841_vm7, %v7584_v24, %v854_v6  ;;  %v7587_v55 = vld [vmem:[#allocation38_spill] sm:$0xff] }
  0x80   :  { %v553_v58 = vadd.f32 %v552_v54, %v550_v63  ;;  %v859_v48 = vsel %vm842_vm8, %v7585_v22, %v858_v8  ;;  %v565_v30 = vadd.f32 %v564_v34, %v562_v43  ;;  %v856_v21 = vsel %vm840_vm6, %v7586_v52, %v855_v1  ;;  %v3750_v15 = vld [vmem:[%s7012_s0] sm:$0xff]  ;;  %v7592_v34 = vld [vmem:[#allocation61_spill] sm:$0xff] }
  0x81   :  { %v585_v23 = vadd.f32 %v584_v46, %v582_v33  ;;  %v860_v42 = vsel %vm841_vm7, %v7587_v55, %v859_v48  ;;  %v561_v31 = vadd.f32 %v560_v37, %v559_v12  ;;  %7588 = vst [vmem:[#allocation36_spill] sm:$0xff] %v3750_v15  ;;  %v857_v43 = vsel %vm839_vm5, %v3750_v15, %v856_v21  ;;  %v7589_v33 = vld [vmem:[#allocation41_spill] sm:$0xff]  ;;  %v7594_v1 = vld [vmem:[#allocation66_spill] sm:$0xff] }
  0x82   :  { %v3745_v63 = vadd.f32 %v554_v59, %v553_v58  ;;  %v861_v54 = vsel %vm840_vm6, %v7589_v33, %v860_v42  ;;  %v567_v6 = vadd.f32 %v566_v53, %v565_v30  ;;  %v3761_v58 = vld [vmem:[%s7013_s3 + $0x268] sm:$0xff]  ;;  %v864_v46 = vsel %vm842_vm8, %v7592_v34, %v863_v19  ;;  %v7599_v15 = vld [vmem:[#allocation42_spill] sm:$0xff]  ;;  %v7603_v33 = vld [vmem:[#allocation44_spill] sm:$0xff] }
  0x83   :  { %v587_v8 = vadd.f32 %v586_v32, %v585_v23  ;;  %7590 = vst [vmem:[#allocation29_spill] sm:$0xff] %v3761_v58  ;;  %v3766_v59 = vld [vmem:[%s7012_s0 + $0x8] sm:$0xff]  ;;  %v601_v23 = vmul.f32 %v561_v31, %v7513_v62  ;;  %v605_v53 = vmul.f32 %v561_v31, %v7514_v38  ;;  %v7593_v32 = vld [vmem:[#allocation65_spill] sm:$0xff]  ;;  %v3790_v31 = vld [vmem:[%s7013_s3 + $0x270] sm:$0xff] }
  0x84   :  { %7591 = vst [vmem:[#allocation34_spill] sm:$0xff] %v3766_v59  ;;  %v862_v37 = vsel %vm839_vm5, %v3766_v59, %v861_v54  ;;  %v679_v12 = vmul.f32 %v7593_v32, %v3745_v63  ;;  %v685_v48 = vmul.f32 %v7594_v1, %v3745_v63  ;;  %v602_v21 = vmul.f32 %v567_v6, %v7514_v38  ;;  %v7596_v54 = vld [vmem:[#allocation67_spill] sm:$0xff]  ;;  %v7598_v32 = vld [vmem:[#allocation68_spill] sm:$0xff]  ;;  %v7600_v1 = vld [vmem:[#allocation62_spill] sm:$0xff] }
  0x85   :  { %v3781_v30 = vadd.f32 %v587_v8, %v3692_v13  ;;  %v604_v42 = vmul.f32 %v567_v6, %v7513_v62  ;;  %v691_v19 = vmul.f32 %v7596_v54, %v3745_v63  ;;  %7597 = vst [vmem:[#allocation30_spill] sm:$0xff] %v3790_v31  ;;  %v711_v59 = vmul.f32 %v7598_v32, %v3745_v63  ;;  %v7604_v34 = vld [vmem:[#allocation45_spill] sm:$0xff] }
  0x86   :  { %v865_v8 = vsel %vm841_vm7, %v7599_v15, %v864_v46  ;;  %v869_v38 = vsel %vm842_vm8, %v7600_v1, %v868_v57  ;;  %v873_v62 = vmul.f32 %v3761_v58, %v857_v43  ;;  %v3801_v6 = vadd.f32 %v602_v21, %v601_v23  ;;  %v3814_v46 = vld [vmem:[%s7012_s0 + $0x10] sm:$0xff]  ;;  %v7606_v43 = vld [vmem:[#allocation25_spill] sm:$0xff]  ;;  %v7609_v1 = vld [vmem:[#allocation70_spill] sm:$0xff] }
  0x87   :  { %7595 = vst [vmem:[#allocation39_spill] sm:$0xff] %v3781_v30  ;;  %v3803_v54 = vsub.f32 %v604_v42, %v605_v53  ;;  %v866_v52 = vsel %vm840_vm6, %v7603_v33, %v865_v8  ;;  %v870_v32 = vsel %vm841_vm7, %v7604_v34, %v869_v38  ;;  %7605 = vst [vmem:[#allocation47_spill] sm:$0xff] %v3814_v46  ;;  %v7607_v42 = vld [vmem:[#allocation69_spill] sm:$0xff]  ;;  %v7608_v38 = vld [vmem:[#allocation74_spill] sm:$0xff] }
  0x88   :  { %7601 = vst [vmem:[#allocation37_spill] sm:$0xff] %v3801_v6  ;;  %v867_v57 = vsel %vm839_vm5, %v3814_v46, %v866_v52  ;;  %v871_v23 = vsel %vm840_vm6, %v7606_v43, %v870_v32  ;;  %v874_v53 = vmul.f32 %v3790_v31, %v862_v37  ;;  %v881_v21 = vsel %vm843_vm9, %v3471_v0, %v3536_v56  ;;  %v7610_v46 = vld [vmem:[#allocation77_spill] sm:$0xff]  ;;  %v7612_v0 = vld [vmem:[#allocation78_spill] sm:$0xff]  ;;  %v7613_v56 = vld [vmem:[#allocation75_spill] sm:$0xff] }
  0x89   :  { %7602 = vst [vmem:[#allocation40_spill] sm:$0xff] %v3803_v54  ;;  %v681_v8 = vmul.f32 %v7607_v42, %v3801_v6  ;;  %v683_v34 = vmul.f32 %v7608_v38, %v3803_v54  ;;  %v687_v52 = vmul.f32 %v7609_v1, %v3801_v6  ;;  %v689_v33 = vmul.f32 %v7610_v46, %v3803_v54  ;;  %v3838_v37 = vld [vmem:[%s7013_s3 + $0x278] sm:$0xff]  ;;  %v7614_v15 = vld [vmem:[#allocation79_spill] sm:$0xff] }
  0x8a   :  { %v7611_v32 = vld [vmem:[#allocation73_spill] sm:$0xff]  ;;  %v695_v42 = vmul.f32 %v7612_v0, %v3803_v54  ;;  %v713_v38 = vmul.f32 %v7613_v56, %v3801_v6  ;;  %v715_v1 = vmul.f32 %v7614_v15, %v3803_v54  ;;  %v875_v31 = vadd.f32 %v874_v53, %v873_v62 }
  0x8b   :  { %v693_v43 = vmul.f32 %v7611_v32, %v3801_v6  ;;  %v682_v55 = vadd.f32 %v681_v8, %v679_v12  ;;  %v688_v24 = vadd.f32 %v687_v52, %v685_v48  ;;  %v7615_v46 = vld [vmem:[#allocation21_spill] sm:$0xff]  ;;  %v876_v32 = vmul.f32 %v3838_v37, %v867_v57 }
  0x8c   :  { %v872_v22 = vsel %vm839_vm5, %v7615_v46, %v871_v23  ;;  %v714_v9 = vadd.f32 %v713_v38, %v711_v59  ;;  %v882_v0 = vsel %vm842_vm8, %v3409_v16, %v881_v21  ;;  %v886_v12 = vsel %vm843_vm9, %v3500_v26, %v3561_v40  ;;  %v7618_v21 = vld [vmem:[#allocation10_spill] sm:$0xff] }
  0x8d   :  { %v694_v58 = vadd.f32 %v693_v43, %v691_v19  ;;  %v3855_v27 = vadd.f32 %v683_v34, %v682_v55  ;;  %v690_v56 = vadd.f32 %v689_v33, %v688_v24  ;;  %v883_v15 = vsel %vm841_vm7, %v3277_v11, %v882_v0 }
  0x8e   :  { %v716_v59 = vadd.f32 %v715_v1, %v714_v9  ;;  %v877_v19 = vadd.f32 %v876_v32, %v875_v31  ;;  %v884_v62 = vsel %vm840_vm6, %v7534_v45, %v883_v15 }
  0x8f   :  { %v696_v48 = vadd.f32 %v695_v42, %v694_v58  ;;  %v730_v55 = vmul.f32 %v690_v56, %v2920_v7  ;;  %v734_v24 = vmul.f32 %v690_v56, %v2899_v14  ;;  %v808_v33 = vsel %vm743_vm0, %v3745_v63, %v3855_v27 }
  0x90   :  { %v885_v34 = vsel %vm839_vm5, %v2941_v18, %v884_v62  ;;  %v3877_v9 = vadd.f32 %v716_v59, %v3781_v30  ;;  %v809_v57 = vsel %vm742_vm1, %v3649_v39, %v808_v33  ;;  %v878_v23 = vadd.f32 %v877_v19, %v872_v22 }
  0x91   :  { %v731_v58 = vmul.f32 %v696_v48, %v2899_v14  ;;  %v733_v31 = vmul.f32 %v696_v48, %v2920_v7  ;;  %v810_v43 = vsel %vm741_vm2, %v3558_v25, %v809_v57  ;;  %v887_v18 = vsel %vm842_vm8, %v3436_v61, %v886_v12 }
  0x92   :  { %v891_v14 = vsel %vm843_vm9, %v3502_v50, %v3563_v35  ;;  %v811_v8 = vsel %vm740_vm3, %v7618_v21, %v810_v43  ;;  %v823_v22 = vsel %vm743_vm0, %v3781_v30, %v3877_v9  ;;  %2416 = vst [vmem:[%s7015_s4 + $0x18] sm:$0xff] %v878_v23  ;;  %v888_v38 = vsel %vm841_vm7, %v7536_v20, %v887_v18  ;;  %v7621_v43 = vld [vmem:[#allocation60_spill] sm:$0xff]  ;;  %v7622_v23 = vld [vmem:[#allocation6_spill] sm:$0xff] }
  0x93   :  { %v3894_v53 = vadd.f32 %v731_v58, %v730_v55  ;;  %v3896_v7 = vsub.f32 %v733_v31, %v734_v24  ;;  %v812_v52 = vsel %vm739_vm4, %v3356_v49, %v811_v8  ;;  %v824_v42 = vsel %vm742_vm1, %v3692_v13, %v823_v22  ;;  %v7619_v24 = vld [vmem:[#allocation2_spill] sm:$0xff]  ;;  %v7620_v58 = vld [vmem:[#allocation11_spill] sm:$0xff]  ;;  %v7624_v8 = vld [vmem:[#allocation17_spill] sm:$0xff] }
  0x94   :  { %v892_v1 = vsel %vm842_vm8, %v3438_v41, %v891_v14  ;;  %v825_v0 = vsel %vm741_vm2, %v3664_v5, %v824_v42  ;;  %v828_v56 = vmul.f32 %v3269_v10, %v812_v52  ;;  %v889_v59 = vsel %vm840_vm6, %v7540_v36, %v888_v38  ;;  %v7623_v14 = vld [vmem:[#allocation15_spill] sm:$0xff]  ;;  %v7625_v52 = vld [vmem:[#allocation4_spill] sm:$0xff] }
  0x95   :  { %7616 = vst [vmem:[#allocation27_spill] sm:$0xff] %v3894_v53  ;;  %7617 = vst [vmem:[#allocation26_spill] sm:$0xff] %v3896_v7  ;;  %v813_v46 = vsel %vm743_vm0, %v3801_v6, %v3894_v53  ;;  %v818_v32 = vsel %vm743_vm0, %v3803_v54, %v3896_v7  ;;  %v826_v48 = vsel %vm740_vm3, %v3661_v4, %v825_v0  ;;  %v7626_v38 = vld [vmem:[#allocation7_spill] sm:$0xff]  ;;  %v7628_v0 = vld [vmem:[#allocation90_spill] sm:$0xff] }
  0x96   :  { %v814_v15 = vsel %vm742_vm1, %v3694_v44, %v813_v46  ;;  %v819_v12 = vsel %vm742_vm1, %v3696_v60, %v818_v32  ;;  %v827_v62 = vsel %vm739_vm4, %v3641_v47, %v826_v48  ;;  %v890_v55 = vsel %vm839_vm5, %v7543_v17, %v889_v59  ;;  %v7627_v46 = vld [vmem:[#allocation89_spill] sm:$0xff]  ;;  %v7630_v59 = vld [vmem:[#allocation23_spill] sm:$0xff] }
  0x97   :  { %v815_v10 = vsel %vm741_vm2, %v3578_v3, %v814_v15  ;;  %v820_v19 = vsel %vm741_vm2, %v3620_v28, %v819_v12  ;;  %v893_v57 = vsel %vm841_vm7, %v7537_v2, %v892_v1  ;;  %v896_v18 = vsel %vm843_vm9, %v7622_v23, %v7621_v43  ;;  %v7629_v12 = vld [vmem:[#allocation49_spill] sm:$0xff] }
  0x98   :  { %v816_v33 = vsel %vm740_vm3, %v7619_v24, %v815_v10  ;;  %v821_v31 = vsel %vm740_vm3, %v7620_v58, %v820_v19  ;;  %v894_v42 = vsel %vm840_vm6, %v7625_v52, %v893_v57  ;;  %v897_v1 = vsel %vm842_vm8, %v7626_v38, %v896_v18  ;;  %v7631_v10 = vld [vmem:[#allocation82_spill] sm:$0xff] }
  0x99   :  { %v817_v17 = vsel %vm739_vm4, %v7623_v14, %v816_v33  ;;  %v822_v22 = vsel %vm739_vm4, %v7624_v8, %v821_v31  ;;  %v895_v48 = vsel %vm839_vm5, %v7629_v12, %v894_v42  ;;  %v898_v29 = vsel %vm841_vm7, %v7630_v59, %v897_v1  ;;  %v7632_v33 = vld [vmem:[#allocation29_spill] sm:$0xff]  ;;  %v7633_v57 = vld [vmem:[#allocation30_spill] sm:$0xff] }
  0x9a   :  { %v829_v32 = vmul.f32 %v7627_v46, %v817_v17  ;;  %v831_v15 = vmul.f32 %v7628_v0, %v822_v22  ;;  %v899_v19 = vsel %vm840_vm6, %v7631_v10, %v898_v29  ;;  %v901_v31 = vmul.f32 %v7632_v33, %v885_v34  ;;  %v7634_v22 = vld [vmem:[#allocation81_spill] sm:$0xff]  ;;  %v4009_v34 = vld [vmem:[%s7013_s3 + $0x1f0] sm:$0xff] }
  0x9b   :  { %v902_v18 = vmul.f32 %v7633_v57, %v890_v55  ;;  %v904_v17 = vmul.f32 %v3838_v37, %v895_v48  ;;  %v900_v0 = vsel %vm839_vm5, %v7634_v22, %v899_v19  ;;  %v909_v42 = vsel %vm843_vm9, %v3745_v63, %v3855_v27 }
  0x9c   :  { %v830_v46 = vadd.f32 %v829_v32, %v828_v56  ;;  %v914_v1 = vsel %vm843_vm9, %v3801_v6, %v3894_v53  ;;  %v910_v55 = vsel %vm842_vm8, %v3649_v39, %v909_v42  ;;  %v919_v12 = vsel %vm843_vm9, %v3803_v54, %v3896_v7 }
  0x9d   :  { %v903_v56 = vadd.f32 %v902_v18, %v901_v31  ;;  %v915_v32 = vsel %vm842_vm8, %v3694_v44, %v914_v1  ;;  %vm940_vm10 = vcmp.lt.f32.partialorder %v4009_v34, 2.5  ;;  %v911_v29 = vsel %vm841_vm7, %v3558_v25, %v910_v55 }
  0x9e   :  { %v832_v48 = vadd.f32 %v831_v15, %v830_v46  ;;  %v916_v19 = vsel %vm841_vm7, %v3578_v3, %v915_v32  ;;  %v920_v31 = vsel %vm842_vm8, %v3696_v60, %v919_v12  ;;  %v912_v42 = vsel %vm840_vm6, %v7618_v21, %v911_v29 }
  0x9f   :  { %v905_v18 = vadd.f32 %v904_v17, %v903_v56  ;;  %v917_v15 = vsel %vm840_vm6, %v7619_v24, %v916_v19  ;;  %v921_v46 = vsel %vm841_vm7, %v3620_v28, %v920_v31  ;;  %v913_v55 = vsel %vm839_vm5, %v3356_v49, %v912_v42  ;;  %v7635_v31 = vld [vmem:[#allocation84_spill] sm:$0xff] }
  0xa0   :  { %v833_v1 = vadd.f32 %v832_v48, %v827_v62  ;;  %v918_v17 = vsel %vm839_vm5, %v7623_v14, %v917_v15  ;;  %v922_v56 = vsel %vm840_vm6, %v7620_v58, %v921_v46  ;;  %v924_v62 = vsel %vm843_vm9, %v3781_v30, %v3877_v9  ;;  %v7637_v15 = vld [vmem:[#allocation86_spill] sm:$0xff]  ;;  %v7638_v46 = vld [vmem:[#allocation76_spill] sm:$0xff] }
  0xa1   :  { %v906_v32 = vadd.f32 %v905_v18, %v900_v0  ;;  %v923_v12 = vsel %vm839_vm5, %v7624_v8, %v922_v56  ;;  %v929_v48 = vmul.f32 %v7632_v33, %v913_v55  ;;  %v925_v29 = vsel %vm842_vm8, %v3692_v13, %v924_v62  ;;  %v7636_v18 = vld [vmem:[#allocation64_spill] sm:$0xff]  ;;  %v7641_v62 = vld [vmem:[#allocation87_spill] sm:$0xff] }
  0xa2   :  { %2411 = vst [vmem:[%s7015_s4 + $0x10] sm:$0xff] %v833_v1  ;;  %v930_v0 = vmul.f32 %v7633_v57, %v918_v17  ;;  %v932_v19 = vmul.f32 %v3838_v37, %v923_v12  ;;  %vm941_vm11 = vcmp.lt.f32.partialorder %v4009_v34, 3.5  ;;  %v926_v33 = vsel %vm841_vm7, %v3664_v5, %v925_v29  ;;  %v7639_v17 = vld [vmem:[#allocation46_spill] sm:$0xff] }
  0xa3   :  { %2417 = vst [vmem:[%s7015_s4 + $0x20] sm:$0xff] %v906_v32  ;;  %vm942_vm12 = vcmp.lt.f32.partialorder %v4009_v34, 4.5  ;;  %vm943_vm13 = vcmp.lt.f32.partialorder %v4009_v34, 5.5  ;;  %vm944_vm14 = vcmp.lt.f32.partialorder %v4009_v34, 6.5  ;;  %v927_v37 = vsel %vm840_vm6, %v3661_v4, %v926_v33  ;;  %v7640_v32 = vld [vmem:[#allocation57_spill] sm:$0xff]  ;;  %v4102_v33 = vld [vmem:[%s7013_s3 + $0x280] sm:$0xff] }
  0xa4   :  { %v931_v57 = vadd.f32 %v930_v0, %v929_v48  ;;  %v954_v42 = vsel %vm944_vm14, %v7636_v18, %v7635_v31  ;;  %v959_v1 = vsel %vm944_vm14, %v7638_v46, %v7637_v15  ;;  %v928_v55 = vsel %vm839_vm5, %v3641_v47, %v927_v37  ;;  %v7642_v48 = vld [vmem:[#allocation80_spill] sm:$0xff]  ;;  %v7643_v37 = vld [vmem:[#allocation18_spill] sm:$0xff]  ;;  %v7647_v46 = vld [vmem:[#allocation41_spill] sm:$0xff] }
  0xa5   :  { %v955_v56 = vsel %vm943_vm13, %v7639_v17, %v954_v42  ;;  %v960_v12 = vsel %vm943_vm13, %v7640_v32, %v959_v1  ;;  %v964_v29 = vsel %vm944_vm14, %v7642_v48, %v7641_v62  ;;  %v7644_v1 = vld [vmem:[#allocation38_spill] sm:$0xff]  ;;  %v7645_v17 = vld [vmem:[#allocation61_spill] sm:$0xff]  ;;  %v7646_v48 = vld [vmem:[#allocation24_spill] sm:$0xff] }
  0xa6   :  { %v933_v0 = vadd.f32 %v932_v19, %v931_v57  ;;  %v956_v42 = vsel %vm942_vm12, %v7643_v37, %v955_v56  ;;  %v961_v32 = vsel %vm942_vm12, %v7644_v1, %v960_v12  ;;  %v965_v19 = vsel %vm943_vm13, %v7645_v17, %v964_v29  ;;  %v4121_v57 = vld [vmem:[%s7013_s3 + $0x290] sm:$0xff]  ;;  %v7648_v37 = vld [vmem:[#allocation42_spill] sm:$0xff]  ;;  %v7649_v1 = vld [vmem:[#allocation85_spill] sm:$0xff] }
  0xa7   :  { %v957_v62 = vsel %vm941_vm11, %v7646_v48, %v956_v42  ;;  %v962_v56 = vsel %vm941_vm11, %v7647_v46, %v961_v32  ;;  %v966_v12 = vsel %vm942_vm12, %v7648_v37, %v965_v19  ;;  %v7650_v15 = vld [vmem:[#allocation72_spill] sm:$0xff]  ;;  %v7652_v47 = vld [vmem:[#allocation34_spill] sm:$0xff]  ;;  %v7654_v46 = vld [vmem:[#allocation47_spill] sm:$0xff] }
  0xa8   :  { %v969_v29 = vsel %vm944_vm14, %v7650_v15, %v7649_v1  ;;  %v934_v17 = vadd.f32 %v933_v0, %v928_v55  ;;  %v7651_v18 = vld [vmem:[#allocation36_spill] sm:$0xff]  ;;  %v963_v42 = vsel %vm940_vm10, %v7652_v47, %v962_v56  ;;  %v7655_v37 = vld [vmem:[#allocation62_spill] sm:$0xff]  ;;  %v7656_v56 = vld [vmem:[#allocation45_spill] sm:$0xff] }
  0xa9   :  { %v958_v31 = vsel %vm940_vm10, %v7651_v18, %v957_v62  ;;  %v7653_v48 = vld [vmem:[#allocation44_spill] sm:$0xff]  ;;  %v970_v55 = vsel %vm943_vm13, %v7655_v37, %v969_v29  ;;  %v975_v62 = vmul.f32 %v4107_v51, %v963_v42  ;;  %v7657_v18 = vld [vmem:[#allocation9_spill] sm:$0xff] }
  0xaa   :  { %v967_v32 = vsel %vm941_vm11, %v7653_v48, %v966_v12  ;;  %v974_v0 = vmul.f32 %v4102_v33, %v958_v31  ;;  %2418 = vst [vmem:[%s7015_s4 + $0x28] sm:$0xff] %v934_v17  ;;  %v971_v12 = vsel %vm942_vm12, %v7656_v56, %v970_v55  ;;  %v987_v31 = vsel %vm944_vm14, %v3500_v26, %v3561_v40  ;;  %v7659_v29 = vld [vmem:[#allocation25_spill] sm:$0xff]  ;;  %v7669_v34 = vld [vmem:[#allocation80_spill] sm:$0xff] }
  0xab   :  { %v968_v19 = vsel %vm940_vm10, %v7654_v46, %v967_v32  ;;  %v7658_v32 = vld [vmem:[#allocation14_spill] sm:$0xff]  ;;  %v972_v17 = vsel %vm941_vm11, %v7659_v29, %v971_v12 }
  0xac   :  { %v977_v47 = vmul.f32 %v4121_v57, %v968_v19  ;;  %v982_v46 = vsel %vm944_vm14, %v7658_v32, %v7657_v18  ;;  %v976_v42 = vadd.f32 %v975_v62, %v974_v0  ;;  %v988_v19 = vsel %vm943_vm13, %v3436_v61, %v987_v31  ;;  %v4180_v32 = vld [vmem:[%s7014_s1] sm:$0xff] }
  0xad   :  { %v983_v55 = vsel %vm943_vm13, %v3409_v16, %v982_v46  ;;  %7660 = vst [vmem:[#allocation48_spill] sm:$0xff] %v4180_v32  ;;  %v973_v26 = vsel %vm940_vm10, %v4180_v32, %v972_v17  ;;  %v989_v46 = vsel %vm942_vm12, %v7536_v20, %v988_v19  ;;  %v992_v62 = vsel %vm944_vm14, %v3502_v50, %v3563_v35  ;;  %v4207_v19 = vld [vmem:[%s7012_s0 + $0x18] sm:$0xff] }
  0xae   :  { %v984_v0 = vsel %vm942_vm12, %v3277_v11, %v983_v55  ;;  %v978_v12 = vadd.f32 %v977_v47, %v976_v42  ;;  %v990_v17 = vsel %vm941_vm11, %v7540_v36, %v989_v46  ;;  %v993_v55 = vsel %vm943_vm13, %v3438_v41, %v992_v62  ;;  %7661 = vst [vmem:[#allocation50_spill] sm:$0xff] %v4207_v19  ;;  %v4215_v42 = vld [vmem:[%s7012_s0 + $0x20] sm:$0xff] }
  0xaf   :  { %v985_v31 = vsel %vm941_vm11, %v7534_v45, %v984_v0  ;;  %7662 = vst [vmem:[#allocation51_spill] sm:$0xff] %v4215_v42  ;;  %v991_v0 = vsel %vm940_vm10, %v4215_v42, %v990_v17  ;;  %v994_v46 = vsel %vm942_vm12, %v7537_v2, %v993_v55  ;;  %v997_v62 = vsel %vm944_vm14, %v7622_v23, %v7621_v43  ;;  %v4237_v55 = vld [vmem:[%s7012_s0 + $0x28] sm:$0xff] }
  0xb0   :  { %v986_v47 = vsel %vm940_vm10, %v4207_v19, %v985_v31  ;;  %v979_v36 = vadd.f32 %v978_v12, %v973_v26  ;;  %v995_v31 = vsel %vm941_vm11, %v7625_v52, %v994_v46  ;;  %v998_v19 = vsel %vm943_vm13, %v7626_v38, %v997_v62 }
  0xb1   :  { %v1002_v17 = vmul.f32 %v4102_v33, %v986_v47  ;;  %v996_v42 = vsel %vm940_vm10, %v4237_v55, %v995_v31  ;;  %v999_v26 = vsel %vm942_vm12, %v7630_v59, %v998_v19  ;;  %v1003_v12 = vmul.f32 %v4107_v51, %v991_v0 }
  0xb2   :  { %v1010_v47 = vsel %vm944_vm14, %v3745_v63, %v3855_v27  ;;  %2423 = vst [vmem:[%s7015_s4 + $0x30] sm:$0xff] %v979_v36  ;;  %v1000_v46 = vsel %vm941_vm11, %v7631_v10, %v999_v26  ;;  %v1005_v62 = vmul.f32 %v4121_v57, %v996_v42  ;;  %v1015_v0 = vsel %vm944_vm14, %v3801_v6, %v3894_v53 }
  0xb3   :  { %v1011_v19 = vsel %vm943_vm13, %v3649_v39, %v1010_v47  ;;  %v1001_v31 = vsel %vm940_vm10, %v7634_v22, %v1000_v46  ;;  %v1004_v36 = vadd.f32 %v1003_v12, %v1002_v17  ;;  %v1016_v42 = vsel %vm943_vm13, %v3694_v44, %v1015_v0 }
  0xb4   :  { %v1012_v26 = vsel %vm942_vm12, %v3558_v25, %v1011_v19  ;;  %v1017_v39 = vsel %vm942_vm12, %v3578_v3, %v1016_v42  ;;  %v1020_v22 = vsel %vm944_vm14, %v3803_v54, %v3896_v7  ;;  %v1025_v17 = vsel %vm944_vm14, %v3781_v30, %v3877_v9 }
  0xb5   :  { %v1013_v47 = vsel %vm941_vm11, %v7618_v21, %v1012_v26  ;;  %v1006_v12 = vadd.f32 %v1005_v62, %v1004_v36  ;;  %v1018_v19 = vsel %vm941_vm11, %v7619_v24, %v1017_v39  ;;  %v1021_v0 = vsel %vm943_vm13, %v3696_v60, %v1020_v22  ;;  %v4309_v39 = vld [vmem:[%s7013_s3 + $0x1f8] sm:$0xff] }
  0xb6   :  { %v1014_v46 = vsel %vm940_vm10, %v3356_v49, %v1013_v47  ;;  %v1019_v26 = vsel %vm940_vm10, %v7623_v14, %v1018_v19  ;;  %v1022_v62 = vsel %vm942_vm12, %v3620_v28, %v1021_v0  ;;  %v1026_v49 = vsel %vm943_vm13, %v3692_v13, %v1025_v17  ;;  %v7664_v19 = vld [vmem:[#allocation84_spill] sm:$0xff] }
  0xb7   :  { %v1030_v36 = vmul.f32 %v4102_v33, %v1014_v46  ;;  %v1007_v42 = vadd.f32 %v1006_v12, %v1001_v31  ;;  %v1023_v14 = vsel %vm941_vm11, %v7620_v58, %v1022_v62  ;;  %v1027_v47 = vsel %vm942_vm12, %v3664_v5, %v1026_v49  ;;  %v7665_v0 = vld [vmem:[#allocation64_spill] sm:$0xff] }
  0xb8   :  { %v1031_v22 = vmul.f32 %v4107_v51, %v1019_v26  ;;  %v1024_v33 = vsel %vm940_vm10, %v7624_v8, %v1023_v14  ;;  %v1028_v17 = vsel %vm941_vm11, %v3661_v4, %v1027_v47  ;;  %vm1041_vm15 = vcmp.lt.f32.partialorder %v4309_v39, 2.5  ;;  %v7663_v51 = vld [vmem:[#allocation32_spill] sm:$0xff]  ;;  %v7666_v26 = vld [vmem:[#allocation86_spill] sm:$0xff] }
  0xb9   :  { %2424 = vst [vmem:[%s7015_s4 + $0x38] sm:$0xff] %v1007_v42  ;;  %v1033_v12 = vmul.f32 %v4121_v57, %v1024_v33  ;;  %vm1044_vm0 = vcmp.lt.f32.partialorder %v4309_v39, 5.5  ;;  %v1029_v46 = vsel %vm940_vm10, %v7663_v51, %v1028_v17  ;;  %vm1042_vm1 = vcmp.lt.f32.partialorder %v4309_v39, 3.5  ;;  %v7667_v62 = vld [vmem:[#allocation76_spill] sm:$0xff]  ;;  %v7670_v14 = vld [vmem:[#allocation46_spill] sm:$0xff]  ;;  %v7672_v17 = vld [vmem:[#allocation61_spill] sm:$0xff] }
  0xba   :  { %v1032_v31 = vadd.f32 %v1031_v22, %v1030_v36  ;;  %vm1043_vm2 = vcmp.lt.f32.partialorder %v4309_v39, 4.5  ;;  %vm1045_vm3 = vcmp.lt.f32.partialorder %v4309_v39, 6.5  ;;  %v7668_v36 = vld [vmem:[#allocation87_spill] sm:$0xff]  ;;  %v7671_v22 = vld [vmem:[#allocation57_spill] sm:$0xff]  ;;  %v7691_v39 = vld [vmem:[#allocation80_spill] sm:$0xff] }
  0xbb   :  { %v1055_v57 = vsel %vm1045_vm3, %v7665_v0, %v7664_v19  ;;  %v1060_v49 = vsel %vm1045_vm3, %v7667_v62, %v7666_v26  ;;  %v1065_v42 = vsel %vm1045_vm3, %v7669_v34, %v7668_v36  ;;  %v4364_v34 = vld [vmem:[%s7013_s3 + $0x298] sm:$0xff] }
  0xbc   :  { %v1034_v8 = vadd.f32 %v1033_v12, %v1032_v31  ;;  %v1056_v47 = vsel %vm1044_vm0, %v7670_v14, %v1055_v57  ;;  %v1061_v33 = vsel %vm1044_vm0, %v7671_v22, %v1060_v49  ;;  %v1066_v31 = vsel %vm1044_vm0, %v7672_v17, %v1065_v42  ;;  %v4369_v57 = vld [vmem:[%s7013_s3 + $0x2a0] sm:$0xff]  ;;  %v4374_v49 = vld [vmem:[%s7013_s3 + $0x2a8] sm:$0xff]  ;;  %v7676_v22 = vld [vmem:[#allocation24_spill] sm:$0xff] }
  0xbd   :  { %v1070_v12 = vsel %vm1045_vm3, %v7650_v15, %v7649_v1  ;;  %v7673_v42 = vld [vmem:[#allocation18_spill] sm:$0xff]  ;;  %v7677_v36 = vld [vmem:[#allocation41_spill] sm:$0xff] }
  0xbe   :  { %v1035_v62 = vadd.f32 %v1034_v8, %v1029_v46  ;;  %v1057_v15 = vsel %vm1043_vm2, %v7673_v42, %v1056_v47  ;;  %v7674_v46 = vld [vmem:[#allocation38_spill] sm:$0xff] }
  0xbf   :  { %v1062_v8 = vsel %vm1043_vm2, %v7674_v46, %v1061_v33  ;;  %v7675_v1 = vld [vmem:[#allocation42_spill] sm:$0xff]  ;;  %v1058_v14 = vsel %vm1042_vm1, %v7676_v22, %v1057_v15  ;;  %v1071_v33 = vsel %vm1044_vm0, %v7655_v37, %v1070_v12 }
  0xc0   :  { %v1067_v17 = vsel %vm1043_vm2, %v7675_v1, %v1066_v31  ;;  %v1063_v26 = vsel %vm1042_vm1, %v7677_v36, %v1062_v8  ;;  %2425 = vst [vmem:[%s7015_s4 + $0x40] sm:$0xff] %v1035_v62  ;;  %v7678_v31 = vld [vmem:[#allocation36_spill] sm:$0xff]  ;;  %v7679_v22 = vld [vmem:[#allocation34_spill] sm:$0xff]  ;;  %v7680_v36 = vld [vmem:[#allocation47_spill] sm:$0xff]  ;;  %v1072_v12 = vsel %vm1043_vm2, %v7656_v56, %v1071_v33 }
  0xc1   :  { %v1068_v47 = vsel %vm1042_vm1, %v7653_v48, %v1067_v17  ;;  %v1059_v15 = vsel %vm1041_vm15, %v7678_v31, %v1058_v14  ;;  %v1064_v8 = vsel %vm1041_vm15, %v7679_v22, %v1063_v26  ;;  %v1073_v62 = vsel %vm1042_vm1, %v7659_v29, %v1072_v12  ;;  %v7682_v33 = vld [vmem:[#allocation8_spill] sm:$0xff] }
  0xc2   :  { %v1069_v17 = vsel %vm1041_vm15, %v7680_v36, %v1068_v47  ;;  %v1075_v37 = vmul.f32 %v4364_v34, %v1059_v15  ;;  %v1076_v14 = vmul.f32 %v4369_v57, %v1064_v8  ;;  %v1074_v26 = vsel %vm1041_vm15, %v4180_v32, %v1073_v62  ;;  %v7681_v47 = vld [vmem:[#allocation14_spill] sm:$0xff] }
  0xc3   :  { %v1078_v31 = vmul.f32 %v4374_v49, %v1069_v17  ;;  %v1083_v36 = vsel %vm1045_vm3, %v7681_v47, %v7657_v18  ;;  %v1088_v12 = vsel %vm1045_vm3, %v7682_v33, %v3561_v40  ;;  %v1093_v15 = vsel %vm1045_vm3, %v3502_v50, %v3563_v35 }
  0xc4   :  { %v1077_v8 = vadd.f32 %v1076_v14, %v1075_v37  ;;  %v1084_v17 = vsel %vm1044_vm0, %v3409_v16, %v1083_v36  ;;  %v1089_v62 = vsel %vm1044_vm0, %v3436_v61, %v1088_v12  ;;  %v1094_v32 = vsel %vm1044_vm0, %v3438_v41, %v1093_v15  ;;  %v7683_v41 = vld [vmem:[#allocation83_spill] sm:$0xff] }
  0xc5   :  { %v1085_v33 = vsel %vm1043_vm2, %v3277_v11, %v1084_v17  ;;  %v1090_v37 = vsel %vm1043_vm2, %v7536_v20, %v1089_v62  ;;  %v1095_v36 = vsel %vm1043_vm2, %v7537_v2, %v1094_v32  ;;  %v1098_v14 = vsel %vm1045_vm3, %v7622_v23, %v7621_v43  ;;  %v7684_v20 = vld [vmem:[#allocation50_spill] sm:$0xff]  ;;  %v7685_v2 = vld [vmem:[#allocation51_spill] sm:$0xff] }
  0xc6   :  { %v1079_v12 = vadd.f32 %v1078_v31, %v1077_v8  ;;  %v1086_v15 = vsel %vm1042_vm1, %v7534_v45, %v1085_v33  ;;  %v1091_v17 = vsel %vm1042_vm1, %v7683_v41, %v1090_v37  ;;  %v1096_v62 = vsel %vm1042_vm1, %v7625_v52, %v1095_v36 }
  0xc7   :  { %v1087_v32 = vsel %vm1041_vm15, %v7684_v20, %v1086_v15  ;;  %v1092_v31 = vsel %vm1041_vm15, %v7685_v2, %v1091_v17  ;;  %v1097_v33 = vsel %vm1041_vm15, %v4237_v55, %v1096_v62  ;;  %v1099_v8 = vsel %vm1044_vm0, %v7626_v38, %v1098_v14  ;;  %v4484_v17 = vld [vmem:[%s7013_s3 + $0x200] sm:$0xff] }
  0xc8   :  { %v1080_v37 = vadd.f32 %v1079_v12, %v1074_v26  ;;  %v1100_v36 = vsel %vm1043_vm2, %v7630_v59, %v1099_v8  ;;  %v1103_v52 = vmul.f32 %v4364_v34, %v1087_v32  ;;  %v1104_v15 = vmul.f32 %v4369_v57, %v1092_v31  ;;  %v4505_v32 = vld [vmem:[%s7014_s1 + $0x8] sm:$0xff] }
  0xc9   :  { %v1101_v62 = vsel %vm1042_vm1, %v7631_v10, %v1100_v36  ;;  %v1106_v14 = vmul.f32 %v4374_v49, %v1097_v33  ;;  %v1111_v26 = vsel %vm1045_vm3, %v3745_v63, %v3855_v27  ;;  %v1116_v12 = vsel %vm1045_vm3, %v3801_v6, %v3894_v53  ;;  %v7686_v8 = vld [vmem:[#allocation43_spill] sm:$0xff] }
  0xca   :  { %vm1143_vm4 = vcmp.lt.f32.partialorder %v4484_v17, 3.5  ;;  %2430 = vst [vmem:[%s7015_s4 + $0x48] sm:$0xff] %v1080_v37  ;;  %v1102_v31 = vsel %vm1041_vm15, %v4505_v32, %v1101_v62  ;;  %v1105_v33 = vadd.f32 %v1104_v15, %v1103_v52  ;;  %v1112_v36 = vsel %vm1044_vm0, %v7686_v8, %v1111_v26 }
  0xcb   :  { %v1117_v6 = vsel %vm1044_vm0, %v3694_v44, %v1116_v12  ;;  %vm1142_vm5 = vcmp.lt.f32.partialorder %v4484_v17, 2.5  ;;  %v1113_v37 = vsel %vm1043_vm2, %v3558_v25, %v1112_v36  ;;  %v1121_v52 = vsel %vm1045_vm3, %v3803_v54, %v3896_v7  ;;  %v4543_v36 = vld [vmem:[%s7012_s0 + $0x30] sm:$0xff] }
  0xcc   :  { %v1118_v53 = vsel %vm1043_vm2, %v3578_v3, %v1117_v6  ;;  %v1126_v15 = vsel %vm1045_vm3, %v3781_v30, %v3877_v9  ;;  %v1107_v62 = vadd.f32 %v1106_v14, %v1105_v33  ;;  %v1114_v26 = vsel %vm1042_vm1, %v7618_v21, %v1113_v37  ;;  %7687 = vst [vmem:[#allocation52_spill] sm:$0xff] %v4543_v36  ;;  %v4551_v33 = vld [vmem:[%s7012_s0 + $0x38] sm:$0xff] }
  0xcd   :  { %v1119_v12 = vsel %vm1042_vm1, %v7619_v24, %v1118_v53  ;;  %v1122_v6 = vsel %vm1044_vm0, %v3696_v60, %v1121_v52  ;;  %v1115_v14 = vsel %vm1041_vm15, %v4543_v36, %v1114_v26  ;;  %v1127_v52 = vsel %vm1044_vm0, %v3692_v13, %v1126_v15 }
  0xce   :  { %v1120_v53 = vsel %vm1041_vm15, %v4551_v33, %v1119_v12  ;;  %v1123_v37 = vsel %vm1043_vm2, %v3620_v28, %v1122_v6  ;;  %v1108_v24 = vadd.f32 %v1107_v62, %v1102_v31  ;;  %v1128_v36 = vsel %vm1043_vm2, %v3664_v5, %v1127_v52  ;;  %v4572_v12 = vld [vmem:[%s7012_s0 + $0x40] sm:$0xff] }
  0xcf   :  { %v1124_v26 = vsel %vm1042_vm1, %v7620_v58, %v1123_v37  ;;  %v1131_v30 = vmul.f32 %v4364_v34, %v1115_v14  ;;  %v1129_v31 = vsel %vm1042_vm1, %v3661_v4, %v1128_v36  ;;  %v1132_v62 = vmul.f32 %v4369_v57, %v1120_v53  ;;  %v7688_v36 = vld [vmem:[#allocation86_spill] sm:$0xff]  ;;  %v7689_v53 = vld [vmem:[#allocation76_spill] sm:$0xff]  ;;  %v7690_v37 = vld [vmem:[#allocation87_spill] sm:$0xff] }
  0xd0   :  { %v1125_v15 = vsel %vm1041_vm15, %v4572_v12, %v1124_v26  ;;  %vm1145_vm6 = vcmp.lt.f32.partialorder %v4484_v17, 5.5  ;;  %2431 = vst [vmem:[%s7015_s4 + $0x50] sm:$0xff] %v1108_v24  ;;  %v1130_v34 = vsel %vm1041_vm15, %v7663_v51, %v1129_v31  ;;  %vm1144_vm7 = vcmp.lt.f32.partialorder %v4484_v17, 4.5  ;;  %v7692_v52 = vld [vmem:[#allocation46_spill] sm:$0xff]  ;;  %v7694_v31 = vld [vmem:[#allocation61_spill] sm:$0xff] }
  0xd1   :  { %v1134_v6 = vmul.f32 %v4374_v49, %v1125_v15  ;;  %vm1146_vm8 = vcmp.lt.f32.partialorder %v4484_v17, 6.5  ;;  %v1133_v14 = vadd.f32 %v1132_v62, %v1131_v30  ;;  %v7693_v30 = vld [vmem:[#allocation57_spill] sm:$0xff]  ;;  %v7719_v17 = vld [vmem:[#allocation72_spill] sm:$0xff] }
  0xd2   :  { %v1156_v57 = vsel %vm1146_vm8, %v7665_v0, %v7664_v19  ;;  %v1161_v24 = vsel %vm1146_vm8, %v7689_v53, %v7688_v36  ;;  %v1166_v49 = vsel %vm1146_vm8, %v7691_v39, %v7690_v37  ;;  %v7695_v0 = vld [vmem:[#allocation85_spill] sm:$0xff]  ;;  %v7696_v19 = vld [vmem:[#allocation72_spill] sm:$0xff] }
  0xd3   :  { %v1157_v26 = vsel %vm1145_vm6, %v7692_v52, %v1156_v57  ;;  %v1162_v15 = vsel %vm1145_vm6, %v7693_v30, %v1161_v24  ;;  %v1167_v62 = vsel %vm1145_vm6, %v7694_v31, %v1166_v49  ;;  %v1171_v53 = vsel %vm1146_vm8, %v7696_v19, %v7695_v0  ;;  %v4619_v39 = vld [vmem:[%s7013_s3 + $0x2b0] sm:$0xff]  ;;  %v4624_v57 = vld [vmem:[%s7013_s3 + $0x2b8] sm:$0xff]  ;;  %v4629_v24 = vld [vmem:[%s7013_s3 + $0x2c0] sm:$0xff] }
  0xd4   :  { %v1135_v36 = vadd.f32 %v1134_v6, %v1133_v14  ;;  %v1158_v49 = vsel %vm1144_vm7, %v7673_v42, %v1157_v26  ;;  %v1163_v6 = vsel %vm1144_vm7, %v7674_v46, %v1162_v15  ;;  %v1168_v14 = vsel %vm1144_vm7, %v7675_v1, %v1167_v62  ;;  %v7697_v31 = vld [vmem:[#allocation24_spill] sm:$0xff]  ;;  %v7698_v52 = vld [vmem:[#allocation41_spill] sm:$0xff]  ;;  %v7699_v42 = vld [vmem:[#allocation62_spill] sm:$0xff] }
  0xd5   :  { %v1159_v30 = vsel %vm1143_vm4, %v7697_v31, %v1158_v49  ;;  %v1164_v19 = vsel %vm1143_vm4, %v7698_v52, %v1163_v6  ;;  %v1169_v26 = vsel %vm1143_vm4, %v7653_v48, %v1168_v14  ;;  %v1172_v15 = vsel %vm1145_vm6, %v7699_v42, %v1171_v53  ;;  %v7700_v0 = vld [vmem:[#allocation36_spill] sm:$0xff]  ;;  %v7701_v31 = vld [vmem:[#allocation47_spill] sm:$0xff] }
  0xd6   :  { %v1136_v46 = vadd.f32 %v1135_v36, %v1130_v34  ;;  %v1160_v62 = vsel %vm1142_vm5, %v7700_v0, %v1159_v30  ;;  %v1165_v49 = vsel %vm1142_vm5, %v7679_v22, %v1164_v19  ;;  %v1170_v6 = vsel %vm1142_vm5, %v7701_v31, %v1169_v26  ;;  %v7702_v30 = vld [vmem:[#allocation8_spill] sm:$0xff] }
  0xd7   :  { %v1173_v14 = vsel %vm1144_vm7, %v7656_v56, %v1172_v15  ;;  %v1176_v48 = vmul.f32 %v4619_v39, %v1160_v62  ;;  %v1177_v34 = vmul.f32 %v4624_v57, %v1165_v49  ;;  %v1179_v36 = vmul.f32 %v4629_v24, %v1170_v6 }
  0xd8   :  { %2432 = vst [vmem:[%s7015_s4 + $0x58] sm:$0xff] %v1136_v46  ;;  %v1174_v19 = vsel %vm1143_vm4, %v7659_v29, %v1173_v14  ;;  %v1184_v53 = vsel %vm1146_vm8, %v7681_v47, %v7657_v18  ;;  %v1189_v26 = vsel %vm1146_vm8, %v7702_v30, %v3561_v40  ;;  %v1194_v15 = vsel %vm1146_vm8, %v3502_v50, %v3563_v35  ;;  %v7703_v46 = vld [vmem:[#allocation48_spill] sm:$0xff]  ;;  %v7704_v40 = vld [vmem:[#allocation3_spill] sm:$0xff]  ;;  %v7705_v35 = vld [vmem:[#allocation5_spill] sm:$0xff] }
  0xd9   :  { %v1175_v62 = vsel %vm1142_vm5, %v7703_v46, %v1174_v19  ;;  %v1178_v49 = vadd.f32 %v1177_v34, %v1176_v48  ;;  %v1185_v6 = vsel %vm1145_vm6, %v3409_v16, %v1184_v53  ;;  %v1190_v14 = vsel %vm1145_vm6, %v3436_v61, %v1189_v26 }
  0xda   :  { %v1186_v30 = vsel %vm1144_vm7, %v3277_v11, %v1185_v6  ;;  %v1191_v50 = vsel %vm1144_vm7, %v7704_v40, %v1190_v14  ;;  %v1195_v48 = vsel %vm1145_vm6, %v7705_v35, %v1194_v15  ;;  %v1199_v34 = vsel %vm1146_vm8, %v7622_v23, %v7621_v43  ;;  %v7706_v6 = vld [vmem:[#allocation16_spill] sm:$0xff] }
  0xdb   :  { %v1180_v19 = vadd.f32 %v1179_v36, %v1178_v49  ;;  %v1187_v53 = vsel %vm1143_vm4, %v7534_v45, %v1186_v30  ;;  %v1192_v26 = vsel %vm1143_vm4, %v7683_v41, %v1191_v50  ;;  %v1196_v14 = vsel %vm1144_vm7, %v7706_v6, %v1195_v48  ;;  %v7707_v49 = vld [vmem:[#allocation4_spill] sm:$0xff] }
  0xdc   :  { %v1188_v15 = vsel %vm1142_vm5, %v7684_v20, %v1187_v53  ;;  %v1193_v36 = vsel %vm1142_vm5, %v7685_v2, %v1192_v26  ;;  %v1197_v30 = vsel %vm1143_vm4, %v7707_v49, %v1196_v14  ;;  %v1200_v50 = vsel %vm1145_vm6, %v7626_v38, %v1199_v34 }
  0xdd   :  { %v1181_v41 = vadd.f32 %v1180_v19, %v1175_v62  ;;  %v1198_v48 = vsel %vm1142_vm5, %v4237_v55, %v1197_v30  ;;  %v1201_v53 = vsel %vm1144_vm7, %v7630_v59, %v1200_v50  ;;  %v1204_v20 = vmul.f32 %v4619_v39, %v1188_v15  ;;  %v7708_v15 = vld [vmem:[#allocation27_spill] sm:$0xff] }
  0xde   :  { %v1202_v26 = vsel %vm1143_vm4, %v7631_v10, %v1201_v53  ;;  %v1205_v14 = vmul.f32 %v4624_v57, %v1193_v36  ;;  %v1207_v2 = vmul.f32 %v4629_v24, %v1198_v48  ;;  %v1212_v62 = vsel %vm1146_vm8, %v3745_v63, %v3855_v27  ;;  %v7709_v36 = vld [vmem:[#allocation37_spill] sm:$0xff] }
  0xdf   :  { %2437 = vst [vmem:[%s7015_s4 + $0x60] sm:$0xff] %v1181_v41  ;;  %v1203_v34 = vsel %vm1142_vm5, %v4505_v32, %v1202_v26  ;;  %v1213_v19 = vsel %vm1145_vm6, %v7686_v8, %v1212_v62  ;;  %v1217_v30 = vsel %vm1146_vm8, %v7709_v36, %v7708_v15  ;;  %v1222_v50 = vsel %vm1146_vm8, %v3803_v54, %v3896_v7  ;;  %v7711_v7 = vld [vmem:[#allocation52_spill] sm:$0xff] }
  0xe0   :  { %v1206_v48 = vadd.f32 %v1205_v14, %v1204_v20  ;;  %v1214_v41 = vsel %vm1144_vm7, %v3558_v25, %v1213_v19  ;;  %v1218_v53 = vsel %vm1145_vm6, %v3694_v44, %v1217_v30  ;;  %v1223_v26 = vsel %vm1145_vm6, %v3696_v60, %v1222_v50  ;;  %v7710_v19 = vld [vmem:[#allocation39_spill] sm:$0xff]  ;;  %v7712_v60 = vld [vmem:[#allocation2_spill] sm:$0xff] }
  0xe1   :  { %v1215_v62 = vsel %vm1143_vm4, %v7618_v21, %v1214_v41  ;;  %v1219_v20 = vsel %vm1144_vm7, %v3578_v3, %v1218_v53  ;;  %v1224_v14 = vsel %vm1144_vm7, %v3620_v28, %v1223_v26  ;;  %v1227_v30 = vsel %vm1146_vm8, %v7710_v19, %v3877_v9  ;;  %v4795_v26 = vld [vmem:[%s7013_s3 + $0x208] sm:$0xff] }
  0xe2   :  { %v1208_v54 = vadd.f32 %v1207_v2, %v1206_v48  ;;  %v1216_v50 = vsel %vm1142_vm5, %v7711_v7, %v1215_v62  ;;  %v1220_v41 = vsel %vm1143_vm4, %v7712_v60, %v1219_v20  ;;  %v1225_v53 = vsel %vm1143_vm4, %v7620_v58, %v1224_v14 }
  0xe3   :  { %v1221_v2 = vsel %vm1142_vm5, %v4551_v33, %v1220_v41  ;;  %v1226_v48 = vsel %vm1142_vm5, %v4572_v12, %v1225_v53  ;;  %v1228_v62 = vsel %vm1145_vm6, %v3692_v13, %v1227_v30  ;;  %v1232_v20 = vmul.f32 %v4619_v39, %v1216_v50  ;;  %v7716_v30 = vld [vmem:[#allocation76_spill] sm:$0xff] }
  0xe4   :  { %v1209_v14 = vadd.f32 %v1208_v54, %v1203_v34  ;;  %v1229_v58 = vsel %vm1144_vm7, %v3664_v5, %v1228_v62  ;;  %v1233_v28 = vmul.f32 %v4624_v57, %v1221_v2  ;;  %v1235_v7 = vmul.f32 %v4629_v24, %v1226_v48  ;;  %v7714_v57 = vld [vmem:[#allocation64_spill] sm:$0xff]  ;;  %v7715_v34 = vld [vmem:[#allocation86_spill] sm:$0xff] }
  0xe5   :  { %v1230_v41 = vsel %vm1143_vm4, %v3661_v4, %v1229_v58  ;;  %vm1243_vm9 = vcmp.lt.f32.partialorder %v4795_v26, 2.5  ;;  %vm1244_vm10 = vcmp.lt.f32.partialorder %v4795_v26, 3.5  ;;  %vm1246_vm11 = vcmp.lt.f32.partialorder %v4795_v26, 5.5  ;;  %v7713_v58 = vld [vmem:[#allocation84_spill] sm:$0xff]  ;;  %v7720_v62 = vld [vmem:[#allocation46_spill] sm:$0xff] }
  0xe6   :  { %2438 = vst [vmem:[%s7015_s4 + $0x68] sm:$0xff] %v1209_v14  ;;  %v1231_v54 = vsel %vm1142_vm5, %v7663_v51, %v1230_v41  ;;  %v1234_v39 = vadd.f32 %v1233_v28, %v1232_v20  ;;  %vm1245_vm12 = vcmp.lt.f32.partialorder %v4795_v26, 4.5  ;;  %vm1247_vm13 = vcmp.lt.f32.partialorder %v4795_v26, 6.5  ;;  %v7717_v53 = vld [vmem:[#allocation80_spill] sm:$0xff]  ;;  %v7718_v28 = vld [vmem:[#allocation85_spill] sm:$0xff] }
  0xe7   :  { %v1257_v24 = vsel %vm1247_vm13, %v7714_v57, %v7713_v58  ;;  %v1262_v50 = vsel %vm1247_vm13, %v7716_v30, %v7715_v34  ;;  %v1267_v51 = vsel %vm1247_vm13, %v7717_v53, %v7690_v37  ;;  %v1272_v2 = vsel %vm1247_vm13, %v7719_v17, %v7718_v28  ;;  %v7721_v14 = vld [vmem:[#allocation57_spill] sm:$0xff]  ;;  %v4854_v53 = vld [vmem:[%s7013_s3 + $0x2c8] sm:$0xff]  ;;  %v7725_v28 = vld [vmem:[#allocation24_spill] sm:$0xff] }
  0xe8   :  { %v1236_v48 = vadd.f32 %v1235_v7, %v1234_v39  ;;  %v1258_v20 = vsel %vm1246_vm11, %v7720_v62, %v1257_v24  ;;  %v1263_v41 = vsel %vm1246_vm11, %v7721_v14, %v1262_v50  ;;  %v7722_v30 = vld [vmem:[#allocation61_spill] sm:$0xff]  ;;  %v4859_v7 = vld [vmem:[%s7013_s3 + $0x2d0] sm:$0xff]  ;;  %v7723_v24 = vld [vmem:[#allocation18_spill] sm:$0xff]  ;;  %v1273_v62 = vsel %vm1246_vm11, %v7699_v42, %v1272_v2 }
  0xe9   :  { %v1268_v34 = vsel %vm1246_vm11, %v7722_v30, %v1267_v51  ;;  %v4864_v39 = vld [vmem:[%s7013_s3 + $0x2d8] sm:$0xff]  ;;  %v1259_v50 = vsel %vm1245_vm12, %v7723_v24, %v1258_v20  ;;  %v7724_v51 = vld [vmem:[#allocation38_spill] sm:$0xff]  ;;  %v7726_v24 = vld [vmem:[#allocation44_spill] sm:$0xff] }
  0xea   :  { %v1264_v30 = vsel %vm1245_vm12, %v7724_v51, %v1263_v41  ;;  %v1269_v14 = vsel %vm1245_vm12, %v7675_v1, %v1268_v34  ;;  %v1237_v17 = vadd.f32 %v1236_v48, %v1231_v54  ;;  %v1260_v37 = vsel %vm1244_vm10, %v7725_v28, %v1259_v50  ;;  %v7728_v50 = vld [vmem:[#allocation8_spill] sm:$0xff]  ;;  %v7745_v26 = vld [vmem:[#allocation85_spill] sm:$0xff] }
  0xeb   :  { %v1265_v20 = vsel %vm1244_vm10, %v7698_v52, %v1264_v30  ;;  %v1270_v41 = vsel %vm1244_vm10, %v7726_v24, %v1269_v14  ;;  %v1261_v34 = vsel %vm1243_vm9, %v7700_v0, %v1260_v37  ;;  %v1274_v30 = vsel %vm1245_vm12, %v7656_v56, %v1273_v62 }
  0xec   :  { %v1266_v54 = vsel %vm1243_vm9, %v7679_v22, %v1265_v20  ;;  %v1271_v2 = vsel %vm1243_vm9, %v7701_v31, %v1270_v41  ;;  %2439 = vst [vmem:[%s7015_s4 + $0x70] sm:$0xff] %v1237_v17  ;;  %v1275_v0 = vsel %vm1244_vm10, %v7659_v29, %v1274_v30  ;;  %v1277_v37 = vmul.f32 %v4854_v53, %v1261_v34  ;;  %v7727_v17 = vld [vmem:[#allocation71_spill] sm:$0xff]  ;;  %v7730_v34 = vld [vmem:[#allocation12_spill] sm:$0xff] }
  0xed   :  { %v1278_v22 = vmul.f32 %v4859_v7, %v1266_v54  ;;  %v1280_v48 = vmul.f32 %v4864_v39, %v1271_v2  ;;  %v1276_v14 = vsel %vm1243_vm9, %v7703_v46, %v1275_v0  ;;  %v1285_v62 = vsel %vm1247_vm13, %v7681_v47, %v7657_v18  ;;  %v7729_v41 = vld [vmem:[#allocation31_spill] sm:$0xff] }
  0xee   :  { %v1290_v20 = vsel %vm1247_vm13, %v7728_v50, %v7727_v17  ;;  %v1295_v54 = vsel %vm1247_vm13, %v7730_v34, %v7729_v41  ;;  %v1286_v30 = vsel %vm1246_vm11, %v3409_v16, %v1285_v62  ;;  %v1300_v62 = vsel %vm1247_vm13, %v7622_v23, %v7621_v43 }
  0xef   :  { %v1279_v2 = vadd.f32 %v1278_v22, %v1277_v37  ;;  %v1291_v0 = vsel %vm1246_vm11, %v3436_v61, %v1290_v20  ;;  %v1296_v47 = vsel %vm1246_vm11, %v7705_v35, %v1295_v54  ;;  %v1287_v50 = vsel %vm1245_vm12, %v3277_v11, %v1286_v30  ;;  %v7731_v35 = vld [vmem:[#allocation83_spill] sm:$0xff] }
  0xf0   :  { %v1292_v37 = vsel %vm1245_vm12, %v7704_v40, %v1291_v0  ;;  %v1297_v22 = vsel %vm1245_vm12, %v7706_v6, %v1296_v47  ;;  %v1288_v54 = vsel %vm1244_vm10, %v7534_v45, %v1287_v50  ;;  %v7732_v40 = vld [vmem:[#allocation50_spill] sm:$0xff]  ;;  %v7733_v6 = vld [vmem:[#allocation51_spill] sm:$0xff] }
  0xf1   :  { %v1281_v20 = vadd.f32 %v1280_v48, %v1279_v2  ;;  %v1293_v30 = vsel %vm1244_vm10, %v7731_v35, %v1292_v37  ;;  %v1298_v0 = vsel %vm1244_vm10, %v7707_v49, %v1297_v22  ;;  %v1289_v47 = vsel %vm1243_vm9, %v7732_v40, %v1288_v54 }
  0xf2   :  { %v1294_v48 = vsel %vm1243_vm9, %v7733_v6, %v1293_v30  ;;  %v1299_v50 = vsel %vm1243_vm9, %v4237_v55, %v1298_v0  ;;  %v1301_v2 = vsel %vm1246_vm11, %v7626_v38, %v1300_v62  ;;  %v1305_v49 = vmul.f32 %v4854_v53, %v1289_v47 }
  0xf3   :  { %v1282_v37 = vadd.f32 %v1281_v20, %v1276_v14  ;;  %v1302_v22 = vsel %vm1245_vm12, %v7630_v59, %v1301_v2  ;;  %v1306_v54 = vmul.f32 %v4859_v7, %v1294_v48  ;;  %v1308_v6 = vmul.f32 %v4864_v39, %v1299_v50 }
  0xf4   :  { %v1303_v30 = vsel %vm1244_vm10, %v7631_v10, %v1302_v22  ;;  %v1313_v62 = vsel %vm1247_vm13, %v3745_v63, %v3855_v27  ;;  %v1318_v14 = vsel %vm1247_vm13, %v7709_v36, %v7708_v15  ;;  %v7735_v22 = vld [vmem:[#allocation40_spill] sm:$0xff] }
  0xf5   :  { %2444 = vst [vmem:[%s7015_s4 + $0x78] sm:$0xff] %v1282_v37  ;;  %v1304_v20 = vsel %vm1243_vm9, %v4505_v32, %v1303_v30  ;;  %v1307_v0 = vadd.f32 %v1306_v54, %v1305_v49  ;;  %v1314_v47 = vsel %vm1246_vm11, %v7686_v8, %v1313_v62  ;;  %v1319_v48 = vsel %vm1246_vm11, %v3694_v44, %v1318_v14  ;;  %v7734_v37 = vld [vmem:[#allocation26_spill] sm:$0xff] }
  0xf6   :  { %v1315_v50 = vsel %vm1245_vm12, %v3558_v25, %v1314_v47  ;;  %v1320_v2 = vsel %vm1245_vm12, %v3578_v3, %v1319_v48  ;;  %v1323_v49 = vsel %vm1247_vm13, %v7735_v22, %v7734_v37  ;;  %v1328_v54 = vsel %vm1247_vm13, %v7710_v19, %v3877_v9  ;;  %v7736_v47 = vld [vmem:[#allocation35_spill] sm:$0xff]  ;;  %v7737_v3 = vld [vmem:[#allocation52_spill] sm:$0xff] }
  0xf7   :  { %v1309_v30 = vadd.f32 %v1308_v6, %v1307_v0  ;;  %v1316_v62 = vsel %vm1244_vm10, %v7618_v21, %v1315_v50  ;;  %v1321_v14 = vsel %vm1244_vm10, %v7712_v60, %v1320_v2  ;;  %v1324_v48 = vsel %vm1246_vm11, %v7736_v47, %v1323_v49  ;;  %v7738_v0 = vld [vmem:[#allocation19_spill] sm:$0xff]  ;;  %v5033_v49 = vld [vmem:[%s7013_s3 + $0x210] sm:$0xff] }
  0xf8   :  { %v1317_v22 = vsel %vm1243_vm9, %v7737_v3, %v1316_v62  ;;  %v1322_v6 = vsel %vm1243_vm9, %v4551_v33, %v1321_v14  ;;  %v1325_v50 = vsel %vm1245_vm12, %v7738_v0, %v1324_v48  ;;  %v1329_v2 = vsel %vm1246_vm11, %v3692_v13, %v1328_v54  ;;  %v7739_v60 = vld [vmem:[#allocation11_spill] sm:$0xff] }
  0xf9   :  { %v1310_v47 = vadd.f32 %v1309_v30, %v1304_v20  ;;  %v1326_v62 = vsel %vm1244_vm10, %v7739_v60, %v1325_v50  ;;  %v1330_v14 = vsel %vm1245_vm12, %v3664_v5, %v1329_v2  ;;  %v1333_v48 = vmul.f32 %v4854_v53, %v1317_v22  ;;  %v5059_v53 = vld [vmem:[%s7014_s1 + $0x10] sm:$0xff]  ;;  %v7743_v2 = vld [vmem:[#allocation87_spill] sm:$0xff] }
  0xfa   :  { %v1327_v54 = vsel %vm1243_vm9, %v4572_v12, %v1326_v62  ;;  %v1331_v13 = vsel %vm1244_vm10, %v3661_v4, %v1330_v14  ;;  %v1334_v20 = vmul.f32 %v4859_v7, %v1322_v6  ;;  %vm1344_vm14 = vcmp.lt.f32.partialorder %v5033_v49, 2.5  ;;  %7740 = vst [vmem:[#allocation55_spill] sm:$0xff] %v5059_v53  ;;  %v7742_v6 = vld [vmem:[#allocation76_spill] sm:$0xff] }
  0xfb   :  { %2445 = vst [vmem:[%s7015_s4 + $0x80] sm:$0xff] %v1310_v47  ;;  %v1336_v30 = vmul.f32 %v4864_v39, %v1327_v54  ;;  %vm1345_vm15 = vcmp.lt.f32.partialorder %v5033_v49, 3.5  ;;  %vm1347_vm0 = vcmp.lt.f32.partialorder %v5033_v49, 5.5  ;;  %v1332_v7 = vsel %vm1243_vm9, %v5059_v53, %v1331_v13  ;;  %v7741_v47 = vld [vmem:[#allocation86_spill] sm:$0xff]  ;;  %v7744_v62 = vld [vmem:[#allocation80_spill] sm:$0xff] }
  0xfc   :  { %v1335_v22 = vadd.f32 %v1334_v20, %v1333_v48  ;;  %vm1346_vm1 = vcmp.lt.f32.partialorder %v5033_v49, 4.5  ;;  %vm1348_vm2 = vcmp.lt.f32.partialorder %v5033_v49, 6.5  ;;  %v7746_v14 = vld [vmem:[#allocation72_spill] sm:$0xff]  ;;  %v7747_v20 = vld [vmem:[#allocation46_spill] sm:$0xff] }
  0xfd   :  { %v1358_v39 = vsel %vm1348_vm2, %v7714_v57, %v7713_v58  ;;  %v1363_v50 = vsel %vm1348_vm2, %v7742_v6, %v7741_v47  ;;  %v1368_v13 = vsel %vm1348_vm2, %v7744_v62, %v7743_v2  ;;  %v1373_v48 = vsel %vm1348_vm2, %v7746_v14, %v7745_v26  ;;  %v7748_v58 = vld [vmem:[#allocation57_spill] sm:$0xff]  ;;  %v5094_v62 = vld [vmem:[%s7013_s3 + $0x2e0] sm:$0xff]  ;;  %v7770_v49 = vld [vmem:[#allocation80_spill] sm:$0xff] }
  0xfe   :  { %v1337_v54 = vadd.f32 %v1336_v30, %v1335_v22  ;;  %v1359_v57 = vsel %vm1347_vm0, %v7747_v20, %v1358_v39  ;;  %v1364_v53 = vsel %vm1347_vm0, %v7748_v58, %v1363_v50  ;;  %v7749_v6 = vld [vmem:[#allocation61_spill] sm:$0xff]  ;;  %v5099_v30 = vld [vmem:[%s7013_s3 + $0x2e8] sm:$0xff]  ;;  %v5104_v22 = vld [vmem:[%s7013_s3 + $0x2f0] sm:$0xff]  ;;  %v1374_v26 = vsel %vm1347_vm0, %v7699_v42, %v1373_v48 }
  0xff   :  { %v1369_v47 = vsel %vm1347_vm0, %v7749_v6, %v1368_v13  ;;  %v7750_v39 = vld [vmem:[#allocation18_spill] sm:$0xff]  ;;  %v1365_v13 = vsel %vm1346_vm1, %v7724_v51, %v1364_v53  ;;  %v5138_v48 = vld [vmem:[%s7012_s0 + $0x8] sm:$0xff] }
 0x100   :  { %v1360_v50 = vsel %vm1346_vm1, %v7750_v39, %v1359_v57  ;;  %v1370_v14 = vsel %vm1346_vm1, %v7675_v1, %v1369_v47  ;;  %v1338_v6 = vadd.f32 %v1337_v54, %v1332_v7  ;;  %v1366_v57 = vsel %vm1345_vm15, %v7698_v52, %v1365_v13  ;;  %v5130_v47 = vld [vmem:[%s7012_s0] sm:$0xff]  ;;  %7752 = vst [vmem:[#allocation58_spill] sm:$0xff] %v5138_v48 }
 0x101   :  { %v1361_v58 = vsel %vm1345_vm15, %v7725_v28, %v1360_v50  ;;  %v1371_v53 = vsel %vm1345_vm15, %v7726_v24, %v1370_v14  ;;  %7751 = vst [vmem:[#allocation53_spill] sm:$0xff] %v5130_v47  ;;  %v1367_v54 = vsel %vm1344_vm14, %v5138_v48, %v1366_v57  ;;  %v1375_v50 = vsel %vm1346_vm1, %v7656_v56, %v1374_v26  ;;  %v7753_v26 = vld [vmem:[#allocation14_spill] sm:$0xff] }
 0x102   :  { %v1362_v7 = vsel %vm1344_vm14, %v5130_v47, %v1361_v58  ;;  %v1372_v14 = vsel %vm1344_vm14, %v7701_v31, %v1371_v53  ;;  %2446 = vst [vmem:[%s7015_s4 + $0x88] sm:$0xff] %v1338_v6  ;;  %v1376_v58 = vsel %vm1345_vm15, %v7659_v29, %v1375_v50  ;;  %v1379_v57 = vmul.f32 %v5099_v30, %v1367_v54  ;;  %v7754_v6 = vld [vmem:[#allocation8_spill] sm:$0xff] }
 0x103   :  { %v1378_v13 = vmul.f32 %v5094_v62, %v1362_v7  ;;  %v1381_v48 = vmul.f32 %v5104_v22, %v1372_v14  ;;  %v1377_v31 = vsel %vm1344_vm14, %v7703_v46, %v1376_v58  ;;  %v1386_v53 = vsel %vm1348_vm2, %v7753_v26, %v7657_v18  ;;  %v7755_v46 = vld [vmem:[#allocation5_spill] sm:$0xff] }
 0x104   :  { %v1391_v50 = vsel %vm1348_vm2, %v7754_v6, %v7727_v17  ;;  %v1396_v7 = vsel %vm1348_vm2, %v7730_v34, %v7729_v41  ;;  %v1387_v14 = vsel %vm1347_vm0, %v3409_v16, %v1386_v53  ;;  %v7756_v17 = vld [vmem:[#allocation3_spill] sm:$0xff] }
 0x105   :  { %v1380_v54 = vadd.f32 %v1379_v57, %v1378_v13  ;;  %v1392_v58 = vsel %vm1347_vm0, %v3436_v61, %v1391_v50  ;;  %v1397_v26 = vsel %vm1347_vm0, %v7755_v46, %v1396_v7  ;;  %v1388_v6 = vsel %vm1346_vm1, %v3277_v11, %v1387_v14  ;;  %v7757_v57 = vld [vmem:[#allocation16_spill] sm:$0xff] }
 0x106   :  { %v1393_v13 = vsel %vm1346_vm1, %v7756_v17, %v1392_v58  ;;  %v1398_v53 = vsel %vm1346_vm1, %v7757_v57, %v1397_v26  ;;  %v1401_v50 = vsel %vm1348_vm2, %v7622_v23, %v7621_v43  ;;  %v1389_v7 = vsel %vm1345_vm15, %v7534_v45, %v1388_v6  ;;  %v7758_v46 = vld [vmem:[#allocation4_spill] sm:$0xff]  ;;  %v7759_v57 = vld [vmem:[#allocation51_spill] sm:$0xff] }
 0x107   :  { %v1382_v61 = vadd.f32 %v1381_v48, %v1380_v54  ;;  %v1394_v14 = vsel %vm1345_vm15, %v7731_v35, %v1393_v13  ;;  %v1399_v58 = vsel %vm1345_vm15, %v7758_v46, %v1398_v53  ;;  %v1390_v26 = vsel %vm1344_vm14, %v7732_v40, %v1389_v7 }
 0x108   :  { %v1395_v48 = vsel %vm1344_vm14, %v7759_v57, %v1394_v14  ;;  %v1400_v6 = vsel %vm1344_vm14, %v4237_v55, %v1399_v58  ;;  %v1402_v54 = vsel %vm1347_vm0, %v7626_v38, %v1401_v50  ;;  %v1406_v46 = vmul.f32 %v5094_v62, %v1390_v26  ;;  %v5224_v14 = vld [vmem:[%s7013_s3 + $0x218] sm:$0xff] }
 0x109   :  { %v1383_v13 = vadd.f32 %v1382_v61, %v1377_v31  ;;  %v1403_v53 = vsel %vm1346_vm1, %v7630_v59, %v1402_v54  ;;  %v1407_v7 = vmul.f32 %v5099_v30, %v1395_v48  ;;  %v1409_v50 = vmul.f32 %v5104_v22, %v1400_v6 }
 0x10a   :  { %v1404_v58 = vsel %vm1345_vm15, %v7631_v10, %v1403_v53  ;;  %v1414_v61 = vsel %vm1348_vm2, %v3745_v63, %v3855_v27  ;;  %v1419_v31 = vsel %vm1348_vm2, %v7709_v36, %v7708_v15  ;;  %vm1446_vm3 = vcmp.lt.f32.partialorder %v5224_v14, 3.5 }
 0x10b   :  { %2451 = vst [vmem:[%s7015_s4 + $0x90] sm:$0xff] %v1383_v13  ;;  %v1405_v26 = vsel %vm1344_vm14, %v4505_v32, %v1404_v58  ;;  %v1408_v48 = vadd.f32 %v1407_v7, %v1406_v46  ;;  %v1415_v6 = vsel %vm1347_vm0, %v7686_v8, %v1414_v61  ;;  %v1420_v54 = vsel %vm1347_vm0, %v3694_v44, %v1419_v31  ;;  %v7760_v13 = vld [vmem:[#allocation28_spill] sm:$0xff] }
 0x10c   :  { %vm1445_vm4 = vcmp.lt.f32.partialorder %v5224_v14, 2.5  ;;  %v1416_v53 = vsel %vm1346_vm1, %v3558_v25, %v1415_v6  ;;  %v1421_v36 = vsel %vm1346_vm1, %v7760_v13, %v1420_v54  ;;  %v7761_v46 = vld [vmem:[#allocation40_spill] sm:$0xff]  ;;  %v1429_v58 = vsel %vm1348_vm2, %v7710_v19, %v3877_v9  ;;  %v7762_v6 = vld [vmem:[#allocation2_spill] sm:$0xff]  ;;  %v7763_v54 = vld [vmem:[#allocation35_spill] sm:$0xff] }
 0x10d   :  { %v1424_v7 = vsel %vm1348_vm2, %v7761_v46, %v7734_v37  ;;  %v1410_v61 = vadd.f32 %v1409_v50, %v1408_v48  ;;  %v1417_v31 = vsel %vm1345_vm15, %v7618_v21, %v1416_v53  ;;  %v1422_v44 = vsel %vm1345_vm15, %v7762_v6, %v1421_v36  ;;  %v7764_v53 = vld [vmem:[#allocation20_spill] sm:$0xff] }
 0x10e   :  { %v1425_v13 = vsel %vm1347_vm0, %v7763_v54, %v1424_v7  ;;  %v1418_v25 = vsel %vm1344_vm14, %v7737_v3, %v1417_v31  ;;  %v1423_v50 = vsel %vm1344_vm14, %v4551_v33, %v1422_v44  ;;  %v1430_v36 = vsel %vm1347_vm0, %v7764_v53, %v1429_v58  ;;  %v7765_v58 = vld [vmem:[#allocation55_spill] sm:$0xff] }
 0x10f   :  { %v1426_v48 = vsel %vm1346_vm1, %v7738_v0, %v1425_v13  ;;  %v1411_v6 = vadd.f32 %v1410_v61, %v1405_v26  ;;  %v1431_v31 = vsel %vm1346_vm1, %v3664_v5, %v1430_v36  ;;  %v1434_v3 = vmul.f32 %v5094_v62, %v1418_v25  ;;  %v7767_v36 = vld [vmem:[#allocation64_spill] sm:$0xff] }
 0x110   :  { %v1427_v7 = vsel %vm1345_vm15, %v7739_v60, %v1426_v48  ;;  %v1432_v13 = vsel %vm1345_vm15, %v3661_v4, %v1431_v31  ;;  %v1435_v26 = vmul.f32 %v5099_v30, %v1423_v50  ;;  %vm1447_vm5 = vcmp.lt.f32.partialorder %v5224_v14, 4.5  ;;  %v7766_v48 = vld [vmem:[#allocation84_spill] sm:$0xff]  ;;  %v7768_v50 = vld [vmem:[#allocation86_spill] sm:$0xff] }
 0x111   :  { %v1428_v44 = vsel %vm1344_vm14, %v4572_v12, %v1427_v7  ;;  %2452 = vst [vmem:[%s7015_s4 + $0x98] sm:$0xff] %v1411_v6  ;;  %v1433_v25 = vsel %vm1344_vm14, %v7765_v58, %v1432_v13  ;;  %vm1448_vm6 = vcmp.lt.f32.partialorder %v5224_v14, 5.5  ;;  %vm1449_vm7 = vcmp.lt.f32.partialorder %v5224_v14, 6.5  ;;  %v7769_v7 = vld [vmem:[#allocation76_spill] sm:$0xff]  ;;  %v7772_v13 = vld [vmem:[#allocation61_spill] sm:$0xff] }
 0x112   :  { %v1437_v62 = vmul.f32 %v5104_v22, %v1428_v44  ;;  %v1436_v61 = vadd.f32 %v1435_v26, %v1434_v3  ;;  %v1459_v30 = vsel %vm1449_vm7, %v7767_v36, %v7766_v48  ;;  %v1464_v6 = vsel %vm1449_vm7, %v7769_v7, %v7768_v50  ;;  %v7771_v3 = vld [vmem:[#allocation57_spill] sm:$0xff]  ;;  %v7774_v48 = vld [vmem:[#allocation72_spill] sm:$0xff] }
 0x113   :  { %v1469_v22 = vsel %vm1449_vm7, %v7770_v49, %v7743_v2  ;;  %v1460_v31 = vsel %vm1448_vm6, %v7747_v20, %v1459_v30  ;;  %v1465_v44 = vsel %vm1448_vm6, %v7771_v3, %v1464_v6  ;;  %v7773_v36 = vld [vmem:[#allocation85_spill] sm:$0xff]  ;;  %v5344_v30 = vld [vmem:[%s7013_s3 + $0x300] sm:$0xff]  ;;  %v5349_v6 = vld [vmem:[%s7013_s3 + $0x308] sm:$0xff] }
 0x114   :  { %v1470_v26 = vsel %vm1448_vm6, %v7772_v13, %v1469_v22  ;;  %v1474_v7 = vsel %vm1449_vm7, %v7774_v48, %v7773_v36  ;;  %v1438_v50 = vadd.f32 %v1437_v62, %v1436_v61  ;;  %v5339_v49 = vld [vmem:[%s7013_s3 + $0x2f8] sm:$0xff]  ;;  %v1461_v22 = vsel %vm1447_vm5, %v7750_v39, %v1460_v31 }
 0x115   :  { %v1466_v62 = vsel %vm1447_vm5, %v7724_v51, %v1465_v44  ;;  %v1471_v61 = vsel %vm1447_vm5, %v7675_v1, %v1470_v26  ;;  %v1462_v13 = vsel %vm1446_vm3, %v7725_v28, %v1461_v22  ;;  %v1475_v44 = vsel %vm1448_vm6, %v7699_v42, %v1474_v7  ;;  %v7775_v1 = vld [vmem:[#allocation58_spill] sm:$0xff] }
 0x116   :  { %v1467_v3 = vsel %vm1446_vm3, %v7698_v52, %v1466_v62  ;;  %v1472_v31 = vsel %vm1446_vm3, %v7726_v24, %v1471_v61  ;;  %v1439_v51 = vadd.f32 %v1438_v50, %v1433_v25  ;;  %v1463_v26 = vsel %vm1445_vm4, %v5130_v47, %v1462_v13  ;;  %v5381_v62 = vld [vmem:[%s7012_s0 + $0x10] sm:$0xff] }
 0x117   :  { %v1468_v22 = vsel %vm1445_vm4, %v7775_v1, %v1467_v3  ;;  %7776 = vst [vmem:[#allocation54_spill] sm:$0xff] %v5381_v62  ;;  %v1473_v61 = vsel %vm1445_vm4, %v5381_v62, %v1472_v31  ;;  %v1476_v25 = vsel %vm1447_vm5, %v7656_v56, %v1475_v44  ;;  %v1479_v50 = vmul.f32 %v5339_v49, %v1463_v26  ;;  %v7777_v31 = vld [vmem:[#allocation14_spill] sm:$0xff]  ;;  %v7778_v44 = vld [vmem:[#allocation71_spill] sm:$0xff]  ;;  %v7779_v56 = vld [vmem:[#allocation8_spill] sm:$0xff] }
 0x118   :  { %v1480_v7 = vmul.f32 %v5344_v30, %v1468_v22  ;;  %v1482_v13 = vmul.f32 %v5349_v6, %v1473_v61  ;;  %2453 = vst [vmem:[%s7015_s4 + $0xa0] sm:$0xff] %v1439_v51  ;;  %v1477_v3 = vsel %vm1446_vm3, %v7659_v29, %v1476_v25  ;;  %v1487_v62 = vsel %vm1449_vm7, %v7777_v31, %v7657_v18  ;;  %v7780_v51 = vld [vmem:[#allocation48_spill] sm:$0xff]  ;;  %v7781_v31 = vld [vmem:[#allocation22_spill] sm:$0xff] }
 0x119   :  { %v1492_v26 = vsel %vm1449_vm7, %v7779_v56, %v7778_v44  ;;  %v1497_v22 = vsel %vm1449_vm7, %v7730_v34, %v7729_v41  ;;  %v1478_v61 = vsel %vm1445_vm4, %v7780_v51, %v1477_v3  ;;  %v1488_v29 = vsel %vm1448_vm6, %v3409_v16, %v1487_v62  ;;  %v7782_v41 = vld [vmem:[#allocation5_spill] sm:$0xff]  ;;  %v7784_v51 = vld [vmem:[#allocation4_spill] sm:$0xff] }
 0x11a   :  { %v1481_v25 = vadd.f32 %v1480_v7, %v1479_v50  ;;  %v1493_v18 = vsel %vm1448_vm6, %v7781_v31, %v1492_v26  ;;  %v1489_v56 = vsel %vm1447_vm5, %v3277_v11, %v1488_v29  ;;  %v1498_v50 = vsel %vm1448_vm6, %v7782_v41, %v1497_v22  ;;  %v7783_v26 = vld [vmem:[#allocation16_spill] sm:$0xff] }
 0x11b   :  { %v1494_v34 = vsel %vm1447_vm5, %v7756_v17, %v1493_v18  ;;  %v1502_v62 = vsel %vm1449_vm7, %v7622_v23, %v7621_v43  ;;  %v1490_v3 = vsel %vm1446_vm3, %v7534_v45, %v1489_v56  ;;  %v1499_v18 = vsel %vm1447_vm5, %v7783_v26, %v1498_v50 }
 0x11c   :  { %v1483_v7 = vadd.f32 %v1482_v13, %v1481_v25  ;;  %v1495_v29 = vsel %vm1446_vm3, %v7731_v35, %v1494_v34  ;;  %v1491_v22 = vsel %vm1445_vm4, %v7732_v40, %v1490_v3  ;;  %v1500_v56 = vsel %vm1446_vm3, %v7784_v51, %v1499_v18 }
 0x11d   :  { %v1496_v13 = vsel %vm1445_vm4, %v7759_v57, %v1495_v29  ;;  %v1503_v34 = vsel %vm1448_vm6, %v7626_v38, %v1502_v62  ;;  %v1501_v50 = vsel %vm1445_vm4, %v4237_v55, %v1500_v56  ;;  %v1507_v3 = vmul.f32 %v5339_v49, %v1491_v22 }
 0x11e   :  { %v1484_v25 = vadd.f32 %v1483_v7, %v1478_v61  ;;  %v1504_v40 = vsel %vm1447_vm5, %v7630_v59, %v1503_v34  ;;  %v1508_v29 = vmul.f32 %v5344_v30, %v1496_v13  ;;  %v1510_v18 = vmul.f32 %v5349_v6, %v1501_v50  ;;  %v7785_v7 = vld [vmem:[#allocation37_spill] sm:$0xff] }
 0x11f   :  { %v1505_v57 = vsel %vm1446_vm3, %v7631_v10, %v1504_v40  ;;  %v1515_v61 = vsel %vm1449_vm7, %v3745_v63, %v3855_v27  ;;  %v1520_v22 = vsel %vm1449_vm7, %v7785_v7, %v7708_v15  ;;  %v1525_v13 = vsel %vm1449_vm7, %v7761_v46, %v7734_v37  ;;  %v7786_v34 = vld [vmem:[#allocation13_spill] sm:$0xff]  ;;  %v7789_v46 = vld [vmem:[#allocation52_spill] sm:$0xff] }
 0x120   :  { %2458 = vst [vmem:[%s7015_s4 + $0xa8] sm:$0xff] %v1484_v25  ;;  %v1506_v55 = vsel %vm1445_vm4, %v4505_v32, %v1505_v57  ;;  %v1516_v62 = vsel %vm1448_vm6, %v7686_v8, %v1515_v61  ;;  %v1509_v56 = vadd.f32 %v1508_v29, %v1507_v3  ;;  %v7787_v50 = vld [vmem:[#allocation33_spill] sm:$0xff]  ;;  %v1526_v57 = vsel %vm1448_vm6, %v7763_v54, %v1525_v13  ;;  %v7788_v8 = vld [vmem:[#allocation28_spill] sm:$0xff]  ;;  %v7790_v54 = vld [vmem:[#allocation2_spill] sm:$0xff] }
 0x121   :  { %v1517_v25 = vsel %vm1447_vm5, %v7786_v34, %v1516_v62  ;;  %v1521_v40 = vsel %vm1448_vm6, %v7787_v50, %v1520_v22  ;;  %v1527_v29 = vsel %vm1447_vm5, %v7738_v0, %v1526_v57  ;;  %v1530_v62 = vsel %vm1449_vm7, %v7710_v19, %v3877_v9 }
 0x122   :  { %v1518_v61 = vsel %vm1446_vm3, %v7618_v21, %v1517_v25  ;;  %v1522_v3 = vsel %vm1447_vm5, %v7788_v8, %v1521_v40  ;;  %v1511_v22 = vadd.f32 %v1510_v18, %v1509_v56  ;;  %v1528_v40 = vsel %vm1446_vm3, %v7739_v60, %v1527_v29 }
 0x123   :  { %v1519_v13 = vsel %vm1445_vm4, %v7789_v46, %v1518_v61  ;;  %v1523_v25 = vsel %vm1446_vm3, %v7790_v54, %v1522_v3  ;;  %v1529_v18 = vsel %vm1445_vm4, %v4572_v12, %v1528_v40  ;;  %v1531_v56 = vsel %vm1448_vm6, %v7764_v53, %v1530_v62  ;;  %v5530_v3 = vld [vmem:[%s7013_s3 + $0x220] sm:$0xff] }
 0x124   :  { %v1524_v57 = vsel %vm1445_vm4, %v4551_v33, %v1523_v25  ;;  %v1535_v61 = vmul.f32 %v5339_v49, %v1519_v13  ;;  %v1512_v29 = vadd.f32 %v1511_v22, %v1506_v55  ;;  %v1532_v25 = vsel %vm1447_vm5, %v3664_v5, %v1531_v56  ;;  %v7792_v55 = vld [vmem:[#allocation64_spill] sm:$0xff]  ;;  %v7793_v13 = vld [vmem:[#allocation86_spill] sm:$0xff] }
 0x125   :  { %v1536_v60 = vmul.f32 %v5344_v30, %v1524_v57  ;;  %v1538_v40 = vmul.f32 %v5349_v6, %v1529_v18  ;;  %v1533_v62 = vsel %vm1446_vm3, %v3661_v4, %v1532_v25  ;;  %vm1546_vm8 = vcmp.lt.f32.partialorder %v5530_v3, 2.5  ;;  %v7791_v6 = vld [vmem:[#allocation84_spill] sm:$0xff]  ;;  %v7796_v25 = vld [vmem:[#allocation57_spill] sm:$0xff] }
 0x126   :  { %vm1547_vm9 = vcmp.lt.f32.partialorder %v5530_v3, 3.5  ;;  %vm1548_vm10 = vcmp.lt.f32.partialorder %v5530_v3, 4.5  ;;  %2459 = vst [vmem:[%s7015_s4 + $0xb0] sm:$0xff] %v1512_v29  ;;  %v1534_v49 = vsel %vm1445_vm4, %v7765_v58, %v1533_v62  ;;  %vm1549_vm11 = vcmp.lt.f32.partialorder %v5530_v3, 5.5  ;;  %v7794_v57 = vld [vmem:[#allocation76_spill] sm:$0xff] }
 0x127   :  { %v1537_v30 = vadd.f32 %v1536_v60, %v1535_v61  ;;  %vm1550_vm12 = vcmp.lt.f32.partialorder %v5530_v3, 6.5  ;;  %v7795_v56 = vld [vmem:[#allocation80_spill] sm:$0xff]  ;;  %v7815_v3 = vld [vmem:[#allocation86_spill] sm:$0xff] }
 0x128   :  { %v1560_v22 = vsel %vm1550_vm12, %v7792_v55, %v7791_v6  ;;  %v1565_v18 = vsel %vm1550_vm12, %v7794_v57, %v7793_v13  ;;  %v1570_v14 = vsel %vm1550_vm12, %v7795_v56, %v7743_v2  ;;  %v1575_v60 = vsel %vm1550_vm12, %v7774_v48, %v7773_v36  ;;  %v7797_v57 = vld [vmem:[#allocation61_spill] sm:$0xff]  ;;  %v5579_v56 = vld [vmem:[%s7013_s3 + $0x310] sm:$0xff] }
 0x129   :  { %v1539_v61 = vadd.f32 %v1538_v40, %v1537_v30  ;;  %v1561_v29 = vsel %vm1549_vm11, %v7747_v20, %v1560_v22  ;;  %v1566_v62 = vsel %vm1549_vm11, %v7796_v25, %v1565_v18  ;;  %v1571_v13 = vsel %vm1549_vm11, %v7797_v57, %v1570_v14  ;;  %v5584_v40 = vld [vmem:[%s7013_s3 + $0x318] sm:$0xff]  ;;  %v5589_v30 = vld [vmem:[%s7013_s3 + $0x320] sm:$0xff] }
 0x12a   :  { %v1562_v22 = vsel %vm1548_vm10, %v7750_v39, %v1561_v29  ;;  %v7798_v18 = vld [vmem:[#allocation38_spill] sm:$0xff]  ;;  %v1576_v20 = vsel %vm1549_vm11, %v7699_v42, %v1575_v60 }
 0x12b   :  { %v1567_v14 = vsel %vm1548_vm10, %v7798_v18, %v1566_v62  ;;  %v7799_v57 = vld [vmem:[#allocation42_spill] sm:$0xff]  ;;  %v1540_v48 = vadd.f32 %v1539_v61, %v1534_v49  ;;  %v1563_v36 = vsel %vm1547_vm9, %v7725_v28, %v1562_v22  ;;  %v7801_v22 = vld [vmem:[#allocation45_spill] sm:$0xff] }
 0x12c   :  { %v1572_v25 = vsel %vm1548_vm10, %v7799_v57, %v1571_v13  ;;  %v1568_v29 = vsel %vm1547_vm9, %v7698_v52, %v1567_v14  ;;  %v1564_v13 = vsel %vm1546_vm8, %v5130_v47, %v1563_v36  ;;  %v7800_v60 = vld [vmem:[#allocation54_spill] sm:$0xff]  ;;  %v1577_v14 = vsel %vm1548_vm10, %v7801_v22, %v1576_v20 }
 0x12d   :  { %v1573_v62 = vsel %vm1547_vm9, %v7726_v24, %v1572_v25  ;;  %v1569_v49 = vsel %vm1546_vm8, %v7775_v1, %v1568_v29  ;;  %2460 = vst [vmem:[%s7015_s4 + $0xb8] sm:$0xff] %v1540_v48  ;;  %v7802_v25 = vld [vmem:[#allocation25_spill] sm:$0xff]  ;;  %v1580_v47 = vmul.f32 %v5579_v56, %v1564_v13  ;;  %v7805_v22 = vld [vmem:[#allocation14_spill] sm:$0xff]  ;;  %v7806_v13 = vld [vmem:[#allocation8_spill] sm:$0xff] }
 0x12e   :  { %v1574_v61 = vsel %vm1546_vm8, %v7800_v60, %v1573_v62  ;;  %v1578_v36 = vsel %vm1547_vm9, %v7802_v25, %v1577_v14  ;;  %v1581_v29 = vmul.f32 %v5584_v40, %v1569_v49  ;;  %v5636_v62 = vld [vmem:[%s7014_s1] sm:$0xff]  ;;  %v7804_v48 = vld [vmem:[#allocation9_spill] sm:$0xff]  ;;  %v1593_v49 = vsel %vm1550_vm12, %v7806_v13, %v7778_v44  ;;  %v7808_v25 = vld [vmem:[#allocation12_spill] sm:$0xff] }
 0x12f   :  { %v1583_v1 = vmul.f32 %v5589_v30, %v1574_v61  ;;  %7803 = vst [vmem:[#allocation59_spill] sm:$0xff] %v5636_v62  ;;  %v1579_v20 = vsel %vm1546_vm8, %v5636_v62, %v1578_v36  ;;  %v1588_v14 = vsel %vm1550_vm12, %v7805_v22, %v7804_v48  ;;  %v7807_v61 = vld [vmem:[#allocation31_spill] sm:$0xff]  ;;  %v1594_v62 = vsel %vm1549_vm11, %v7781_v31, %v1593_v49 }
 0x130   :  { %v1598_v60 = vsel %vm1550_vm12, %v7808_v25, %v7807_v61  ;;  %v1582_v24 = vadd.f32 %v1581_v29, %v1580_v47  ;;  %v1589_v36 = vsel %vm1549_vm11, %v3409_v16, %v1588_v14  ;;  %v1595_v47 = vsel %vm1548_vm10, %v7756_v17, %v1594_v62 }
 0x131   :  { %v1599_v22 = vsel %vm1549_vm11, %v7782_v41, %v1598_v60  ;;  %v1590_v13 = vsel %vm1548_vm10, %v3277_v11, %v1589_v36  ;;  %v1603_v14 = vsel %vm1550_vm12, %v7622_v23, %v7621_v43  ;;  %v1596_v36 = vsel %vm1547_vm9, %v7731_v35, %v1595_v47  ;;  %v5703_v47 = vld [vmem:[%s7012_s0 + $0x28] sm:$0xff] }
 0x132   :  { %v1600_v29 = vsel %vm1548_vm10, %v7783_v26, %v1599_v22  ;;  %v1584_v49 = vadd.f32 %v1583_v1, %v1582_v24  ;;  %v1591_v60 = vsel %vm1547_vm9, %v7534_v45, %v1590_v13  ;;  %v5687_v22 = vld [vmem:[%s7012_s0 + $0x18] sm:$0xff]  ;;  %v5695_v24 = vld [vmem:[%s7012_s0 + $0x20] sm:$0xff] }
 0x133   :  { %v1601_v62 = vsel %vm1547_vm9, %v7784_v51, %v1600_v29  ;;  %7809 = vst [vmem:[#allocation56_spill] sm:$0xff] %v5687_v22  ;;  %v1592_v1 = vsel %vm1546_vm8, %v5687_v22, %v1591_v60  ;;  %7810 = vst [vmem:[#allocation65_spill] sm:$0xff] %v5695_v24  ;;  %v1597_v13 = vsel %vm1546_vm8, %v5695_v24, %v1596_v36 }
 0x134   :  { %v1602_v29 = vsel %vm1546_vm8, %v5703_v47, %v1601_v62  ;;  %v1604_v60 = vsel %vm1549_vm11, %v7626_v38, %v1603_v14  ;;  %v1585_v22 = vadd.f32 %v1584_v49, %v1579_v20  ;;  %v1608_v36 = vmul.f32 %v5579_v56, %v1592_v1  ;;  %v7811_v62 = vld [vmem:[#allocation43_spill] sm:$0xff] }
 0x135   :  { %v1605_v51 = vsel %vm1548_vm10, %v7630_v59, %v1604_v60  ;;  %v1609_v24 = vmul.f32 %v5584_v40, %v1597_v13  ;;  %v1611_v45 = vmul.f32 %v5589_v30, %v1602_v29  ;;  %v1616_v14 = vsel %vm1550_vm12, %v3745_v63, %v3855_v27  ;;  %v7812_v60 = vld [vmem:[#allocation40_spill] sm:$0xff] }
 0x136   :  { %v1606_v35 = vsel %vm1547_vm9, %v7631_v10, %v1605_v51  ;;  %v1621_v20 = vsel %vm1550_vm12, %v7785_v7, %v7708_v15  ;;  %2465 = vst [vmem:[%s7015_s4 + $0xc0] sm:$0xff] %v1585_v22  ;;  %v1617_v1 = vsel %vm1549_vm11, %v7811_v62, %v1616_v14 }
 0x137   :  { %v1607_v51 = vsel %vm1546_vm8, %v4505_v32, %v1606_v35  ;;  %v1610_v49 = vadd.f32 %v1609_v24, %v1608_v36  ;;  %v1622_v13 = vsel %vm1549_vm11, %v7787_v50, %v1621_v20  ;;  %v1618_v29 = vsel %vm1548_vm10, %v7786_v34, %v1617_v1  ;;  %v7813_v20 = vld [vmem:[#allocation35_spill] sm:$0xff] }
 0x138   :  { %v1623_v22 = vsel %vm1548_vm10, %v7788_v8, %v1622_v13  ;;  %v1626_v35 = vsel %vm1550_vm12, %v7812_v60, %v7734_v37  ;;  %v1631_v32 = vsel %vm1550_vm12, %v7710_v19, %v3877_v9  ;;  %v1619_v36 = vsel %vm1547_vm9, %v7618_v21, %v1618_v29 }
 0x139   :  { %v1612_v24 = vadd.f32 %v1611_v45, %v1610_v49  ;;  %v1624_v14 = vsel %vm1547_vm9, %v7790_v54, %v1623_v22  ;;  %v1627_v1 = vsel %vm1549_vm11, %v7813_v20, %v1626_v35  ;;  %v1620_v13 = vsel %vm1546_vm8, %v7789_v46, %v1619_v36  ;;  %v7814_v54 = vld [vmem:[#allocation11_spill] sm:$0xff] }
 0x13a   :  { %v1625_v45 = vsel %vm1546_vm8, %v4551_v33, %v1624_v14  ;;  %v1628_v49 = vsel %vm1548_vm10, %v7738_v0, %v1627_v1  ;;  %v1632_v29 = vsel %vm1549_vm11, %v7764_v53, %v1631_v32  ;;  %v1636_v36 = vmul.f32 %v5579_v56, %v1620_v13  ;;  %v5785_v33 = vld [vmem:[%s7013_s3 + $0x228] sm:$0xff]  ;;  %v7816_v1 = vld [vmem:[#allocation76_spill] sm:$0xff] }
 0x13b   :  { %v1613_v22 = vadd.f32 %v1612_v24, %v1607_v51  ;;  %v1629_v35 = vsel %vm1547_vm9, %v7814_v54, %v1628_v49  ;;  %v1633_v46 = vsel %vm1548_vm10, %v3664_v5, %v1632_v29  ;;  %v1637_v24 = vmul.f32 %v5584_v40, %v1625_v45  ;;  %v7817_v13 = vld [vmem:[#allocation80_spill] sm:$0xff]  ;;  %v7818_v49 = vld [vmem:[#allocation85_spill] sm:$0xff] }
 0x13c   :  { %v1630_v32 = vsel %vm1546_vm8, %v4572_v12, %v1629_v35  ;;  %v1634_v51 = vsel %vm1547_vm9, %v3661_v4, %v1633_v46  ;;  %vm1647_vm13 = vcmp.lt.f32.partialorder %v5785_v33, 2.5  ;;  %vm1648_vm14 = vcmp.lt.f32.partialorder %v5785_v33, 3.5  ;;  %v7819_v29 = vld [vmem:[#allocation72_spill] sm:$0xff]  ;;  %v7820_v46 = vld [vmem:[#allocation46_spill] sm:$0xff] }
 0x13d   :  { %2466 = vst [vmem:[%s7015_s4 + $0xc8] sm:$0xff] %v1613_v22  ;;  %v1635_v56 = vsel %vm1546_vm8, %v7765_v58, %v1634_v51  ;;  %v1639_v14 = vmul.f32 %v5589_v30, %v1630_v32  ;;  %v1638_v12 = vadd.f32 %v1637_v24, %v1636_v36  ;;  %vm1649_vm15 = vcmp.lt.f32.partialorder %v5785_v33, 4.5  ;;  %v7821_v32 = vld [vmem:[#allocation57_spill] sm:$0xff] }
 0x13e   :  { %vm1650_vm0 = vcmp.lt.f32.partialorder %v5785_v33, 5.5  ;;  %vm1651_vm1 = vcmp.lt.f32.partialorder %v5785_v33, 6.5  ;;  %v7822_v24 = vld [vmem:[#allocation61_spill] sm:$0xff] }
 0x13f   :  { %v1661_v40 = vsel %vm1651_vm1, %v7792_v55, %v7791_v6  ;;  %v1666_v30 = vsel %vm1651_vm1, %v7816_v1, %v7815_v3  ;;  %v1671_v45 = vsel %vm1651_vm1, %v7817_v13, %v7743_v2  ;;  %v1676_v22 = vsel %vm1651_vm1, %v7819_v29, %v7818_v49  ;;  %v5834_v13 = vld [vmem:[%s7013_s3 + $0x328] sm:$0xff] }
 0x140   :  { %v1640_v35 = vadd.f32 %v1639_v14, %v1638_v12  ;;  %v1662_v36 = vsel %vm1650_vm0, %v7820_v46, %v1661_v40  ;;  %v1667_v51 = vsel %vm1650_vm0, %v7821_v32, %v1666_v30  ;;  %v1672_v1 = vsel %vm1650_vm0, %v7822_v24, %v1671_v45  ;;  %v5839_v14 = vld [vmem:[%s7013_s3 + $0x330] sm:$0xff]  ;;  %v5844_v12 = vld [vmem:[%s7013_s3 + $0x338] sm:$0xff] }
 0x141   :  { %v1663_v40 = vsel %vm1649_vm15, %v7750_v39, %v1662_v36  ;;  %v1668_v30 = vsel %vm1649_vm15, %v7798_v18, %v1667_v51  ;;  %v1673_v45 = vsel %vm1649_vm15, %v7799_v57, %v1672_v1  ;;  %v1677_v24 = vsel %vm1650_vm0, %v7699_v42, %v1676_v22  ;;  %v7823_v39 = vld [vmem:[#allocation44_spill] sm:$0xff]  ;;  %v7824_v18 = vld [vmem:[#allocation53_spill] sm:$0xff]  ;;  %v7825_v57 = vld [vmem:[#allocation58_spill] sm:$0xff] }
 0x142   :  { %v1641_v32 = vadd.f32 %v1640_v35, %v1635_v56  ;;  %v1664_v46 = vsel %vm1648_vm14, %v7725_v28, %v1663_v40  ;;  %v1669_v36 = vsel %vm1648_vm14, %v7698_v52, %v1668_v30  ;;  %v1674_v51 = vsel %vm1648_vm14, %v7823_v39, %v1673_v45  ;;  %v7826_v22 = vld [vmem:[#allocation54_spill] sm:$0xff]  ;;  %v7827_v40 = vld [vmem:[#allocation45_spill] sm:$0xff]  ;;  %v7829_v39 = vld [vmem:[#allocation59_spill] sm:$0xff] }
 0x143   :  { %v1665_v1 = vsel %vm1647_vm13, %v7824_v18, %v1664_v46  ;;  %v1670_v56 = vsel %vm1647_vm13, %v7825_v57, %v1669_v36  ;;  %v1675_v35 = vsel %vm1647_vm13, %v7826_v22, %v1674_v51  ;;  %v1678_v30 = vsel %vm1649_vm15, %v7827_v40, %v1677_v24  ;;  %v7828_v45 = vld [vmem:[#allocation25_spill] sm:$0xff]  ;;  %v7830_v24 = vld [vmem:[#allocation14_spill] sm:$0xff] }
 0x144   :  { %2467 = vst [vmem:[%s7015_s4 + $0xd0] sm:$0xff] %v1641_v32  ;;  %v1679_v46 = vsel %vm1648_vm14, %v7828_v45, %v1678_v30  ;;  %v1681_v18 = vmul.f32 %v5834_v13, %v1665_v1  ;;  %v1682_v36 = vmul.f32 %v5839_v14, %v1670_v56  ;;  %v1684_v57 = vmul.f32 %v5844_v12, %v1675_v35  ;;  %v7831_v32 = vld [vmem:[#allocation8_spill] sm:$0xff] }
 0x145   :  { %v1680_v51 = vsel %vm1647_vm13, %v7829_v39, %v1679_v46  ;;  %v1689_v40 = vsel %vm1651_vm1, %v7830_v24, %v7804_v48  ;;  %v1694_v30 = vsel %vm1651_vm1, %v7831_v32, %v7778_v44  ;;  %v1699_v1 = vsel %vm1651_vm1, %v7808_v25, %v7807_v61 }
 0x146   :  { %v1683_v56 = vadd.f32 %v1682_v36, %v1681_v18  ;;  %v1690_v35 = vsel %vm1650_vm0, %v3409_v16, %v1689_v40  ;;  %v1695_v46 = vsel %vm1650_vm0, %v7781_v31, %v1694_v30  ;;  %v1700_v24 = vsel %vm1650_vm0, %v7782_v41, %v1699_v1  ;;  %v7832_v31 = vld [vmem:[#allocation63_spill] sm:$0xff] }
 0x147   :  { %v1691_v32 = vsel %vm1649_vm15, %v3277_v11, %v1690_v35  ;;  %v1696_v18 = vsel %vm1649_vm15, %v7756_v17, %v1695_v46  ;;  %v1701_v40 = vsel %vm1649_vm15, %v7783_v26, %v1700_v24  ;;  %v1704_v36 = vsel %vm1651_vm1, %v7622_v23, %v7621_v43  ;;  %v7833_v41 = vld [vmem:[#allocation83_spill] sm:$0xff]  ;;  %v7834_v11 = vld [vmem:[#allocation4_spill] sm:$0xff]  ;;  %v7836_v26 = vld [vmem:[#allocation65_spill] sm:$0xff] }
 0x148   :  { %v1685_v30 = vadd.f32 %v1684_v57, %v1683_v56  ;;  %v1692_v1 = vsel %vm1648_vm14, %v7832_v31, %v1691_v32  ;;  %v1697_v35 = vsel %vm1648_vm14, %v7833_v41, %v1696_v18  ;;  %v1702_v46 = vsel %vm1648_vm14, %v7834_v11, %v1701_v40  ;;  %v7835_v17 = vld [vmem:[#allocation56_spill] sm:$0xff] }
 0x149   :  { %v1693_v24 = vsel %vm1647_vm13, %v7835_v17, %v1692_v1  ;;  %v1698_v57 = vsel %vm1647_vm13, %v7836_v26, %v1697_v35  ;;  %v1703_v32 = vsel %vm1647_vm13, %v5703_v47, %v1702_v46  ;;  %v1705_v56 = vsel %vm1650_vm0, %v7626_v38, %v1704_v36 }
 0x14a   :  { %v1686_v18 = vadd.f32 %v1685_v30, %v1680_v51  ;;  %v1706_v40 = vsel %vm1649_vm15, %v7630_v59, %v1705_v56  ;;  %v1709_v11 = vmul.f32 %v5834_v13, %v1693_v24  ;;  %v1710_v1 = vmul.f32 %v5839_v14, %v1698_v57  ;;  %v5969_v30 = vld [vmem:[%s7014_s1 + $0x8] sm:$0xff] }
 0x14b   :  { %v1707_v35 = vsel %vm1648_vm14, %v7631_v10, %v1706_v40  ;;  %v1712_v26 = vmul.f32 %v5844_v12, %v1703_v32  ;;  %v1717_v36 = vsel %vm1651_vm1, %v3745_v63, %v3855_v27  ;;  %v1722_v51 = vsel %vm1651_vm1, %v7785_v7, %v7708_v15 }
 0x14c   :  { %2472 = vst [vmem:[%s7015_s4 + $0xd8] sm:$0xff] %v1686_v18  ;;  %v1708_v46 = vsel %vm1647_vm13, %v5969_v30, %v1707_v35  ;;  %v1711_v24 = vadd.f32 %v1710_v1, %v1709_v11  ;;  %v1718_v57 = vsel %vm1650_vm0, %v7811_v62, %v1717_v36  ;;  %v1723_v32 = vsel %vm1650_vm0, %v7787_v50, %v1722_v51  ;;  %v7837_v36 = vld [vmem:[#allocation2_spill] sm:$0xff] }
 0x14d   :  { %v1719_v56 = vsel %vm1649_vm15, %v7786_v34, %v1718_v57  ;;  %v1724_v18 = vsel %vm1649_vm15, %v7788_v8, %v1723_v32  ;;  %v1727_v11 = vsel %vm1651_vm1, %v7812_v60, %v7734_v37  ;;  %v1732_v40 = vsel %vm1651_vm1, %v7710_v19, %v3877_v9  ;;  %v6006_v32 = vld [vmem:[%s7012_s0 + $0x30] sm:$0xff] }
 0x14e   :  { %v1713_v1 = vadd.f32 %v1712_v26, %v1711_v24  ;;  %v1720_v35 = vsel %vm1648_vm14, %v7618_v21, %v1719_v56  ;;  %v1725_v51 = vsel %vm1648_vm14, %v7837_v36, %v1724_v18  ;;  %v1728_v57 = vsel %vm1650_vm0, %v7813_v20, %v1727_v11  ;;  %7838 = vst [vmem:[#allocation66_spill] sm:$0xff] %v6006_v32  ;;  %v6014_v24 = vld [vmem:[%s7012_s0 + $0x38] sm:$0xff] }
 0x14f   :  { %v1721_v26 = vsel %vm1647_vm13, %v6006_v32, %v1720_v35  ;;  %v1726_v56 = vsel %vm1647_vm13, %v6014_v24, %v1725_v51  ;;  %v1729_v18 = vsel %vm1649_vm15, %v7738_v0, %v1728_v57  ;;  %v1733_v11 = vsel %vm1650_vm0, %v7764_v53, %v1732_v40  ;;  %v6028_v35 = vld [vmem:[%s7013_s3 + $0x230] sm:$0xff]  ;;  %v6040_v40 = vld [vmem:[%s7012_s0 + $0x40] sm:$0xff] }
 0x150   :  { %v1714_v32 = vadd.f32 %v1713_v1, %v1708_v46  ;;  %v1730_v20 = vsel %vm1648_vm14, %v7814_v54, %v1729_v18  ;;  %v1734_v51 = vsel %vm1649_vm15, %v3664_v5, %v1733_v11  ;;  %v1737_v57 = vmul.f32 %v5834_v13, %v1721_v26  ;;  %v7841_v11 = vld [vmem:[#allocation46_spill] sm:$0xff] }
 0x151   :  { %v1731_v53 = vsel %vm1647_vm13, %v6040_v40, %v1730_v20  ;;  %v1735_v46 = vsel %vm1648_vm14, %v3661_v4, %v1734_v51  ;;  %v1738_v1 = vmul.f32 %v5839_v14, %v1726_v56  ;;  %vm1748_vm2 = vcmp.lt.f32.partialorder %v6028_v35, 2.5  ;;  %v7839_v14 = vld [vmem:[#allocation76_spill] sm:$0xff] }
 0x152   :  { %2473 = vst [vmem:[%s7015_s4 + $0xe0] sm:$0xff] %v1714_v32  ;;  %v1740_v13 = vmul.f32 %v5844_v12, %v1731_v53  ;;  %vm1749_vm3 = vcmp.lt.f32.partialorder %v6028_v35, 3.5  ;;  %vm1751_vm4 = vcmp.lt.f32.partialorder %v6028_v35, 5.5  ;;  %v1736_v20 = vsel %vm1647_vm13, %v7765_v58, %v1735_v46  ;;  %v7840_v32 = vld [vmem:[#allocation80_spill] sm:$0xff] }
 0x153   :  { %v1739_v26 = vadd.f32 %v1738_v1, %v1737_v57  ;;  %vm1750_vm5 = vcmp.lt.f32.partialorder %v6028_v35, 4.5  ;;  %vm1752_vm6 = vcmp.lt.f32.partialorder %v6028_v35, 6.5  ;;  %v7842_v57 = vld [vmem:[#allocation57_spill] sm:$0xff]  ;;  %v7865_v35 = vld [vmem:[#allocation80_spill] sm:$0xff] }
 0x154   :  { %v1762_v53 = vsel %vm1752_vm6, %v7792_v55, %v7791_v6  ;;  %v1767_v12 = vsel %vm1752_vm6, %v7839_v14, %v7815_v3  ;;  %v1772_v33 = vsel %vm1752_vm6, %v7840_v32, %v7743_v2  ;;  %v1777_v56 = vsel %vm1752_vm6, %v7819_v29, %v7818_v49  ;;  %v7843_v1 = vld [vmem:[#allocation61_spill] sm:$0xff]  ;;  %v6089_v32 = vld [vmem:[%s7013_s3 + $0x340] sm:$0xff] }
 0x155   :  { %v1741_v18 = vadd.f32 %v1740_v13, %v1739_v26  ;;  %v1763_v51 = vsel %vm1751_vm4, %v7841_v11, %v1762_v53  ;;  %v1768_v46 = vsel %vm1751_vm4, %v7842_v57, %v1767_v12  ;;  %v1773_v14 = vsel %vm1751_vm4, %v7843_v1, %v1772_v33  ;;  %v6094_v13 = vld [vmem:[%s7013_s3 + $0x348] sm:$0xff]  ;;  %v6099_v26 = vld [vmem:[%s7013_s3 + $0x350] sm:$0xff]  ;;  %v7844_v53 = vld [vmem:[#allocation18_spill] sm:$0xff] }
 0x156   :  { %v1764_v12 = vsel %vm1750_vm5, %v7844_v53, %v1763_v51  ;;  %v7845_v33 = vld [vmem:[#allocation38_spill] sm:$0xff]  ;;  %v1778_v57 = vsel %vm1751_vm4, %v7699_v42, %v1777_v56  ;;  %v7847_v53 = vld [vmem:[#allocation44_spill] sm:$0xff] }
 0x157   :  { %v1769_v29 = vsel %vm1750_vm5, %v7845_v33, %v1768_v46  ;;  %v7846_v49 = vld [vmem:[#allocation42_spill] sm:$0xff]  ;;  %v1742_v11 = vadd.f32 %v1741_v18, %v1736_v20  ;;  %v1765_v2 = vsel %vm1749_vm3, %v7725_v28, %v1764_v12  ;;  %v7848_v33 = vld [vmem:[#allocation53_spill] sm:$0xff] }
 0x158   :  { %v1774_v1 = vsel %vm1750_vm5, %v7846_v49, %v1773_v14  ;;  %v1770_v51 = vsel %vm1749_vm3, %v7698_v52, %v1769_v29  ;;  %v1766_v14 = vsel %vm1748_vm2, %v7848_v33, %v1765_v2  ;;  %v7849_v49 = vld [vmem:[#allocation58_spill] sm:$0xff]  ;;  %v7850_v18 = vld [vmem:[#allocation45_spill] sm:$0xff] }
 0x159   :  { %v1775_v46 = vsel %vm1749_vm3, %v7847_v53, %v1774_v1  ;;  %v1771_v20 = vsel %vm1748_vm2, %v7849_v49, %v1770_v51  ;;  %v1779_v29 = vsel %vm1750_vm5, %v7850_v18, %v1778_v57  ;;  %2474 = vst [vmem:[%s7015_s4 + $0xe8] sm:$0xff] %v1742_v11  ;;  %v1782_v1 = vmul.f32 %v6089_v32, %v1766_v14  ;;  %v7851_v57 = vld [vmem:[#allocation14_spill] sm:$0xff]  ;;  %v7852_v11 = vld [vmem:[#allocation8_spill] sm:$0xff] }
 0x15a   :  { %v1776_v56 = vsel %vm1748_vm2, %v7826_v22, %v1775_v46  ;;  %v1780_v2 = vsel %vm1749_vm3, %v7828_v45, %v1779_v29  ;;  %v1783_v12 = vmul.f32 %v6094_v13, %v1771_v20  ;;  %v1790_v18 = vsel %vm1752_vm6, %v7851_v57, %v7804_v48  ;;  %v7854_v57 = vld [vmem:[#allocation5_spill] sm:$0xff]  ;;  %v7855_v45 = vld [vmem:[#allocation88_spill] sm:$0xff] }
 0x15b   :  { %v1785_v51 = vmul.f32 %v6099_v26, %v1776_v56  ;;  %v1781_v46 = vsel %vm1748_vm2, %v7829_v39, %v1780_v2  ;;  %v1795_v29 = vsel %vm1752_vm6, %v7852_v11, %v7778_v44  ;;  %v1800_v14 = vsel %vm1752_vm6, %v7808_v25, %v7807_v61  ;;  %v7853_v2 = vld [vmem:[#allocation22_spill] sm:$0xff]  ;;  %v7856_v44 = vld [vmem:[#allocation3_spill] sm:$0xff] }
 0x15c   :  { %v1784_v20 = vadd.f32 %v1783_v12, %v1782_v1  ;;  %v1791_v56 = vsel %vm1751_vm4, %v3409_v16, %v1790_v18  ;;  %v1796_v39 = vsel %vm1751_vm4, %v7853_v2, %v1795_v29  ;;  %v1801_v48 = vsel %vm1751_vm4, %v7854_v57, %v1800_v14  ;;  %v7857_v12 = vld [vmem:[#allocation16_spill] sm:$0xff] }
 0x15d   :  { %v1792_v11 = vsel %vm1750_vm5, %v7855_v45, %v1791_v56  ;;  %v1797_v1 = vsel %vm1750_vm5, %v7856_v44, %v1796_v39  ;;  %v1802_v18 = vsel %vm1750_vm5, %v7857_v12, %v1801_v48  ;;  %v1805_v29 = vsel %vm1752_vm6, %v7622_v23, %v7621_v43  ;;  %v7858_v57 = vld [vmem:[#allocation4_spill] sm:$0xff]  ;;  %v7859_v12 = vld [vmem:[#allocation65_spill] sm:$0xff] }
 0x15e   :  { %v1786_v2 = vadd.f32 %v1785_v51, %v1784_v20  ;;  %v1793_v14 = vsel %vm1749_vm3, %v7832_v31, %v1792_v11  ;;  %v1798_v56 = vsel %vm1749_vm3, %v7833_v41, %v1797_v1  ;;  %v1803_v39 = vsel %vm1749_vm3, %v7858_v57, %v1802_v18 }
 0x15f   :  { %v1794_v48 = vsel %vm1748_vm2, %v7835_v17, %v1793_v14  ;;  %v1799_v51 = vsel %vm1748_vm2, %v7859_v12, %v1798_v56  ;;  %v1804_v11 = vsel %vm1748_vm2, %v5703_v47, %v1803_v39  ;;  %v1806_v20 = vsel %vm1751_vm4, %v7626_v38, %v1805_v29  ;;  %v6209_v56 = vld [vmem:[%s7013_s3 + $0x238] sm:$0xff] }
 0x160   :  { %v1787_v1 = vadd.f32 %v1786_v2, %v1781_v46  ;;  %v1807_v18 = vsel %vm1750_vm5, %v7630_v59, %v1806_v20  ;;  %v1810_v57 = vmul.f32 %v6089_v32, %v1794_v48  ;;  %v1811_v14 = vmul.f32 %v6094_v13, %v1799_v51 }
 0x161   :  { %v1808_v39 = vsel %vm1749_vm3, %v7631_v10, %v1807_v18  ;;  %v1813_v29 = vmul.f32 %v6099_v26, %v1804_v11  ;;  %v1818_v46 = vsel %vm1752_vm6, %v3745_v63, %v3855_v27  ;;  %v1823_v2 = vsel %vm1752_vm6, %v7785_v7, %v7708_v15 }
 0x162   :  { %vm1850_vm7 = vcmp.lt.f32.partialorder %v6209_v56, 3.5  ;;  %2479 = vst [vmem:[%s7015_s4 + $0xf0] sm:$0xff] %v1787_v1  ;;  %v1809_v48 = vsel %vm1748_vm2, %v5969_v30, %v1808_v39  ;;  %v1812_v51 = vadd.f32 %v1811_v14, %v1810_v57  ;;  %v1819_v11 = vsel %vm1751_vm4, %v7811_v62, %v1818_v46 }
 0x163   :  { %v1824_v20 = vsel %vm1751_vm4, %v7787_v50, %v1823_v2  ;;  %vm1849_vm8 = vcmp.lt.f32.partialorder %v6209_v56, 2.5  ;;  %v1820_v18 = vsel %vm1750_vm5, %v7786_v34, %v1819_v11  ;;  %v1828_v57 = vsel %vm1752_vm6, %v7812_v60, %v7734_v37  ;;  %v7860_v11 = vld [vmem:[#allocation35_spill] sm:$0xff] }
 0x164   :  { %v1825_v1 = vsel %vm1750_vm5, %v7788_v8, %v1824_v20  ;;  %v1833_v14 = vsel %vm1752_vm6, %v7710_v19, %v3877_v9  ;;  %v1814_v39 = vadd.f32 %v1813_v29, %v1812_v51  ;;  %v1821_v46 = vsel %vm1749_vm3, %v7618_v21, %v1820_v18  ;;  %v7861_v8 = vld [vmem:[#allocation66_spill] sm:$0xff]  ;;  %v7862_v18 = vld [vmem:[#allocation20_spill] sm:$0xff] }
 0x165   :  { %v1826_v2 = vsel %vm1749_vm3, %v7837_v36, %v1825_v1  ;;  %v1829_v20 = vsel %vm1751_vm4, %v7860_v11, %v1828_v57  ;;  %v1822_v50 = vsel %vm1748_vm2, %v7861_v8, %v1821_v46  ;;  %v1834_v1 = vsel %vm1751_vm4, %v7862_v18, %v1833_v14 }
 0x166   :  { %v1827_v29 = vsel %vm1748_vm2, %v6014_v24, %v1826_v2  ;;  %v1830_v51 = vsel %vm1750_vm5, %v7738_v0, %v1829_v20  ;;  %v1815_v36 = vadd.f32 %v1814_v39, %v1809_v48  ;;  %v1835_v46 = vsel %vm1750_vm5, %v3664_v5, %v1834_v1  ;;  %v7863_v39 = vld [vmem:[#allocation76_spill] sm:$0xff] }
 0x167   :  { %v1831_v57 = vsel %vm1749_vm3, %v7814_v54, %v1830_v51  ;;  %v1838_v8 = vmul.f32 %v6089_v32, %v1822_v50  ;;  %v1836_v20 = vsel %vm1749_vm3, %v3661_v4, %v1835_v46  ;;  %v1839_v48 = vmul.f32 %v6094_v13, %v1827_v29  ;;  %v7864_v29 = vld [vmem:[#allocation87_spill] sm:$0xff] }
 0x168   :  { %v1832_v2 = vsel %vm1748_vm2, %v6040_v40, %v1831_v57  ;;  %vm1851_vm9 = vcmp.lt.f32.partialorder %v6209_v56, 4.5  ;;  %2480 = vst [vmem:[%s7015_s4 + $0xf8] sm:$0xff] %v1815_v36  ;;  %v1837_v50 = vsel %vm1748_vm2, %v7765_v58, %v1836_v20  ;;  %vm1852_vm10 = vcmp.lt.f32.partialorder %v6209_v56, 5.5  ;;  %v7868_v57 = vld [vmem:[#allocation61_spill] sm:$0xff]  ;;  %v7870_v20 = vld [vmem:[#allocation72_spill] sm:$0xff] }
 0x169   :  { %v1841_v32 = vmul.f32 %v6099_v26, %v1832_v2  ;;  %vm1853_vm11 = vcmp.lt.f32.partialorder %v6209_v56, 6.5  ;;  %v1840_v14 = vadd.f32 %v1839_v48, %v1838_v8  ;;  %v7866_v26 = vld [vmem:[#allocation46_spill] sm:$0xff]  ;;  %v7867_v8 = vld [vmem:[#allocation57_spill] sm:$0xff] }
 0x16a   :  { %v1863_v13 = vsel %vm1853_vm11, %v7792_v55, %v7791_v6  ;;  %v1868_v36 = vsel %vm1853_vm11, %v7863_v39, %v7815_v3  ;;  %v1873_v58 = vsel %vm1853_vm11, %v7865_v35, %v7864_v29  ;;  %v7869_v2 = vld [vmem:[#allocation85_spill] sm:$0xff] }
 0x16b   :  { %v1864_v51 = vsel %vm1852_vm10, %v7866_v26, %v1863_v13  ;;  %v1869_v1 = vsel %vm1852_vm10, %v7867_v8, %v1868_v36  ;;  %v1874_v46 = vsel %vm1852_vm10, %v7868_v57, %v1873_v58  ;;  %v1878_v48 = vsel %vm1853_vm11, %v7870_v20, %v7869_v2  ;;  %v6324_v35 = vld [vmem:[%s7013_s3 + $0x358] sm:$0xff]  ;;  %v6329_v13 = vld [vmem:[%s7013_s3 + $0x360] sm:$0xff]  ;;  %v6334_v36 = vld [vmem:[%s7013_s3 + $0x368] sm:$0xff] }
 0x16c   :  { %v1842_v39 = vadd.f32 %v1841_v32, %v1840_v14  ;;  %v7871_v58 = vld [vmem:[#allocation18_spill] sm:$0xff] }
 0x16d   :  { %v1865_v57 = vsel %vm1851_vm9, %v7871_v58, %v1864_v51  ;;  %v7872_v32 = vld [vmem:[#allocation38_spill] sm:$0xff] }
 0x16e   :  { %v1870_v14 = vsel %vm1851_vm9, %v7872_v32, %v1869_v1  ;;  %v7873_v8 = vld [vmem:[#allocation42_spill] sm:$0xff]  ;;  %v1866_v20 = vsel %vm1850_vm7, %v7725_v28, %v1865_v57  ;;  %v1879_v1 = vsel %vm1852_vm10, %v7699_v42, %v1878_v48  ;;  %v1843_v32 = vadd.f32 %v1842_v39, %v1837_v50 }
 0x16f   :  { %v1875_v26 = vsel %vm1851_vm9, %v7873_v8, %v1874_v46  ;;  %v1871_v2 = vsel %vm1850_vm7, %v7698_v52, %v1870_v14  ;;  %v1867_v46 = vsel %vm1849_vm8, %v7848_v33, %v1866_v20  ;;  %v7874_v52 = vld [vmem:[#allocation45_spill] sm:$0xff]  ;;  %v7877_v20 = vld [vmem:[#allocation14_spill] sm:$0xff] }
 0x170   :  { %v1876_v51 = vsel %vm1850_vm7, %v7847_v53, %v1875_v26  ;;  %v1872_v57 = vsel %vm1849_vm8, %v7849_v49, %v1871_v2  ;;  %v1880_v26 = vsel %vm1851_vm9, %v7874_v52, %v1879_v1  ;;  %v1883_v53 = vmul.f32 %v6324_v35, %v1867_v46  ;;  %2481 = vst [vmem:[%s7015_s4 + $0x100] sm:$0xff] %v1843_v32  ;;  %v7875_v33 = vld [vmem:[#allocation25_spill] sm:$0xff]  ;;  %v7879_v1 = vld [vmem:[#allocation8_spill] sm:$0xff]  ;;  %v7880_v32 = vld [vmem:[#allocation59_spill] sm:$0xff] }
 0x171   :  { %v1877_v14 = vsel %vm1849_vm8, %v7826_v22, %v1876_v51  ;;  %v1884_v50 = vmul.f32 %v6329_v13, %v1872_v57  ;;  %v1881_v49 = vsel %vm1850_vm7, %v7875_v33, %v1880_v26  ;;  %v7876_v2 = vld [vmem:[#allocation9_spill] sm:$0xff]  ;;  %v7878_v51 = vld [vmem:[#allocation71_spill] sm:$0xff]  ;;  %v1901_v57 = vsel %vm1853_vm11, %v7808_v25, %v7807_v61 }
 0x172   :  { %v1886_v39 = vmul.f32 %v6334_v36, %v1877_v14  ;;  %v1891_v48 = vsel %vm1853_vm11, %v7877_v20, %v7876_v2  ;;  %v1896_v46 = vsel %vm1853_vm11, %v7879_v1, %v7878_v51  ;;  %v1882_v14 = vsel %vm1849_vm8, %v7880_v32, %v1881_v49  ;;  %v7881_v20 = vld [vmem:[#allocation22_spill] sm:$0xff]  ;;  %v7882_v61 = vld [vmem:[#allocation5_spill] sm:$0xff] }
 0x173   :  { %v1885_v26 = vadd.f32 %v1884_v50, %v1883_v53  ;;  %v1892_v33 = vsel %vm1852_vm10, %v3409_v16, %v1891_v48  ;;  %v1897_v2 = vsel %vm1852_vm10, %v7881_v20, %v1896_v46  ;;  %v1902_v53 = vsel %vm1852_vm10, %v7882_v61, %v1901_v57  ;;  %v7883_v46 = vld [vmem:[#allocation16_spill] sm:$0xff] }
 0x174   :  { %v1893_v1 = vsel %vm1851_vm9, %v7855_v45, %v1892_v33  ;;  %v1898_v25 = vsel %vm1851_vm9, %v7856_v44, %v1897_v2  ;;  %v1906_v50 = vsel %vm1853_vm11, %v7622_v23, %v7621_v43  ;;  %v1903_v2 = vsel %vm1851_vm9, %v7883_v46, %v1902_v53 }
 0x175   :  { %v1887_v49 = vadd.f32 %v1886_v39, %v1885_v26  ;;  %v1894_v48 = vsel %vm1850_vm7, %v7832_v31, %v1893_v1  ;;  %v1899_v33 = vsel %vm1850_vm7, %v7833_v41, %v1898_v25  ;;  %v7884_v26 = vld [vmem:[#allocation4_spill] sm:$0xff]  ;;  %v1907_v25 = vsel %vm1852_vm10, %v7626_v38, %v1906_v50 }
 0x176   :  { %v1895_v57 = vsel %vm1849_vm8, %v7835_v17, %v1894_v48  ;;  %v1900_v39 = vsel %vm1849_vm8, %v7859_v12, %v1899_v33  ;;  %v1904_v1 = vsel %vm1850_vm7, %v7884_v26, %v1903_v2  ;;  %v1908_v48 = vsel %vm1851_vm9, %v7630_v59, %v1907_v25  ;;  %v7885_v25 = vld [vmem:[#allocation33_spill] sm:$0xff] }
 0x177   :  { %v1888_v41 = vadd.f32 %v1887_v49, %v1882_v14  ;;  %v1905_v53 = vsel %vm1849_vm8, %v5703_v47, %v1904_v1  ;;  %v1911_v17 = vmul.f32 %v6324_v35, %v1895_v57  ;;  %v1909_v33 = vsel %vm1850_vm7, %v7631_v10, %v1908_v48 }
 0x178   :  { %v1912_v2 = vmul.f32 %v6329_v13, %v1900_v39  ;;  %v1914_v12 = vmul.f32 %v6334_v36, %v1905_v53  ;;  %v1919_v14 = vsel %vm1853_vm11, %v3745_v63, %v3855_v27  ;;  %v1910_v50 = vsel %vm1849_vm8, %v5969_v30, %v1909_v33 }
 0x179   :  { %2486 = vst [vmem:[%s7015_s4 + $0x108] sm:$0xff] %v1888_v41  ;;  %v1920_v49 = vsel %vm1852_vm10, %v7811_v62, %v1919_v14  ;;  %v1924_v57 = vsel %vm1853_vm11, %v7785_v7, %v7708_v15  ;;  %v1929_v39 = vsel %vm1853_vm11, %v7812_v60, %v7734_v37  ;;  %v7886_v14 = vld [vmem:[#allocation28_spill] sm:$0xff]  ;;  %v7887_v60 = vld [vmem:[#allocation66_spill] sm:$0xff] }
 0x17a   :  { %v1913_v1 = vadd.f32 %v1912_v2, %v1911_v17  ;;  %v1921_v41 = vsel %vm1851_vm9, %v7786_v34, %v1920_v49  ;;  %v1925_v53 = vsel %vm1852_vm10, %v7885_v25, %v1924_v57  ;;  %v1930_v48 = vsel %vm1852_vm10, %v7860_v11, %v1929_v39  ;;  %v7888_v11 = vld [vmem:[#allocation2_spill] sm:$0xff] }
 0x17b   :  { %v1922_v33 = vsel %vm1850_vm7, %v7618_v21, %v1921_v41  ;;  %v1926_v17 = vsel %vm1851_vm9, %v7886_v14, %v1925_v53  ;;  %v1931_v2 = vsel %vm1851_vm9, %v7738_v0, %v1930_v48  ;;  %v1934_v49 = vsel %vm1853_vm11, %v7710_v19, %v3877_v9 }
 0x17c   :  { %v1915_v57 = vadd.f32 %v1914_v12, %v1913_v1  ;;  %v1923_v39 = vsel %vm1849_vm8, %v7887_v60, %v1922_v33  ;;  %v1927_v41 = vsel %vm1850_vm7, %v7888_v11, %v1926_v17  ;;  %v1932_v53 = vsel %vm1850_vm7, %v7814_v54, %v1931_v2  ;;  %v6510_v17 = vld [vmem:[%s7013_s3 + $0x240] sm:$0xff] }
 0x17d   :  { %v1928_v48 = vsel %vm1849_vm8, %v6014_v24, %v1927_v41  ;;  %v1933_v12 = vsel %vm1849_vm8, %v6040_v40, %v1932_v53  ;;  %v1935_v1 = vsel %vm1852_vm10, %v7862_v18, %v1934_v49  ;;  %v1939_v33 = vmul.f32 %v6324_v35, %v1923_v39  ;;  %v6529_v35 = vld [vmem:[%s7014_s1 + $0x10] sm:$0xff] }
 0x17e   :  { %v1916_v2 = vadd.f32 %v1915_v57, %v1910_v50  ;;  %v1936_v41 = vsel %vm1851_vm9, %v3664_v5, %v1935_v1  ;;  %v1940_v54 = vmul.f32 %v6329_v13, %v1928_v48  ;;  %v1942_v53 = vmul.f32 %v6334_v36, %v1933_v12  ;;  %v7889_v57 = vld [vmem:[#allocation76_spill] sm:$0xff] }
 0x17f   :  { %v1937_v49 = vsel %vm1850_vm7, %v3661_v4, %v1936_v41  ;;  %vm1950_vm12 = vcmp.lt.f32.partialorder %v6510_v17, 2.5  ;;  %vm1951_vm13 = vcmp.lt.f32.partialorder %v6510_v17, 3.5  ;;  %vm1952_vm14 = vcmp.lt.f32.partialorder %v6510_v17, 4.5  ;;  %v7890_v48 = vld [vmem:[#allocation80_spill] sm:$0xff] }
 0x180   :  { %2487 = vst [vmem:[%s7015_s4 + $0x110] sm:$0xff] %v1916_v2  ;;  %v1938_v13 = vsel %vm1849_vm8, %v6529_v35, %v1937_v49  ;;  %v1941_v36 = vadd.f32 %v1940_v54, %v1939_v33  ;;  %vm1953_vm15 = vcmp.lt.f32.partialorder %v6510_v17, 5.5  ;;  %vm1954_vm0 = vcmp.lt.f32.partialorder %v6510_v17, 6.5  ;;  %v7891_v54 = vld [vmem:[#allocation85_spill] sm:$0xff]  ;;  %v7892_v12 = vld [vmem:[#allocation72_spill] sm:$0xff]  ;;  %v7893_v2 = vld [vmem:[#allocation46_spill] sm:$0xff] }
 0x181   :  { %v1964_v50 = vsel %vm1954_vm0, %v7792_v55, %v7791_v6  ;;  %v1969_v39 = vsel %vm1954_vm0, %v7889_v57, %v7815_v3  ;;  %v1974_v56 = vsel %vm1954_vm0, %v7890_v48, %v7864_v29  ;;  %v1979_v1 = vsel %vm1954_vm0, %v7892_v12, %v7891_v54  ;;  %v7894_v49 = vld [vmem:[#allocation57_spill] sm:$0xff]  ;;  %v6564_v48 = vld [vmem:[%s7013_s3 + $0x370] sm:$0xff]  ;;  %v7914_v17 = vld [vmem:[#allocation86_spill] sm:$0xff] }
 0x182   :  { %v1943_v33 = vadd.f32 %v1942_v53, %v1941_v36  ;;  %v1965_v41 = vsel %vm1953_vm15, %v7893_v2, %v1964_v50  ;;  %v1970_v55 = vsel %vm1953_vm15, %v7894_v49, %v1969_v39  ;;  %v7895_v57 = vld [vmem:[#allocation61_spill] sm:$0xff]  ;;  %v6574_v36 = vld [vmem:[%s7013_s3 + $0x380] sm:$0xff]  ;;  %v1980_v49 = vsel %vm1953_vm15, %v7699_v42, %v1979_v1  ;;  %v6608_v1 = vld [vmem:[%s7012_s0 + $0x8] sm:$0xff] }
 0x183   :  { %v1975_v3 = vsel %vm1953_vm15, %v7895_v57, %v1974_v56  ;;  %v6569_v53 = vld [vmem:[%s7013_s3 + $0x378] sm:$0xff]  ;;  %v1966_v50 = vsel %vm1952_vm14, %v7871_v58, %v1965_v41  ;;  %v7896_v39 = vld [vmem:[#allocation38_spill] sm:$0xff]  ;;  %v7898_v58 = vld [vmem:[#allocation44_spill] sm:$0xff]  ;;  %7900 = vst [vmem:[#allocation68_spill] sm:$0xff] %v6608_v1 }
 0x184   :  { %v1971_v56 = vsel %vm1952_vm14, %v7896_v39, %v1970_v55  ;;  %v1976_v57 = vsel %vm1952_vm14, %v7873_v8, %v1975_v3  ;;  %v1944_v2 = vadd.f32 %v1943_v33, %v1938_v13  ;;  %v1967_v12 = vsel %vm1951_vm13, %v7725_v28, %v1966_v50  ;;  %v7897_v54 = vld [vmem:[#allocation41_spill] sm:$0xff]  ;;  %v6600_v3 = vld [vmem:[%s7012_s0] sm:$0xff] }
 0x185   :  { %v1972_v41 = vsel %vm1951_vm13, %v7897_v54, %v1971_v56  ;;  %v1977_v55 = vsel %vm1951_vm13, %v7898_v58, %v1976_v57  ;;  %7899 = vst [vmem:[#allocation67_spill] sm:$0xff] %v6600_v3  ;;  %v1968_v13 = vsel %vm1950_vm12, %v6600_v3, %v1967_v12  ;;  %v1981_v50 = vsel %vm1952_vm14, %v7874_v52, %v1980_v49  ;;  %v7901_v12 = vld [vmem:[#allocation25_spill] sm:$0xff]  ;;  %v7903_v49 = vld [vmem:[#allocation14_spill] sm:$0xff] }
 0x186   :  { %v1973_v33 = vsel %vm1950_vm12, %v6608_v1, %v1972_v41  ;;  %v1978_v57 = vsel %vm1950_vm12, %v7826_v22, %v1977_v55  ;;  %2488 = vst [vmem:[%s7015_s4 + $0x118] sm:$0xff] %v1944_v2  ;;  %v1982_v56 = vsel %vm1951_vm13, %v7901_v12, %v1981_v50  ;;  %v1984_v3 = vmul.f32 %v6564_v48, %v1968_v13  ;;  %v7902_v55 = vld [vmem:[#allocation9_spill] sm:$0xff]  ;;  %v7904_v2 = vld [vmem:[#allocation8_spill] sm:$0xff]  ;;  %v7905_v12 = vld [vmem:[#allocation31_spill] sm:$0xff] }
 0x187   :  { %v1985_v41 = vmul.f32 %v6569_v53, %v1973_v33  ;;  %v1987_v1 = vmul.f32 %v6574_v36, %v1978_v57  ;;  %v1983_v22 = vsel %vm1950_vm12, %v7880_v32, %v1982_v56  ;;  %v1992_v52 = vsel %vm1954_vm0, %v7903_v49, %v7902_v55  ;;  %v7906_v13 = vld [vmem:[#allocation12_spill] sm:$0xff] }
 0x188   :  { %v1997_v50 = vsel %vm1954_vm0, %v7904_v2, %v7878_v51  ;;  %v2002_v33 = vsel %vm1954_vm0, %v7906_v13, %v7905_v12  ;;  %v1993_v56 = vsel %vm1953_vm15, %v3409_v16, %v1992_v52 }
 0x189   :  { %v1986_v57 = vadd.f32 %v1985_v41, %v1984_v3  ;;  %v1998_v32 = vsel %vm1953_vm15, %v7881_v20, %v1997_v50  ;;  %v2003_v49 = vsel %vm1953_vm15, %v7882_v61, %v2002_v33  ;;  %v1994_v2 = vsel %vm1952_vm14, %v7855_v45, %v1993_v56  ;;  %v7907_v61 = vld [vmem:[#allocation83_spill] sm:$0xff] }
 0x18a   :  { %v1999_v3 = vsel %vm1952_vm14, %v7856_v44, %v1998_v32  ;;  %v2004_v52 = vsel %vm1952_vm14, %v7883_v46, %v2003_v49  ;;  %v2007_v41 = vsel %vm1954_vm0, %v7622_v23, %v7621_v43  ;;  %v1995_v33 = vsel %vm1951_vm13, %v7832_v31, %v1994_v2  ;;  %v7908_v44 = vld [vmem:[#allocation56_spill] sm:$0xff]  ;;  %v7909_v46 = vld [vmem:[#allocation65_spill] sm:$0xff] }
 0x18b   :  { %v1988_v50 = vadd.f32 %v1987_v1, %v1986_v57  ;;  %v2000_v56 = vsel %vm1951_vm13, %v7907_v61, %v1999_v3  ;;  %v2005_v32 = vsel %vm1951_vm13, %v7884_v26, %v2004_v52  ;;  %v1996_v49 = vsel %vm1950_vm12, %v7908_v44, %v1995_v33 }
 0x18c   :  { %v2001_v1 = vsel %vm1950_vm12, %v7909_v46, %v2000_v56  ;;  %v2006_v2 = vsel %vm1950_vm12, %v5703_v47, %v2005_v32  ;;  %v2008_v57 = vsel %vm1953_vm15, %v7626_v38, %v2007_v41  ;;  %v2012_v26 = vmul.f32 %v6564_v48, %v1996_v49 }
 0x18d   :  { %v1989_v3 = vadd.f32 %v1988_v50, %v1983_v22  ;;  %v2009_v52 = vsel %vm1952_vm14, %v7630_v59, %v2008_v57  ;;  %v2013_v33 = vmul.f32 %v6569_v53, %v2001_v1  ;;  %v2015_v46 = vmul.f32 %v6574_v36, %v2006_v2 }
 0x18e   :  { %v2010_v56 = vsel %vm1951_vm13, %v7631_v10, %v2009_v52  ;;  %v2020_v41 = vsel %vm1954_vm0, %v3745_v63, %v3855_v27  ;;  %v2025_v22 = vsel %vm1954_vm0, %v7785_v7, %v7708_v15  ;;  %v2035_v52 = vsel %vm1954_vm0, %v7710_v19, %v3877_v9 }
 0x18f   :  { %2493 = vst [vmem:[%s7015_s4 + $0x120] sm:$0xff] %v1989_v3  ;;  %v2011_v50 = vsel %vm1950_vm12, %v5969_v30, %v2010_v56  ;;  %v2014_v32 = vadd.f32 %v2013_v33, %v2012_v26  ;;  %v2021_v49 = vsel %vm1953_vm15, %v7811_v62, %v2020_v41  ;;  %v2026_v1 = vsel %vm1953_vm15, %v7885_v25, %v2025_v22  ;;  %v7910_v3 = vld [vmem:[#allocation40_spill] sm:$0xff]  ;;  %v7911_v22 = vld [vmem:[#allocation35_spill] sm:$0xff] }
 0x190   :  { %v2022_v2 = vsel %vm1952_vm14, %v7786_v34, %v2021_v49  ;;  %v2027_v57 = vsel %vm1952_vm14, %v7886_v14, %v2026_v1  ;;  %v2030_v26 = vsel %vm1954_vm0, %v7910_v3, %v7734_v37 }
 0x191   :  { %v2016_v33 = vadd.f32 %v2015_v46, %v2014_v32  ;;  %v2023_v56 = vsel %vm1951_vm13, %v7618_v21, %v2022_v2  ;;  %v2028_v41 = vsel %vm1951_vm13, %v7888_v11, %v2027_v57  ;;  %v2031_v49 = vsel %vm1953_vm15, %v7911_v22, %v2030_v26  ;;  %v7912_v11 = vld [vmem:[#allocation11_spill] sm:$0xff] }
 0x192   :  { %v2024_v1 = vsel %vm1950_vm12, %v7887_v60, %v2023_v56  ;;  %v2029_v46 = vsel %vm1950_vm12, %v6014_v24, %v2028_v41  ;;  %v2032_v32 = vsel %vm1952_vm14, %v7738_v0, %v2031_v49  ;;  %v2036_v2 = vsel %vm1953_vm15, %v7862_v18, %v2035_v52  ;;  %v6760_v41 = vld [vmem:[%s7013_s3 + $0x248] sm:$0xff] }
 0x193   :  { %v2017_v57 = vadd.f32 %v2016_v33, %v2011_v50  ;;  %v2033_v26 = vsel %vm1951_vm13, %v7912_v11, %v2032_v32  ;;  %v2037_v56 = vsel %vm1952_vm14, %v3664_v5, %v2036_v2  ;;  %v2040_v60 = vmul.f32 %v6564_v48, %v2024_v1  ;;  %v7915_v32 = vld [vmem:[#allocation76_spill] sm:$0xff] }
 0x194   :  { %v2034_v52 = vsel %vm1950_vm12, %v6040_v40, %v2033_v26  ;;  %v2038_v50 = vsel %vm1951_vm13, %v3661_v4, %v2037_v56  ;;  %v2041_v33 = vmul.f32 %v6569_v53, %v2029_v46  ;;  %vm2051_vm1 = vcmp.lt.f32.partialorder %v6760_v41, 2.5  ;;  %v7913_v53 = vld [vmem:[#allocation64_spill] sm:$0xff] }
 0x195   :  { %2494 = vst [vmem:[%s7015_s4 + $0x128] sm:$0xff] %v2017_v57  ;;  %v2039_v48 = vsel %vm1950_vm12, %v6529_v35, %v2038_v50  ;;  %v2043_v49 = vmul.f32 %v6574_v36, %v2034_v52  ;;  %vm2052_vm2 = vcmp.lt.f32.partialorder %v6760_v41, 3.5  ;;  %vm2053_vm3 = vcmp.lt.f32.partialorder %v6760_v41, 4.5  ;;  %v7916_v2 = vld [vmem:[#allocation80_spill] sm:$0xff]  ;;  %v7917_v57 = vld [vmem:[#allocation85_spill] sm:$0xff]  ;;  %v7919_v50 = vld [vmem:[#allocation46_spill] sm:$0xff] }
 0x196   :  { %v2042_v1 = vadd.f32 %v2041_v33, %v2040_v60  ;;  %vm2054_vm4 = vcmp.lt.f32.partialorder %v6760_v41, 5.5  ;;  %vm2055_vm5 = vcmp.lt.f32.partialorder %v6760_v41, 6.5  ;;  %v7918_v26 = vld [vmem:[#allocation72_spill] sm:$0xff]  ;;  %v7920_v33 = vld [vmem:[#allocation57_spill] sm:$0xff] }
 0x197   :  { %v2065_v46 = vsel %vm2055_vm5, %v7913_v53, %v7791_v6  ;;  %v2070_v36 = vsel %vm2055_vm5, %v7915_v32, %v7914_v17  ;;  %v2075_v60 = vsel %vm2055_vm5, %v7916_v2, %v7864_v29  ;;  %v2080_v56 = vsel %vm2055_vm5, %v7918_v26, %v7917_v57  ;;  %v7921_v17 = vld [vmem:[#allocation61_spill] sm:$0xff]  ;;  %v6809_v29 = vld [vmem:[%s7013_s3 + $0x388] sm:$0xff] }
 0x198   :  { %v2044_v52 = vadd.f32 %v2043_v49, %v2042_v1  ;;  %v2066_v6 = vsel %vm2054_vm4, %v7919_v50, %v2065_v46  ;;  %v2071_v53 = vsel %vm2054_vm4, %v7920_v33, %v2070_v36  ;;  %v2076_v32 = vsel %vm2054_vm4, %v7921_v17, %v2075_v60  ;;  %v6814_v49 = vld [vmem:[%s7013_s3 + $0x390] sm:$0xff]  ;;  %v6819_v1 = vld [vmem:[%s7013_s3 + $0x398] sm:$0xff]  ;;  %v7922_v46 = vld [vmem:[#allocation18_spill] sm:$0xff] }
 0x199   :  { %v2067_v36 = vsel %vm2053_vm3, %v7922_v46, %v2066_v6  ;;  %v2072_v2 = vsel %vm2053_vm3, %v7896_v39, %v2071_v53  ;;  %v2077_v60 = vsel %vm2053_vm3, %v7873_v8, %v2076_v32  ;;  %v2081_v57 = vsel %vm2054_vm4, %v7699_v42, %v2080_v56  ;;  %v7923_v33 = vld [vmem:[#allocation67_spill] sm:$0xff]  ;;  %v7924_v53 = vld [vmem:[#allocation68_spill] sm:$0xff] }
 0x19a   :  { %v2045_v26 = vadd.f32 %v2044_v52, %v2039_v48  ;;  %v2068_v50 = vsel %vm2052_vm2, %v7725_v28, %v2067_v36  ;;  %v2073_v6 = vsel %vm2052_vm2, %v7897_v54, %v2072_v2  ;;  %v2078_v39 = vsel %vm2052_vm2, %v7898_v58, %v2077_v60  ;;  %v2539_v28 = vld [vmem:[%s7012_s0 + $0x10] sm:$0xff]  ;;  %v7925_v54 = vld [vmem:[#allocation45_spill] sm:$0xff]  ;;  %v7927_v36 = vld [vmem:[#allocation59_spill] sm:$0xff] }
 0x19b   :  { %v2069_v8 = vsel %vm2051_vm1, %v7923_v33, %v2068_v50  ;;  %v2074_v42 = vsel %vm2051_vm1, %v7924_v53, %v2073_v6  ;;  %v2079_v48 = vsel %vm2051_vm1, %v2539_v28, %v2078_v39  ;;  %v2082_v56 = vsel %vm2053_vm3, %v7925_v54, %v2081_v57  ;;  %v7926_v58 = vld [vmem:[#allocation25_spill] sm:$0xff]  ;;  %v7928_v60 = vld [vmem:[#allocation14_spill] sm:$0xff]  ;;  %v7933_v54 = vld [vmem:[#allocation4_spill] sm:$0xff] }
 0x19c   :  { %2495 = vst [vmem:[%s7015_s4 + $0x130] sm:$0xff] %v2045_v26  ;;  %v2083_v52 = vsel %vm2052_vm2, %v7926_v58, %v2082_v56  ;;  %v2085_v17 = vmul.f32 %v6809_v29, %v2069_v8  ;;  %v2086_v32 = vmul.f32 %v6814_v49, %v2074_v42  ;;  %v2088_v46 = vmul.f32 %v6819_v1, %v2079_v48  ;;  %v7929_v26 = vld [vmem:[#allocation8_spill] sm:$0xff]  ;;  %v7931_v42 = vld [vmem:[#allocation3_spill] sm:$0xff] }
 0x19d   :  { %v2084_v2 = vsel %vm2051_vm1, %v7927_v36, %v2083_v52  ;;  %v2093_v57 = vsel %vm2055_vm5, %v7928_v60, %v7902_v55  ;;  %v2098_v50 = vsel %vm2055_vm5, %v7929_v26, %v7878_v51  ;;  %v2103_v6 = vsel %vm2055_vm5, %v7906_v13, %v7905_v12  ;;  %v7930_v55 = vld [vmem:[#allocation5_spill] sm:$0xff]  ;;  %v7932_v13 = vld [vmem:[#allocation16_spill] sm:$0xff] }
 0x19e   :  { %v2087_v39 = vadd.f32 %v2086_v32, %v2085_v17  ;;  %v2094_v33 = vsel %vm2054_vm4, %v3409_v16, %v2093_v57  ;;  %v2099_v8 = vsel %vm2054_vm4, %v7881_v20, %v2098_v50  ;;  %v2104_v53 = vsel %vm2054_vm4, %v7930_v55, %v2103_v6  ;;  %v7934_v52 = vld [vmem:[#allocation65_spill] sm:$0xff]  ;;  %v7936_v57 = vld [vmem:[#allocation66_spill] sm:$0xff] }
 0x19f   :  { %v2095_v51 = vsel %vm2053_vm3, %v7855_v45, %v2094_v33  ;;  %v2100_v12 = vsel %vm2053_vm3, %v7931_v42, %v2099_v8  ;;  %v2105_v16 = vsel %vm2053_vm3, %v7932_v13, %v2104_v53  ;;  %v2108_v20 = vsel %vm2055_vm5, %v7622_v23, %v7621_v43 }
 0x1a0   :  { %v2089_v28 = vadd.f32 %v2088_v46, %v2087_v39  ;;  %v2096_v48 = vsel %vm2052_vm2, %v7832_v31, %v2095_v51  ;;  %v2101_v45 = vsel %vm2052_vm2, %v7907_v61, %v2100_v12  ;;  %v2106_v56 = vsel %vm2052_vm2, %v7933_v54, %v2105_v16 }
 0x1a1   :  { %v2097_v58 = vsel %vm2051_vm1, %v7908_v44, %v2096_v48  ;;  %v2102_v43 = vsel %vm2051_vm1, %v7934_v52, %v2101_v45  ;;  %v2107_v23 = vsel %vm2051_vm1, %v5703_v47, %v2106_v56  ;;  %v2109_v31 = vsel %vm2054_vm4, %v7626_v38, %v2108_v20 }
 0x1a2   :  { %v2090_v61 = vadd.f32 %v2089_v28, %v2084_v2  ;;  %v2110_v17 = vsel %vm2053_vm3, %v7630_v59, %v2109_v31  ;;  %v2113_v32 = vmul.f32 %v6809_v29, %v2097_v58  ;;  %v2114_v44 = vmul.f32 %v6814_v49, %v2102_v43 }
 0x1a3   :  { %v2111_v46 = vsel %vm2052_vm2, %v7631_v10, %v2110_v17  ;;  %v2116_v36 = vmul.f32 %v6819_v1, %v2107_v23  ;;  %v2121_v38 = vsel %vm2055_vm5, %v3745_v63, %v3855_v27  ;;  %v2126_v59 = vsel %vm2055_vm5, %v7785_v7, %v7708_v15 }
 0x1a4   :  { %2500 = vst [vmem:[%s7015_s4 + $0x138] sm:$0xff] %v2090_v61  ;;  %v2112_v10 = vsel %vm2051_vm1, %v5969_v30, %v2111_v46  ;;  %v2115_v47 = vadd.f32 %v2114_v44, %v2113_v32  ;;  %v2122_v2 = vsel %vm2054_vm4, %v7811_v62, %v2121_v38  ;;  %v2127_v27 = vsel %vm2054_vm4, %v7885_v25, %v2126_v59 }
 0x1a5   :  { %v2123_v63 = vsel %vm2053_vm3, %v7786_v34, %v2122_v2  ;;  %v2128_v15 = vsel %vm2053_vm3, %v7886_v14, %v2127_v27  ;;  %v2131_v7 = vsel %vm2055_vm5, %v7910_v3, %v7734_v37  ;;  %v2136_v62 = vsel %vm2055_vm5, %v7710_v19, %v3877_v9  ;;  %v7935_v34 = vld [vmem:[#allocation2_spill] sm:$0xff] }
 0x1a6   :  { %v2117_v30 = vadd.f32 %v2116_v36, %v2115_v47  ;;  %v2124_v25 = vsel %vm2052_vm2, %v7618_v21, %v2123_v63  ;;  %v2129_v60 = vsel %vm2052_vm2, %v7935_v34, %v2128_v15  ;;  %v2132_v14 = vsel %vm2054_vm4, %v7911_v22, %v2131_v7 }
 0x1a7   :  { %v2125_v37 = vsel %vm2051_vm1, %v7936_v57, %v2124_v25  ;;  %v2130_v9 = vsel %vm2051_vm1, %v6014_v24, %v2129_v60  ;;  %v2133_v21 = vsel %vm2053_vm3, %v7738_v0, %v2132_v14  ;;  %v2137_v19 = vsel %vm2054_vm4, %v7862_v18, %v2136_v62 }
 0x1a8   :  { %v2118_v3 = vadd.f32 %v2117_v30, %v2112_v10  ;;  %v2134_v22 = vsel %vm2052_vm2, %v7912_v11, %v2133_v21  ;;  %v2138_v26 = vsel %vm2053_vm3, %v3664_v5, %v2137_v19  ;;  %v2141_v50 = vmul.f32 %v6809_v29, %v2125_v37 }
 0x1a9   :  { %v2135_v24 = vsel %vm2051_vm1, %v6040_v40, %v2134_v22  ;;  %v2139_v0 = vsel %vm2052_vm2, %v3661_v4, %v2138_v26  ;;  %v2142_v18 = vmul.f32 %v6814_v49, %v2130_v9 }
 0x1aa   :  { %2501 = vst [vmem:[%s7015_s4 + $0x140] sm:$0xff] %v2118_v3  ;;  %v2144_v11 = vmul.f32 %v6819_v1, %v2135_v24  ;;  %v2140_v5 = vsel %vm2051_vm1, %v6529_v35, %v2139_v0 }
 0x1ab   :  { %v2143_v6 = vadd.f32 %v2142_v18, %v2141_v50 }
 0x1ad   :  { %v2145_v29 = vadd.f32 %v2144_v11, %v2143_v6 }
 0x1af   :  { %v2146_v39 = vadd.f32 %v2145_v29, %v2140_v5 }
 0x1b1   :  { %2502 = vst [vmem:[%s7015_s4 + $0x148] sm:$0xff] %v2146_v39 }

</bundles_post_ra>
